<compile_context>
chip_gen: v5e
topology: v5e:2x2
jax: 0.10.0
libtpu: 0.0.40
codegen_flags: <defaults>
</compile_context>

<pallas_src>
import functools

import jax
import jax.numpy as jnp
from jax.experimental import pallas as pl
from jax.experimental.pallas import tpu as pltpu

EPS = 1e-5          # torch GroupNorm default eps
LANES = 128         # TPU lane width
_MXU_MIN_CIN = 64   # below this the 1x1 conv stays on the VPU in f32


def _round_up(v, m):
    return (v + m - 1) // m * m


def _vmem_budget_bytes():
    """Per-generation scoped-VMEM budget: physical capacity minus compiler headroom."""
    cap = 64 * 1024 * 1024
    try:
        info = pltpu.get_tpu_info()
        cap = int(getattr(info, "vmem_capacity_bytes", cap))
    except Exception:
        pass
    # ~48 MiB on v7x (64 MiB physical), ~112 MiB on v5e/v6e (128 MiB physical).
    return max(32 * 1024 * 1024, min(cap - 16 * 1024 * 1024, cap * 7 // 8))


def _pick_row_tile(h, w, c_in, c_out, budget_bytes, n_batch):
    """Largest row tile whose pass-1/pass-2 working set fits the VMEM budget."""
    f32 = 4
    wpad = w + 2
    per_row = f32 * (2 * wpad * c_in           # x block (double buffered)
                     + 2 * w * c_in            # dw block (pass-1 out / pass-2 in)
                     + 2 * w * c_out           # pass-2 out block
                     + (wpad + 2 * w) * c_in   # xt + shifted slices
                     + 2 * w * c_in            # acc (+ mask)
                     + 2 * w * max(c_in, c_out))   # pass-2 act / matmul temporaries
    fixed = 2 * f32 * (2 * wpad * c_in + 9 * c_in + 8 * LANES) + 4 * c_in * c_out
    th = int((budget_bytes // 2 - fixed) // max(per_row, 1))
    th = max(1, min(th, h))
    if n_batch == 1 and h >= 16:
        # Keep >= 2 row tiles so both v7x TensorCores have work at batch 1.  On 1-TC
        # chips this only adds one ~0.35us pipeline step.
        th = min(th, (h + 1) // 2)
    if th >= 8:
        th = (th // 8) * 8
    return max(1, min(th, h))


# ---------------------------------------------------------------------------
# Kernels
# ---------------------------------------------------------------------------

def _dw_stats_kernel(x_ref, top_ref, bot_ref, wd_ref, dw_ref, stats_ref,
                     *, h_valid, h_pad, true_c):
    """Pass 1: depthwise 3x3 for one row tile + per-tile GroupNorm partials.

    x_ref    : (1, TH, W+2, C)  row tile, one zero column of padding each side
    top_ref  : (1, 1, W+2, C)   row above the tile (clamped; zeroed at the image top)
    bot_ref  : (1, 1, W+2, C)   row below the tile (clamped; zeroed at the image bottom)
    wd_ref   : (3, 3, C)        per-channel 3x3 taps
    dw_ref   : (1, TH, W, C)    depthwise output (consumed by pass 2)
    stats_ref: (1, 1, 8, 128)   lanes [0,64) = sum, lanes [64,128) = sum((x - tile_mean)^2)
    """
    _, th, _, c = x_ref.shape
    w = dw_ref.shape[2]
    t = pl.program_id(1)
    n_t = pl.num_programs(1)

    # 0/1 scalar multipliers implement the zero padding at the image top/bottom.
    m_top = (t > 0).astype(jnp.float32)
    m_bot = (t < n_t - 1).astype(jnp.float32)
    xt = jnp.concatenate([top_ref[0].astype(jnp.float32) * m_top,
                          x_ref[0].astype(jnp.float32),
                          bot_ref[0].astype(jnp.float32) * m_bot], axis=0)  # (TH+2, W+2, C)

    # kx taps are static slices of the zero-column-padded width (no shifted-view
    # concatenates; any sublane realignment is done off the VPU/store path).
    xs = (xt[:, 0:w, :], xt[:, 1:w + 1, :], xt[:, 2:w + 2, :])

    wd = wd_ref[...].astype(jnp.float32)                     # (3, 3, C)
    acc = jnp.zeros((th, w, c), jnp.float32)
    for ky in range(3):                                      # ky shifts = aligned row slices
        for kx in range(3):
            acc = acc + wd[ky, kx][None, None, :] * xs[kx][ky:ky + th]

    dw_ref[...] = acc.reshape(1, th, w, c).astype(dw_ref.dtype)

    # GroupNorm partials; pad rows / pad channel lanes are masked out (static branch:
    # zero cost when H divides the tile and C is unpadded, as in the test below).
    need_row_mask = h_pad != h_valid
    need_chan_mask = true_c != c
    if need_row_mask or need_chan_mask:
        maskf = jnp.ones((th, w, c), jnp.float32)
        if need_row_mask:
            row = jax.lax.broadcasted_iota(jnp.int32, (th, w, c), 0) + t * th
            maskf = maskf * (row < h_valid).astype(jnp.float32)
        if need_chan_mask:
            ch = jax.lax.broadcasted_iota(jnp.int32, (th, w, c), 2)
            maskf = maskf * (ch < true_c).astype(jnp.float32)
        if need_row_mask:
            valid_rows = jnp.minimum(h_valid - t * th, th).astype(jnp.float32)
        else:
            valid_rows = float(th)
        n_i = valid_rows * float(w * true_c)
        s = jnp.sum(acc * maskf)
        d = (acc - s / n_i) * maskf
    else:
        n_i = float(th * w * true_c)
        s = jnp.sum(acc)
        d = acc - s / n_i
    m2 = jnp.sum(d * d)

    lane = jax.lax.broadcasted_iota(jnp.int32, stats_ref.shape, 3)
    stats_ref[...] = jnp.where(lane < 64, s, m2)


def _gn_act_pconv_kernel(dw_ref, ss_ref, wp_ref, out_ref):
    """Pass 2: folded GroupNorm scale/shift -> tanhexp -> pointwise 1x1 conv.

    dw_ref : (1, TH, W, Cin)  depthwise output from pass 1
    ss_ref : (1, 2, Cin)      row 0 = gamma/std, row 1 = beta - mean*gamma/std
    wp_ref : (Cin, Cout)      1x1 weights (bf16 for the MXU path, f32 for the VPU path)
    out_ref: (1, TH, W, Cout)
    """
    _, th, w, cin = dw_ref.shape
    cout = out_ref.shape[3]

    x = dw_ref[0].astype(jnp.float32)                        # (TH, W, Cin)
    ss = ss_ref[0]                                           # (2, Cin)
    normed = x * ss[0][None, None, :] + ss[1][None, None, :]
    act = normed * jnp.tanh(jnp.exp(normed))                 # tanhexp (exp/tanh -> EUP)

    if cin >= _MXU_MIN_CIN:
        # Large-C layers: 1x1 conv as an MXU matmul, bf16 operands, f32 accumulation.
        out = jnp.dot(act.reshape(th * w, cin).astype(wp_ref.dtype), wp_ref[...],
                      preferred_element_type=jnp.float32)
        out = out.reshape(th, w, cout)
    else:
        # Tiny-C layers (no lane padding): f32 broadcast-FMA on the VPU.
        wpf = wp_ref[...].astype(jnp.float32)                # (Cin, Cout)
        out = jnp.zeros((th, w, cout), jnp.float32)
        for ic in range(cin):
            out = out + act[:, :, ic:ic + 1] * wpf[ic][None, None, :]
    out_ref[...] = out.reshape(1, th, w, cout).astype(out_ref.dtype)


# ---------------------------------------------------------------------------
# Wrappers
# ---------------------------------------------------------------------------

def _separable_conv_nhwc(x, wd, gamma, beta, wp, *, true_cin):
    """One SeparableConv on NHWC input -> NHWC f32 output (same H, W; Cout = wp.shape[1])."""
    n, h, w, c = x.shape
    c_out = wp.shape[1]
    budget = _vmem_budget_bytes()
    th = _pick_row_tile(h, w, c, c_out, budget, n)
    n_t = -(-h // th)
    hp = n_t * th
    wpad = w + 2

    # Zero pad: one column each side (3x3 zero padding in W, shift-free kx taps) and
    # H up to a row-tile multiple (pad rows are masked out of the GN statistics).
    xp = jnp.pad(x, ((0, 0), (0, hp - h), (1, 1), (0, 0)))

    grid = (n, n_t)
    x_spec = pl.BlockSpec((1, th, wpad, c), lambda i, t: (i, t, 0, 0))
    top_spec = pl.BlockSpec((1, 1, wpad, c),
                            lambda i, t: (i, jnp.maximum(t * th - 1, 0), 0, 0))
    bot_spec = pl.BlockSpec((1, 1, wpad, c),
                            lambda i, t: (i, jnp.minimum((t + 1) * th, hp - 1), 0, 0))
    wd_spec = pl.BlockSpec((3, 3, c), lambda i, t: (0, 0, 0))
    dw_spec = pl.BlockSpec((1, th, w, c), lambda i, t: (i, t, 0, 0))
    st_spec = pl.BlockSpec((1, 1, 8, LANES), lambda i, t: (i, t, 0, 0))
    cparams = pltpu.CompilerParams(dimension_semantics=("parallel", "parallel"),
                                   vmem_limit_bytes=int(budget))

    # ---- pass 1: depthwise 3x3 (written once to HBM) + per-tile GN partials ----
    kern1 = functools.partial(_dw_stats_kernel, h_valid=h, h_pad=hp, true_c=true_cin)
    dw, stats = pl.pallas_call(
        kern1,
        out_shape=(jax.ShapeDtypeStruct((n, hp, w, c), jnp.float32),
                   jax.ShapeDtypeStruct((n, n_t, 8, LANES), jnp.float32)),
        grid=grid,
        in_specs=[x_spec, top_spec, bot_spec, wd_spec],
        out_specs=(dw_spec, st_spec),
        compiler_params=cparams,
    )(xp, xp, xp, wd)

    # ---- tiny XLA glue: Chan-style combination of per-tile (sum, M2) partials ----
    row_counts = jnp.minimum(h - jnp.arange(n_t) * th, th).astype(jnp.float32)
    counts = row_counts * float(w * true_cin)                 # (n_t,) true element counts
    total = float(h * w * true_cin)
    s_i = stats[:, :, 0, 0]                                   # (N, n_t)
    m2_i = stats[:, :, 0, 64]                                  # (N, n_t)
    mean_i = s_i / counts[None, :]
    mean = jnp.sum(s_i, axis=1) / total                       # (N,)
    m2 = jnp.sum(m2_i, axis=1) + jnp.sum(
        counts[None, :] * (mean_i - mean[:, None]) ** 2, axis=1)
    var = jnp.maximum(m2 / total, 0.0)
    inv_std = jax.lax.rsqrt(var + EPS)
    scale = gamma[None, :] * inv_std[:, None]                 # (N, C)
    shift = beta[None, :] - mean[:, None] * scale
    ss = jnp.stack([scale, shift], axis=1)                    # (N, 2, C)

    # ---- pass 2: normalize + tanhexp + pointwise 1x1 conv ----
    use_mxu = c >= _MXU_MIN_CIN
    wp_k = wp.astype(jnp.bfloat16) if use_mxu else wp.astype(jnp.float32)
    ss_spec = pl.BlockSpec((1, 2, c), lambda i, t: (i, 0, 0))
    wp_spec = pl.BlockSpec((c, c_out), lambda i, t: (0, 0))
    out_spec = pl.BlockSpec((1, th, w, c_out), lambda i, t: (i, t, 0, 0))

    out = pl.pallas_call(
        _gn_act_pconv_kernel,
        out_shape=jax.ShapeDtypeStruct((n, hp, w, c_out), jnp.float32),
        grid=grid,
        in_specs=[dw_spec, ss_spec, wp_spec],
        out_specs=out_spec,
        compiler_params=cparams,
    )(dw, ss, wp_k)
    return out[:, :h]                                         # drop H pad rows


def additional_conv_pallas(x_nchw, params):
    """AdditionalConv forward: SeparableConv(in->out) then SeparableConv(out->out).

    x_nchw: (N, Cin, H, W) f32
    params: (wd1 (3,3,Cin), gamma1 (Cin,), beta1 (Cin,), wp1 (Cin,Cmid),
             wd2 (3,3,Cmid), gamma2 (Cmid,), beta2 (Cmid,), wp2 (Cmid,Cout))
    returns: (N, Cout, H, W) f32
    """
    wd1, g1, b1, wp1, wd2, g2, b2, wp2 = params
    n, cin, h, w = x_nchw.shape
    cmid = wp1.shape[1]
    cout = wp2.shape[1]

    def padded_c(c):
        # Lane padding only pays off for large channel counts (review item: padding
        # tiny C to 128 inflates HBM traffic and depthwise VPU work ~32x).
        return _round_up(c, LANES) if c > LANES else c

    cp0, cp1, cp2 = padded_c(cin), padded_c(cmid), padded_c(cout)

    # NCHW -> NHWC once for the whole block.  Zero-padded weights keep any padded
    # channel lanes exactly zero end-to-end.
    x = jnp.transpose(x_nchw, (0, 2, 3, 1)).astype(jnp.float32)
    x = jnp.pad(x, ((0, 0), (0, 0), (0, 0), (0, cp0 - cin)))

    wd1_p = jnp.pad(wd1, ((0, 0), (0, 0), (0, cp0 - cin)))
    g1_p = jnp.pad(g1, (0, cp0 - cin))
    b1_p = jnp.pad(b1, (0, cp0 - cin))
    wp1_p = jnp.pad(wp1, ((0, cp0 - cin), (0, cp1 - cmid)))

    wd2_p = jnp.pad(wd2, ((0, 0), (0, 0), (0, cp1 - cmid)))
    g2_p = jnp.pad(g2, (0, cp1 - cmid))
    b2_p = jnp.pad(b2, (0, cp1 - cmid))
    wp2_p = jnp.pad(wp2, ((0, cp1 - cmid), (0, cp2 - cout)))

    h1 = _separable_conv_nhwc(x, wd1_p, g1_p, b1_p, wp1_p, true_cin=cin)
    h2 = _separable_conv_nhwc(h1, wd2_p, g2_p, b2_p, wp2_p, true_cin=cmid)

    # Drop channel padding, NHWC -> NCHW to match the PyTorch output convention.
    return jnp.transpose(h2[..., :cout], (0, 3, 1, 2))


# ---------------------------------------------------------------------------
# Pure-JAX reference (mirrors the PyTorch module, f32 everywhere)
# ---------------------------------------------------------------------------

def _separable_conv_reference(x_nchw, wd, gamma, beta, wp):
    cin = x_nchw.shape[1]
    w_dw = jnp.transpose(wd, (2, 0, 1))[:, None, :, :]        # (Cin, 1, 3, 3)
    hh = jax.lax.conv_general_dilated(
        x_nchw, w_dw, (1, 1), ((1, 1), (1, 1)),
        feature_group_count=cin,
        dimension_numbers=("NCHW", "OIHW", "NCHW"),
        precision=jax.lax.Precision.HIGHEST)
    mean = jnp.mean(hh, axis=(1, 2, 3), keepdims=True)
    var = jnp.mean((hh - mean) ** 2, axis=(1, 2, 3), keepdims=True)
    hn = (hh - mean) * jax.lax.rsqrt(var + EPS)
    hn = hn * gamma.reshape(1, -1, 1, 1) + beta.reshape(1, -1, 1, 1)
    a = hn * jnp.tanh(jnp.exp(hn))
    w_pw = jnp.transpose(wp, (1, 0))[:, :, None, None]         # (Cout, Cin, 1, 1)
    return jax.lax.conv_general_dilated(
        a, w_pw, (1, 1), "VALID",
        dimension_numbers=("NCHW", "OIHW", "NCHW"),
        precision=jax.lax.Precision.HIGHEST)


def additional_conv_reference(x_nchw, params):
    wd1, g1, b1, wp1, wd2, g2, b2, wp2 = params
    hh = _separable_conv_reference(x_nchw, wd1, g1, b1, wp1)
    return _separable_conv_reference(hh, wd2, g2, b2, wp2)


# ---------------------------------------------------------------------------

if __name__ == "__main__":
    N, IN_CH, OUT_CH, H, W = 2, 4, 8, 16, 16

    key = jax.random.PRNGKey(0)
    ks = jax.random.split(key, 9)

    x = jax.random.normal(ks[0], (N, IN_CH, H, W), dtype=jnp.float32)
    # depthwise weights stored (3, 3, C)  == torch (C, 1, 3, 3) transposed
    wd1 = 0.2 * jax.random.normal(ks[1], (3, 3, IN_CH), dtype=jnp.float32)
    wp1 = 0.3 * jax.random.normal(ks[2], (IN_CH, OUT_CH), dtype=jnp.float32)
    g1 = 1.0 + 0.1 * jax.random.normal(ks[3], (IN_CH,), dtype=jnp.float32)
    b1 = 0.1 * jax.random.normal(ks[4], (IN_CH,), dtype=jnp.float32)

    wd2 = 0.2 * jax.random.normal(ks[5], (3, 3, OUT_CH), dtype=jnp.float32)
    wp2 = 0.3 * jax.random.normal(ks[6], (OUT_CH, OUT_CH), dtype=jnp.float32)
    g2 = 1.0 + 0.1 * jax.random.normal(ks[7], (OUT_CH,), dtype=jnp.float32)
    b2 = 0.1 * jax.random.normal(ks[8], (OUT_CH,), dtype=jnp.float32)

    params = (wd1, g1, b1, wp1, wd2, g2, b2, wp2)

    out = jax.jit(additional_conv_pallas)(x, params)
    out = jax.block_until_ready(out)

    ref = additional_conv_reference(x, params)
    assert out.shape == (N, OUT_CH, H, W)
    max_err = float(jnp.max(jnp.abs(out - ref)))
    # Tiny-channel layers run fully in f32 (VPU pointwise path), so the agreement with
    # the f32 reference is tight; bf16 enters only for >=64-channel MXU layers.
    assert jnp.allclose(out, ref, rtol=1e-2, atol=1e-2), f"max abs err {max_err}"

    print("KERNEL_OK")
</pallas_src>

<mosaic_0001>
module attributes {stable_mosaic.version = 11 : i64} {
  func.func @_dw_stats_kernel(%arg0: i32, %arg1: i32, %arg2: memref<1x16x18x4xf32, #tpu.memory_space<vmem>>, %arg3: memref<1x1x18x4xf32, #tpu.memory_space<vmem>>, %arg4: memref<1x1x18x4xf32, #tpu.memory_space<vmem>>, %arg5: memref<3x3x4xf32, #tpu.memory_space<vmem>>, %arg6: memref<1x16x16x4xf32, #tpu.memory_space<vmem>>, %arg7: memref<1x1x8x128xf32, #tpu.memory_space<vmem>>) attributes {dimension_semantics = [#tpu.dimension_semantics<parallel>, #tpu.dimension_semantics<parallel>], iteration_bounds = array<i64: 2, 1>, scalar_prefetch = 0 : i64, scratch_operands = 0 : i64, tpu.core_type = #tpu.core_type<tc>, window_params = [{transform_indices = @transform_0, window_bounds = array<i64: 1, 16, 18, 4>}, {transform_indices = @transform_1, window_bounds = array<i64: 1, 1, 18, 4>}, {transform_indices = @transform_2, window_bounds = array<i64: 1, 1, 18, 4>}, {pipeline_mode = #tpu.pipeline_mode<synchronous>, transform_indices = @transform_3, window_bounds = array<i64: 3, 3, 4>}, {transform_indices = @transform_4, window_bounds = array<i64: 1, 16, 16, 4>}, {transform_indices = @transform_5, window_bounds = array<i64: 1, 1, 8, 128>}]} {
    %c0_i32 = arith.constant 0 : i32
    %0 = arith.cmpi sgt, %arg1, %c0_i32 : i32
    %1 = arith.extui %0 : i1 to i32
    %2 = arith.sitofp %1 : i32 to f32
    %c0_i32_0 = arith.constant 0 : i32
    %3 = arith.cmpi slt, %arg1, %c0_i32_0 : i32
    %4 = arith.extui %3 : i1 to i32
    %5 = arith.sitofp %4 : i32 to f32
    %c0 = arith.constant 0 : index
    %c0_1 = arith.constant 0 : index
    %c0_2 = arith.constant 0 : index
    %c0_3 = arith.constant 0 : index
    %6 = vector.load %arg3[%c0, %c0_1, %c0_2, %c0_3] : memref<1x1x18x4xf32, #tpu.memory_space<vmem>>, vector<1x1x18x4xf32>
    %7 = vector.shape_cast %6 : vector<1x1x18x4xf32> to vector<1x18x4xf32>
    %8 = vector.broadcast %2 : f32 to vector<1x18x4xf32>
    %9 = arith.mulf %7, %8 : vector<1x18x4xf32>
    %c0_4 = arith.constant 0 : index
    %c0_5 = arith.constant 0 : index
    %c0_6 = arith.constant 0 : index
    %c0_7 = arith.constant 0 : index
    %10 = vector.load %arg2[%c0_4, %c0_5, %c0_6, %c0_7] : memref<1x16x18x4xf32, #tpu.memory_space<vmem>>, vector<1x16x18x4xf32>
    %11 = vector.shape_cast %10 : vector<1x16x18x4xf32> to vector<16x18x4xf32>
    %c0_8 = arith.constant 0 : index
    %c0_9 = arith.constant 0 : index
    %c0_10 = arith.constant 0 : index
    %c0_11 = arith.constant 0 : index
    %12 = vector.load %arg4[%c0_8, %c0_9, %c0_10, %c0_11] : memref<1x1x18x4xf32, #tpu.memory_space<vmem>>, vector<1x1x18x4xf32>
    %13 = vector.shape_cast %12 : vector<1x1x18x4xf32> to vector<1x18x4xf32>
    %14 = vector.broadcast %5 : f32 to vector<1x18x4xf32>
    %15 = arith.mulf %13, %14 : vector<1x18x4xf32>
    %16 = tpu.concatenate %9, %11, %15 in 0 : vector<1x18x4xf32>, vector<16x18x4xf32>, vector<1x18x4xf32> -> vector<18x18x4xf32>
    %17 = vector.extract_strided_slice %16 {offsets = [0, 0, 0], sizes = [18, 16, 4], strides = [1, 1, 1]} : vector<18x18x4xf32> to vector<18x16x4xf32>
    %18 = vector.extract_strided_slice %16 {offsets = [0, 1, 0], sizes = [18, 16, 4], strides = [1, 1, 1]} : vector<18x18x4xf32> to vector<18x16x4xf32>
    %19 = vector.extract_strided_slice %16 {offsets = [0, 2, 0], sizes = [18, 16, 4], strides = [1, 1, 1]} : vector<18x18x4xf32> to vector<18x16x4xf32>
    %c0_12 = arith.constant 0 : index
    %c0_13 = arith.constant 0 : index
    %c0_14 = arith.constant 0 : index
    %20 = vector.load %arg5[%c0_12, %c0_13, %c0_14] : memref<3x3x4xf32, #tpu.memory_space<vmem>>, vector<3x3x4xf32>
    %cst = arith.constant 0.000000e+00 : f32
    %21 = vector.broadcast %cst : f32 to vector<16x16x4xf32>
    %22 = vector.extract_strided_slice %20 {offsets = [0, 0, 0], sizes = [1, 1, 4], strides = [1, 1, 1]} : vector<3x3x4xf32> to vector<1x1x4xf32>
    %23 = vector.shape_cast %22 : vector<1x1x4xf32> to vector<4xf32>
    %24 = vector.shape_cast %23 : vector<4xf32> to vector<1x1x4xf32>
    %25 = vector.extract_strided_slice %17 {offsets = [0, 0, 0], sizes = [16, 16, 4], strides = [1, 1, 1]} : vector<18x16x4xf32> to vector<16x16x4xf32>
    %26 = vector.broadcast %24 : vector<1x1x4xf32> to vector<16x16x4xf32>
    %27 = arith.mulf %26, %25 : vector<16x16x4xf32>
    %28 = arith.addf %21, %27 : vector<16x16x4xf32>
    %29 = vector.extract_strided_slice %20 {offsets = [0, 1, 0], sizes = [1, 1, 4], strides = [1, 1, 1]} : vector<3x3x4xf32> to vector<1x1x4xf32>
    %30 = vector.shape_cast %29 : vector<1x1x4xf32> to vector<4xf32>
    %31 = vector.shape_cast %30 : vector<4xf32> to vector<1x1x4xf32>
    %32 = vector.extract_strided_slice %18 {offsets = [0, 0, 0], sizes = [16, 16, 4], strides = [1, 1, 1]} : vector<18x16x4xf32> to vector<16x16x4xf32>
    %33 = vector.broadcast %31 : vector<1x1x4xf32> to vector<16x16x4xf32>
    %34 = arith.mulf %33, %32 : vector<16x16x4xf32>
    %35 = arith.addf %28, %34 : vector<16x16x4xf32>
    %36 = vector.extract_strided_slice %20 {offsets = [0, 2, 0], sizes = [1, 1, 4], strides = [1, 1, 1]} : vector<3x3x4xf32> to vector<1x1x4xf32>
    %37 = vector.shape_cast %36 : vector<1x1x4xf32> to vector<4xf32>
    %38 = vector.shape_cast %37 : vector<4xf32> to vector<1x1x4xf32>
    %39 = vector.extract_strided_slice %19 {offsets = [0, 0, 0], sizes = [16, 16, 4], strides = [1, 1, 1]} : vector<18x16x4xf32> to vector<16x16x4xf32>
    %40 = vector.broadcast %38 : vector<1x1x4xf32> to vector<16x16x4xf32>
    %41 = arith.mulf %40, %39 : vector<16x16x4xf32>
    %42 = arith.addf %35, %41 : vector<16x16x4xf32>
    %43 = vector.extract_strided_slice %20 {offsets = [1, 0, 0], sizes = [1, 1, 4], strides = [1, 1, 1]} : vector<3x3x4xf32> to vector<1x1x4xf32>
    %44 = vector.shape_cast %43 : vector<1x1x4xf32> to vector<4xf32>
    %45 = vector.shape_cast %44 : vector<4xf32> to vector<1x1x4xf32>
    %46 = vector.extract_strided_slice %17 {offsets = [1, 0, 0], sizes = [16, 16, 4], strides = [1, 1, 1]} : vector<18x16x4xf32> to vector<16x16x4xf32>
    %47 = vector.broadcast %45 : vector<1x1x4xf32> to vector<16x16x4xf32>
    %48 = arith.mulf %47, %46 : vector<16x16x4xf32>
    %49 = arith.addf %42, %48 : vector<16x16x4xf32>
    %50 = vector.extract_strided_slice %20 {offsets = [1, 1, 0], sizes = [1, 1, 4], strides = [1, 1, 1]} : vector<3x3x4xf32> to vector<1x1x4xf32>
    %51 = vector.shape_cast %50 : vector<1x1x4xf32> to vector<4xf32>
    %52 = vector.shape_cast %51 : vector<4xf32> to vector<1x1x4xf32>
    %53 = vector.extract_strided_slice %18 {offsets = [1, 0, 0], sizes = [16, 16, 4], strides = [1, 1, 1]} : vector<18x16x4xf32> to vector<16x16x4xf32>
    %54 = vector.broadcast %52 : vector<1x1x4xf32> to vector<16x16x4xf32>
    %55 = arith.mulf %54, %53 : vector<16x16x4xf32>
    %56 = arith.addf %49, %55 : vector<16x16x4xf32>
    %57 = vector.extract_strided_slice %20 {offsets = [1, 2, 0], sizes = [1, 1, 4], strides = [1, 1, 1]} : vector<3x3x4xf32> to vector<1x1x4xf32>
    %58 = vector.shape_cast %57 : vector<1x1x4xf32> to vector<4xf32>
    %59 = vector.shape_cast %58 : vector<4xf32> to vector<1x1x4xf32>
    %60 = vector.extract_strided_slice %19 {offsets = [1, 0, 0], sizes = [16, 16, 4], strides = [1, 1, 1]} : vector<18x16x4xf32> to vector<16x16x4xf32>
    %61 = vector.broadcast %59 : vector<1x1x4xf32> to vector<16x16x4xf32>
    %62 = arith.mulf %61, %60 : vector<16x16x4xf32>
    %63 = arith.addf %56, %62 : vector<16x16x4xf32>
    %64 = vector.extract_strided_slice %20 {offsets = [2, 0, 0], sizes = [1, 1, 4], strides = [1, 1, 1]} : vector<3x3x4xf32> to vector<1x1x4xf32>
    %65 = vector.shape_cast %64 : vector<1x1x4xf32> to vector<4xf32>
    %66 = vector.shape_cast %65 : vector<4xf32> to vector<1x1x4xf32>
    %67 = vector.extract_strided_slice %17 {offsets = [2, 0, 0], sizes = [16, 16, 4], strides = [1, 1, 1]} : vector<18x16x4xf32> to vector<16x16x4xf32>
    %68 = vector.broadcast %66 : vector<1x1x4xf32> to vector<16x16x4xf32>
    %69 = arith.mulf %68, %67 : vector<16x16x4xf32>
    %70 = arith.addf %63, %69 : vector<16x16x4xf32>
    %71 = vector.extract_strided_slice %20 {offsets = [2, 1, 0], sizes = [1, 1, 4], strides = [1, 1, 1]} : vector<3x3x4xf32> to vector<1x1x4xf32>
    %72 = vector.shape_cast %71 : vector<1x1x4xf32> to vector<4xf32>
    %73 = vector.shape_cast %72 : vector<4xf32> to vector<1x1x4xf32>
    %74 = vector.extract_strided_slice %18 {offsets = [2, 0, 0], sizes = [16, 16, 4], strides = [1, 1, 1]} : vector<18x16x4xf32> to vector<16x16x4xf32>
    %75 = vector.broadcast %73 : vector<1x1x4xf32> to vector<16x16x4xf32>
    %76 = arith.mulf %75, %74 : vector<16x16x4xf32>
    %77 = arith.addf %70, %76 : vector<16x16x4xf32>
    %78 = vector.extract_strided_slice %20 {offsets = [2, 2, 0], sizes = [1, 1, 4], strides = [1, 1, 1]} : vector<3x3x4xf32> to vector<1x1x4xf32>
    %79 = vector.shape_cast %78 : vector<1x1x4xf32> to vector<4xf32>
    %80 = vector.shape_cast %79 : vector<4xf32> to vector<1x1x4xf32>
    %81 = vector.extract_strided_slice %19 {offsets = [2, 0, 0], sizes = [16, 16, 4], strides = [1, 1, 1]} : vector<18x16x4xf32> to vector<16x16x4xf32>
    %82 = vector.broadcast %80 : vector<1x1x4xf32> to vector<16x16x4xf32>
    %83 = arith.mulf %82, %81 : vector<16x16x4xf32>
    %84 = arith.addf %77, %83 : vector<16x16x4xf32>
    %85 = vector.shape_cast %84 : vector<16x16x4xf32> to vector<1x16x16x4xf32>
    %c0_15 = arith.constant 0 : index
    %c0_16 = arith.constant 0 : index
    %c0_17 = arith.constant 0 : index
    %c0_18 = arith.constant 0 : index
    %86 = vector.load %arg6[%c0_15, %c0_16, %c0_17, %c0_18] : memref<1x16x16x4xf32, #tpu.memory_space<vmem>>, vector<1x16x16x4xf32>
    tpu.vector_store %arg6[%c0_15, %c0_16, %c0_17, %c0_18], %85 {strides = array<i32>} : memref<1x16x16x4xf32, #tpu.memory_space<vmem>>, vector<1x16x16x4xf32>,
    %87 = vector.shape_cast %84 : vector<16x16x4xf32> to vector<1x16x16x4xf32>
    %cst_19 = arith.constant dense<0.000000e+00> : vector<1xf32>
    %88 = vector.multi_reduction <add>, %87, %cst_19 [1, 2, 3] : vector<1x16x16x4xf32> to vector<1xf32>
    %89 = vector.shape_cast %88 : vector<1xf32> to vector<1x1x1x1xf32>
    %90 = vector.extract %89[0, 0, 0, 0] : f32 from vector<1x1x1x1xf32>
    %cst_20 = arith.constant 1.024000e+03 : f32
    %91 = arith.divf %90, %cst_20 : f32
    %92 = vector.broadcast %91 : f32 to vector<16x16x4xf32>
    %93 = arith.subf %84, %92 : vector<16x16x4xf32>
    %94 = arith.mulf %93, %93 : vector<16x16x4xf32>
    %95 = vector.shape_cast %94 : vector<16x16x4xf32> to vector<1x16x16x4xf32>
    %cst_21 = arith.constant dense<0.000000e+00> : vector<1xf32>
    %96 = vector.multi_reduction <add>, %95, %cst_21 [1, 2, 3] : vector<1x16x16x4xf32> to vector<1xf32>
    %97 = vector.shape_cast %96 : vector<1xf32> to vector<1x1x1x1xf32>
    %98 = vector.extract %97[0, 0, 0, 0] : f32 from vector<1x1x1x1xf32>
    %99 = tpu.iota {dimensions = array<i32: 3>} : vector<1x1x8x128xi32>
    %c64_i32 = arith.constant 64 : i32
    %100 = vector.broadcast %c64_i32 : i32 to vector<1x1x8x128xi32>
    %101 = arith.cmpi slt, %99, %100 : vector<1x1x8x128xi32>
    %102 = vector.broadcast %90 : f32 to vector<1x1x8x128xf32>
    %103 = vector.broadcast %98 : f32 to vector<1x1x8x128xf32>
    %104 = arith.select %101, %102, %103 : vector<1x1x8x128xi1>, vector<1x1x8x128xf32>
    %c0_22 = arith.constant 0 : index
    %c0_23 = arith.constant 0 : index
    %c0_24 = arith.constant 0 : index
    %c0_25 = arith.constant 0 : index
    %105 = vector.load %arg7[%c0_22, %c0_23, %c0_24, %c0_25] : memref<1x1x8x128xf32, #tpu.memory_space<vmem>>, vector<1x1x8x128xf32>
    tpu.vector_store %arg7[%c0_22, %c0_23, %c0_24, %c0_25], %104 {strides = array<i32>} : memref<1x1x8x128xf32, #tpu.memory_space<vmem>>, vector<1x1x8x128xf32>,
    return
  }
  func.func @transform_0(%arg0: i32, %arg1: i32) -> (i32, i32, i32, i32) {
    %c0_i32 = arith.constant 0 : i32
    %c0_i32_0 = arith.constant 0 : i32
    %c0_i32_1 = arith.constant 0 : i32
    return %arg0, %arg1, %c0_i32, %c0_i32_0 : i32, i32, i32, i32
  }
  func.func @transform_1(%arg0: i32, %arg1: i32) -> (i32, i32, i32, i32) {
    %c16_i32 = arith.constant 16 : i32
    %0 = arith.muli %arg1, %c16_i32 : i32
    %c1_i32 = arith.constant 1 : i32
    %1 = arith.subi %0, %c1_i32 : i32
    %c0_i32 = arith.constant 0 : i32
    %2 = arith.maxsi %1, %c0_i32 : i32
    %c0_i32_0 = arith.constant 0 : i32
    %c0_i32_1 = arith.constant 0 : i32
    %c0_i32_2 = arith.constant 0 : i32
    return %arg0, %2, %c0_i32_0, %c0_i32_1 : i32, i32, i32, i32
  }
  func.func @transform_2(%arg0: i32, %arg1: i32) -> (i32, i32, i32, i32) {
    %c1_i32 = arith.constant 1 : i32
    %0 = arith.addi %arg1, %c1_i32 : i32
    %c16_i32 = arith.constant 16 : i32
    %1 = arith.muli %0, %c16_i32 : i32
    %c15_i32 = arith.constant 15 : i32
    %2 = arith.minsi %1, %c15_i32 : i32
    %c0_i32 = arith.constant 0 : i32
    %c0_i32_0 = arith.constant 0 : i32
    %c0_i32_1 = arith.constant 0 : i32
    return %arg0, %2, %c0_i32, %c0_i32_0 : i32, i32, i32, i32
  }
  func.func @transform_3(%arg0: i32, %arg1: i32) -> (i32, i32, i32) {
    %c0_i32 = arith.constant 0 : i32
    %c0_i32_0 = arith.constant 0 : i32
    %c0_i32_1 = arith.constant 0 : i32
    %c0_i32_2 = arith.constant 0 : i32
    return %c0_i32, %c0_i32_0, %c0_i32_1 : i32, i32, i32
  }
  func.func @transform_4(%arg0: i32, %arg1: i32) -> (i32, i32, i32, i32) {
    %c0_i32 = arith.constant 0 : i32
    %c0_i32_0 = arith.constant 0 : i32
    %c0_i32_1 = arith.constant 0 : i32
    return %arg0, %arg1, %c0_i32, %c0_i32_0 : i32, i32, i32, i32
  }
  func.func @transform_5(%arg0: i32, %arg1: i32) -> (i32, i32, i32, i32) {
    %c0_i32 = arith.constant 0 : i32
    %c0_i32_0 = arith.constant 0 : i32
    %c0_i32_1 = arith.constant 0 : i32
    return %arg0, %arg1, %c0_i32, %c0_i32_0 : i32, i32, i32, i32
  }
}

module attributes {stable_mosaic.version = 11 : i64} {
  func.func @_gn_act_pconv_kernel(%arg0: i32, %arg1: i32, %arg2: memref<1x16x16x4xf32, #tpu.memory_space<vmem>>, %arg3: memref<1x2x4xf32, #tpu.memory_space<vmem>>, %arg4: memref<4x8xf32, #tpu.memory_space<vmem>>, %arg5: memref<1x16x16x8xf32, #tpu.memory_space<vmem>>) attributes {dimension_semantics = [#tpu.dimension_semantics<parallel>, #tpu.dimension_semantics<parallel>], iteration_bounds = array<i64: 2, 1>, scalar_prefetch = 0 : i64, scratch_operands = 0 : i64, tpu.core_type = #tpu.core_type<tc>, window_params = [{transform_indices = @transform_0, window_bounds = array<i64: 1, 16, 16, 4>}, {transform_indices = @transform_1, window_bounds = array<i64: 1, 2, 4>}, {pipeline_mode = #tpu.pipeline_mode<synchronous>, transform_indices = @transform_2, window_bounds = array<i64: 4, 8>}, {transform_indices = @transform_3, window_bounds = array<i64: 1, 16, 16, 8>}]} {
    %c0 = arith.constant 0 : index
    %c0_0 = arith.constant 0 : index
    %c0_1 = arith.constant 0 : index
    %c0_2 = arith.constant 0 : index
    %0 = vector.load %arg2[%c0, %c0_0, %c0_1, %c0_2] : memref<1x16x16x4xf32, #tpu.memory_space<vmem>>, vector<1x16x16x4xf32>
    %1 = vector.shape_cast %0 : vector<1x16x16x4xf32> to vector<16x16x4xf32>
    %c0_3 = arith.constant 0 : index
    %c0_4 = arith.constant 0 : index
    %c0_5 = arith.constant 0 : index
    %2 = vector.load %arg3[%c0_3, %c0_4, %c0_5] : memref<1x2x4xf32, #tpu.memory_space<vmem>>, vector<1x2x4xf32>
    %3 = vector.shape_cast %2 : vector<1x2x4xf32> to vector<2x4xf32>
    %4 = vector.extract_strided_slice %3 {offsets = [0, 0], sizes = [1, 4], strides = [1, 1]} : vector<2x4xf32> to vector<1x4xf32>
    %5 = vector.shape_cast %4 : vector<1x4xf32> to vector<4xf32>
    %6 = vector.shape_cast %5 : vector<4xf32> to vector<1x1x4xf32>
    %7 = vector.broadcast %6 : vector<1x1x4xf32> to vector<16x16x4xf32>
    %8 = arith.mulf %1, %7 : vector<16x16x4xf32>
    %9 = vector.extract_strided_slice %3 {offsets = [1, 0], sizes = [1, 4], strides = [1, 1]} : vector<2x4xf32> to vector<1x4xf32>
    %10 = vector.shape_cast %9 : vector<1x4xf32> to vector<4xf32>
    %11 = vector.shape_cast %10 : vector<4xf32> to vector<1x1x4xf32>
    %12 = vector.broadcast %11 : vector<1x1x4xf32> to vector<16x16x4xf32>
    %13 = arith.addf %8, %12 : vector<16x16x4xf32>
    %14 = math.exp %13 : vector<16x16x4xf32>
    %15 = math.tanh %14 : vector<16x16x4xf32>
    %16 = arith.mulf %13, %15 : vector<16x16x4xf32>
    %c0_6 = arith.constant 0 : index
    %c0_7 = arith.constant 0 : index
    %17 = vector.load %arg4[%c0_6, %c0_7] : memref<4x8xf32, #tpu.memory_space<vmem>>, vector<4x8xf32>
    %cst = arith.constant 0.000000e+00 : f32
    %18 = vector.broadcast %cst : f32 to vector<16x16x8xf32>
    %19 = vector.extract_strided_slice %16 {offsets = [0, 0, 0], sizes = [16, 16, 1], strides = [1, 1, 1]} : vector<16x16x4xf32> to vector<16x16x1xf32>
    %20 = vector.extract_strided_slice %17 {offsets = [0, 0], sizes = [1, 8], strides = [1, 1]} : vector<4x8xf32> to vector<1x8xf32>
    %21 = vector.shape_cast %20 : vector<1x8xf32> to vector<8xf32>
    %22 = vector.shape_cast %21 : vector<8xf32> to vector<1x1x8xf32>
    %23 = vector.broadcast %19 : vector<16x16x1xf32> to vector<16x16x8xf32>
    %24 = vector.broadcast %22 : vector<1x1x8xf32> to vector<16x16x8xf32>
    %25 = arith.mulf %23, %24 : vector<16x16x8xf32>
    %26 = arith.addf %18, %25 : vector<16x16x8xf32>
    %27 = vector.extract_strided_slice %16 {offsets = [0, 0, 1], sizes = [16, 16, 1], strides = [1, 1, 1]} : vector<16x16x4xf32> to vector<16x16x1xf32>
    %28 = vector.extract_strided_slice %17 {offsets = [1, 0], sizes = [1, 8], strides = [1, 1]} : vector<4x8xf32> to vector<1x8xf32>
    %29 = vector.shape_cast %28 : vector<1x8xf32> to vector<8xf32>
    %30 = vector.shape_cast %29 : vector<8xf32> to vector<1x1x8xf32>
    %31 = vector.broadcast %27 : vector<16x16x1xf32> to vector<16x16x8xf32>
    %32 = vector.broadcast %30 : vector<1x1x8xf32> to vector<16x16x8xf32>
    %33 = arith.mulf %31, %32 : vector<16x16x8xf32>
    %34 = arith.addf %26, %33 : vector<16x16x8xf32>
    %35 = vector.extract_strided_slice %16 {offsets = [0, 0, 2], sizes = [16, 16, 1], strides = [1, 1, 1]} : vector<16x16x4xf32> to vector<16x16x1xf32>
    %36 = vector.extract_strided_slice %17 {offsets = [2, 0], sizes = [1, 8], strides = [1, 1]} : vector<4x8xf32> to vector<1x8xf32>
    %37 = vector.shape_cast %36 : vector<1x8xf32> to vector<8xf32>
    %38 = vector.shape_cast %37 : vector<8xf32> to vector<1x1x8xf32>
    %39 = vector.broadcast %35 : vector<16x16x1xf32> to vector<16x16x8xf32>
    %40 = vector.broadcast %38 : vector<1x1x8xf32> to vector<16x16x8xf32>
    %41 = arith.mulf %39, %40 : vector<16x16x8xf32>
    %42 = arith.addf %34, %41 : vector<16x16x8xf32>
    %43 = vector.extract_strided_slice %16 {offsets = [0, 0, 3], sizes = [16, 16, 1], strides = [1, 1, 1]} : vector<16x16x4xf32> to vector<16x16x1xf32>
    %44 = vector.extract_strided_slice %17 {offsets = [3, 0], sizes = [1, 8], strides = [1, 1]} : vector<4x8xf32> to vector<1x8xf32>
    %45 = vector.shape_cast %44 : vector<1x8xf32> to vector<8xf32>
    %46 = vector.shape_cast %45 : vector<8xf32> to vector<1x1x8xf32>
    %47 = vector.broadcast %43 : vector<16x16x1xf32> to vector<16x16x8xf32>
    %48 = vector.broadcast %46 : vector<1x1x8xf32> to vector<16x16x8xf32>
    %49 = arith.mulf %47, %48 : vector<16x16x8xf32>
    %50 = arith.addf %42, %49 : vector<16x16x8xf32>
    %51 = vector.shape_cast %50 : vector<16x16x8xf32> to vector<1x16x16x8xf32>
    %c0_8 = arith.constant 0 : index
    %c0_9 = arith.constant 0 : index
    %c0_10 = arith.constant 0 : index
    %c0_11 = arith.constant 0 : index
    %52 = vector.load %arg5[%c0_8, %c0_9, %c0_10, %c0_11] : memref<1x16x16x8xf32, #tpu.memory_space<vmem>>, vector<1x16x16x8xf32>
    tpu.vector_store %arg5[%c0_8, %c0_9, %c0_10, %c0_11], %51 {strides = array<i32>} : memref<1x16x16x8xf32, #tpu.memory_space<vmem>>, vector<1x16x16x8xf32>,
    return
  }
  func.func @transform_0(%arg0: i32, %arg1: i32) -> (i32, i32, i32, i32) {
    %c0_i32 = arith.constant 0 : i32
    %c0_i32_0 = arith.constant 0 : i32
    %c0_i32_1 = arith.constant 0 : i32
    return %arg0, %arg1, %c0_i32, %c0_i32_0 : i32, i32, i32, i32
  }
  func.func @transform_1(%arg0: i32, %arg1: i32) -> (i32, i32, i32) {
    %c0_i32 = arith.constant 0 : i32
    %c0_i32_0 = arith.constant 0 : i32
    %c0_i32_1 = arith.constant 0 : i32
    return %arg0, %c0_i32, %c0_i32_0 : i32, i32, i32
  }
  func.func @transform_2(%arg0: i32, %arg1: i32) -> (i32, i32) {
    %c0_i32 = arith.constant 0 : i32
    %c0_i32_0 = arith.constant 0 : i32
    %c0_i32_1 = arith.constant 0 : i32
    return %c0_i32, %c0_i32_0 : i32, i32
  }
  func.func @transform_3(%arg0: i32, %arg1: i32) -> (i32, i32, i32, i32) {
    %c0_i32 = arith.constant 0 : i32
    %c0_i32_0 = arith.constant 0 : i32
    %c0_i32_1 = arith.constant 0 : i32
    return %arg0, %arg1, %c0_i32, %c0_i32_0 : i32, i32, i32, i32
  }
}

module attributes {stable_mosaic.version = 11 : i64} {
  func.func @_dw_stats_kernel(%arg0: i32, %arg1: i32, %arg2: memref<1x16x18x8xf32, #tpu.memory_space<vmem>>, %arg3: memref<1x1x18x8xf32, #tpu.memory_space<vmem>>, %arg4: memref<1x1x18x8xf32, #tpu.memory_space<vmem>>, %arg5: memref<3x3x8xf32, #tpu.memory_space<vmem>>, %arg6: memref<1x16x16x8xf32, #tpu.memory_space<vmem>>, %arg7: memref<1x1x8x128xf32, #tpu.memory_space<vmem>>) attributes {dimension_semantics = [#tpu.dimension_semantics<parallel>, #tpu.dimension_semantics<parallel>], iteration_bounds = array<i64: 2, 1>, scalar_prefetch = 0 : i64, scratch_operands = 0 : i64, tpu.core_type = #tpu.core_type<tc>, window_params = [{transform_indices = @transform_0, window_bounds = array<i64: 1, 16, 18, 8>}, {transform_indices = @transform_1, window_bounds = array<i64: 1, 1, 18, 8>}, {transform_indices = @transform_2, window_bounds = array<i64: 1, 1, 18, 8>}, {pipeline_mode = #tpu.pipeline_mode<synchronous>, transform_indices = @transform_3, window_bounds = array<i64: 3, 3, 8>}, {transform_indices = @transform_4, window_bounds = array<i64: 1, 16, 16, 8>}, {transform_indices = @transform_5, window_bounds = array<i64: 1, 1, 8, 128>}]} {
    %c0_i32 = arith.constant 0 : i32
    %0 = arith.cmpi sgt, %arg1, %c0_i32 : i32
    %1 = arith.extui %0 : i1 to i32
    %2 = arith.sitofp %1 : i32 to f32
    %c0_i32_0 = arith.constant 0 : i32
    %3 = arith.cmpi slt, %arg1, %c0_i32_0 : i32
    %4 = arith.extui %3 : i1 to i32
    %5 = arith.sitofp %4 : i32 to f32
    %c0 = arith.constant 0 : index
    %c0_1 = arith.constant 0 : index
    %c0_2 = arith.constant 0 : index
    %c0_3 = arith.constant 0 : index
    %6 = vector.load %arg3[%c0, %c0_1, %c0_2, %c0_3] : memref<1x1x18x8xf32, #tpu.memory_space<vmem>>, vector<1x1x18x8xf32>
    %7 = vector.shape_cast %6 : vector<1x1x18x8xf32> to vector<1x18x8xf32>
    %8 = vector.broadcast %2 : f32 to vector<1x18x8xf32>
    %9 = arith.mulf %7, %8 : vector<1x18x8xf32>
    %c0_4 = arith.constant 0 : index
    %c0_5 = arith.constant 0 : index
    %c0_6 = arith.constant 0 : index
    %c0_7 = arith.constant 0 : index
    %10 = vector.load %arg2[%c0_4, %c0_5, %c0_6, %c0_7] : memref<1x16x18x8xf32, #tpu.memory_space<vmem>>, vector<1x16x18x8xf32>
    %11 = vector.shape_cast %10 : vector<1x16x18x8xf32> to vector<16x18x8xf32>
    %c0_8 = arith.constant 0 : index
    %c0_9 = arith.constant 0 : index
    %c0_10 = arith.constant 0 : index
    %c0_11 = arith.constant 0 : index
    %12 = vector.load %arg4[%c0_8, %c0_9, %c0_10, %c0_11] : memref<1x1x18x8xf32, #tpu.memory_space<vmem>>, vector<1x1x18x8xf32>
    %13 = vector.shape_cast %12 : vector<1x1x18x8xf32> to vector<1x18x8xf32>
    %14 = vector.broadcast %5 : f32 to vector<1x18x8xf32>
    %15 = arith.mulf %13, %14 : vector<1x18x8xf32>
    %16 = tpu.concatenate %9, %11, %15 in 0 : vector<1x18x8xf32>, vector<16x18x8xf32>, vector<1x18x8xf32> -> vector<18x18x8xf32>
    %17 = vector.extract_strided_slice %16 {offsets = [0, 0, 0], sizes = [18, 16, 8], strides = [1, 1, 1]} : vector<18x18x8xf32> to vector<18x16x8xf32>
    %18 = vector.extract_strided_slice %16 {offsets = [0, 1, 0], sizes = [18, 16, 8], strides = [1, 1, 1]} : vector<18x18x8xf32> to vector<18x16x8xf32>
    %19 = vector.extract_strided_slice %16 {offsets = [0, 2, 0], sizes = [18, 16, 8], strides = [1, 1, 1]} : vector<18x18x8xf32> to vector<18x16x8xf32>
    %c0_12 = arith.constant 0 : index
    %c0_13 = arith.constant 0 : index
    %c0_14 = arith.constant 0 : index
    %20 = vector.load %arg5[%c0_12, %c0_13, %c0_14] : memref<3x3x8xf32, #tpu.memory_space<vmem>>, vector<3x3x8xf32>
    %cst = arith.constant 0.000000e+00 : f32
    %21 = vector.broadcast %cst : f32 to vector<16x16x8xf32>
    %22 = vector.extract_strided_slice %20 {offsets = [0, 0, 0], sizes = [1, 1, 8], strides = [1, 1, 1]} : vector<3x3x8xf32> to vector<1x1x8xf32>
    %23 = vector.shape_cast %22 : vector<1x1x8xf32> to vector<8xf32>
    %24 = vector.shape_cast %23 : vector<8xf32> to vector<1x1x8xf32>
    %25 = vector.extract_strided_slice %17 {offsets = [0, 0, 0], sizes = [16, 16, 8], strides = [1, 1, 1]} : vector<18x16x8xf32> to vector<16x16x8xf32>
    %26 = vector.broadcast %24 : vector<1x1x8xf32> to vector<16x16x8xf32>
    %27 = arith.mulf %26, %25 : vector<16x16x8xf32>
    %28 = arith.addf %21, %27 : vector<16x16x8xf32>
    %29 = vector.extract_strided_slice %20 {offsets = [0, 1, 0], sizes = [1, 1, 8], strides = [1, 1, 1]} : vector<3x3x8xf32> to vector<1x1x8xf32>
    %30 = vector.shape_cast %29 : vector<1x1x8xf32> to vector<8xf32>
    %31 = vector.shape_cast %30 : vector<8xf32> to vector<1x1x8xf32>
    %32 = vector.extract_strided_slice %18 {offsets = [0, 0, 0], sizes = [16, 16, 8], strides = [1, 1, 1]} : vector<18x16x8xf32> to vector<16x16x8xf32>
    %33 = vector.broadcast %31 : vector<1x1x8xf32> to vector<16x16x8xf32>
    %34 = arith.mulf %33, %32 : vector<16x16x8xf32>
    %35 = arith.addf %28, %34 : vector<16x16x8xf32>
    %36 = vector.extract_strided_slice %20 {offsets = [0, 2, 0], sizes = [1, 1, 8], strides = [1, 1, 1]} : vector<3x3x8xf32> to vector<1x1x8xf32>
    %37 = vector.shape_cast %36 : vector<1x1x8xf32> to vector<8xf32>
    %38 = vector.shape_cast %37 : vector<8xf32> to vector<1x1x8xf32>
    %39 = vector.extract_strided_slice %19 {offsets = [0, 0, 0], sizes = [16, 16, 8], strides = [1, 1, 1]} : vector<18x16x8xf32> to vector<16x16x8xf32>
    %40 = vector.broadcast %38 : vector<1x1x8xf32> to vector<16x16x8xf32>
    %41 = arith.mulf %40, %39 : vector<16x16x8xf32>
    %42 = arith.addf %35, %41 : vector<16x16x8xf32>
    %43 = vector.extract_strided_slice %20 {offsets = [1, 0, 0], sizes = [1, 1, 8], strides = [1, 1, 1]} : vector<3x3x8xf32> to vector<1x1x8xf32>
    %44 = vector.shape_cast %43 : vector<1x1x8xf32> to vector<8xf32>
    %45 = vector.shape_cast %44 : vector<8xf32> to vector<1x1x8xf32>
    %46 = vector.extract_strided_slice %17 {offsets = [1, 0, 0], sizes = [16, 16, 8], strides = [1, 1, 1]} : vector<18x16x8xf32> to vector<16x16x8xf32>
    %47 = vector.broadcast %45 : vector<1x1x8xf32> to vector<16x16x8xf32>
    %48 = arith.mulf %47, %46 : vector<16x16x8xf32>
    %49 = arith.addf %42, %48 : vector<16x16x8xf32>
    %50 = vector.extract_strided_slice %20 {offsets = [1, 1, 0], sizes = [1, 1, 8], strides = [1, 1, 1]} : vector<3x3x8xf32> to vector<1x1x8xf32>
    %51 = vector.shape_cast %50 : vector<1x1x8xf32> to vector<8xf32>
    %52 = vector.shape_cast %51 : vector<8xf32> to vector<1x1x8xf32>
    %53 = vector.extract_strided_slice %18 {offsets = [1, 0, 0], sizes = [16, 16, 8], strides = [1, 1, 1]} : vector<18x16x8xf32> to vector<16x16x8xf32>
    %54 = vector.broadcast %52 : vector<1x1x8xf32> to vector<16x16x8xf32>
    %55 = arith.mulf %54, %53 : vector<16x16x8xf32>
    %56 = arith.addf %49, %55 : vector<16x16x8xf32>
    %57 = vector.extract_strided_slice %20 {offsets = [1, 2, 0], sizes = [1, 1, 8], strides = [1, 1, 1]} : vector<3x3x8xf32> to vector<1x1x8xf32>
    %58 = vector.shape_cast %57 : vector<1x1x8xf32> to vector<8xf32>
    %59 = vector.shape_cast %58 : vector<8xf32> to vector<1x1x8xf32>
    %60 = vector.extract_strided_slice %19 {offsets = [1, 0, 0], sizes = [16, 16, 8], strides = [1, 1, 1]} : vector<18x16x8xf32> to vector<16x16x8xf32>
    %61 = vector.broadcast %59 : vector<1x1x8xf32> to vector<16x16x8xf32>
    %62 = arith.mulf %61, %60 : vector<16x16x8xf32>
    %63 = arith.addf %56, %62 : vector<16x16x8xf32>
    %64 = vector.extract_strided_slice %20 {offsets = [2, 0, 0], sizes = [1, 1, 8], strides = [1, 1, 1]} : vector<3x3x8xf32> to vector<1x1x8xf32>
    %65 = vector.shape_cast %64 : vector<1x1x8xf32> to vector<8xf32>
    %66 = vector.shape_cast %65 : vector<8xf32> to vector<1x1x8xf32>
    %67 = vector.extract_strided_slice %17 {offsets = [2, 0, 0], sizes = [16, 16, 8], strides = [1, 1, 1]} : vector<18x16x8xf32> to vector<16x16x8xf32>
    %68 = vector.broadcast %66 : vector<1x1x8xf32> to vector<16x16x8xf32>
    %69 = arith.mulf %68, %67 : vector<16x16x8xf32>
    %70 = arith.addf %63, %69 : vector<16x16x8xf32>
    %71 = vector.extract_strided_slice %20 {offsets = [2, 1, 0], sizes = [1, 1, 8], strides = [1, 1, 1]} : vector<3x3x8xf32> to vector<1x1x8xf32>
    %72 = vector.shape_cast %71 : vector<1x1x8xf32> to vector<8xf32>
    %73 = vector.shape_cast %72 : vector<8xf32> to vector<1x1x8xf32>
    %74 = vector.extract_strided_slice %18 {offsets = [2, 0, 0], sizes = [16, 16, 8], strides = [1, 1, 1]} : vector<18x16x8xf32> to vector<16x16x8xf32>
    %75 = vector.broadcast %73 : vector<1x1x8xf32> to vector<16x16x8xf32>
    %76 = arith.mulf %75, %74 : vector<16x16x8xf32>
    %77 = arith.addf %70, %76 : vector<16x16x8xf32>
    %78 = vector.extract_strided_slice %20 {offsets = [2, 2, 0], sizes = [1, 1, 8], strides = [1, 1, 1]} : vector<3x3x8xf32> to vector<1x1x8xf32>
    %79 = vector.shape_cast %78 : vector<1x1x8xf32> to vector<8xf32>
    %80 = vector.shape_cast %79 : vector<8xf32> to vector<1x1x8xf32>
    %81 = vector.extract_strided_slice %19 {offsets = [2, 0, 0], sizes = [16, 16, 8], strides = [1, 1, 1]} : vector<18x16x8xf32> to vector<16x16x8xf32>
    %82 = vector.broadcast %80 : vector<1x1x8xf32> to vector<16x16x8xf32>
    %83 = arith.mulf %82, %81 : vector<16x16x8xf32>
    %84 = arith.addf %77, %83 : vector<16x16x8xf32>
    %85 = vector.shape_cast %84 : vector<16x16x8xf32> to vector<1x16x16x8xf32>
    %c0_15 = arith.constant 0 : index
    %c0_16 = arith.constant 0 : index
    %c0_17 = arith.constant 0 : index
    %c0_18 = arith.constant 0 : index
    %86 = vector.load %arg6[%c0_15, %c0_16, %c0_17, %c0_18] : memref<1x16x16x8xf32, #tpu.memory_space<vmem>>, vector<1x16x16x8xf32>
    tpu.vector_store %arg6[%c0_15, %c0_16, %c0_17, %c0_18], %85 {strides = array<i32>} : memref<1x16x16x8xf32, #tpu.memory_space<vmem>>, vector<1x16x16x8xf32>,
    %87 = vector.shape_cast %84 : vector<16x16x8xf32> to vector<1x16x16x8xf32>
    %cst_19 = arith.constant dense<0.000000e+00> : vector<1xf32>
    %88 = vector.multi_reduction <add>, %87, %cst_19 [1, 2, 3] : vector<1x16x16x8xf32> to vector<1xf32>
    %89 = vector.shape_cast %88 : vector<1xf32> to vector<1x1x1x1xf32>
    %90 = vector.extract %89[0, 0, 0, 0] : f32 from vector<1x1x1x1xf32>
    %cst_20 = arith.constant 2.048000e+03 : f32
    %91 = arith.divf %90, %cst_20 : f32
    %92 = vector.broadcast %91 : f32 to vector<16x16x8xf32>
    %93 = arith.subf %84, %92 : vector<16x16x8xf32>
    %94 = arith.mulf %93, %93 : vector<16x16x8xf32>
    %95 = vector.shape_cast %94 : vector<16x16x8xf32> to vector<1x16x16x8xf32>
    %cst_21 = arith.constant dense<0.000000e+00> : vector<1xf32>
    %96 = vector.multi_reduction <add>, %95, %cst_21 [1, 2, 3] : vector<1x16x16x8xf32> to vector<1xf32>
    %97 = vector.shape_cast %96 : vector<1xf32> to vector<1x1x1x1xf32>
    %98 = vector.extract %97[0, 0, 0, 0] : f32 from vector<1x1x1x1xf32>
    %99 = tpu.iota {dimensions = array<i32: 3>} : vector<1x1x8x128xi32>
    %c64_i32 = arith.constant 64 : i32
    %100 = vector.broadcast %c64_i32 : i32 to vector<1x1x8x128xi32>
    %101 = arith.cmpi slt, %99, %100 : vector<1x1x8x128xi32>
    %102 = vector.broadcast %90 : f32 to vector<1x1x8x128xf32>
    %103 = vector.broadcast %98 : f32 to vector<1x1x8x128xf32>
    %104 = arith.select %101, %102, %103 : vector<1x1x8x128xi1>, vector<1x1x8x128xf32>
    %c0_22 = arith.constant 0 : index
    %c0_23 = arith.constant 0 : index
    %c0_24 = arith.constant 0 : index
    %c0_25 = arith.constant 0 : index
    %105 = vector.load %arg7[%c0_22, %c0_23, %c0_24, %c0_25] : memref<1x1x8x128xf32, #tpu.memory_space<vmem>>, vector<1x1x8x128xf32>
    tpu.vector_store %arg7[%c0_22, %c0_23, %c0_24, %c0_25], %104 {strides = array<i32>} : memref<1x1x8x128xf32, #tpu.memory_space<vmem>>, vector<1x1x8x128xf32>,
    return
  }
  func.func @transform_0(%arg0: i32, %arg1: i32) -> (i32, i32, i32, i32) {
    %c0_i32 = arith.constant 0 : i32
    %c0_i32_0 = arith.constant 0 : i32
    %c0_i32_1 = arith.constant 0 : i32
    return %arg0, %arg1, %c0_i32, %c0_i32_0 : i32, i32, i32, i32
  }
  func.func @transform_1(%arg0: i32, %arg1: i32) -> (i32, i32, i32, i32) {
    %c16_i32 = arith.constant 16 : i32
    %0 = arith.muli %arg1, %c16_i32 : i32
    %c1_i32 = arith.constant 1 : i32
    %1 = arith.subi %0, %c1_i32 : i32
    %c0_i32 = arith.constant 0 : i32
    %2 = arith.maxsi %1, %c0_i32 : i32
    %c0_i32_0 = arith.constant 0 : i32
    %c0_i32_1 = arith.constant 0 : i32
    %c0_i32_2 = arith.constant 0 : i32
    return %arg0, %2, %c0_i32_0, %c0_i32_1 : i32, i32, i32, i32
  }
  func.func @transform_2(%arg0: i32, %arg1: i32) -> (i32, i32, i32, i32) {
    %c1_i32 = arith.constant 1 : i32
    %0 = arith.addi %arg1, %c1_i32 : i32
    %c16_i32 = arith.constant 16 : i32
    %1 = arith.muli %0, %c16_i32 : i32
    %c15_i32 = arith.constant 15 : i32
    %2 = arith.minsi %1, %c15_i32 : i32
    %c0_i32 = arith.constant 0 : i32
    %c0_i32_0 = arith.constant 0 : i32
    %c0_i32_1 = arith.constant 0 : i32
    return %arg0, %2, %c0_i32, %c0_i32_0 : i32, i32, i32, i32
  }
  func.func @transform_3(%arg0: i32, %arg1: i32) -> (i32, i32, i32) {
    %c0_i32 = arith.constant 0 : i32
    %c0_i32_0 = arith.constant 0 : i32
    %c0_i32_1 = arith.constant 0 : i32
    %c0_i32_2 = arith.constant 0 : i32
    return %c0_i32, %c0_i32_0, %c0_i32_1 : i32, i32, i32
  }
  func.func @transform_4(%arg0: i32, %arg1: i32) -> (i32, i32, i32, i32) {
    %c0_i32 = arith.constant 0 : i32
    %c0_i32_0 = arith.constant 0 : i32
    %c0_i32_1 = arith.constant 0 : i32
    return %arg0, %arg1, %c0_i32, %c0_i32_0 : i32, i32, i32, i32
  }
  func.func @transform_5(%arg0: i32, %arg1: i32) -> (i32, i32, i32, i32) {
    %c0_i32 = arith.constant 0 : i32
    %c0_i32_0 = arith.constant 0 : i32
    %c0_i32_1 = arith.constant 0 : i32
    return %arg0, %arg1, %c0_i32, %c0_i32_0 : i32, i32, i32, i32
  }
}

module attributes {stable_mosaic.version = 11 : i64} {
  func.func @_gn_act_pconv_kernel(%arg0: i32, %arg1: i32, %arg2: memref<1x16x16x8xf32, #tpu.memory_space<vmem>>, %arg3: memref<1x2x8xf32, #tpu.memory_space<vmem>>, %arg4: memref<8x8xf32, #tpu.memory_space<vmem>>, %arg5: memref<1x16x16x8xf32, #tpu.memory_space<vmem>>) attributes {dimension_semantics = [#tpu.dimension_semantics<parallel>, #tpu.dimension_semantics<parallel>], iteration_bounds = array<i64: 2, 1>, scalar_prefetch = 0 : i64, scratch_operands = 0 : i64, tpu.core_type = #tpu.core_type<tc>, window_params = [{transform_indices = @transform_0, window_bounds = array<i64: 1, 16, 16, 8>}, {transform_indices = @transform_1, window_bounds = array<i64: 1, 2, 8>}, {pipeline_mode = #tpu.pipeline_mode<synchronous>, transform_indices = @transform_2, window_bounds = array<i64: 8, 8>}, {transform_indices = @transform_3, window_bounds = array<i64: 1, 16, 16, 8>}]} {
    %c0 = arith.constant 0 : index
    %c0_0 = arith.constant 0 : index
    %c0_1 = arith.constant 0 : index
    %c0_2 = arith.constant 0 : index
    %0 = vector.load %arg2[%c0, %c0_0, %c0_1, %c0_2] : memref<1x16x16x8xf32, #tpu.memory_space<vmem>>, vector<1x16x16x8xf32>
    %1 = vector.shape_cast %0 : vector<1x16x16x8xf32> to vector<16x16x8xf32>
    %c0_3 = arith.constant 0 : index
    %c0_4 = arith.constant 0 : index
    %c0_5 = arith.constant 0 : index
    %2 = vector.load %arg3[%c0_3, %c0_4, %c0_5] : memref<1x2x8xf32, #tpu.memory_space<vmem>>, vector<1x2x8xf32>
    %3 = vector.shape_cast %2 : vector<1x2x8xf32> to vector<2x8xf32>
    %4 = vector.extract_strided_slice %3 {offsets = [0, 0], sizes = [1, 8], strides = [1, 1]} : vector<2x8xf32> to vector<1x8xf32>
    %5 = vector.shape_cast %4 : vector<1x8xf32> to vector<8xf32>
    %6 = vector.shape_cast %5 : vector<8xf32> to vector<1x1x8xf32>
    %7 = vector.broadcast %6 : vector<1x1x8xf32> to vector<16x16x8xf32>
    %8 = arith.mulf %1, %7 : vector<16x16x8xf32>
    %9 = vector.extract_strided_slice %3 {offsets = [1, 0], sizes = [1, 8], strides = [1, 1]} : vector<2x8xf32> to vector<1x8xf32>
    %10 = vector.shape_cast %9 : vector<1x8xf32> to vector<8xf32>
    %11 = vector.shape_cast %10 : vector<8xf32> to vector<1x1x8xf32>
    %12 = vector.broadcast %11 : vector<1x1x8xf32> to vector<16x16x8xf32>
    %13 = arith.addf %8, %12 : vector<16x16x8xf32>
    %14 = math.exp %13 : vector<16x16x8xf32>
    %15 = math.tanh %14 : vector<16x16x8xf32>
    %16 = arith.mulf %13, %15 : vector<16x16x8xf32>
    %c0_6 = arith.constant 0 : index
    %c0_7 = arith.constant 0 : index
    %17 = vector.load %arg4[%c0_6, %c0_7] : memref<8x8xf32, #tpu.memory_space<vmem>>, vector<8x8xf32>
    %cst = arith.constant 0.000000e+00 : f32
    %18 = vector.broadcast %cst : f32 to vector<16x16x8xf32>
    %19 = vector.extract_strided_slice %16 {offsets = [0, 0, 0], sizes = [16, 16, 1], strides = [1, 1, 1]} : vector<16x16x8xf32> to vector<16x16x1xf32>
    %20 = vector.extract_strided_slice %17 {offsets = [0, 0], sizes = [1, 8], strides = [1, 1]} : vector<8x8xf32> to vector<1x8xf32>
    %21 = vector.shape_cast %20 : vector<1x8xf32> to vector<8xf32>
    %22 = vector.shape_cast %21 : vector<8xf32> to vector<1x1x8xf32>
    %23 = vector.broadcast %19 : vector<16x16x1xf32> to vector<16x16x8xf32>
    %24 = vector.broadcast %22 : vector<1x1x8xf32> to vector<16x16x8xf32>
    %25 = arith.mulf %23, %24 : vector<16x16x8xf32>
    %26 = arith.addf %18, %25 : vector<16x16x8xf32>
    %27 = vector.extract_strided_slice %16 {offsets = [0, 0, 1], sizes = [16, 16, 1], strides = [1, 1, 1]} : vector<16x16x8xf32> to vector<16x16x1xf32>
    %28 = vector.extract_strided_slice %17 {offsets = [1, 0], sizes = [1, 8], strides = [1, 1]} : vector<8x8xf32> to vector<1x8xf32>
    %29 = vector.shape_cast %28 : vector<1x8xf32> to vector<8xf32>
    %30 = vector.shape_cast %29 : vector<8xf32> to vector<1x1x8xf32>
    %31 = vector.broadcast %27 : vector<16x16x1xf32> to vector<16x16x8xf32>
    %32 = vector.broadcast %30 : vector<1x1x8xf32> to vector<16x16x8xf32>
    %33 = arith.mulf %31, %32 : vector<16x16x8xf32>
    %34 = arith.addf %26, %33 : vector<16x16x8xf32>
    %35 = vector.extract_strided_slice %16 {offsets = [0, 0, 2], sizes = [16, 16, 1], strides = [1, 1, 1]} : vector<16x16x8xf32> to vector<16x16x1xf32>
    %36 = vector.extract_strided_slice %17 {offsets = [2, 0], sizes = [1, 8], strides = [1, 1]} : vector<8x8xf32> to vector<1x8xf32>
    %37 = vector.shape_cast %36 : vector<1x8xf32> to vector<8xf32>
    %38 = vector.shape_cast %37 : vector<8xf32> to vector<1x1x8xf32>
    %39 = vector.broadcast %35 : vector<16x16x1xf32> to vector<16x16x8xf32>
    %40 = vector.broadcast %38 : vector<1x1x8xf32> to vector<16x16x8xf32>
    %41 = arith.mulf %39, %40 : vector<16x16x8xf32>
    %42 = arith.addf %34, %41 : vector<16x16x8xf32>
    %43 = vector.extract_strided_slice %16 {offsets = [0, 0, 3], sizes = [16, 16, 1], strides = [1, 1, 1]} : vector<16x16x8xf32> to vector<16x16x1xf32>
    %44 = vector.extract_strided_slice %17 {offsets = [3, 0], sizes = [1, 8], strides = [1, 1]} : vector<8x8xf32> to vector<1x8xf32>
    %45 = vector.shape_cast %44 : vector<1x8xf32> to vector<8xf32>
    %46 = vector.shape_cast %45 : vector<8xf32> to vector<1x1x8xf32>
    %47 = vector.broadcast %43 : vector<16x16x1xf32> to vector<16x16x8xf32>
    %48 = vector.broadcast %46 : vector<1x1x8xf32> to vector<16x16x8xf32>
    %49 = arith.mulf %47, %48 : vector<16x16x8xf32>
    %50 = arith.addf %42, %49 : vector<16x16x8xf32>
    %51 = vector.extract_strided_slice %16 {offsets = [0, 0, 4], sizes = [16, 16, 1], strides = [1, 1, 1]} : vector<16x16x8xf32> to vector<16x16x1xf32>
    %52 = vector.extract_strided_slice %17 {offsets = [4, 0], sizes = [1, 8], strides = [1, 1]} : vector<8x8xf32> to vector<1x8xf32>
    %53 = vector.shape_cast %52 : vector<1x8xf32> to vector<8xf32>
    %54 = vector.shape_cast %53 : vector<8xf32> to vector<1x1x8xf32>
    %55 = vector.broadcast %51 : vector<16x16x1xf32> to vector<16x16x8xf32>
    %56 = vector.broadcast %54 : vector<1x1x8xf32> to vector<16x16x8xf32>
    %57 = arith.mulf %55, %56 : vector<16x16x8xf32>
    %58 = arith.addf %50, %57 : vector<16x16x8xf32>
    %59 = vector.extract_strided_slice %16 {offsets = [0, 0, 5], sizes = [16, 16, 1], strides = [1, 1, 1]} : vector<16x16x8xf32> to vector<16x16x1xf32>
    %60 = vector.extract_strided_slice %17 {offsets = [5, 0], sizes = [1, 8], strides = [1, 1]} : vector<8x8xf32> to vector<1x8xf32>
    %61 = vector.shape_cast %60 : vector<1x8xf32> to vector<8xf32>
    %62 = vector.shape_cast %61 : vector<8xf32> to vector<1x1x8xf32>
    %63 = vector.broadcast %59 : vector<16x16x1xf32> to vector<16x16x8xf32>
    %64 = vector.broadcast %62 : vector<1x1x8xf32> to vector<16x16x8xf32>
    %65 = arith.mulf %63, %64 : vector<16x16x8xf32>
    %66 = arith.addf %58, %65 : vector<16x16x8xf32>
    %67 = vector.extract_strided_slice %16 {offsets = [0, 0, 6], sizes = [16, 16, 1], strides = [1, 1, 1]} : vector<16x16x8xf32> to vector<16x16x1xf32>
    %68 = vector.extract_strided_slice %17 {offsets = [6, 0], sizes = [1, 8], strides = [1, 1]} : vector<8x8xf32> to vector<1x8xf32>
    %69 = vector.shape_cast %68 : vector<1x8xf32> to vector<8xf32>
    %70 = vector.shape_cast %69 : vector<8xf32> to vector<1x1x8xf32>
    %71 = vector.broadcast %67 : vector<16x16x1xf32> to vector<16x16x8xf32>
    %72 = vector.broadcast %70 : vector<1x1x8xf32> to vector<16x16x8xf32>
    %73 = arith.mulf %71, %72 : vector<16x16x8xf32>
    %74 = arith.addf %66, %73 : vector<16x16x8xf32>
    %75 = vector.extract_strided_slice %16 {offsets = [0, 0, 7], sizes = [16, 16, 1], strides = [1, 1, 1]} : vector<16x16x8xf32> to vector<16x16x1xf32>
    %76 = vector.extract_strided_slice %17 {offsets = [7, 0], sizes = [1, 8], strides = [1, 1]} : vector<8x8xf32> to vector<1x8xf32>
    %77 = vector.shape_cast %76 : vector<1x8xf32> to vector<8xf32>
    %78 = vector.shape_cast %77 : vector<8xf32> to vector<1x1x8xf32>
    %79 = vector.broadcast %75 : vector<16x16x1xf32> to vector<16x16x8xf32>
    %80 = vector.broadcast %78 : vector<1x1x8xf32> to vector<16x16x8xf32>
    %81 = arith.mulf %79, %80 : vector<16x16x8xf32>
    %82 = arith.addf %74, %81 : vector<16x16x8xf32>
    %83 = vector.shape_cast %82 : vector<16x16x8xf32> to vector<1x16x16x8xf32>
    %c0_8 = arith.constant 0 : index
    %c0_9 = arith.constant 0 : index
    %c0_10 = arith.constant 0 : index
    %c0_11 = arith.constant 0 : index
    %84 = vector.load %arg5[%c0_8, %c0_9, %c0_10, %c0_11] : memref<1x16x16x8xf32, #tpu.memory_space<vmem>>, vector<1x16x16x8xf32>
    tpu.vector_store %arg5[%c0_8, %c0_9, %c0_10, %c0_11], %83 {strides = array<i32>} : memref<1x16x16x8xf32, #tpu.memory_space<vmem>>, vector<1x16x16x8xf32>,
    return
  }
  func.func @transform_0(%arg0: i32, %arg1: i32) -> (i32, i32, i32, i32) {
    %c0_i32 = arith.constant 0 : i32
    %c0_i32_0 = arith.constant 0 : i32
    %c0_i32_1 = arith.constant 0 : i32
    return %arg0, %arg1, %c0_i32, %c0_i32_0 : i32, i32, i32, i32
  }
  func.func @transform_1(%arg0: i32, %arg1: i32) -> (i32, i32, i32) {
    %c0_i32 = arith.constant 0 : i32
    %c0_i32_0 = arith.constant 0 : i32
    %c0_i32_1 = arith.constant 0 : i32
    return %arg0, %c0_i32, %c0_i32_0 : i32, i32, i32
  }
  func.func @transform_2(%arg0: i32, %arg1: i32) -> (i32, i32) {
    %c0_i32 = arith.constant 0 : i32
    %c0_i32_0 = arith.constant 0 : i32
    %c0_i32_1 = arith.constant 0 : i32
    return %c0_i32, %c0_i32_0 : i32, i32
  }
  func.func @transform_3(%arg0: i32, %arg1: i32) -> (i32, i32, i32, i32) {
    %c0_i32 = arith.constant 0 : i32
    %c0_i32_0 = arith.constant 0 : i32
    %c0_i32_1 = arith.constant 0 : i32
    return %arg0, %arg1, %c0_i32, %c0_i32_0 : i32, i32, i32, i32
  }
}

</mosaic_0001>

<bundles_post_ra>
// kernel: additional_conv_pallas.5
= control target key start
LH: loop header
LB: loop body
LE: loop exit
PB: predicated region body
PF: predicated region fallthrough
CT: control target
= control target key end

     0   :  { %s1635_s12 = smov 0   ;;  %s1637_s13 = smov 0   ;;  %s2586_s0 = inlined_call_operand.vmem [shape: f32[2,16,16,4], index: 0, kind: input, shape index: {}]   ;;  %s2587_s1 = inlined_call_operand.vmem [shape: f32[2,2,4], index: 1, kind: input, shape index: {}]   ;;  %s2588_s2 = inlined_call_operand.vmem [shape: f32[4,8], index: 2, kind: input, shape index: {}]   ;;  %s2589_s3 = inlined_call_operand.vmem [shape: f32[2,16,16,8], index: 3, kind: output, shape index: {}]  }
   0x1   :  { %s1639_s14 = smov 0  }
   0x2 LB: > { %s25_s15 = sadd.s32 1, %s1605_s13  ;;  %p1409_p0 = scmp.ge.s32.totalorder %s1609_s14, 1  ;;  %s1609_s14 = sphi %s1639_s14, %s13_s14   ;;  %s1605_s13 = sphi %s1637_s13, %s2645_s13   ;;  %s1601_s12 = sphi %s1635_s12, %s2644_s12  }
   0x3   : > { %p27_p1 = scmp.ge.s32.totalorder %s25_s15, 2  ;;  %p168_p2 = scmp.lt.s32.totalorder %s1609_s14, 3 }
   0x5   : > { %s2647_s15 = smov (%p27_p1, %s25_s15), 0  ;;  %p169_p3 = pnand %p1409_p0, %p168_p2 }
   0x7   : > { %172 = sbr.rel (%p169_p3) target bundleno = 511 (0x1ff), region = 32 }
   0xc   : > { %p207_p4 = scmp.lt.s32.totalorder %s1601_s12, 1  ;;  %v1611_v0 = vmov 0   ;;  %vm1264_vm0 = vcmask 64512  }
   0xd   : > { %1449 = vset.pattern.permute.xlu2 %v1611_v0  ;;  %1448 = vset.pattern.permute.xlu1 %v1611_v0 }
   0xe   : > { %1447 = vset.pattern.permute.xlu0 %v1611_v0  ;;  %s2649_s12 = smov (!%p207_p4, %s1601_s12), 1 }
   0xf   : > { %s1417_s16 = sshll.u32 %s2649_s12, 8  ;;  %s1412_s17 = sshll.u32 %s2649_s12, 1 }
  0x10   : > { %s1662_s20 = scalar_lea.vmem %s2586_s0, %s1417_s16  ;;  %s220_s23 = scalar_lea.vmem %s2587_s1, %s1412_s17 }
  0x11   : > { %v236_v1 = vld [vmem:[%s1662_s20 + $0x20] sm:$0xff]  ;;  %v234_v3 = vld [vmem:[%s1662_s20 + $0x10] sm:$0xff]  ;;  %v237_v7 = vld [vmem:[%s1662_s20 + $0x28] sm:$0xff]  ;;  %s2426_s28 = scalar_lea.vmem %s2589_s3, %s1417_s16 }
  0x12   : > { %v264_v2 = vld [vmem:[%s220_s23] sm:$0x3]  ;;  %v235_v8 = vld [vmem:[%s1662_s20 + $0x18] sm:$0xff]  ;;  %v233_v9 = vld [vmem:[%s1662_s20 + $0x8] sm:$0xff] }
  0x13   : > { %v1669_v4 = vperm.slane %v264_v2, 0  ;;  %v1671_v5 = vperm.slane %v264_v2, 1  ;;  %v232_v6 = vld [vmem:[%s1662_s20] sm:$0xff]  ;;  %v239_v28 = vld [vmem:[%s1662_s20 + $0x38] sm:$0xff]  ;;  %v238_v30 = vld [vmem:[%s1662_s20 + $0x30] sm:$0xff] }
  0x14   : > { %v240_v16 = vld [vmem:[%s1662_s20 + $0x40] sm:$0xff]  ;;  %v243_v34 = vld [vmem:[%s1662_s20 + $0x58] sm:$0xff]  ;;  %v242_v36 = vld [vmem:[%s1662_s20 + $0x50] sm:$0xff] }
  0x15   : > { %v270_v10 = vmul.f32 %v1669_v4, %v236_v1  ;;  %v268_v11 = vmul.f32 %v1669_v4, %v234_v3  ;;  %v266_v12 = vmul.f32 %v1669_v4, %v232_v6  ;;  %v271_v13 = vmul.f32 %v1669_v4, %v237_v7  ;;  %v241_v38 = vld [vmem:[%s1662_s20 + $0x48] sm:$0xff]  ;;  %v246_v47 = vld [vmem:[%s1662_s20 + $0x70] sm:$0xff]  ;;  %v244_v61 = vld [vmem:[%s1662_s20 + $0x60] sm:$0xff] }
  0x16   : > { %v269_v14 = vmul.f32 %v1669_v4, %v235_v8  ;;  %v267_v15 = vmul.f32 %v1669_v4, %v233_v9  ;;  %v274_v26 = vmul.f32 %v1669_v4, %v240_v16  ;;  %v273_v33 = vmul.f32 %v1669_v4, %v239_v28  ;;  %v245_v50 = vld [vmem:[%s1662_s20 + $0x68] sm:$0xff] }
  0x17   : > { %v303_v17 = vadd.f32 %v1671_v5, %v270_v10  ;;  %v301_v18 = vadd.f32 %v1671_v5, %v268_v11  ;;  %v1687_v19 = vadd.f32 %v1671_v5, %v266_v12  ;;  %v1690_v20 = vadd.f32 %v1671_v5, %v271_v13  ;;  %v249_v6 = vld [vmem:[%s1662_s20 + $0x88] sm:$0xff] }
  0x18   : > { %v1693_v21 = vadd.f32 %v1671_v5, %v269_v14  ;;  %v1696_v22 = vadd.f32 %v1671_v5, %v267_v15  ;;  %v1706_v32 = vadd.f32 %v1671_v5, %v274_v26  ;;  %v272_v35 = vmul.f32 %v1669_v4, %v238_v30 }
  0x19   : > { %v339_v23 = vmul.f32 1.442695, %v303_v17  ;;  %v335_v24 = vmul.f32 1.442695, %v301_v18  ;;  %v331_v25 = vmul.f32 1.442695, %v1687_v19  ;;  %v277_v37 = vmul.f32 %v1669_v4, %v243_v34 }
  0x1a   : > { %v341_v27 = vmul.f32 1.442695, %v1690_v20  ;;  %v337_v29 = vmul.f32 1.442695, %v1693_v21  ;;  %v333_v31 = vmul.f32 1.442695, %v1696_v22  ;;  %v1716_v41 = vadd.f32 %v1671_v5, %v273_v33 }
  0x1b   : > { %1459 = vpow2.f32 %v339_v23  ;;  %v347_v40 = vmul.f32 1.442695, %v1706_v32  ;;  %v276_v42 = vmul.f32 %v1669_v4, %v242_v36  ;;  %v1720_v44 = vadd.f32 %v1671_v5, %v272_v35  ;;  %v252_v33 = vld [vmem:[%s1662_s20 + $0xa0] sm:$0xff] }
  0x1c   : > { %1461 = vpow2.f32 %v335_v24  ;;  %v275_v46 = vmul.f32 %v1669_v4, %v241_v38  ;;  %v1725_v49 = vadd.f32 %v1671_v5, %v277_v37  ;;  %v345_v52 = vmul.f32 1.442695, %v1716_v41  ;;  %v248_v24 = vld [vmem:[%s1662_s20 + $0x80] sm:$0xff] }
  0x1d   : > { %1463 = vpow2.f32 %v331_v25  ;;  %v1730_v53 = vadd.f32 %v1671_v5, %v276_v42  ;;  %v343_v55 = vmul.f32 1.442695, %v1720_v44  ;;  %v280_v56 = vmul.f32 %v1669_v4, %v246_v47  ;;  %v247_v25 = vld [vmem:[%s1662_s20 + $0x78] sm:$0xff]  ;;  %v257_v47 = vld [vmem:[%s1662_s20 + $0xc8] sm:$0xff] }
  0x1e   : > { %1465 = vpow2.f32 %v341_v27  ;;  %v1735_v57 = vadd.f32 %v1671_v5, %v275_v46  ;;  %v279_v58 = vmul.f32 %v1669_v4, %v245_v50  ;;  %v353_v60 = vmul.f32 1.442695, %v1725_v49  ;;  %v258_v46 = vld [vmem:[%s1662_s20 + $0xd0] sm:$0xff] }
  0x1f   : > { %1467 = vpow2.f32 %v337_v29  ;;  %v351_v0 = vmul.f32 1.442695, %v1730_v53  ;;  %v1746_v3 = vadd.f32 %v1671_v5, %v280_v56  ;;  %v278_v11 = vmul.f32 %v1669_v4, %v244_v61 }
  0x20   : > { %1469 = vpow2.f32 %v333_v31  ;;  %v349_v9 = vmul.f32 1.442695, %v1735_v57  ;;  %v1755_v10 = vadd.f32 %v1671_v5, %v279_v58  ;;  %v283_v14 = vmul.f32 %v1669_v4, %v249_v6 }
  0x21   : > { %v1460_v39 = vpop.eup %1459  ;;  %v359_v16 = vmul.f32 1.442695, %v1746_v3  ;;  %v1767_v23 = vadd.f32 %v1671_v5, %v278_v11  ;;  %v282_v30 = vmul.f32 %v1669_v4, %v248_v24  ;;  %v281_v31 = vmul.f32 %v1669_v4, %v247_v25  ;;  %v260_v24 = vld [vmem:[%s1662_s20 + $0xe0] sm:$0xff]  ;;  %v259_v25 = vld [vmem:[%s1662_s20 + $0xd8] sm:$0xff] }
  0x22   : > { %v1462_v43 = vpop.eup %1461  ;;  %1471 = vtanh.f32 %v1460_v39  ;;  %v286_v38 = vmul.f32 %v1669_v4, %v252_v33  ;;  %v250_v39 = vld [vmem:[%s1662_s20 + $0x90] sm:$0xff]  ;;  %v293_v33 = vmul.f32 %v1669_v4, %v259_v25 }
  0x23   : > { %v1464_v45 = vpop.eup %1463  ;;  %1473 = vtanh.f32 %v1462_v43  ;;  %v1792_v42 = vadd.f32 %v1671_v5, %v282_v30  ;;  %v1795_v43 = vadd.f32 %v1671_v5, %v281_v31  ;;  %v284_v58 = vmul.f32 %v1669_v4, %v250_v39 }
  0x24   : > { %v1466_v48 = vpop.eup %1465  ;;  %1475 = vtanh.f32 %v1464_v45  ;;  %v294_v31 = vmul.f32 %v1669_v4, %v260_v24 }
  0x25   : > { %v1468_v51 = vpop.eup %1467  ;;  %1477 = vpow2.f32 %v347_v40  ;;  %v1834_v11 = vadd.f32 %v1671_v5, %v284_v58 }
  0x26   : > { %v1470_v54 = vpop.eup %1469  ;;  %1479 = vtanh.f32 %v1466_v48  ;;  %v256_v48 = vld [vmem:[%s1662_s20 + $0xc0] sm:$0xff] }
  0x27   : > { %1481 = vtanh.f32 %v1468_v51 }
  0x28   : > { %v1472_v59 = vpop.eup %1471  ;;  %1483 = vtanh.f32 %v1470_v54  ;;  %v291_v54 = vmul.f32 %v1669_v4, %v257_v47 }
  0x29   : > { %v1474_v62 = vpop.eup %1473  ;;  %v1740_v63 = vmul.f32 %v1472_v59, %v303_v17  ;;  %1485 = vpow2.f32 %v345_v52  ;;  %v292_v52 = vmul.f32 %v1669_v4, %v258_v46  ;;  %v290_v59 = vmul.f32 %v1669_v4, %v256_v48 }
  0x2a   : > { %v1476_v1 = vpop.eup %1475  ;;  %v1743_v2 = vmul.f32 %v1474_v62, %v301_v18  ;;  %1487 = vpow2.f32 %v343_v55 }
  0x2b   : > { %2602 = vst [vmem:[#allocation2_spill] sm:$0xff] %v1740_v63  ;;  %v1478_v7 = vpop.eup %1477  ;;  %482 = vperm.xlu2 %1449, %v1740_v63   ;;  %v1751_v8 = vmul.f32 %v1476_v1, %v1687_v19  ;;  %1489 = vpow2.f32 %v353_v60  ;;  %v357_v19 = vmul.f32 1.442695, %v1755_v10  ;;  %v1818_v62 = vadd.f32 %v1671_v5, %v292_v52 }
  0x2c   : > { %v1480_v12 = vpop.eup %1479  ;;  %472 = vperm.xlu1 %1448, %v1743_v2   ;;  %1491 = vpow2.f32 %v351_v0  ;;  %v1821_v0 = vadd.f32 %v1671_v5, %v291_v54  ;;  %v1828_v6 = vadd.f32 %v1671_v5, %v290_v59  ;;  %v263_v54 = vld [vmem:[%s1662_s20 + $0xf8] sm:$0xff] }
  0x2d   : > { %2603 = vst [vmem:[#allocation3_spill] sm:$0xff] %v1751_v8  ;;  %v1482_v13 = vpop.eup %1481  ;;  %462 = vperm.xlu0 %1447, %v1751_v8   ;;  %1493 = vtanh.f32 %v1478_v7  ;;  %v1763_v18 = vmul.f32 %v1480_v12, %v1690_v20  ;;  %v1778_v20 = vadd.f32 %v1671_v5, %v283_v14  ;;  %v361_v7 = vmul.f32 1.442695, %v1795_v43  ;;  %v255_v14 = vld [vmem:[%s1662_s20 + $0xb8] sm:$0xff] }
  0x2e   : > { %v1484_v15 = vpop.eup %1483  ;;  %1495 = vpow2.f32 %v349_v9  ;;  %v1772_v27 = vmul.f32 %v1482_v13, %v1693_v21  ;;  %v355_v21 = vmul.f32 1.442695, %v1767_v23  ;;  %v297_v59 = vmul.f32 %v1669_v4, %v263_v54 }
  0x2f   : > { %v1486_v17 = vpop.eup %1485  ;;  %v1775_v28 = vmul.f32 %v1484_v15, %v1696_v22  ;;  %v251_v22 = vld [vmem:[%s1662_s20 + $0x98] sm:$0xff]  ;;  %v365_v37 = vmul.f32 1.442695, %v1778_v20  ;;  %v381_v25 = vmul.f32 1.442695, %v1821_v0 }
  0x30   : > { %v1488_v26 = vpop.eup %1487  ;;  %1497 = vtanh.f32 %v1486_v17  ;;  %v285_v45 = vmul.f32 %v1669_v4, %v251_v22 }
  0x31   : > { %1499 = vtanh.f32 %v1488_v26  ;;  %v1490_v29 = vpop.eup %1489  ;;  %v254_v26 = vld [vmem:[%s1662_s20 + $0xb0] sm:$0xff] }
  0x32   : > { %1501 = vpow2.f32 %v359_v16  ;;  %v1492_v34 = vpop.eup %1491  ;;  %v1825_v1 = vadd.f32 %v1671_v5, %v285_v45  ;;  %v288_v39 = vmul.f32 %v1669_v4, %v254_v26 }
  0x33   : > { %487 = vperm.xlu2 %1449, %v1763_v18   ;;  %1503 = vpow2.f32 %v357_v19  ;;  %v1494_v35 = vpop.eup %1493  ;;  %v261_v19 = vld [vmem:[%s1662_s20 + $0xe8] sm:$0xff] }
  0x34   : > { %477 = vperm.xlu1 %1448, %v1772_v27   ;;  %v1496_v36 = vpop.eup %1495  ;;  %1505 = vtanh.f32 %v1490_v29  ;;  %v1802_v51 = vmul.f32 %v1494_v35, %v1706_v32  ;;  %v1815_v32 = vadd.f32 %v1671_v5, %v286_v38  ;;  %v369_v17 = vmul.f32 1.442695, %v1825_v1  ;;  %v253_v29 = vld [vmem:[%s1662_s20 + $0xa8] sm:$0xff] }
  0x35   : > { %467 = vperm.xlu0 %1447, %v1775_v28   ;;  %1507 = vtanh.f32 %v1492_v34  ;;  %v295_v30 = vmul.f32 %v1669_v4, %v261_v19  ;;  %v1866_v38 = vadd.f32 %v1671_v5, %v293_v33  ;;  %v383_v19 = vmul.f32 1.442695, %v1818_v62 }
  0x36   : > { %v1498_v40 = vpop.eup %1497  ;;  %1509 = vpow2.f32 %v355_v21  ;;  %v371_v13 = vmul.f32 1.442695, %v1815_v32  ;;  %v289_v21 = vmul.f32 %v1669_v4, %v255_v14 }
  0x37   : > { %v1500_v50 = vpop.eup %1499  ;;  %v1807_v56 = vmul.f32 %v1498_v40, %v1716_v41  ;;  %1511 = vtanh.f32 %v1496_v36  ;;  %v363_v41 = vmul.f32 1.442695, %v1792_v42  ;;  %v1860_v36 = vadd.f32 %v1671_v5, %v295_v30 }
  0x38   : > { %v1502_v55 = vpop.eup %1501  ;;  %v1812_v61 = vmul.f32 %v1500_v50, %v1720_v44  ;;  %v287_v40 = vmul.f32 %v1669_v4, %v253_v29  ;;  %v1874_v47 = vadd.f32 %v1671_v5, %v289_v21  ;;  %v1877_v50 = vadd.f32 %v1671_v5, %v288_v39 }
  0x39   : > { %v1504_v60 = vpop.eup %1503  ;;  %1513 = vtanh.f32 %v1502_v55  ;;  %v262_v55 = vld [vmem:[%s1662_s20 + $0xf0] sm:$0xff]  ;;  %v379_v30 = vmul.f32 1.442695, %v1828_v6  ;;  %v389_v21 = vmul.f32 1.442695, %v1860_v36 }
  0x3a   : > { %v1506_v44 = vpop.eup %1505  ;;  %1515 = vtanh.f32 %v1504_v60  ;;  %v1880_v52 = vadd.f32 %v1671_v5, %v287_v40  ;;  %v296_v60 = vmul.f32 %v1669_v4, %v262_v55  ;;  %v375_v14 = vmul.f32 1.442695, %v1877_v50 }
  0x3b   : > { %502 = vperm.xlu2 %1449, %v1802_v51   ;;  %v1508_v9 = vpop.eup %1507  ;;  %1517 = vpow2.f32 %v365_v37  ;;  %v1840_v16 = vmul.f32 %v1506_v44, %v1725_v49  ;;  %v367_v49 = vmul.f32 1.442695, %v1834_v11  ;;  %v1863_v37 = vadd.f32 %v1671_v5, %v294_v31 }
  0x3c   : > { %497 = vperm.xlu1 %1448, %v1807_v56   ;;  %v1510_v12 = vpop.eup %1509  ;;  %1519 = vpow2.f32 %v363_v41  ;;  %v1852_v34 = vmul.f32 %v1508_v9, %v1730_v53 }
  0x3d   : > { %492 = vperm.xlu0 %1447, %v1812_v61   ;;  %v1512_v15 = vpop.eup %1511  ;;  %2604 = vst [vmem:[#allocation4_spill] sm:$0xff] %v1840_v16  ;;  %1521 = vpow2.f32 %v361_v7 }
  0x3e   : > { %2605 = vst [vmem:[#allocation5_spill] sm:$0xff] %v1852_v34  ;;  %1523 = vtanh.f32 %v1510_v12  ;;  %v1857_v35 = vmul.f32 %v1512_v15, %v1735_v57  ;;  %v377_v12 = vmul.f32 1.442695, %v1874_v47 }
  0x3f   : > { %v1514_v22 = vpop.eup %1513  ;;  %1525 = vpow2.f32 %v371_v13  ;;  %v1897_v13 = vadd.f32 %v1671_v5, %v297_v59 }
  0x40   : > { %v1516_v53 = vpop.eup %1515  ;;  %1527 = vpow2.f32 %v369_v17  ;;  %v1885_v58 = vmul.f32 %v1514_v22, %v1746_v3  ;;  %v1900_v3 = vadd.f32 %v1671_v5, %v296_v60 }
  0x41   : > { %v1518_v45 = vpop.eup %1517  ;;  %1529 = vpow2.f32 %v367_v49  ;;  %v1890_v44 = vmul.f32 %v1516_v53, %v1755_v10  ;;  %v373_v10 = vmul.f32 1.442695, %v1880_v52  ;;  %v393_v60 = vmul.f32 1.442695, %v1897_v13 }
  0x42   : > { %v1520_v57 = vpop.eup %1519  ;;  %1531 = vtanh.f32 %v1518_v45  ;;  %v387_v45 = vmul.f32 1.442695, %v1863_v37 }
  0x43   : > { %517 = vperm.xlu2 %1449, %v1840_v16   ;;  %v1522_v46 = vpop.eup %1521  ;;  %1533 = vtanh.f32 %v1520_v57 }
  0x44   : > { %512 = vperm.xlu1 %1448, %v1852_v34   ;;  %v1524_v48 = vpop.eup %1523  ;;  %1535 = vtanh.f32 %v1522_v46 }
  0x45   : > { %507 = vperm.xlu0 %1447, %v1857_v35   ;;  %v1526_v41 = vpop.eup %1525  ;;  %v1893_v9 = vmul.f32 %v1524_v48, %v1767_v23 }
  0x46   : > { %v1528_v7 = vpop.eup %1527  ;;  %1537 = vtanh.f32 %v1526_v41 }
  0x47   : > { %v1530_v4 = vpop.eup %1529  ;;  %1539 = vtanh.f32 %v1528_v7  ;;  %v391_v7 = vmul.f32 1.442695, %v1900_v3 }
  0x48   : > { %v1532_v15 = vpop.eup %1531  ;;  %1541 = vpow2.f32 %v377_v12 }
  0x49   : > { %v1534_v23 = vpop.eup %1533  ;;  %1543 = vpow2.f32 %v375_v14  ;;  %v1908_v5 = vmul.f32 %v1532_v15, %v1778_v20 }
  0x4a   : > { %v1536_v17 = vpop.eup %1535  ;;  %1545 = vpow2.f32 %v373_v10  ;;  %v1912_v24 = vmul.f32 %v1534_v23, %v1792_v42 }
  0x4b   : > { %532 = vperm.xlu2 %1449, %v1885_v58   ;;  %1547 = vtanh.f32 %v1530_v4  ;;  %v1916_v29 = vmul.f32 %v1536_v17, %v1795_v43 }
  0x4c   : > { %527 = vperm.xlu1 %1448, %v1890_v44   ;;  %v1538_v26 = vpop.eup %1537  ;;  %1549 = vpow2.f32 %v383_v19 }
  0x4d   : > { %522 = vperm.xlu0 %1447, %v1893_v9   ;;  %v1540_v31 = vpop.eup %1539  ;;  %1551 = vpow2.f32 %v381_v25  ;;  %v1923_v43 = vmul.f32 %v1538_v26, %v1815_v32  ;;  %v385_v32 = vmul.f32 1.442695, %v1866_v38 }
  0x4e   : > { %v1542_v33 = vpop.eup %1541  ;;  %1553 = vpow2.f32 %v379_v30  ;;  %v1927_v22 = vmul.f32 %v1540_v31, %v1825_v1 }
  0x4f   : > { %v1544_v20 = vpop.eup %1543  ;;  %1555 = vtanh.f32 %v1542_v33 }
  0x50   : > { %v1546_v42 = vpop.eup %1545  ;;  %1557 = vtanh.f32 %v1544_v20 }
  0x51   : > { %v1548_v49 = vpop.eup %1547  ;;  %1559 = vtanh.f32 %v1546_v42 }
  0x52   : > { %v1550_v53 = vpop.eup %1549  ;;  %v1930_v39 = vmul.f32 %v1548_v49, %v1834_v11  ;;  %1561 = vpow2.f32 %v389_v21 }
  0x53   : > { %547 = vperm.xlu2 %1449, %v1908_v5   ;;  %v1552_v40 = vpop.eup %1551  ;;  %1563 = vtanh.f32 %v1550_v53 }
  0x54   : > { %542 = vperm.xlu1 %1448, %v1912_v24   ;;  %v1554_v57 = vpop.eup %1553  ;;  %1565 = vtanh.f32 %v1552_v40 }
  0x55   : > { %537 = vperm.xlu0 %1447, %v1916_v29   ;;  %v1556_v46 = vpop.eup %1555  ;;  %1567 = vpow2.f32 %v387_v45 }
  0x56   : > { %v1558_v1 = vpop.eup %1557  ;;  %v1938_v11 = vmul.f32 %v1556_v46, %v1874_v47  ;;  %1569 = vpow2.f32 %v385_v32 }
  0x57   : > { %v1560_v48 = vpop.eup %1559  ;;  %v1941_v54 = vmul.f32 %v1558_v1, %v1877_v50  ;;  %1571 = vtanh.f32 %v1554_v57 }
  0x58   : > { %v1562_v55 = vpop.eup %1561  ;;  %v1944_v59 = vmul.f32 %v1560_v48, %v1880_v52 }
  0x59   : > { %v1564_v41 = vpop.eup %1563  ;;  %1573 = vtanh.f32 %v1562_v55 }
  0x5a   : > { %v1566_v12 = vpop.eup %1565  ;;  %1575 = vpow2.f32 %v393_v60  ;;  %v1952_v52 = vmul.f32 %v1564_v41, %v1818_v62 }
  0x5b   : > { %562 = vperm.xlu2 %1449, %v1923_v43   ;;  %v1568_v14 = vpop.eup %1567  ;;  %1577 = vpow2.f32 %v391_v7  ;;  %v1955_v4 = vmul.f32 %v1566_v12, %v1821_v0 }
  0x5c   : > { %557 = vperm.xlu1 %1448, %v1927_v22   ;;  %v1570_v47 = vpop.eup %1569  ;;  %2606 = vst [vmem:[#allocation6_spill] sm:$0xff] %v1952_v52  ;;  %1579 = vtanh.f32 %v1568_v14 }
  0x5d   : > { %552 = vperm.xlu0 %1447, %v1930_v39   ;;  %v1572_v50 = vpop.eup %1571  ;;  %2607 = vst [vmem:[#allocation7_spill] sm:$0xff] %v1955_v4  ;;  %1581 = vtanh.f32 %v1570_v47 }
  0x5e   : > { %v1958_v10 = vmul.f32 %v1572_v50, %v1828_v6 }
  0x5f   : > { %v1574_v15 = vpop.eup %1573 }
  0x60   : > { %v1576_v23 = vpop.eup %1575  ;;  %v1964_v25 = vmul.f32 %v1574_v15, %v1860_v36  ;;  %v2061_v15 = vld [vmem:[%s2588_s2] sm:$0xf] }
  0x61   : > { %v1578_v17 = vpop.eup %1577  ;;  %1583 = vtanh.f32 %v1576_v23  ;;  %2613 = vst [vmem:[#allocation13_spill] sm:$0xff] %v2061_v15  ;;  %v2064_v23 = vperm.slane %v2061_v15, 1 }
  0x62   : > { %v1580_v19 = vpop.eup %1579  ;;  %2608 = vst [vmem:[#allocation8_spill] sm:$0xff] %v1964_v25  ;;  %1585 = vtanh.f32 %v1578_v17  ;;  %v1613_v17 = vmov 2  }
  0x63   : > { %577 = vperm.xlu2 %1449, %v1938_v11   ;;  %v1582_v62 = vpop.eup %1581  ;;  %v1967_v0 = vmul.f32 %v1580_v19, %v1863_v37  ;;  %v1612_v37 = vmov 1   ;;  %v2067_v19 = vperm.slane %v2061_v15, 0 }
  0x64   : > { %572 = vperm.xlu1 %1448, %v1941_v54   ;;  %v1970_v6 = vmul.f32 %v1582_v62, %v1866_v38 }
  0x65   : > { %567 = vperm.xlu0 %1447, %v1944_v59   ;;  %2609 = vst [vmem:[#allocation9_spill] sm:$0xff] %v1967_v0 }
  0x67   : > { %v1584_v26 = vpop.eup %1583 }
  0x68   : > { %v1586_v30 = vpop.eup %1585  ;;  %v1976_v31 = vmul.f32 %v1584_v26, %v1897_v13 }
  0x69   : > { %v1979_v36 = vmul.f32 %v1586_v30, %v1900_v3 }
  0x6a   : > { %2610 = vst [vmem:[#allocation10_spill] sm:$0xff] %v1976_v31 }
  0x6b   : > { %592 = vperm.xlu2 %1449, %v1952_v52  }
  0x6c   : > { %587 = vperm.xlu1 %1448, %v1955_v4  }
  0x6d   : > { %582 = vperm.xlu0 %1447, %v1958_v10  }
  0x73   : > { %607 = vperm.xlu2 %1449, %v1964_v25  }
  0x74   : > { %602 = vperm.xlu1 %1448, %v1967_v0  }
  0x75   : > { %597 = vperm.xlu0 %1447, %v1970_v6  }
  0x7b   : > { %1450 = vset.pattern.permute.xlu2 %v1612_v37 }
  0x7c   : > { %617 = vperm.xlu1 %1448, %v1976_v31   ;;  %686 = vperm.xlu2 %1450, %v1751_v8  }
  0x7d   : > { %612 = vperm.xlu0 %1447, %v1979_v36  }
  0x84   : > { %1452 = vset.pattern.permute.xlu1 %v1612_v37  ;;  %698 = vperm.xlu2 %1450, %v1772_v27  }
  0x85   : > { %1451 = vset.pattern.permute.xlu0 %v1612_v37  ;;  %694 = vperm.xlu1 %1452, %v1743_v2   ;;  %v1986_v38 = vpop.permute.xlu2 %482 }
  0x86   : > { %690 = vperm.xlu0 %1451, %v1775_v28  }
  0x8c   : > { %706 = vperm.xlu2 %1450, %v1763_v18  }
  0x8d   : > { %702 = vperm.xlu1 %1452, %v1740_v63   ;;  %v1991_v13 = vpop.permute.xlu2 %487 }
  0x8e   : > { %710 = vperm.xlu0 %1451, %v1812_v61  }
  0x94   : > { %718 = vperm.xlu2 %1450, %v1802_v51  }
  0x95   : > { %714 = vperm.xlu1 %1452, %v1807_v56   ;;  %v1996_v3 = vpop.permute.xlu2 %502 }
  0x96   : > { %722 = vperm.xlu0 %1451, %v1857_v35  }
  0x9c   : > { %730 = vperm.xlu2 %1450, %v1840_v16  }
  0x9d   : > { %726 = vperm.xlu1 %1452, %v1852_v34   ;;  %v2001_v33 = vpop.permute.xlu2 %517 }
  0x9e   : > { %734 = vperm.xlu0 %1451, %v1893_v9   ;;  %v2004_v20 = vpop.permute.xlu1 %472 }
  0x9f   : > { %v463_v42 = vpop.permute.xlu0 %462 }
  0xa0   : > { %v621_v30 = vmul.f32 %v2067_v19, %v463_v42 }
  0xa4   : > { %742 = vperm.xlu2 %1450, %v1885_v58  }
  0xa5   : > { %738 = vperm.xlu1 %1452, %v1890_v44   ;;  %v2008_v49 = vpop.permute.xlu2 %532 }
  0xa6   : > { %746 = vperm.xlu0 %1451, %v1916_v29   ;;  %v478_v21 = vpop.permute.xlu1 %477 }
  0xa7   : > { %v2011_v53 = vpop.permute.xlu0 %467 }
  0xac   : > { %754 = vperm.xlu2 %1450, %v1908_v5  }
  0xad   : > { %750 = vperm.xlu1 %1452, %v1912_v24   ;;  %v2015_v40 = vpop.permute.xlu2 %547 }
  0xae   : > { %758 = vperm.xlu0 %1451, %v1930_v39   ;;  %v2018_v45 = vpop.permute.xlu1 %497 }
  0xaf   : > { %v2020_v57 = vpop.permute.xlu0 %492 }
  0xb4   : > { %766 = vperm.xlu2 %1450, %v1923_v43  }
  0xb5   : > { %762 = vperm.xlu1 %1452, %v1927_v22   ;;  %v2024_v32 = vpop.permute.xlu2 %562 }
  0xb6   : > { %770 = vperm.xlu0 %1451, %v1944_v59   ;;  %v2027_v46 = vpop.permute.xlu1 %512 }
  0xb7   : > { %v2029_v1 = vpop.permute.xlu0 %507 }
  0xbc   : > { %778 = vperm.xlu2 %1450, %v1938_v11  }
  0xbd   : > { %774 = vperm.xlu1 %1452, %v1941_v54   ;;  %v2033_v48 = vpop.permute.xlu2 %577 }
  0xbe   : > { %782 = vperm.xlu0 %1451, %v1958_v10   ;;  %v2036_v55 = vpop.permute.xlu1 %527 }
  0xbf   : > { %v2038_v60 = vpop.permute.xlu0 %522 }
  0xc4   : > { %790 = vperm.xlu2 %1450, %v1952_v52  }
  0xc5   : > { %786 = vperm.xlu1 %1452, %v1955_v4   ;;  %v2042_v41 = vpop.permute.xlu2 %592 }
  0xc6   : > { %794 = vperm.xlu0 %1451, %v1970_v6   ;;  %v2045_v7 = vpop.permute.xlu1 %542 }
  0xc7   : > { %v2047_v12 = vpop.permute.xlu0 %537 }
  0xcc   : > { %802 = vperm.xlu2 %1450, %v1964_v25  }
  0xcd   : > { %798 = vperm.xlu1 %1452, %v1967_v0   ;;  %v2051_v14 = vpop.permute.xlu2 %607 }
  0xce   : > { %2611 = vst [vmem:[#allocation11_spill] sm:$0xff] %v2051_v14  ;;  %806 = vperm.xlu0 %1451, %v1979_v36   ;;  %v2054_v47 = vpop.permute.xlu1 %557 }
  0xcf   : > { %2612 = vst [vmem:[#allocation12_spill] sm:$0xff] %v2054_v47  ;;  %v2056_v50 = vpop.permute.xlu0 %552 }
  0xd4   : > { %1453 = vset.pattern.permute.xlu2 %v1613_v17 }
  0xd5   : > { %810 = vperm.xlu1 %1452, %v1976_v31   ;;  %879 = vperm.xlu2 %1453, %v1751_v8  }
  0xd6   : > { %1454 = vset.pattern.permute.xlu0 %v1613_v17  ;;  %v2071_v62 = vpop.permute.xlu1 %572  ;;  %v687_v26 = vpop.permute.xlu2 %686 }
  0xd7   : > { %2614 = vst [vmem:[#allocation14_spill] sm:$0xff] %v2071_v62  ;;  %883 = vperm.xlu0 %1454, %v1775_v28   ;;  %v2075_v37 = vpop.permute.xlu0 %567  ;;  %v814_v47 = vmul.f32 %v2064_v23, %v687_v26  ;;  %v624_v62 = vmul.f32 %v2067_v19, %v478_v21  ;;  %v626_v26 = vmul.f32 %v2067_v19, %v1991_v13 }
  0xd8   : > { %2615 = vst [vmem:[#allocation15_spill] sm:$0xff] %v2075_v37 }
  0xd9   : > { %v2078_v14 = vadd.f32 %v814_v47, %v621_v30 }
  0xdd   : > { %1455 = vset.pattern.permute.xlu1 %v1613_v17  ;;  %891 = vperm.xlu2 %1453, %v1772_v27  }
  0xde   : > { %887 = vperm.xlu1 %1455, %v1743_v2   ;;  %v2082_v8 = vpop.permute.xlu1 %587  ;;  %v699_v31 = vpop.permute.xlu2 %698 }
  0xdf   : > { %2616 = vst [vmem:[#allocation16_spill] sm:$0xff] %v2082_v8  ;;  %903 = vperm.xlu0 %1454, %v1812_v61   ;;  %v2086_v42 = vpop.permute.xlu0 %582  ;;  %v817_v15 = vmul.f32 %v2064_v23, %v699_v31 }
  0xe1   : > { %v2089_v37 = vadd.f32 %v817_v15, %v624_v62  ;;  %v629_v62 = vmul.f32 %v2067_v19, %v1996_v3 }
  0xe5   : > { %899 = vperm.xlu2 %1453, %v1763_v18  }
  0xe6   : > { %895 = vperm.xlu1 %1455, %v1740_v63   ;;  %v2093_v47 = vpop.permute.xlu1 %602  ;;  %v707_v17 = vpop.permute.xlu2 %706 }
  0xe7   : > { %2617 = vst [vmem:[#allocation17_spill] sm:$0xff] %v2093_v47  ;;  %915 = vperm.xlu0 %1454, %v1857_v35   ;;  %v2098_v21 = vpop.permute.xlu0 %597  ;;  %v819_v30 = vmul.f32 %v2064_v23, %v707_v17 }
  0xe9   : > { %v2101_v8 = vadd.f32 %v819_v30, %v626_v26  ;;  %v632_v26 = vmul.f32 %v2067_v19, %v2001_v33 }
  0xed   : > { %911 = vperm.xlu2 %1453, %v1802_v51  }
  0xee   : > { %907 = vperm.xlu1 %1455, %v1807_v56   ;;  %v2105_v31 = vpop.permute.xlu1 %617  ;;  %v719_v15 = vpop.permute.xlu2 %718 }
  0xef   : > { %2618 = vst [vmem:[#allocation18_spill] sm:$0xff] %v2105_v31  ;;  %927 = vperm.xlu0 %1454, %v1893_v9   ;;  %v2110_v13 = vpop.permute.xlu0 %612  ;;  %v822_v47 = vmul.f32 %v2064_v23, %v719_v15  ;;  %v623_v31 = vmul.f32 %v2067_v19, %v2004_v20  ;;  %v635_v20 = vmul.f32 %v2067_v19, %v2008_v49 }
  0xf1   : > { %v2113_v63 = vadd.f32 %v822_v47, %v629_v62  ;;  %v622_v62 = vmul.f32 %v2067_v19, %v2011_v53 }
  0xf3   : > { %2619 = vst [vmem:[#allocation19_spill] sm:$0xff] %v2113_v63 }
  0xf5   : > { %923 = vperm.xlu2 %1453, %v1840_v16  }
  0xf6   : > { %919 = vperm.xlu1 %1455, %v1852_v34   ;;  %v731_v17 = vpop.permute.xlu2 %730 }
  0xf7   : > { %939 = vperm.xlu0 %1454, %v1916_v29   ;;  %v695_v30 = vpop.permute.xlu1 %694  ;;  %v825_v3 = vmul.f32 %v2064_v23, %v731_v17 }
  0xf8   : > { %v816_v15 = vmul.f32 %v2064_v23, %v695_v30  ;;  %v691_v47 = vpop.permute.xlu0 %690 }
  0xf9   : > { %v2126_v16 = vadd.f32 %v825_v3, %v632_v26  ;;  %v815_v34 = vmul.f32 %v2064_v23, %v691_v47  ;;  %v625_v26 = vmul.f32 %v2067_v19, %v1986_v38  ;;  %v627_v3 = vmul.f32 %v2067_v19, %v2020_v57 }
  0xfa   : > { %v2129_v63 = vadd.f32 %v816_v15, %v623_v31  ;;  %v638_v38 = vmul.f32 %v2067_v19, %v2015_v40 }
  0xfb   : > { %v2131_v33 = vadd.f32 %v815_v34, %v622_v62 }
  0xfd   : > { %935 = vperm.xlu2 %1453, %v1885_v58  }
  0xfe   : > { %931 = vperm.xlu1 %1455, %v1890_v44   ;;  %v743_v17 = vpop.permute.xlu2 %742 }
  0xff   : > { %951 = vperm.xlu0 %1454, %v1930_v39   ;;  %v703_v30 = vpop.permute.xlu1 %702  ;;  %v828_v53 = vmul.f32 %v2064_v23, %v743_v17 }
 0x100   : > { %v818_v31 = vmul.f32 %v2064_v23, %v703_v30  ;;  %v711_v34 = vpop.permute.xlu0 %710 }
 0x101   : > { %v2144_v15 = vadd.f32 %v828_v53, %v635_v20  ;;  %v820_v47 = vmul.f32 %v2064_v23, %v711_v34  ;;  %v628_v20 = vmul.f32 %v2067_v19, %v2018_v45  ;;  %v641_v45 = vmul.f32 %v2067_v19, %v2024_v32 }
 0x102   : > { %v2147_v62 = vadd.f32 %v818_v31, %v625_v26  ;;  %v630_v31 = vmul.f32 %v2067_v19, %v2029_v1 }
 0x103   : > { %v2149_v49 = vadd.f32 %v820_v47, %v627_v3 }
 0x105   : > { %947 = vperm.xlu2 %1453, %v1908_v5  }
 0x106   : > { %943 = vperm.xlu1 %1455, %v1912_v24   ;;  %v755_v17 = vpop.permute.xlu2 %754 }
 0x107   : > { %963 = vperm.xlu0 %1454, %v1944_v59   ;;  %v715_v30 = vpop.permute.xlu1 %714  ;;  %v831_v57 = vmul.f32 %v2064_v23, %v755_v17 }
 0x108   : > { %v821_v53 = vmul.f32 %v2064_v23, %v715_v30  ;;  %v723_v26 = vpop.permute.xlu0 %722 }
 0x109   : > { %v2162_v34 = vadd.f32 %v831_v57, %v638_v38  ;;  %v823_v3 = vmul.f32 %v2064_v23, %v723_v26  ;;  %v631_v38 = vmul.f32 %v2067_v19, %v2027_v46  ;;  %v644_v46 = vmul.f32 %v2067_v19, %v2033_v48 }
 0x10a   : > { %v2165_v47 = vadd.f32 %v821_v53, %v628_v20  ;;  %v633_v53 = vmul.f32 %v2067_v19, %v2038_v60 }
 0x10b   : > { %v2167_v40 = vadd.f32 %v823_v3, %v630_v31 }
 0x10d   : > { %959 = vperm.xlu2 %1453, %v1923_v43  }
 0x10e   : > { %955 = vperm.xlu1 %1455, %v1927_v22   ;;  %v767_v17 = vpop.permute.xlu2 %766 }
 0x10f   : > { %975 = vperm.xlu0 %1454, %v1958_v10   ;;  %v727_v30 = vpop.permute.xlu1 %726  ;;  %v834_v1 = vmul.f32 %v2064_v23, %v767_v17 }
 0x110   : > { %v824_v57 = vmul.f32 %v2064_v23, %v727_v30  ;;  %v735_v20 = vpop.permute.xlu0 %734 }
 0x111   : > { %v2180_v26 = vadd.f32 %v834_v1, %v641_v45  ;;  %v826_v31 = vmul.f32 %v2064_v23, %v735_v20  ;;  %v634_v45 = vmul.f32 %v2067_v19, %v2036_v55  ;;  %v647_v55 = vmul.f32 %v2067_v19, %v2042_v41 }
 0x112   : > { %v2183_v3 = vadd.f32 %v824_v57, %v631_v38  ;;  %v636_v57 = vmul.f32 %v2067_v19, %v2047_v12 }
 0x113   : > { %v2185_v32 = vadd.f32 %v826_v31, %v633_v53 }
 0x115   : > { %971 = vperm.xlu2 %1453, %v1938_v11  }
 0x116   : > { %967 = vperm.xlu1 %1455, %v1941_v54   ;;  %v779_v17 = vpop.permute.xlu2 %778 }
 0x117   : > { %987 = vperm.xlu0 %1454, %v1970_v6   ;;  %v739_v30 = vpop.permute.xlu1 %738  ;;  %v837_v60 = vmul.f32 %v2064_v23, %v779_v17 }
 0x118   : > { %v827_v1 = vmul.f32 %v2064_v23, %v739_v30  ;;  %v747_v38 = vpop.permute.xlu0 %746 }
 0x119   : > { %v2198_v20 = vadd.f32 %v837_v60, %v644_v46  ;;  %v829_v53 = vmul.f32 %v2064_v23, %v747_v38  ;;  %v637_v46 = vmul.f32 %v2067_v19, %v2045_v7  ;;  %v2623_v7 = vld [vmem:[#allocation11_spill] sm:$0xff] }
 0x11a   : > { %v2201_v31 = vadd.f32 %v827_v1, %v634_v45  ;;  %v639_v1 = vmul.f32 %v2067_v19, %v2056_v50 }
 0x11b   : > { %v2203_v48 = vadd.f32 %v829_v53, %v636_v57 }
 0x11d   : > { %983 = vperm.xlu2 %1453, %v1952_v52  }
 0x11e   : > { %979 = vperm.xlu1 %1455, %v1955_v4   ;;  %v791_v17 = vpop.permute.xlu2 %790  ;;  %v1614_v4 = vmov 3  }
 0x11f   : > { %999 = vperm.xlu0 %1454, %v1979_v36   ;;  %v751_v30 = vpop.permute.xlu1 %750  ;;  %v840_v12 = vmul.f32 %v2064_v23, %v791_v17 }
 0x120   : > { %v830_v60 = vmul.f32 %v2064_v23, %v751_v30  ;;  %v759_v45 = vpop.permute.xlu0 %758  ;;  %v650_v30 = vmul.f32 %v2067_v19, %v2623_v7 }
 0x121   : > { %v2216_v38 = vadd.f32 %v840_v12, %v647_v55  ;;  %v832_v57 = vmul.f32 %v2064_v23, %v759_v45  ;;  %v2624_v55 = vld [vmem:[#allocation12_spill] sm:$0xff]  ;;  %v2625_v45 = vld [vmem:[#allocation15_spill] sm:$0xff] }
 0x122   : > { %v2219_v53 = vadd.f32 %v830_v60, %v637_v46  ;;  %v640_v12 = vmul.f32 %v2067_v19, %v2624_v55  ;;  %v2627_v55 = vld [vmem:[#allocation10_spill] sm:$0xff] }
 0x123   : > { %2620 = vst [vmem:[#allocation20_spill] sm:$0xff] %v2216_v38  ;;  %v2221_v41 = vadd.f32 %v832_v57, %v639_v1  ;;  %v642_v1 = vmul.f32 %v2067_v19, %v2625_v45 }
 0x124   : > { %2621 = vst [vmem:[#allocation21_spill] sm:$0xff] %v2219_v53 }
 0x125   : > { %2622 = vst [vmem:[#allocation22_spill] sm:$0xff] %v2221_v41  ;;  %995 = vperm.xlu2 %1453, %v1964_v25   ;;  %v2629_v41 = vld [vmem:[#allocation14_spill] sm:$0xff] }
 0x126   : > { %991 = vperm.xlu1 %1455, %v1967_v0   ;;  %v803_v17 = vpop.permute.xlu2 %802 }
 0x127   : > { %1457 = vset.pattern.permute.xlu0 %v1614_v4  ;;  %v763_v52 = vpop.permute.xlu1 %762  ;;  %v843_v50 = vmul.f32 %v2064_v23, %v803_v17  ;;  %v2626_v17 = vld [vmem:[#allocation13_spill] sm:$0xff] }
 0x128   : > { %v833_v46 = vmul.f32 %v2064_v23, %v763_v52  ;;  %1076 = vperm.xlu0 %1457, %v1775_v28   ;;  %v771_v60 = vpop.permute.xlu0 %770  ;;  %v2242_v53 = vperm.slane %v2626_v17, 2  ;;  %v2628_v52 = vld [vmem:[#allocation3_spill] sm:$0xff] }
 0x129   : > { %v2234_v57 = vadd.f32 %v843_v50, %v650_v30  ;;  %v835_v7 = vmul.f32 %v2064_v23, %v771_v60  ;;  %v643_v30 = vmul.f32 %v2067_v19, %v2629_v41  ;;  %v645_v60 = vmul.f32 %v2067_v19, %v2086_v42 }
 0x12a   : > { %v2237_v0 = vadd.f32 %v833_v46, %v640_v12 }
 0x12b   : > { %v2239_v25 = vadd.f32 %v835_v7, %v642_v1 }
 0x12d   : > { %1456 = vset.pattern.permute.xlu2 %v1614_v4 }
 0x12e   : > { %1003 = vperm.xlu1 %1455, %v2627_v55   ;;  %1072 = vperm.xlu2 %1456, %v2628_v52  }
 0x12f   : > { %v775_v28 = vpop.permute.xlu1 %774  ;;  %v880_v38 = vpop.permute.xlu2 %879 }
 0x130   : > { %v836_v50 = vmul.f32 %v2064_v23, %v775_v28  ;;  %1096 = vperm.xlu0 %1457, %v1812_v61   ;;  %v783_v12 = vpop.permute.xlu0 %782  ;;  %v1007_v46 = vmul.f32 %v2242_v53, %v880_v38  ;;  %v2630_v38 = vld [vmem:[#allocation16_spill] sm:$0xff] }
 0x131   : > { %v838_v45 = vmul.f32 %v2064_v23, %v783_v12  ;;  %v646_v28 = vmul.f32 %v2067_v19, %v2630_v38 }
 0x132   : > { %v2254_v1 = vadd.f32 %v836_v50, %v643_v30  ;;  %v2257_v7 = vadd.f32 %v1007_v46, %v2078_v14  ;;  %v648_v50 = vmul.f32 %v2067_v19, %v2098_v21  ;;  %v2631_v46 = vld [vmem:[#allocation2_spill] sm:$0xff] }
 0x133   : > { %v2259_v52 = vadd.f32 %v838_v45, %v645_v60  ;;  %v2632_v45 = vld [vmem:[#allocation17_spill] sm:$0xff] }
 0x136   : > { %1458 = vset.pattern.permute.xlu1 %v1614_v4  ;;  %1084 = vperm.xlu2 %1456, %v1772_v27  }
 0x137   : > { %1080 = vperm.xlu1 %1458, %v1743_v2   ;;  %v787_v61 = vpop.permute.xlu1 %786  ;;  %v892_v41 = vpop.permute.xlu2 %891 }
 0x138   : > { %v839_v42 = vmul.f32 %v2064_v23, %v787_v61  ;;  %1108 = vperm.xlu0 %1457, %v1857_v35   ;;  %v795_v30 = vpop.permute.xlu0 %794  ;;  %v1010_v14 = vmul.f32 %v2242_v53, %v892_v41  ;;  %v649_v61 = vmul.f32 %v2067_v19, %v2632_v45 }
 0x139   : > { %v841_v4 = vmul.f32 %v2064_v23, %v795_v30 }
 0x13a   : > { %v2271_v27 = vadd.f32 %v839_v42, %v646_v28  ;;  %v2274_v2 = vadd.f32 %v1010_v14, %v2089_v37  ;;  %v651_v37 = vmul.f32 %v2067_v19, %v2110_v13 }
 0x13b   : > { %v2276_v12 = vadd.f32 %v841_v4, %v648_v50  ;;  %v2633_v50 = vld [vmem:[#allocation18_spill] sm:$0xff] }
 0x13c   : > { %v652_v4 = vmul.f32 %v2067_v19, %v2633_v50  ;;  %v2636_v19 = vld [vmem:[#allocation5_spill] sm:$0xff] }
 0x13e   : > { %1092 = vperm.xlu2 %1456, %v1763_v18  }
 0x13f   : > { %1088 = vperm.xlu1 %1458, %v2631_v46   ;;  %v799_v35 = vpop.permute.xlu1 %798  ;;  %v900_v60 = vpop.permute.xlu2 %899 }
 0x140   : > { %v842_v21 = vmul.f32 %v2064_v23, %v799_v35  ;;  %1120 = vperm.xlu0 %1457, %v1893_v9   ;;  %v807_v41 = vpop.permute.xlu0 %806  ;;  %v1012_v38 = vmul.f32 %v2242_v53, %v900_v60  ;;  %v2634_v60 = vld [vmem:[#allocation19_spill] sm:$0xff] }
 0x141   : > { %v844_v28 = vmul.f32 %v2064_v23, %v807_v41 }
 0x142   : > { %v2288_v18 = vadd.f32 %v842_v21, %v649_v61  ;;  %v2291_v42 = vadd.f32 %v1012_v38, %v2101_v8  ;;  %v2635_v61 = vld [vmem:[#allocation4_spill] sm:$0xff] }
 0x143   : > { %v2293_v30 = vadd.f32 %v844_v28, %v651_v37 }
 0x146   : > { %1104 = vperm.xlu2 %1456, %v1802_v51  }
 0x147   : > { %1100 = vperm.xlu1 %1458, %v1807_v56   ;;  %v811_v9 = vpop.permute.xlu1 %810  ;;  %v912_v14 = vpop.permute.xlu2 %911 }
 0x148   : > { %v845_v13 = vmul.f32 %v2064_v23, %v811_v9  ;;  %1132 = vperm.xlu0 %1457, %v1916_v29   ;;  %v1015_v46 = vmul.f32 %v2242_v53, %v912_v14 }
 0x149   : > { %v884_v35 = vpop.permute.xlu0 %883 }
 0x14a   : > { %v2302_v8 = vadd.f32 %v845_v13, %v652_v4  ;;  %v2305_v45 = vadd.f32 %v1015_v46, %v2634_v60  ;;  %v1008_v51 = vmul.f32 %v2242_v53, %v884_v35 }
 0x14c   : > { %v2309_v56 = vadd.f32 %v1008_v51, %v2131_v33 }
 0x14e   : > { %1116 = vperm.xlu2 %1456, %v2635_v61  }
 0x14f   : > { %1112 = vperm.xlu1 %1458, %v2636_v19   ;;  %v924_v23 = vpop.permute.xlu2 %923 }
 0x150   : > { %1144 = vperm.xlu0 %1457, %v1930_v39   ;;  %v888_v29 = vpop.permute.xlu1 %887  ;;  %v1018_v21 = vmul.f32 %v2242_v53, %v924_v23 }
 0x151   : > { %v1009_v41 = vmul.f32 %v2242_v53, %v888_v29  ;;  %v904_v38 = vpop.permute.xlu0 %903 }
 0x152   : > { %v2317_v37 = vadd.f32 %v1018_v21, %v2126_v16  ;;  %v1013_v28 = vmul.f32 %v2242_v53, %v904_v38 }
 0x153   : > { %v2321_v33 = vadd.f32 %v1009_v41, %v2129_v63 }
 0x154   : > { %v2324_v9 = vadd.f32 %v1013_v28, %v2149_v49 }
 0x156   : > { %1128 = vperm.xlu2 %1456, %v1885_v58  }
 0x157   : > { %1124 = vperm.xlu1 %1458, %v1890_v44   ;;  %v936_v39 = vpop.permute.xlu2 %935 }
 0x158   : > { %1156 = vperm.xlu0 %1457, %v1944_v59   ;;  %v896_v14 = vpop.permute.xlu1 %895  ;;  %v1021_v50 = vmul.f32 %v2242_v53, %v936_v39 }
 0x159   : > { %v1011_v16 = vmul.f32 %v2242_v53, %v896_v14  ;;  %v916_v4 = vpop.permute.xlu0 %915 }
 0x15a   : > { %v2332_v13 = vadd.f32 %v1021_v50, %v2144_v15  ;;  %v1016_v63 = vmul.f32 %v2242_v53, %v916_v4  ;;  %v2640_v50 = vld [vmem:[#allocation20_spill] sm:$0xff]  ;;  %v2641_v4 = vld [vmem:[#allocation21_spill] sm:$0xff] }
 0x15b   : > { %v2336_v49 = vadd.f32 %v1011_v16, %v2147_v62 }
 0x15c   : > { %v2339_v58 = vadd.f32 %v1016_v63, %v2167_v40 }
 0x15e   : > { %1140 = vperm.xlu2 %1456, %v1908_v5  }
 0x15f   : > { %1136 = vperm.xlu1 %1458, %v1912_v24   ;;  %v948_v44 = vpop.permute.xlu2 %947 }
 0x160   : > { %1168 = vperm.xlu0 %1457, %v1958_v10   ;;  %v908_v59 = vpop.permute.xlu1 %907  ;;  %v1024_v46 = vmul.f32 %v2242_v53, %v948_v44 }
 0x161   : > { %v1014_v15 = vmul.f32 %v2242_v53, %v908_v59  ;;  %v928_v35 = vpop.permute.xlu0 %927  ;;  %v2642_v59 = vld [vmem:[#allocation8_spill] sm:$0xff] }
 0x162   : > { %v2347_v60 = vadd.f32 %v1024_v46, %v2162_v34  ;;  %v1019_v62 = vmul.f32 %v2242_v53, %v928_v35  ;;  %v2643_v46 = vld [vmem:[#allocation9_spill] sm:$0xff] }
 0x163   : > { %v2351_v40 = vadd.f32 %v1014_v15, %v2165_v47 }
 0x164   : > { %v2354_v5 = vadd.f32 %v1019_v62, %v2185_v32 }
 0x166   : > { %1152 = vperm.xlu2 %1456, %v1923_v43  }
 0x167   : > { %1148 = vperm.xlu1 %1458, %v1927_v22   ;;  %v960_v24 = vpop.permute.xlu2 %959 }
 0x168   : > { %1180 = vperm.xlu0 %1457, %v1970_v6   ;;  %v920_v10 = vpop.permute.xlu1 %919  ;;  %v1027_v51 = vmul.f32 %v2242_v53, %v960_v24 }
 0x169   : > { %v1017_v34 = vmul.f32 %v2242_v53, %v920_v10  ;;  %v940_v61 = vpop.permute.xlu0 %939 }
 0x16a   : > { %v2362_v19 = vadd.f32 %v1027_v51, %v2180_v26  ;;  %v1022_v47 = vmul.f32 %v2242_v53, %v940_v61 }
 0x16b   : > { %v2366_v32 = vadd.f32 %v1017_v34, %v2183_v3 }
 0x16c   : > { %v2369_v43 = vadd.f32 %v1022_v47, %v2203_v48  ;;  %v2415_v47 = vperm.slane %v2626_v17, 3 }
 0x16e   : > { %1164 = vperm.xlu2 %1456, %v1938_v11   ;;  %v2637_v11 = vld [vmem:[#allocation22_spill] sm:$0xff] }
 0x16f   : > { %1160 = vperm.xlu1 %1458, %v1941_v54   ;;  %v972_v22 = vpop.permute.xlu2 %971  ;;  %v2638_v54 = vld [vmem:[#allocation6_spill] sm:$0xff] }
 0x170   : > { %1192 = vperm.xlu0 %1457, %v1979_v36   ;;  %v932_v6 = vpop.permute.xlu1 %931  ;;  %v1030_v23 = vmul.f32 %v2242_v53, %v972_v22  ;;  %v2639_v36 = vld [vmem:[#allocation7_spill] sm:$0xff] }
 0x171   : > { %v1020_v26 = vmul.f32 %v2242_v53, %v932_v6  ;;  %v952_v29 = vpop.permute.xlu0 %951 }
 0x172   : > { %v2377_v21 = vadd.f32 %v1030_v23, %v2198_v20  ;;  %v1025_v3 = vmul.f32 %v2242_v53, %v952_v29 }
 0x173   : > { %v2381_v48 = vadd.f32 %v1020_v26, %v2201_v31 }
 0x174   : > { %v2384_v41 = vadd.f32 %v1025_v3, %v2637_v11 }
 0x176   : > { %1176 = vperm.xlu2 %1456, %v2638_v54  }
 0x177   : > { %1172 = vperm.xlu1 %1458, %v2639_v36   ;;  %v984_v38 = vpop.permute.xlu2 %983 }
 0x178   : > { %v944_v28 = vpop.permute.xlu1 %943  ;;  %v1033_v39 = vmul.f32 %v2242_v53, %v984_v38 }
 0x179   : > { %v1023_v14 = vmul.f32 %v2242_v53, %v944_v28  ;;  %v964_v20 = vpop.permute.xlu0 %963 }
 0x17a   : > { %v2391_v16 = vadd.f32 %v1033_v39, %v2640_v50  ;;  %v1028_v31 = vmul.f32 %v2242_v53, %v964_v20 }
 0x17b   : > { %v2395_v63 = vadd.f32 %v1023_v14, %v2641_v4 }
 0x17c   : > { %v2398_v44 = vadd.f32 %v1028_v31, %v2239_v25 }
 0x17e   : > { %1188 = vperm.xlu2 %1456, %v2642_v59  }
 0x17f   : > { %1184 = vperm.xlu1 %1458, %v2643_v46   ;;  %v996_v15 = vpop.permute.xlu2 %995 }
 0x180   : > { %v956_v35 = vpop.permute.xlu1 %955  ;;  %v1036_v62 = vmul.f32 %v2242_v53, %v996_v15 }
 0x181   : > { %v1026_v24 = vmul.f32 %v2242_v53, %v956_v35  ;;  %v976_v10 = vpop.permute.xlu0 %975 }
 0x182   : > { %v2405_v51 = vadd.f32 %v1036_v62, %v2234_v57  ;;  %v1031_v34 = vmul.f32 %v2242_v53, %v976_v10 }
 0x183   : > { %v2409_v25 = vadd.f32 %v1026_v24, %v2237_v0 }
 0x184   : > { %v2412_v61 = vadd.f32 %v1031_v34, %v2259_v52 }
 0x187   : > { %1196 = vperm.xlu1 %1458, %v2627_v55  }
 0x188   : > { %v968_v22 = vpop.permute.xlu1 %967  ;;  %v1073_v6 = vpop.permute.xlu2 %1072 }
 0x189   : > { %v1029_v23 = vmul.f32 %v2242_v53, %v968_v22  ;;  %v988_v26 = vpop.permute.xlu0 %987  ;;  %v1200_v57 = vmul.f32 %v2415_v47, %v1073_v6 }
 0x18a   : > { %v1034_v29 = vmul.f32 %v2242_v53, %v988_v26 }
 0x18b   : > { %v2429_v0 = vadd.f32 %v1029_v23, %v2254_v1  ;;  %v1232_v17 = vadd.f32 %v1200_v57, %v2257_v7 }
 0x18c   : > { %v2433_v55 = vadd.f32 %v1034_v29, %v2276_v12 }
 0x18d   : > { %1265 = vst.msk [vmem:[%s2426_s28] sm:$0xff] %vm1264_vm0, %v1232_v17 }
 0x190   : > { %v980_v52 = vpop.permute.xlu1 %979  ;;  %v1085_v3 = vpop.permute.xlu2 %1084 }
 0x191   : > { %v1032_v11 = vmul.f32 %v2242_v53, %v980_v52  ;;  %v1000_v54 = vpop.permute.xlu0 %999  ;;  %v1203_v36 = vmul.f32 %v2415_v47, %v1085_v3 }
 0x192   : > { %v1037_v38 = vmul.f32 %v2242_v53, %v1000_v54 }
 0x193   : > { %v2441_v1 = vadd.f32 %v1032_v11, %v2271_v27  ;;  %v1235_v7 = vadd.f32 %v1203_v36, %v2274_v2 }
 0x194   : > { %v2445_v12 = vadd.f32 %v1037_v38, %v2293_v30 }
 0x195   : > { %1268 = vst.msk [vmem:[%s2426_s28 + $0x18] sm:$0xff] %vm1264_vm0, %v1235_v7 }
 0x198   : > { %v992_v28 = vpop.permute.xlu1 %991  ;;  %v1093_v39 = vpop.permute.xlu2 %1092 }
 0x199   : > { %v1035_v14 = vmul.f32 %v2242_v53, %v992_v28  ;;  %v1205_v20 = vmul.f32 %v2415_v47, %v1093_v39 }
 0x19a   : > { %v1077_v50 = vpop.permute.xlu0 %1076 }
 0x19b   : > { %v2452_v31 = vadd.f32 %v1035_v14, %v2288_v18  ;;  %v1237_v27 = vadd.f32 %v1205_v20, %v2291_v42  ;;  %v1201_v2 = vmul.f32 %v2415_v47, %v1077_v50 }
 0x19d   : > { %1270 = vst.msk [vmem:[%s2426_s28 + $0x28] sm:$0xff] %vm1264_vm0, %v1237_v27  ;;  %v1233_v30 = vadd.f32 %v1201_v2, %v2309_v56 }
 0x19f   : > { %1266 = vst.msk [vmem:[%s2426_s28 + $0x8] sm:$0xff] %vm1264_vm0, %v1233_v30 }
 0x1a0   : > { %v1004_v4 = vpop.permute.xlu1 %1003  ;;  %v1105_v59 = vpop.permute.xlu2 %1104 }
 0x1a1   : > { %v1038_v46 = vmul.f32 %v2242_v53, %v1004_v4  ;;  %v1208_v15 = vmul.f32 %v2415_v47, %v1105_v59 }
 0x1a2   : > { %v1097_v18 = vpop.permute.xlu0 %1096 }
 0x1a3   : > { %v2464_v35 = vadd.f32 %v1038_v46, %v2302_v8  ;;  %v1240_v42 = vadd.f32 %v1208_v15, %v2305_v45  ;;  %v1206_v62 = vmul.f32 %v2415_v47, %v1097_v18 }
 0x1a5   : > { %1273 = vst.msk [vmem:[%s2426_s28 + $0x40] sm:$0xff] %vm1264_vm0, %v1240_v42  ;;  %v1238_v56 = vadd.f32 %v1206_v62, %v2324_v9 }
 0x1a7   : > { %1271 = vst.msk [vmem:[%s2426_s28 + $0x30] sm:$0xff] %vm1264_vm0, %v1238_v56 }
 0x1a8   : > { %v1117_v53 = vpop.permute.xlu2 %1116 }
 0x1a9   : > { %v1081_v24 = vpop.permute.xlu1 %1080  ;;  %v1211_v10 = vmul.f32 %v2415_v47, %v1117_v53 }
 0x1aa   : > { %v1202_v34 = vmul.f32 %v2415_v47, %v1081_v24  ;;  %v1109_v8 = vpop.permute.xlu0 %1108 }
 0x1ab   : > { %v1243_v22 = vadd.f32 %v1211_v10, %v2317_v37  ;;  %v1209_v45 = vmul.f32 %v2415_v47, %v1109_v8 }
 0x1ac   : > { %v1234_v6 = vadd.f32 %v1202_v34, %v2321_v33 }
 0x1ad   : > { %1276 = vst.msk [vmem:[%s2426_s28 + $0x58] sm:$0xff] %vm1264_vm0, %v1243_v22  ;;  %v1241_v9 = vadd.f32 %v1209_v45, %v2339_v58 }
 0x1ae   : > { %1267 = vst.msk [vmem:[%s2426_s28 + $0x10] sm:$0xff] %vm1264_vm0, %v1234_v6 }
 0x1af   : > { %1274 = vst.msk [vmem:[%s2426_s28 + $0x48] sm:$0xff] %vm1264_vm0, %v1241_v9 }
 0x1b0   : > { %v1129_v23 = vpop.permute.xlu2 %1128 }
 0x1b1   : > { %v1089_v26 = vpop.permute.xlu1 %1088  ;;  %v1214_v57 = vmul.f32 %v2415_v47, %v1129_v23 }
 0x1b2   : > { %v1204_v37 = vmul.f32 %v2415_v47, %v1089_v26  ;;  %v1121_v29 = vpop.permute.xlu0 %1120 }
 0x1b3   : > { %v1246_v17 = vadd.f32 %v1214_v57, %v2332_v13  ;;  %v1212_v33 = vmul.f32 %v2415_v47, %v1121_v29 }
 0x1b4   : > { %v1236_v52 = vadd.f32 %v1204_v37, %v2336_v49 }
 0x1b5   : > { %1279 = vst.msk [vmem:[%s2426_s28 + $0x70] sm:$0xff] %vm1264_vm0, %v1246_v17  ;;  %v1244_v58 = vadd.f32 %v1212_v33, %v2354_v5 }
 0x1b6   : > { %1269 = vst.msk [vmem:[%s2426_s28 + $0x20] sm:$0xff] %vm1264_vm0, %v1236_v52 }
 0x1b7   : > { %1277 = vst.msk [vmem:[%s2426_s28 + $0x60] sm:$0xff] %vm1264_vm0, %v1244_v58 }
 0x1b8   : > { %v1141_v3 = vpop.permute.xlu2 %1140 }
 0x1b9   : > { %v1101_v11 = vpop.permute.xlu1 %1100  ;;  %v1217_v54 = vmul.f32 %v2415_v47, %v1141_v3 }
 0x1ba   : > { %v1207_v13 = vmul.f32 %v2415_v47, %v1101_v11  ;;  %v1133_v36 = vpop.permute.xlu0 %1132 }
 0x1bb   : > { %v1249_v38 = vadd.f32 %v1217_v54, %v2347_v60  ;;  %v1215_v49 = vmul.f32 %v2415_v47, %v1133_v36 }
 0x1bc   : > { %v1239_v7 = vadd.f32 %v1207_v13, %v2351_v40 }
 0x1bd   : > { %1282 = vst.msk [vmem:[%s2426_s28 + $0x88] sm:$0xff] %vm1264_vm0, %v1249_v38  ;;  %v1247_v5 = vadd.f32 %v1215_v49, %v2369_v43 }
 0x1be   : > { %1272 = vst.msk [vmem:[%s2426_s28 + $0x38] sm:$0xff] %vm1264_vm0, %v1239_v7 }
 0x1bf   : > { %1280 = vst.msk [vmem:[%s2426_s28 + $0x78] sm:$0xff] %vm1264_vm0, %v1247_v5 }
 0x1c0   : > { %v1153_v28 = vpop.permute.xlu2 %1152 }
 0x1c1   : > { %v1113_v39 = vpop.permute.xlu1 %1112  ;;  %v1220_v14 = vmul.f32 %v2415_v47, %v1153_v28 }
 0x1c2   : > { %v1210_v60 = vmul.f32 %v2415_v47, %v1113_v39  ;;  %v1145_v20 = vpop.permute.xlu0 %1144 }
 0x1c3   : > { %v1252_v50 = vadd.f32 %v1220_v14, %v2362_v19  ;;  %v1218_v40 = vmul.f32 %v2415_v47, %v1145_v20 }
 0x1c4   : > { %v1242_v27 = vadd.f32 %v1210_v60, %v2366_v32 }
 0x1c5   : > { %1285 = vst.msk [vmem:[%s2426_s28 + $0xa0] sm:$0xff] %vm1264_vm0, %v1252_v50  ;;  %v1250_v43 = vadd.f32 %v1218_v40, %v2384_v41 }
 0x1c6   : > { %1275 = vst.msk [vmem:[%s2426_s28 + $0x50] sm:$0xff] %vm1264_vm0, %v1242_v27 }
 0x1c7   : > { %1283 = vst.msk [vmem:[%s2426_s28 + $0x90] sm:$0xff] %vm1264_vm0, %v1250_v43 }
 0x1c8   : > { %v1165_v2 = vpop.permute.xlu2 %1164 }
 0x1c9   : > { %v1125_v30 = vpop.permute.xlu1 %1124  ;;  %v1223_v4 = vmul.f32 %v2415_v47, %v1165_v2 }
 0x1ca   : > { %v1213_v19 = vmul.f32 %v2415_v47, %v1125_v30  ;;  %v1157_v59 = vpop.permute.xlu0 %1156 }
 0x1cb   : > { %v1255_v46 = vadd.f32 %v1223_v4, %v2377_v21  ;;  %v1221_v32 = vmul.f32 %v2415_v47, %v1157_v59 }
 0x1cc   : > { %v1245_v15 = vadd.f32 %v1213_v19, %v2381_v48 }
 0x1cd   : > { %1288 = vst.msk [vmem:[%s2426_s28 + $0xb8] sm:$0xff] %vm1264_vm0, %v1255_v46  ;;  %v1253_v41 = vadd.f32 %v1221_v32, %v2398_v44 }
 0x1ce   : > { %1278 = vst.msk [vmem:[%s2426_s28 + $0x68] sm:$0xff] %vm1264_vm0, %v1245_v15 }
 0x1cf   : > { %1286 = vst.msk [vmem:[%s2426_s28 + $0xa8] sm:$0xff] %vm1264_vm0, %v1253_v41 }
 0x1d0   : > { %v1177_v18 = vpop.permute.xlu2 %1176 }
 0x1d1   : > { %v1137_v42 = vpop.permute.xlu1 %1136  ;;  %v1226_v62 = vmul.f32 %v2415_v47, %v1177_v18 }
 0x1d2   : > { %v1216_v21 = vmul.f32 %v2415_v47, %v1137_v42  ;;  %v1169_v56 = vpop.permute.xlu0 %1168 }
 0x1d3   : > { %v1258_v53 = vadd.f32 %v1226_v62, %v2391_v16  ;;  %v1224_v48 = vmul.f32 %v2415_v47, %v1169_v56 }
 0x1d4   : > { %v1248_v24 = vadd.f32 %v1216_v21, %v2395_v63 }
 0x1d5   : > { %1291 = vst.msk [vmem:[%s2426_s28 + $0xd0] sm:$0xff] %vm1264_vm0, %v1258_v53  ;;  %v1256_v44 = vadd.f32 %v1224_v48, %v2412_v61 }
 0x1d6   : > { %1281 = vst.msk [vmem:[%s2426_s28 + $0x80] sm:$0xff] %vm1264_vm0, %v1248_v24 }
 0x1d7   : > { %1289 = vst.msk [vmem:[%s2426_s28 + $0xc0] sm:$0xff] %vm1264_vm0, %v1256_v44 }
 0x1d8   : > { %v1189_v10 = vpop.permute.xlu2 %1188 }
 0x1d9   : > { %v1149_v34 = vpop.permute.xlu1 %1148  ;;  %v1229_v8 = vmul.f32 %v2415_v47, %v1189_v10 }
 0x1da   : > { %v1219_v16 = vmul.f32 %v2415_v47, %v1149_v34  ;;  %v1181_v22 = vpop.permute.xlu0 %1180 }
 0x1db   : > { %v1261_v63 = vadd.f32 %v1229_v8, %v2405_v51  ;;  %v1227_v45 = vmul.f32 %v2415_v47, %v1181_v22 }
 0x1dc   : > { %v1251_v6 = vadd.f32 %v1219_v16, %v2409_v25 }
 0x1dd   : > { %1294 = vst.msk [vmem:[%s2426_s28 + $0xe8] sm:$0xff] %vm1264_vm0, %v1261_v63  ;;  %v1259_v61 = vadd.f32 %v1227_v45, %v2433_v55 }
 0x1de   : > { %1284 = vst.msk [vmem:[%s2426_s28 + $0x98] sm:$0xff] %vm1264_vm0, %v1251_v6 }
 0x1df   : > { %1292 = vst.msk [vmem:[%s2426_s28 + $0xd8] sm:$0xff] %vm1264_vm0, %v1259_v61 }
 0x1e1   : > { %v1161_v9 = vpop.permute.xlu1 %1160 }
 0x1e2   : > { %v1222_v23 = vmul.f32 %v2415_v47, %v1161_v9  ;;  %v1193_v26 = vpop.permute.xlu0 %1192 }
 0x1e3   : > { %v1230_v51 = vmul.f32 %v2415_v47, %v1193_v26 }
 0x1e4   : > { %v1254_v57 = vadd.f32 %v1222_v23, %v2429_v0 }
 0x1e5   : > { %v1262_v25 = vadd.f32 %v1230_v51, %v2445_v12 }
 0x1e6   : > { %1287 = vst.msk [vmem:[%s2426_s28 + $0xb0] sm:$0xff] %vm1264_vm0, %v1254_v57 }
 0x1e7   : > { %1295 = vst.msk [vmem:[%s2426_s28 + $0xf0] sm:$0xff] %vm1264_vm0, %v1262_v25 }
 0x1e9   : > { %v1173_v55 = vpop.permute.xlu1 %1172 }
 0x1ea   : > { %v1225_v37 = vmul.f32 %v2415_v47, %v1173_v55 }
 0x1ec   : > { %v1257_v29 = vadd.f32 %v1225_v37, %v2441_v1 }
 0x1ee   : > { %1290 = vst.msk [vmem:[%s2426_s28 + $0xc8] sm:$0xff] %vm1264_vm0, %v1257_v29 }
 0x1f1   : > { %v1185_v17 = vpop.permute.xlu1 %1184 }
 0x1f2   : > { %v1228_v33 = vmul.f32 %v2415_v47, %v1185_v17 }
 0x1f4   : > { %v1260_v52 = vadd.f32 %v1228_v33, %v2452_v31 }
 0x1f6   : > { %1293 = vst.msk [vmem:[%s2426_s28 + $0xe0] sm:$0xff] %vm1264_vm0, %v1260_v52 }
 0x1f9   : > { %v1197_v0 = vpop.permute.xlu1 %1196 }
 0x1fa   : > { %v1231_v12 = vmul.f32 %v2415_v47, %v1197_v0 }
 0x1fc   : > { %v1263_v58 = vadd.f32 %v1231_v12, %v2464_v35 }
 0x1fe   : > { %1296 = vst.msk [vmem:[%s2426_s28 + $0xf8] sm:$0xff] %vm1264_vm0, %v1263_v58 }
 0x1ff PF: > { %s13_s14 = sadd.s32 1, %s1609_s14   ;;  %s2644_s12 = smov %s1605_s13 }
 0x200   : > { %p10_p5 = scmp.ge.s32.totalorder %s13_s14, 4   ;;  %s2645_s13 = smov %s2647_s15 }
 0x202   :  { %12 = sbr.rel (!%p10_p5) target bundleno = 2 (0x2), region = 65 }

// kernel: additional_conv_pallas.7
= control target key start
LH: loop header
LB: loop body
LE: loop exit
PB: predicated region body
PF: predicated region fallthrough
CT: control target
= control target key end

     0   :  { %s2428_s12 = smov 0   ;;  %s2430_s13 = smov 0   ;;  %s4045_s0 = inlined_call_operand.vmem [shape: f32[2,16,16,8], index: 0, kind: input, shape index: {}]   ;;  %s4046_s1 = inlined_call_operand.vmem [shape: f32[2,2,8], index: 1, kind: input, shape index: {}]   ;;  %s4047_s2 = inlined_call_operand.vmem [shape: f32[8,8], index: 2, kind: input, shape index: {}]   ;;  %s4048_s3 = inlined_call_operand.vmem [shape: f32[2,16,16,8], index: 3, kind: output, shape index: {}]  }
   0x1   :  { %s2432_s14 = smov 0  }
   0x2 LB: > { %s25_s15 = sadd.s32 1, %s2394_s13  ;;  %p2181_p0 = scmp.ge.s32.totalorder %s2398_s14, 1  ;;  %s2398_s14 = sphi %s2432_s14, %s13_s14   ;;  %s2394_s13 = sphi %s2430_s13, %s4363_s13   ;;  %s2390_s12 = sphi %s2428_s12, %s4362_s12  }
   0x3   : > { %p27_p1 = scmp.ge.s32.totalorder %s25_s15, 2  ;;  %p168_p2 = scmp.lt.s32.totalorder %s2398_s14, 3 }
   0x5   : > { %s4365_s15 = smov (%p27_p1, %s25_s15), 0  ;;  %p169_p3 = pnand %p2181_p0, %p168_p2 }
   0x7   : > { %172 = sbr.rel (%p169_p3) target bundleno = 867 (0x363), region = 32 }
   0xc   : > { %p207_p4 = scmp.lt.s32.totalorder %s2390_s12, 1  ;;  %v2400_v0 = vmov 0   ;;  %vm2036_vm0 = vcmask 64512  }
   0xd   : > { %2225 = vset.pattern.permute.xlu2 %v2400_v0  ;;  %2224 = vset.pattern.permute.xlu1 %v2400_v0 }
   0xe   : > { %2223 = vset.pattern.permute.xlu0 %v2400_v0  ;;  %s4367_s12 = smov (!%p207_p4, %s2390_s12), 1 }
   0xf   : > { %s2189_s16 = sshll.u32 %s4367_s12, 8  ;;  %s2184_s17 = sshll.u32 %s4367_s12, 1 }
  0x10   : > { %s2455_s20 = scalar_lea.vmem %s4045_s0, %s2189_s16  ;;  %s220_s23 = scalar_lea.vmem %s4046_s1, %s2184_s17 }
  0x11   : > { %v236_v1 = vld [vmem:[%s2455_s20 + $0x20] sm:$0xff]  ;;  %v234_v3 = vld [vmem:[%s2455_s20 + $0x10] sm:$0xff]  ;;  %v237_v7 = vld [vmem:[%s2455_s20 + $0x28] sm:$0xff]  ;;  %s3880_s30 = scalar_lea.vmem %s4048_s3, %s2189_s16 }
  0x12   : > { %v264_v2 = vld [vmem:[%s220_s23] sm:$0x3]  ;;  %v235_v8 = vld [vmem:[%s2455_s20 + $0x18] sm:$0xff]  ;;  %v233_v9 = vld [vmem:[%s2455_s20 + $0x8] sm:$0xff] }
  0x13   : > { %v2462_v4 = vperm.slane %v264_v2, 0  ;;  %v2464_v5 = vperm.slane %v264_v2, 1  ;;  %v232_v6 = vld [vmem:[%s2455_s20] sm:$0xff]  ;;  %v239_v28 = vld [vmem:[%s2455_s20 + $0x38] sm:$0xff]  ;;  %v238_v30 = vld [vmem:[%s2455_s20 + $0x30] sm:$0xff] }
  0x14   : > { %v240_v16 = vld [vmem:[%s2455_s20 + $0x40] sm:$0xff]  ;;  %v243_v34 = vld [vmem:[%s2455_s20 + $0x58] sm:$0xff]  ;;  %v242_v36 = vld [vmem:[%s2455_s20 + $0x50] sm:$0xff] }
  0x15   : > { %v270_v10 = vmul.f32 %v2462_v4, %v236_v1  ;;  %v268_v11 = vmul.f32 %v2462_v4, %v234_v3  ;;  %v266_v12 = vmul.f32 %v2462_v4, %v232_v6  ;;  %v271_v13 = vmul.f32 %v2462_v4, %v237_v7  ;;  %v241_v38 = vld [vmem:[%s2455_s20 + $0x48] sm:$0xff]  ;;  %v246_v47 = vld [vmem:[%s2455_s20 + $0x70] sm:$0xff]  ;;  %v244_v61 = vld [vmem:[%s2455_s20 + $0x60] sm:$0xff] }
  0x16   : > { %v269_v14 = vmul.f32 %v2462_v4, %v235_v8  ;;  %v267_v15 = vmul.f32 %v2462_v4, %v233_v9  ;;  %v274_v26 = vmul.f32 %v2462_v4, %v240_v16  ;;  %v273_v33 = vmul.f32 %v2462_v4, %v239_v28  ;;  %v245_v50 = vld [vmem:[%s2455_s20 + $0x68] sm:$0xff] }
  0x17   : > { %v303_v17 = vadd.f32 %v2464_v5, %v270_v10  ;;  %v301_v18 = vadd.f32 %v2464_v5, %v268_v11  ;;  %v2480_v19 = vadd.f32 %v2464_v5, %v266_v12  ;;  %v2483_v20 = vadd.f32 %v2464_v5, %v271_v13  ;;  %v249_v6 = vld [vmem:[%s2455_s20 + $0x88] sm:$0xff] }
  0x18   : > { %v2486_v21 = vadd.f32 %v2464_v5, %v269_v14  ;;  %v2489_v22 = vadd.f32 %v2464_v5, %v267_v15  ;;  %v2499_v32 = vadd.f32 %v2464_v5, %v274_v26  ;;  %v272_v35 = vmul.f32 %v2462_v4, %v238_v30 }
  0x19   : > { %v339_v23 = vmul.f32 1.442695, %v303_v17  ;;  %v335_v24 = vmul.f32 1.442695, %v301_v18  ;;  %v331_v25 = vmul.f32 1.442695, %v2480_v19  ;;  %v277_v37 = vmul.f32 %v2462_v4, %v243_v34 }
  0x1a   : > { %v341_v27 = vmul.f32 1.442695, %v2483_v20  ;;  %v337_v29 = vmul.f32 1.442695, %v2486_v21  ;;  %v333_v31 = vmul.f32 1.442695, %v2489_v22  ;;  %v2509_v41 = vadd.f32 %v2464_v5, %v273_v33 }
  0x1b   : > { %2247 = vpow2.f32 %v339_v23  ;;  %v347_v40 = vmul.f32 1.442695, %v2499_v32  ;;  %v276_v42 = vmul.f32 %v2462_v4, %v242_v36  ;;  %v2513_v44 = vadd.f32 %v2464_v5, %v272_v35  ;;  %v252_v33 = vld [vmem:[%s2455_s20 + $0xa0] sm:$0xff] }
  0x1c   : > { %2249 = vpow2.f32 %v335_v24  ;;  %v275_v46 = vmul.f32 %v2462_v4, %v241_v38  ;;  %v2518_v49 = vadd.f32 %v2464_v5, %v277_v37  ;;  %v345_v52 = vmul.f32 1.442695, %v2509_v41  ;;  %v248_v24 = vld [vmem:[%s2455_s20 + $0x80] sm:$0xff] }
  0x1d   : > { %2251 = vpow2.f32 %v331_v25  ;;  %v2523_v53 = vadd.f32 %v2464_v5, %v276_v42  ;;  %v343_v55 = vmul.f32 1.442695, %v2513_v44  ;;  %v280_v56 = vmul.f32 %v2462_v4, %v246_v47  ;;  %v247_v25 = vld [vmem:[%s2455_s20 + $0x78] sm:$0xff]  ;;  %v257_v47 = vld [vmem:[%s2455_s20 + $0xc8] sm:$0xff] }
  0x1e   : > { %2253 = vpow2.f32 %v341_v27  ;;  %v2528_v57 = vadd.f32 %v2464_v5, %v275_v46  ;;  %v279_v58 = vmul.f32 %v2462_v4, %v245_v50  ;;  %v353_v60 = vmul.f32 1.442695, %v2518_v49  ;;  %v258_v46 = vld [vmem:[%s2455_s20 + $0xd0] sm:$0xff] }
  0x1f   : > { %2255 = vpow2.f32 %v337_v29  ;;  %v351_v0 = vmul.f32 1.442695, %v2523_v53  ;;  %v2539_v3 = vadd.f32 %v2464_v5, %v280_v56  ;;  %v278_v11 = vmul.f32 %v2462_v4, %v244_v61 }
  0x20   : > { %2257 = vpow2.f32 %v333_v31  ;;  %v349_v9 = vmul.f32 1.442695, %v2528_v57  ;;  %v2548_v10 = vadd.f32 %v2464_v5, %v279_v58  ;;  %v283_v14 = vmul.f32 %v2462_v4, %v249_v6 }
  0x21   : > { %v2248_v39 = vpop.eup %2247  ;;  %v359_v16 = vmul.f32 1.442695, %v2539_v3  ;;  %v2560_v23 = vadd.f32 %v2464_v5, %v278_v11  ;;  %v282_v30 = vmul.f32 %v2462_v4, %v248_v24  ;;  %v281_v31 = vmul.f32 %v2462_v4, %v247_v25  ;;  %v260_v24 = vld [vmem:[%s2455_s20 + $0xe0] sm:$0xff]  ;;  %v259_v25 = vld [vmem:[%s2455_s20 + $0xd8] sm:$0xff] }
  0x22   : > { %v2250_v43 = vpop.eup %2249  ;;  %2259 = vtanh.f32 %v2248_v39  ;;  %v286_v38 = vmul.f32 %v2462_v4, %v252_v33  ;;  %v250_v39 = vld [vmem:[%s2455_s20 + $0x90] sm:$0xff]  ;;  %v293_v33 = vmul.f32 %v2462_v4, %v259_v25 }
  0x23   : > { %v2252_v45 = vpop.eup %2251  ;;  %2261 = vtanh.f32 %v2250_v43  ;;  %v2585_v42 = vadd.f32 %v2464_v5, %v282_v30  ;;  %v2588_v43 = vadd.f32 %v2464_v5, %v281_v31  ;;  %v284_v58 = vmul.f32 %v2462_v4, %v250_v39 }
  0x24   : > { %v2254_v48 = vpop.eup %2253  ;;  %2263 = vtanh.f32 %v2252_v45  ;;  %v294_v31 = vmul.f32 %v2462_v4, %v260_v24 }
  0x25   : > { %v2256_v51 = vpop.eup %2255  ;;  %2265 = vpow2.f32 %v347_v40  ;;  %v2627_v11 = vadd.f32 %v2464_v5, %v284_v58 }
  0x26   : > { %v2258_v54 = vpop.eup %2257  ;;  %2267 = vtanh.f32 %v2254_v48  ;;  %v256_v48 = vld [vmem:[%s2455_s20 + $0xc0] sm:$0xff] }
  0x27   : > { %2269 = vtanh.f32 %v2256_v51 }
  0x28   : > { %v2260_v59 = vpop.eup %2259  ;;  %2271 = vtanh.f32 %v2258_v54  ;;  %v291_v54 = vmul.f32 %v2462_v4, %v257_v47 }
  0x29   : > { %v2262_v62 = vpop.eup %2261  ;;  %v2533_v63 = vmul.f32 %v2260_v59, %v303_v17  ;;  %2273 = vpow2.f32 %v345_v52  ;;  %v292_v52 = vmul.f32 %v2462_v4, %v258_v46  ;;  %v290_v59 = vmul.f32 %v2462_v4, %v256_v48 }
  0x2a   : > { %v2264_v1 = vpop.eup %2263  ;;  %v2536_v2 = vmul.f32 %v2262_v62, %v301_v18  ;;  %2275 = vpow2.f32 %v343_v55 }
  0x2b   : > { %4089 = vst [vmem:[#allocation2_spill] sm:$0xff] %v2533_v63  ;;  %v2266_v7 = vpop.eup %2265  ;;  %482 = vperm.xlu2 %2225, %v2533_v63   ;;  %v2544_v8 = vmul.f32 %v2264_v1, %v2480_v19  ;;  %2277 = vpow2.f32 %v353_v60  ;;  %v357_v19 = vmul.f32 1.442695, %v2548_v10  ;;  %v2611_v62 = vadd.f32 %v2464_v5, %v292_v52 }
  0x2c   : > { %4090 = vst [vmem:[#allocation3_spill] sm:$0xff] %v2536_v2  ;;  %v2268_v12 = vpop.eup %2267  ;;  %472 = vperm.xlu1 %2224, %v2536_v2   ;;  %2279 = vpow2.f32 %v351_v0  ;;  %v2614_v0 = vadd.f32 %v2464_v5, %v291_v54  ;;  %v2621_v6 = vadd.f32 %v2464_v5, %v290_v59  ;;  %v263_v54 = vld [vmem:[%s2455_s20 + $0xf8] sm:$0xff] }
  0x2d   : > { %4091 = vst [vmem:[#allocation4_spill] sm:$0xff] %v2544_v8  ;;  %v2270_v13 = vpop.eup %2269  ;;  %462 = vperm.xlu0 %2223, %v2544_v8   ;;  %2281 = vtanh.f32 %v2266_v7  ;;  %v2556_v18 = vmul.f32 %v2268_v12, %v2483_v20  ;;  %v2571_v20 = vadd.f32 %v2464_v5, %v283_v14  ;;  %v361_v7 = vmul.f32 1.442695, %v2588_v43  ;;  %v255_v14 = vld [vmem:[%s2455_s20 + $0xb8] sm:$0xff] }
  0x2e   : > { %v2272_v15 = vpop.eup %2271  ;;  %2283 = vpow2.f32 %v349_v9  ;;  %v2565_v27 = vmul.f32 %v2270_v13, %v2486_v21  ;;  %v355_v21 = vmul.f32 1.442695, %v2560_v23  ;;  %v297_v59 = vmul.f32 %v2462_v4, %v263_v54 }
  0x2f   : > { %v2274_v17 = vpop.eup %2273  ;;  %4092 = vst [vmem:[#allocation5_spill] sm:$0xff] %v2556_v18  ;;  %v2568_v28 = vmul.f32 %v2272_v15, %v2489_v22  ;;  %v251_v22 = vld [vmem:[%s2455_s20 + $0x98] sm:$0xff]  ;;  %v365_v37 = vmul.f32 1.442695, %v2571_v20  ;;  %v381_v25 = vmul.f32 1.442695, %v2614_v0 }
  0x30   : > { %v2276_v26 = vpop.eup %2275  ;;  %4093 = vst [vmem:[#allocation6_spill] sm:$0xff] %v2565_v27  ;;  %2285 = vtanh.f32 %v2274_v17  ;;  %v285_v45 = vmul.f32 %v2462_v4, %v251_v22 }
  0x31   : > { %2287 = vtanh.f32 %v2276_v26  ;;  %v2278_v29 = vpop.eup %2277  ;;  %v254_v26 = vld [vmem:[%s2455_s20 + $0xb0] sm:$0xff] }
  0x32   : > { %2289 = vpow2.f32 %v359_v16  ;;  %v2280_v34 = vpop.eup %2279  ;;  %v2618_v1 = vadd.f32 %v2464_v5, %v285_v45  ;;  %v288_v39 = vmul.f32 %v2462_v4, %v254_v26 }
  0x33   : > { %487 = vperm.xlu2 %2225, %v2556_v18   ;;  %2291 = vpow2.f32 %v357_v19  ;;  %v2282_v35 = vpop.eup %2281  ;;  %v261_v19 = vld [vmem:[%s2455_s20 + $0xe8] sm:$0xff] }
  0x34   : > { %477 = vperm.xlu1 %2224, %v2565_v27   ;;  %v2284_v36 = vpop.eup %2283  ;;  %2293 = vtanh.f32 %v2278_v29  ;;  %v2595_v51 = vmul.f32 %v2282_v35, %v2499_v32  ;;  %v2608_v32 = vadd.f32 %v2464_v5, %v286_v38  ;;  %v369_v17 = vmul.f32 1.442695, %v2618_v1  ;;  %v253_v29 = vld [vmem:[%s2455_s20 + $0xa8] sm:$0xff] }
  0x35   : > { %467 = vperm.xlu0 %2223, %v2568_v28   ;;  %2295 = vtanh.f32 %v2280_v34  ;;  %v295_v30 = vmul.f32 %v2462_v4, %v261_v19  ;;  %v2659_v38 = vadd.f32 %v2464_v5, %v293_v33  ;;  %v383_v19 = vmul.f32 1.442695, %v2611_v62 }
  0x36   : > { %v2286_v40 = vpop.eup %2285  ;;  %2297 = vpow2.f32 %v355_v21  ;;  %v371_v13 = vmul.f32 1.442695, %v2608_v32  ;;  %v289_v21 = vmul.f32 %v2462_v4, %v255_v14 }
  0x37   : > { %v2288_v50 = vpop.eup %2287  ;;  %v2600_v56 = vmul.f32 %v2286_v40, %v2509_v41  ;;  %2299 = vtanh.f32 %v2284_v36  ;;  %v363_v41 = vmul.f32 1.442695, %v2585_v42  ;;  %v2653_v36 = vadd.f32 %v2464_v5, %v295_v30 }
  0x38   : > { %v2290_v55 = vpop.eup %2289  ;;  %v2605_v61 = vmul.f32 %v2288_v50, %v2513_v44  ;;  %v287_v40 = vmul.f32 %v2462_v4, %v253_v29  ;;  %v2667_v47 = vadd.f32 %v2464_v5, %v289_v21  ;;  %v2670_v50 = vadd.f32 %v2464_v5, %v288_v39 }
  0x39   : > { %v2292_v60 = vpop.eup %2291  ;;  %2301 = vtanh.f32 %v2290_v55  ;;  %v262_v55 = vld [vmem:[%s2455_s20 + $0xf0] sm:$0xff]  ;;  %v379_v30 = vmul.f32 1.442695, %v2621_v6  ;;  %v389_v21 = vmul.f32 1.442695, %v2653_v36 }
  0x3a   : > { %4094 = vst [vmem:[#allocation7_spill] sm:$0xff] %v2605_v61  ;;  %v2294_v44 = vpop.eup %2293  ;;  %2303 = vtanh.f32 %v2292_v60  ;;  %v2673_v52 = vadd.f32 %v2464_v5, %v287_v40  ;;  %v296_v60 = vmul.f32 %v2462_v4, %v262_v55  ;;  %v375_v14 = vmul.f32 1.442695, %v2670_v50 }
  0x3b   : > { %502 = vperm.xlu2 %2225, %v2595_v51   ;;  %v2296_v9 = vpop.eup %2295  ;;  %2305 = vpow2.f32 %v365_v37  ;;  %v2633_v16 = vmul.f32 %v2294_v44, %v2518_v49  ;;  %v367_v49 = vmul.f32 1.442695, %v2627_v11  ;;  %v2656_v37 = vadd.f32 %v2464_v5, %v294_v31 }
  0x3c   : > { %497 = vperm.xlu1 %2224, %v2600_v56   ;;  %v2298_v12 = vpop.eup %2297  ;;  %2307 = vpow2.f32 %v363_v41  ;;  %v2645_v34 = vmul.f32 %v2296_v9, %v2523_v53 }
  0x3d   : > { %492 = vperm.xlu0 %2223, %v2605_v61   ;;  %v2300_v15 = vpop.eup %2299  ;;  %4095 = vst [vmem:[#allocation8_spill] sm:$0xff] %v2633_v16  ;;  %2309 = vpow2.f32 %v361_v7 }
  0x3e   : > { %4096 = vst [vmem:[#allocation9_spill] sm:$0xff] %v2645_v34  ;;  %2311 = vtanh.f32 %v2298_v12  ;;  %v2650_v35 = vmul.f32 %v2300_v15, %v2528_v57  ;;  %v377_v12 = vmul.f32 1.442695, %v2667_v47 }
  0x3f   : > { %v2302_v22 = vpop.eup %2301  ;;  %2313 = vpow2.f32 %v371_v13  ;;  %v2690_v13 = vadd.f32 %v2464_v5, %v297_v59 }
  0x40   : > { %4097 = vst [vmem:[#allocation10_spill] sm:$0xff] %v2650_v35  ;;  %v2304_v53 = vpop.eup %2303  ;;  %2315 = vpow2.f32 %v369_v17  ;;  %v2678_v58 = vmul.f32 %v2302_v22, %v2539_v3  ;;  %v2693_v3 = vadd.f32 %v2464_v5, %v296_v60 }
  0x41   : > { %v2306_v45 = vpop.eup %2305  ;;  %2317 = vpow2.f32 %v367_v49  ;;  %v2683_v44 = vmul.f32 %v2304_v53, %v2548_v10  ;;  %v373_v10 = vmul.f32 1.442695, %v2673_v52  ;;  %v393_v60 = vmul.f32 1.442695, %v2690_v13 }
  0x42   : > { %v2308_v57 = vpop.eup %2307  ;;  %2319 = vtanh.f32 %v2306_v45  ;;  %v387_v45 = vmul.f32 1.442695, %v2656_v37 }
  0x43   : > { %517 = vperm.xlu2 %2225, %v2633_v16   ;;  %v2310_v46 = vpop.eup %2309  ;;  %2321 = vtanh.f32 %v2308_v57 }
  0x44   : > { %512 = vperm.xlu1 %2224, %v2645_v34   ;;  %v2312_v48 = vpop.eup %2311  ;;  %2323 = vtanh.f32 %v2310_v46 }
  0x45   : > { %507 = vperm.xlu0 %2223, %v2650_v35   ;;  %v2314_v41 = vpop.eup %2313  ;;  %v2686_v9 = vmul.f32 %v2312_v48, %v2560_v23 }
  0x46   : > { %v2316_v7 = vpop.eup %2315  ;;  %2325 = vtanh.f32 %v2314_v41 }
  0x47   : > { %4098 = vst [vmem:[#allocation11_spill] sm:$0xff] %v2686_v9  ;;  %v2318_v4 = vpop.eup %2317  ;;  %2327 = vtanh.f32 %v2316_v7  ;;  %v391_v7 = vmul.f32 1.442695, %v2693_v3 }
  0x48   : > { %v2320_v15 = vpop.eup %2319  ;;  %2329 = vpow2.f32 %v377_v12 }
  0x49   : > { %v2322_v23 = vpop.eup %2321  ;;  %2331 = vpow2.f32 %v375_v14  ;;  %v2701_v5 = vmul.f32 %v2320_v15, %v2571_v20 }
  0x4a   : > { %v2324_v17 = vpop.eup %2323  ;;  %2333 = vpow2.f32 %v373_v10  ;;  %v2705_v24 = vmul.f32 %v2322_v23, %v2585_v42 }
  0x4b   : > { %532 = vperm.xlu2 %2225, %v2678_v58   ;;  %2335 = vtanh.f32 %v2318_v4  ;;  %v2709_v29 = vmul.f32 %v2324_v17, %v2588_v43 }
  0x4c   : > { %527 = vperm.xlu1 %2224, %v2683_v44   ;;  %v2326_v26 = vpop.eup %2325  ;;  %2337 = vpow2.f32 %v383_v19 }
  0x4d   : > { %522 = vperm.xlu0 %2223, %v2686_v9   ;;  %4099 = vst [vmem:[#allocation12_spill] sm:$0xff] %v2709_v29  ;;  %v2328_v31 = vpop.eup %2327  ;;  %2339 = vpow2.f32 %v381_v25  ;;  %v2716_v43 = vmul.f32 %v2326_v26, %v2608_v32  ;;  %v385_v32 = vmul.f32 1.442695, %v2659_v38 }
  0x4e   : > { %v2330_v33 = vpop.eup %2329  ;;  %2341 = vpow2.f32 %v379_v30  ;;  %v2720_v22 = vmul.f32 %v2328_v31, %v2618_v1 }
  0x4f   : > { %v2332_v20 = vpop.eup %2331  ;;  %2343 = vtanh.f32 %v2330_v33  ;;  %4100 = vst [vmem:[#allocation13_spill] sm:$0xff] %v2716_v43 }
  0x50   : > { %v2334_v42 = vpop.eup %2333  ;;  %2345 = vtanh.f32 %v2332_v20  ;;  %4101 = vst [vmem:[#allocation14_spill] sm:$0xff] %v2720_v22 }
  0x51   : > { %v2336_v49 = vpop.eup %2335  ;;  %2347 = vtanh.f32 %v2334_v42 }
  0x52   : > { %v2338_v53 = vpop.eup %2337  ;;  %v2723_v39 = vmul.f32 %v2336_v49, %v2627_v11  ;;  %2349 = vpow2.f32 %v389_v21 }
  0x53   : > { %547 = vperm.xlu2 %2225, %v2701_v5   ;;  %v2340_v40 = vpop.eup %2339  ;;  %2351 = vtanh.f32 %v2338_v53 }
  0x54   : > { %542 = vperm.xlu1 %2224, %v2705_v24   ;;  %v2342_v57 = vpop.eup %2341  ;;  %2353 = vtanh.f32 %v2340_v40 }
  0x55   : > { %537 = vperm.xlu0 %2223, %v2709_v29   ;;  %v2344_v46 = vpop.eup %2343  ;;  %2355 = vpow2.f32 %v387_v45 }
  0x56   : > { %v2346_v1 = vpop.eup %2345  ;;  %v2731_v11 = vmul.f32 %v2344_v46, %v2667_v47  ;;  %2357 = vpow2.f32 %v385_v32 }
  0x57   : > { %v2348_v48 = vpop.eup %2347  ;;  %v2734_v54 = vmul.f32 %v2346_v1, %v2670_v50  ;;  %2359 = vtanh.f32 %v2342_v57 }
  0x58   : > { %4102 = vst [vmem:[#allocation15_spill] sm:$0xff] %v2731_v11  ;;  %v2350_v55 = vpop.eup %2349  ;;  %v2737_v59 = vmul.f32 %v2348_v48, %v2673_v52 }
  0x59   : > { %4103 = vst [vmem:[#allocation16_spill] sm:$0xff] %v2734_v54  ;;  %v2352_v41 = vpop.eup %2351  ;;  %2361 = vtanh.f32 %v2350_v55 }
  0x5a   : > { %v2354_v12 = vpop.eup %2353  ;;  %2363 = vpow2.f32 %v393_v60  ;;  %v2745_v52 = vmul.f32 %v2352_v41, %v2611_v62 }
  0x5b   : > { %562 = vperm.xlu2 %2225, %v2716_v43   ;;  %v2356_v14 = vpop.eup %2355  ;;  %2365 = vpow2.f32 %v391_v7  ;;  %v2748_v4 = vmul.f32 %v2354_v12, %v2614_v0 }
  0x5c   : > { %557 = vperm.xlu1 %2224, %v2720_v22   ;;  %v2358_v47 = vpop.eup %2357  ;;  %4104 = vst [vmem:[#allocation17_spill] sm:$0xff] %v2745_v52  ;;  %2367 = vtanh.f32 %v2356_v14 }
  0x5d   : > { %552 = vperm.xlu0 %2223, %v2723_v39   ;;  %v2360_v50 = vpop.eup %2359  ;;  %4105 = vst [vmem:[#allocation18_spill] sm:$0xff] %v2748_v4  ;;  %2369 = vtanh.f32 %v2358_v47 }
  0x5e   : > { %v2751_v10 = vmul.f32 %v2360_v50, %v2621_v6 }
  0x5f   : > { %v2362_v15 = vpop.eup %2361 }
  0x60   : > { %v2364_v23 = vpop.eup %2363  ;;  %v2757_v25 = vmul.f32 %v2362_v15, %v2653_v36  ;;  %v2402_v15 = vmov 2  }
  0x61   : > { %v2366_v17 = vpop.eup %2365  ;;  %2371 = vtanh.f32 %v2364_v23 }
  0x62   : > { %v2368_v19 = vpop.eup %2367  ;;  %4106 = vst [vmem:[#allocation19_spill] sm:$0xff] %v2757_v25  ;;  %2373 = vtanh.f32 %v2366_v17 }
  0x63   : > { %577 = vperm.xlu2 %2225, %v2731_v11   ;;  %v2370_v62 = vpop.eup %2369  ;;  %v2760_v0 = vmul.f32 %v2368_v19, %v2656_v37  ;;  %v2401_v37 = vmov 1  }
  0x64   : > { %572 = vperm.xlu1 %2224, %v2734_v54   ;;  %v2763_v6 = vmul.f32 %v2370_v62, %v2659_v38 }
  0x65   : > { %567 = vperm.xlu0 %2223, %v2737_v59   ;;  %4107 = vst [vmem:[#allocation20_spill] sm:$0xff] %v2760_v0 }
  0x67   : > { %v2372_v26 = vpop.eup %2371 }
  0x68   : > { %v2374_v30 = vpop.eup %2373  ;;  %v2769_v31 = vmul.f32 %v2372_v26, %v2690_v13 }
  0x69   : > { %v2772_v36 = vmul.f32 %v2374_v30, %v2693_v3 }
  0x6a   : > { %4108 = vst [vmem:[#allocation21_spill] sm:$0xff] %v2769_v31 }
  0x6b   : > { %592 = vperm.xlu2 %2225, %v2745_v52  }
  0x6c   : > { %587 = vperm.xlu1 %2224, %v2748_v4  }
  0x6d   : > { %582 = vperm.xlu0 %2223, %v2751_v10  }
  0x73   : > { %607 = vperm.xlu2 %2225, %v2757_v25  }
  0x74   : > { %602 = vperm.xlu1 %2224, %v2760_v0  }
  0x75   : > { %597 = vperm.xlu0 %2223, %v2763_v6  }
  0x7b   : > { %2226 = vset.pattern.permute.xlu2 %v2401_v37 }
  0x7c   : > { %617 = vperm.xlu1 %2224, %v2769_v31   ;;  %686 = vperm.xlu2 %2226, %v2544_v8  }
  0x7d   : > { %612 = vperm.xlu0 %2223, %v2772_v36  }
  0x84   : > { %2228 = vset.pattern.permute.xlu1 %v2401_v37  ;;  %698 = vperm.xlu2 %2226, %v2565_v27  }
  0x85   : > { %2227 = vset.pattern.permute.xlu0 %v2401_v37  ;;  %694 = vperm.xlu1 %2228, %v2536_v2   ;;  %v2779_v38 = vpop.permute.xlu2 %482 }
  0x86   : > { %4109 = vst [vmem:[#allocation22_spill] sm:$0xff] %v2779_v38  ;;  %690 = vperm.xlu0 %2227, %v2568_v28  }
  0x8c   : > { %706 = vperm.xlu2 %2226, %v2556_v18  }
  0x8d   : > { %702 = vperm.xlu1 %2228, %v2533_v63   ;;  %v2784_v13 = vpop.permute.xlu2 %487 }
  0x8e   : > { %4110 = vst [vmem:[#allocation23_spill] sm:$0xff] %v2784_v13  ;;  %710 = vperm.xlu0 %2227, %v2605_v61  }
  0x94   : > { %718 = vperm.xlu2 %2226, %v2595_v51  }
  0x95   : > { %714 = vperm.xlu1 %2228, %v2600_v56   ;;  %v2789_v3 = vpop.permute.xlu2 %502 }
  0x96   : > { %4111 = vst [vmem:[#allocation24_spill] sm:$0xff] %v2789_v3  ;;  %722 = vperm.xlu0 %2227, %v2650_v35  }
  0x9c   : > { %730 = vperm.xlu2 %2226, %v2633_v16  }
  0x9d   : > { %726 = vperm.xlu1 %2228, %v2645_v34   ;;  %v2794_v33 = vpop.permute.xlu2 %517 }
  0x9e   : > { %4112 = vst [vmem:[#allocation25_spill] sm:$0xff] %v2794_v33  ;;  %734 = vperm.xlu0 %2227, %v2686_v9   ;;  %v2797_v20 = vpop.permute.xlu1 %472 }
  0x9f   : > { %4113 = vst [vmem:[#allocation26_spill] sm:$0xff] %v2797_v20  ;;  %v2799_v42 = vpop.permute.xlu0 %462 }
  0xa0   : > { %4114 = vst [vmem:[#allocation27_spill] sm:$0xff] %v2799_v42 }
  0xa4   : > { %742 = vperm.xlu2 %2226, %v2678_v58  }
  0xa5   : > { %738 = vperm.xlu1 %2228, %v2683_v44   ;;  %v2803_v49 = vpop.permute.xlu2 %532 }
  0xa6   : > { %4115 = vst [vmem:[#allocation28_spill] sm:$0xff] %v2803_v49  ;;  %746 = vperm.xlu0 %2227, %v2709_v29   ;;  %v2806_v21 = vpop.permute.xlu1 %477 }
  0xa7   : > { %4116 = vst [vmem:[#allocation29_spill] sm:$0xff] %v2806_v21  ;;  %v2808_v53 = vpop.permute.xlu0 %467 }
  0xa8   : > { %4117 = vst [vmem:[#allocation30_spill] sm:$0xff] %v2808_v53 }
  0xac   : > { %754 = vperm.xlu2 %2226, %v2701_v5  }
  0xad   : > { %750 = vperm.xlu1 %2228, %v2705_v24   ;;  %v2812_v40 = vpop.permute.xlu2 %547 }
  0xae   : > { %758 = vperm.xlu0 %2227, %v2723_v39   ;;  %v2815_v45 = vpop.permute.xlu1 %497 }
  0xaf   : > { %4118 = vst [vmem:[#allocation31_spill] sm:$0xff] %v2815_v45  ;;  %v2817_v57 = vpop.permute.xlu0 %492 }
  0xb4   : > { %766 = vperm.xlu2 %2226, %v2716_v43  }
  0xb5   : > { %762 = vperm.xlu1 %2228, %v2720_v22   ;;  %v2821_v32 = vpop.permute.xlu2 %562 }
  0xb6   : > { %770 = vperm.xlu0 %2227, %v2737_v59   ;;  %v2824_v46 = vpop.permute.xlu1 %512 }
  0xb7   : > { %4119 = vst [vmem:[#allocation32_spill] sm:$0xff] %v2824_v46  ;;  %v2826_v1 = vpop.permute.xlu0 %507 }
  0xbc   : > { %778 = vperm.xlu2 %2226, %v2731_v11  }
  0xbd   : > { %774 = vperm.xlu1 %2228, %v2734_v54   ;;  %v2830_v48 = vpop.permute.xlu2 %577 }
  0xbe   : > { %4120 = vst [vmem:[#allocation33_spill] sm:$0xff] %v2830_v48  ;;  %782 = vperm.xlu0 %2227, %v2751_v10   ;;  %v2833_v55 = vpop.permute.xlu1 %527 }
  0xbf   : > { %4121 = vst [vmem:[#allocation34_spill] sm:$0xff] %v2833_v55  ;;  %v2835_v60 = vpop.permute.xlu0 %522 }
  0xc4   : > { %790 = vperm.xlu2 %2226, %v2745_v52  }
  0xc5   : > { %786 = vperm.xlu1 %2228, %v2748_v4   ;;  %v2839_v41 = vpop.permute.xlu2 %592 }
  0xc6   : > { %4122 = vst [vmem:[#allocation35_spill] sm:$0xff] %v2839_v41  ;;  %794 = vperm.xlu0 %2227, %v2763_v6   ;;  %v2842_v7 = vpop.permute.xlu1 %542 }
  0xc7   : > { %4123 = vst [vmem:[#allocation36_spill] sm:$0xff] %v2842_v7  ;;  %v2844_v12 = vpop.permute.xlu0 %537 }
  0xcc   : > { %802 = vperm.xlu2 %2226, %v2757_v25  }
  0xcd   : > { %798 = vperm.xlu1 %2228, %v2760_v0   ;;  %v2848_v14 = vpop.permute.xlu2 %607 }
  0xce   : > { %4124 = vst [vmem:[#allocation37_spill] sm:$0xff] %v2848_v14  ;;  %806 = vperm.xlu0 %2227, %v2772_v36   ;;  %v2851_v47 = vpop.permute.xlu1 %557 }
  0xcf   : > { %4125 = vst [vmem:[#allocation38_spill] sm:$0xff] %v2851_v47  ;;  %v2853_v50 = vpop.permute.xlu0 %552 }
  0xd4   : > { %2229 = vset.pattern.permute.xlu2 %v2402_v15 }
  0xd5   : > { %810 = vperm.xlu1 %2228, %v2769_v31   ;;  %879 = vperm.xlu2 %2229, %v2544_v8  }
  0xd6   : > { %2230 = vset.pattern.permute.xlu0 %v2402_v15  ;;  %v2857_v23 = vpop.permute.xlu1 %572  ;;  %v2859_v17 = vpop.permute.xlu2 %686 }
  0xd7   : > { %4126 = vst [vmem:[#allocation39_spill] sm:$0xff] %v2857_v23  ;;  %883 = vperm.xlu0 %2230, %v2568_v28   ;;  %v2862_v19 = vpop.permute.xlu0 %567 }
  0xd8   : > { %4127 = vst [vmem:[#allocation40_spill] sm:$0xff] %v2859_v17 }
  0xd9   : > { %4128 = vst [vmem:[#allocation41_spill] sm:$0xff] %v2862_v19 }
  0xdd   : > { %2231 = vset.pattern.permute.xlu1 %v2402_v15  ;;  %891 = vperm.xlu2 %2229, %v2565_v27  }
  0xde   : > { %887 = vperm.xlu1 %2231, %v2536_v2   ;;  %v2866_v62 = vpop.permute.xlu1 %587  ;;  %v2868_v26 = vpop.permute.xlu2 %698 }
  0xdf   : > { %4129 = vst [vmem:[#allocation42_spill] sm:$0xff] %v2866_v62  ;;  %903 = vperm.xlu0 %2230, %v2605_v61   ;;  %v2871_v30 = vpop.permute.xlu0 %582 }
  0xe0   : > { %4130 = vst [vmem:[#allocation43_spill] sm:$0xff] %v2868_v26 }
  0xe1   : > { %4131 = vst [vmem:[#allocation44_spill] sm:$0xff] %v2871_v30 }
  0xe5   : > { %899 = vperm.xlu2 %2229, %v2556_v18  }
  0xe6   : > { %895 = vperm.xlu1 %2231, %v2533_v63   ;;  %v2875_v37 = vpop.permute.xlu1 %602  ;;  %v2877_v7 = vpop.permute.xlu2 %706 }
  0xe7   : > { %4132 = vst [vmem:[#allocation45_spill] sm:$0xff] %v2875_v37  ;;  %915 = vperm.xlu0 %2230, %v2650_v35   ;;  %v2880_v15 = vpop.permute.xlu0 %597 }
  0xe8   : > { %4133 = vst [vmem:[#allocation46_spill] sm:$0xff] %v2877_v7 }
  0xe9   : > { %4134 = vst [vmem:[#allocation47_spill] sm:$0xff] %v2880_v15 }
  0xed   : > { %911 = vperm.xlu2 %2229, %v2595_v51  }
  0xee   : > { %907 = vperm.xlu1 %2231, %v2600_v56   ;;  %v2884_v55 = vpop.permute.xlu1 %617  ;;  %v2886_v46 = vpop.permute.xlu2 %718 }
  0xef   : > { %4135 = vst [vmem:[#allocation48_spill] sm:$0xff] %v2884_v55  ;;  %927 = vperm.xlu0 %2230, %v2686_v9   ;;  %v2889_v45 = vpop.permute.xlu0 %612 }
  0xf0   : > { %4136 = vst [vmem:[#allocation49_spill] sm:$0xff] %v2886_v46 }
  0xf1   : > { %4137 = vst [vmem:[#allocation50_spill] sm:$0xff] %v2889_v45 }
  0xf5   : > { %923 = vperm.xlu2 %2229, %v2633_v16  }
  0xf6   : > { %919 = vperm.xlu1 %2231, %v2645_v34   ;;  %v2893_v38 = vpop.permute.xlu2 %730 }
  0xf7   : > { %4138 = vst [vmem:[#allocation51_spill] sm:$0xff] %v2893_v38  ;;  %939 = vperm.xlu0 %2230, %v2709_v29   ;;  %v2896_v49 = vpop.permute.xlu1 %694 }
  0xf8   : > { %4139 = vst [vmem:[#allocation52_spill] sm:$0xff] %v2896_v49  ;;  %v2898_v20 = vpop.permute.xlu0 %690 }
  0xf9   : > { %4140 = vst [vmem:[#allocation53_spill] sm:$0xff] %v2898_v20 }
  0xfd   : > { %935 = vperm.xlu2 %2229, %v2678_v58  }
  0xfe   : > { %931 = vperm.xlu1 %2231, %v2683_v44   ;;  %v2902_v33 = vpop.permute.xlu2 %742 }
  0xff   : > { %4141 = vst [vmem:[#allocation54_spill] sm:$0xff] %v2902_v33  ;;  %951 = vperm.xlu0 %2230, %v2723_v39   ;;  %v2905_v55 = vpop.permute.xlu1 %702 }
 0x100   : > { %4142 = vst [vmem:[#allocation55_spill] sm:$0xff] %v2905_v55  ;;  %v2907_v3 = vpop.permute.xlu0 %710 }
 0x105   : > { %947 = vperm.xlu2 %2229, %v2701_v5  }
 0x106   : > { %943 = vperm.xlu1 %2231, %v2705_v24   ;;  %v2911_v38 = vpop.permute.xlu2 %754 }
 0x107   : > { %963 = vperm.xlu0 %2230, %v2737_v59   ;;  %v2914_v49 = vpop.permute.xlu1 %714 }
 0x108   : > { %4143 = vst [vmem:[#allocation56_spill] sm:$0xff] %v2914_v49  ;;  %v2916_v46 = vpop.permute.xlu0 %722 }
 0x10d   : > { %959 = vperm.xlu2 %2229, %v2716_v43  }
 0x10e   : > { %955 = vperm.xlu1 %2231, %v2720_v22   ;;  %v2920_v33 = vpop.permute.xlu2 %766 }
 0x10f   : > { %975 = vperm.xlu0 %2230, %v2751_v10   ;;  %v2923_v55 = vpop.permute.xlu1 %726 }
 0x110   : > { %4144 = vst [vmem:[#allocation57_spill] sm:$0xff] %v2923_v55  ;;  %v2925_v37 = vpop.permute.xlu0 %734 }
 0x115   : > { %971 = vperm.xlu2 %2229, %v2731_v11  }
 0x116   : > { %967 = vperm.xlu1 %2231, %v2734_v54   ;;  %v2929_v13 = vpop.permute.xlu2 %778 }
 0x117   : > { %4145 = vst [vmem:[#allocation58_spill] sm:$0xff] %v2929_v13  ;;  %987 = vperm.xlu0 %2230, %v2763_v6   ;;  %v2932_v49 = vpop.permute.xlu1 %738 }
 0x118   : > { %4146 = vst [vmem:[#allocation59_spill] sm:$0xff] %v2932_v49  ;;  %v2934_v7 = vpop.permute.xlu0 %746  ;;  %v2403_v49 = vmov 3  }
 0x11d   : > { %983 = vperm.xlu2 %2229, %v2745_v52  }
 0x11e   : > { %979 = vperm.xlu1 %2231, %v2748_v4   ;;  %v2938_v62 = vpop.permute.xlu2 %790 }
 0x11f   : > { %4147 = vst [vmem:[#allocation60_spill] sm:$0xff] %v2938_v62  ;;  %999 = vperm.xlu0 %2230, %v2772_v36   ;;  %v2941_v55 = vpop.permute.xlu1 %750 }
 0x120   : > { %4148 = vst [vmem:[#allocation61_spill] sm:$0xff] %v2941_v55  ;;  %v2943_v21 = vpop.permute.xlu0 %758 }
 0x125   : > { %995 = vperm.xlu2 %2229, %v2757_v25  }
 0x126   : > { %991 = vperm.xlu1 %2231, %v2760_v0   ;;  %v2947_v26 = vpop.permute.xlu2 %802 }
 0x127   : > { %4149 = vst [vmem:[#allocation62_spill] sm:$0xff] %v2947_v26  ;;  %2233 = vset.pattern.permute.xlu0 %v2403_v49  ;;  %v2949_v23 = vpop.permute.xlu1 %762 }
 0x128   : > { %4150 = vst [vmem:[#allocation63_spill] sm:$0xff] %v2949_v23  ;;  %1076 = vperm.xlu0 %2233, %v2568_v28   ;;  %v2952_v20 = vpop.permute.xlu0 %770 }
 0x12d   : > { %2232 = vset.pattern.permute.xlu2 %v2403_v49 }
 0x12e   : > { %1003 = vperm.xlu1 %2231, %v2769_v31   ;;  %1072 = vperm.xlu2 %2232, %v2544_v8  }
 0x12f   : > { %v2956_v55 = vpop.permute.xlu1 %774  ;;  %v2958_v17 = vpop.permute.xlu2 %879 }
 0x130   : > { %4151 = vst [vmem:[#allocation64_spill] sm:$0xff] %v2956_v55  ;;  %1096 = vperm.xlu0 %2233, %v2605_v61   ;;  %v2961_v53 = vpop.permute.xlu0 %782 }
 0x131   : > { %4152 = vst [vmem:[#allocation65_spill] sm:$0xff] %v2958_v17 }
 0x132   : > { %4153 = vst [vmem:[#allocation66_spill] sm:$0xff] %v2961_v53 }
 0x136   : > { %2234 = vset.pattern.permute.xlu1 %v2403_v49  ;;  %1084 = vperm.xlu2 %2232, %v2565_v27  }
 0x137   : > { %1080 = vperm.xlu1 %2234, %v2536_v2   ;;  %v2965_v42 = vpop.permute.xlu1 %786  ;;  %v2967_v45 = vpop.permute.xlu2 %891 }
 0x138   : > { %4154 = vst [vmem:[#allocation67_spill] sm:$0xff] %v2965_v42  ;;  %1108 = vperm.xlu0 %2233, %v2650_v35   ;;  %v2970_v47 = vpop.permute.xlu0 %794 }
 0x139   : > { %4155 = vst [vmem:[#allocation68_spill] sm:$0xff] %v2967_v45 }
 0x13a   : > { %4156 = vst [vmem:[#allocation69_spill] sm:$0xff] %v2970_v47 }
 0x13e   : > { %1092 = vperm.xlu2 %2232, %v2556_v18  }
 0x13f   : > { %1088 = vperm.xlu1 %2234, %v2533_v63   ;;  %v2974_v17 = vpop.permute.xlu1 %798  ;;  %v2976_v55 = vpop.permute.xlu2 %899 }
 0x140   : > { %4157 = vst [vmem:[#allocation70_spill] sm:$0xff] %v2974_v17  ;;  %1120 = vperm.xlu0 %2233, %v2686_v9   ;;  %v2979_v49 = vpop.permute.xlu0 %806 }
 0x141   : > { %4158 = vst [vmem:[#allocation71_spill] sm:$0xff] %v2976_v55 }
 0x142   : > { %4159 = vst [vmem:[#allocation72_spill] sm:$0xff] %v2979_v49 }
 0x146   : > { %1104 = vperm.xlu2 %2232, %v2595_v51  }
 0x147   : > { %1100 = vperm.xlu1 %2234, %v2600_v56   ;;  %v2983_v45 = vpop.permute.xlu1 %810  ;;  %v2985_v42 = vpop.permute.xlu2 %911 }
 0x148   : > { %4160 = vst [vmem:[#allocation73_spill] sm:$0xff] %v2983_v45  ;;  %1132 = vperm.xlu0 %2233, %v2709_v29  }
 0x149   : > { %4161 = vst [vmem:[#allocation74_spill] sm:$0xff] %v2985_v42  ;;  %v2988_v23 = vpop.permute.xlu0 %883 }
 0x14a   : > { %4162 = vst [vmem:[#allocation75_spill] sm:$0xff] %v2988_v23 }
 0x14e   : > { %1116 = vperm.xlu2 %2232, %v2633_v16  }
 0x14f   : > { %1112 = vperm.xlu1 %2234, %v2645_v34   ;;  %v2992_v55 = vpop.permute.xlu2 %923 }
 0x150   : > { %4163 = vst [vmem:[#allocation76_spill] sm:$0xff] %v2992_v55  ;;  %1144 = vperm.xlu0 %2233, %v2723_v39   ;;  %v2995_v17 = vpop.permute.xlu1 %887 }
 0x151   : > { %4164 = vst [vmem:[#allocation77_spill] sm:$0xff] %v2995_v17  ;;  %v2997_v49 = vpop.permute.xlu0 %903 }
 0x156   : > { %1128 = vperm.xlu2 %2232, %v2678_v58  }
 0x157   : > { %1124 = vperm.xlu1 %2234, %v2683_v44   ;;  %v3001_v42 = vpop.permute.xlu2 %935 }
 0x158   : > { %4165 = vst [vmem:[#allocation78_spill] sm:$0xff] %v3001_v42  ;;  %1156 = vperm.xlu0 %2233, %v2737_v59   ;;  %v3004_v45 = vpop.permute.xlu1 %895 }
 0x159   : > { %4166 = vst [vmem:[#allocation79_spill] sm:$0xff] %v3004_v45  ;;  %v3006_v23 = vpop.permute.xlu0 %915 }
 0x15e   : > { %1140 = vperm.xlu2 %2232, %v2701_v5  }
 0x15f   : > { %1136 = vperm.xlu1 %2234, %v2705_v24   ;;  %v3010_v55 = vpop.permute.xlu2 %947 }
 0x160   : > { %1168 = vperm.xlu0 %2233, %v2751_v10   ;;  %v3013_v17 = vpop.permute.xlu1 %907 }
 0x161   : > { %4167 = vst [vmem:[#allocation80_spill] sm:$0xff] %v3013_v17  ;;  %v3015_v14 = vpop.permute.xlu0 %927 }
 0x166   : > { %1152 = vperm.xlu2 %2232, %v2716_v43  }
 0x167   : > { %1148 = vperm.xlu1 %2234, %v2720_v22   ;;  %v3019_v42 = vpop.permute.xlu2 %959 }
 0x168   : > { %4168 = vst [vmem:[#allocation81_spill] sm:$0xff] %v3019_v42  ;;  %1180 = vperm.xlu0 %2233, %v2763_v6   ;;  %v3022_v45 = vpop.permute.xlu1 %919 }
 0x169   : > { %4169 = vst [vmem:[#allocation82_spill] sm:$0xff] %v3022_v45  ;;  %v3024_v26 = vpop.permute.xlu0 %939  ;;  %v2404_v45 = vmov 4  }
 0x16e   : > { %1164 = vperm.xlu2 %2232, %v2731_v11  }
 0x16f   : > { %1160 = vperm.xlu1 %2234, %v2734_v54   ;;  %v3028_v15 = vpop.permute.xlu2 %971 }
 0x170   : > { %4170 = vst [vmem:[#allocation83_spill] sm:$0xff] %v3028_v15  ;;  %1192 = vperm.xlu0 %2233, %v2772_v36   ;;  %v3031_v17 = vpop.permute.xlu1 %931 }
 0x171   : > { %4171 = vst [vmem:[#allocation84_spill] sm:$0xff] %v3031_v17  ;;  %v3033_v47 = vpop.permute.xlu0 %951 }
 0x176   : > { %1176 = vperm.xlu2 %2232, %v2745_v52  }
 0x177   : > { %1172 = vperm.xlu1 %2234, %v2748_v4   ;;  %v3037_v41 = vpop.permute.xlu2 %983 }
 0x178   : > { %4172 = vst [vmem:[#allocation85_spill] sm:$0xff] %v3037_v41  ;;  %2236 = vset.pattern.permute.xlu0 %v2404_v45  ;;  %v3039_v62 = vpop.permute.xlu1 %943 }
 0x179   : > { %4173 = vst [vmem:[#allocation86_spill] sm:$0xff] %v3039_v62  ;;  %1269 = vperm.xlu0 %2236, %v2568_v28   ;;  %v3042_v30 = vpop.permute.xlu0 %963 }
 0x17a   : > { %4174 = vst [vmem:[#allocation87_spill] sm:$0xff] %v3042_v30 }
 0x17e   : > { %1188 = vperm.xlu2 %2232, %v2757_v25  }
 0x17f   : > { %1184 = vperm.xlu1 %2234, %v2760_v0   ;;  %v3046_v17 = vpop.permute.xlu2 %995 }
 0x180   : > { %4175 = vst [vmem:[#allocation88_spill] sm:$0xff] %v3046_v17  ;;  %v3048_v15 = vpop.permute.xlu1 %955 }
 0x181   : > { %4176 = vst [vmem:[#allocation89_spill] sm:$0xff] %v3048_v15  ;;  %1289 = vperm.xlu0 %2236, %v2605_v61   ;;  %v3051_v53 = vpop.permute.xlu0 %975 }
 0x182   : > { %4177 = vst [vmem:[#allocation90_spill] sm:$0xff] %v3051_v53 }
 0x186   : > { %2235 = vset.pattern.permute.xlu2 %v2404_v45 }
 0x187   : > { %1196 = vperm.xlu1 %2234, %v2769_v31   ;;  %1265 = vperm.xlu2 %2235, %v2544_v8  }
 0x188   : > { %v3055_v62 = vpop.permute.xlu1 %967  ;;  %v3057_v41 = vpop.permute.xlu2 %1072 }
 0x189   : > { %4178 = vst [vmem:[#allocation91_spill] sm:$0xff] %v3055_v62  ;;  %1301 = vperm.xlu0 %2236, %v2650_v35   ;;  %v3060_v48 = vpop.permute.xlu0 %987 }
 0x18a   : > { %4179 = vst [vmem:[#allocation92_spill] sm:$0xff] %v3057_v41 }
 0x18b   : > { %4180 = vst [vmem:[#allocation93_spill] sm:$0xff] %v3060_v48 }
 0x18f   : > { %2237 = vset.pattern.permute.xlu1 %v2404_v45  ;;  %1277 = vperm.xlu2 %2235, %v2565_v27  }
 0x190   : > { %1273 = vperm.xlu1 %2237, %v2536_v2   ;;  %v3064_v15 = vpop.permute.xlu1 %979  ;;  %v3066_v17 = vpop.permute.xlu2 %1084 }
 0x191   : > { %4181 = vst [vmem:[#allocation94_spill] sm:$0xff] %v3064_v15  ;;  %1313 = vperm.xlu0 %2236, %v2686_v9   ;;  %v3069_v53 = vpop.permute.xlu0 %999 }
 0x192   : > { %4182 = vst [vmem:[#allocation95_spill] sm:$0xff] %v3066_v17 }
 0x193   : > { %4183 = vst [vmem:[#allocation96_spill] sm:$0xff] %v3069_v53 }
 0x197   : > { %1285 = vperm.xlu2 %2235, %v2556_v18  }
 0x198   : > { %1281 = vperm.xlu1 %2237, %v2533_v63   ;;  %v3073_v41 = vpop.permute.xlu1 %991  ;;  %v3075_v62 = vpop.permute.xlu2 %1092 }
 0x199   : > { %4184 = vst [vmem:[#allocation97_spill] sm:$0xff] %v3073_v41  ;;  %1325 = vperm.xlu0 %2236, %v2709_v29  }
 0x19a   : > { %4185 = vst [vmem:[#allocation98_spill] sm:$0xff] %v3075_v62  ;;  %v3078_v45 = vpop.permute.xlu0 %1076 }
 0x19b   : > { %4186 = vst [vmem:[#allocation99_spill] sm:$0xff] %v3078_v45 }
 0x19f   : > { %1297 = vperm.xlu2 %2235, %v2595_v51  }
 0x1a0   : > { %1293 = vperm.xlu1 %2237, %v2600_v56   ;;  %v3082_v17 = vpop.permute.xlu1 %1003  ;;  %v3084_v15 = vpop.permute.xlu2 %1104 }
 0x1a1   : > { %4187 = vst [vmem:[#allocation100_spill] sm:$0xff] %v3082_v17  ;;  %1337 = vperm.xlu0 %2236, %v2723_v39  }
 0x1a2   : > { %4188 = vst [vmem:[#allocation101_spill] sm:$0xff] %v3084_v15  ;;  %v3087_v53 = vpop.permute.xlu0 %1096 }
 0x1a7   : > { %1309 = vperm.xlu2 %2235, %v2633_v16  }
 0x1a8   : > { %1305 = vperm.xlu1 %2237, %v2645_v34   ;;  %v3091_v62 = vpop.permute.xlu2 %1116 }
 0x1a9   : > { %4189 = vst [vmem:[#allocation102_spill] sm:$0xff] %v3091_v62  ;;  %1349 = vperm.xlu0 %2236, %v2737_v59   ;;  %v3094_v41 = vpop.permute.xlu1 %1080 }
 0x1aa   : > { %4190 = vst [vmem:[#allocation103_spill] sm:$0xff] %v3094_v41  ;;  %v3096_v45 = vpop.permute.xlu0 %1108 }
 0x1af   : > { %1321 = vperm.xlu2 %2235, %v2678_v58  }
 0x1b0   : > { %1317 = vperm.xlu1 %2237, %v2683_v44   ;;  %v3100_v15 = vpop.permute.xlu2 %1128 }
 0x1b1   : > { %4191 = vst [vmem:[#allocation104_spill] sm:$0xff] %v3100_v15  ;;  %1361 = vperm.xlu0 %2236, %v2751_v10   ;;  %v3103_v17 = vpop.permute.xlu1 %1088 }
 0x1b2   : > { %4192 = vst [vmem:[#allocation105_spill] sm:$0xff] %v3103_v17  ;;  %v3105_v48 = vpop.permute.xlu0 %1120 }
 0x1b7   : > { %1333 = vperm.xlu2 %2235, %v2701_v5  }
 0x1b8   : > { %1329 = vperm.xlu1 %2237, %v2705_v24   ;;  %v3109_v62 = vpop.permute.xlu2 %1140 }
 0x1b9   : > { %1373 = vperm.xlu0 %2236, %v2763_v6   ;;  %v3112_v41 = vpop.permute.xlu1 %1100 }
 0x1ba   : > { %4193 = vst [vmem:[#allocation106_spill] sm:$0xff] %v3112_v41  ;;  %v3114_v13 = vpop.permute.xlu0 %1132  ;;  %v2405_v41 = vmov 5  }
 0x1bf   : > { %1345 = vperm.xlu2 %2235, %v2716_v43  }
 0x1c0   : > { %1341 = vperm.xlu1 %2237, %v2720_v22   ;;  %v3118_v15 = vpop.permute.xlu2 %1152 }
 0x1c1   : > { %1385 = vperm.xlu0 %2236, %v2772_v36   ;;  %v3121_v17 = vpop.permute.xlu1 %1112 }
 0x1c2   : > { %4194 = vst [vmem:[#allocation107_spill] sm:$0xff] %v3121_v17  ;;  %v3123_v30 = vpop.permute.xlu0 %1144 }
 0x1c7   : > { %1357 = vperm.xlu2 %2235, %v2731_v11  }
 0x1c8   : > { %1353 = vperm.xlu1 %2237, %v2734_v54   ;;  %v3127_v19 = vpop.permute.xlu2 %1164 }
 0x1c9   : > { %2239 = vset.pattern.permute.xlu0 %v2405_v41  ;;  %v3129_v42 = vpop.permute.xlu1 %1124 }
 0x1ca   : > { %4195 = vst [vmem:[#allocation108_spill] sm:$0xff] %v3129_v42  ;;  %1462 = vperm.xlu0 %2239, %v2568_v28   ;;  %v3132_v22 = vpop.permute.xlu0 %1156 }
 0x1cf   : > { %1369 = vperm.xlu2 %2235, %v2745_v52  }
 0x1d0   : > { %1365 = vperm.xlu1 %2237, %v2748_v4   ;;  %v3136_v17 = vpop.permute.xlu2 %1176 }
 0x1d1   : > { %v3138_v43 = vpop.permute.xlu1 %1136 }
 0x1d2   : > { %4196 = vst [vmem:[#allocation109_spill] sm:$0xff] %v3138_v43  ;;  %1482 = vperm.xlu0 %2239, %v2605_v61   ;;  %v3141_v54 = vpop.permute.xlu0 %1168 }
 0x1d7   : > { %1381 = vperm.xlu2 %2235, %v2757_v25   ;;  %v3165_v25 = vld [vmem:[%s4047_s2] sm:$0xff] }
 0x1d8   : > { %1377 = vperm.xlu1 %2237, %v2760_v0   ;;  %v3145_v42 = vpop.permute.xlu2 %1188 }
 0x1d9   : > { %v3147_v11 = vpop.permute.xlu1 %1148 }
 0x1da   : > { %4197 = vst [vmem:[#allocation110_spill] sm:$0xff] %v3147_v11  ;;  %1494 = vperm.xlu0 %2239, %v2650_v35   ;;  %v3150_v52 = vpop.permute.xlu0 %1180 }
 0x1df   : > { %2238 = vset.pattern.permute.xlu2 %v2405_v41 }
 0x1e0   : > { %1389 = vperm.xlu1 %2237, %v2769_v31   ;;  %1458 = vperm.xlu2 %2238, %v2544_v8  }
 0x1e1   : > { %v3154_v43 = vpop.permute.xlu1 %1160  ;;  %v3156_v4 = vpop.permute.xlu2 %1265 }
 0x1e2   : > { %4198 = vst [vmem:[#allocation111_spill] sm:$0xff] %v3154_v43  ;;  %1506 = vperm.xlu0 %2239, %v2686_v9   ;;  %v3159_v0 = vpop.permute.xlu0 %1192  ;;  %v3184_v9 = vperm.slane %v3165_v25, 2 }
 0x1e3   : > { %4199 = vst [vmem:[#allocation112_spill] sm:$0xff] %v3156_v4  ;;  %v3173_v4 = vperm.slane %v3165_v25, 1 }
 0x1e4   : > { %4200 = vst [vmem:[#allocation113_spill] sm:$0xff] %v3159_v0 }
 0x1e8   : > { %2240 = vset.pattern.permute.xlu1 %v2405_v41  ;;  %1470 = vperm.xlu2 %2238, %v2565_v27   ;;  %v3179_v41 = vperm.slane %v3165_v25, 0  ;;  %v820_v27 = vmul.f32 %v3173_v4, %v2907_v3 }
 0x1e9   : > { %1466 = vperm.xlu1 %2240, %v2536_v2   ;;  %v3168_v31 = vpop.permute.xlu1 %1172  ;;  %v3170_v8 = vpop.permute.xlu2 %1277 }
 0x1ea   : > { %4201 = vst [vmem:[#allocation114_spill] sm:$0xff] %v3168_v31  ;;  %1518 = vperm.xlu0 %2239, %v2709_v29   ;;  %v627_v2 = vmul.f32 %v3179_v41, %v2817_v57  ;;  %v3191_v31 = vperm.slane %v3165_v25, 3  ;;  %v3202_v57 = vperm.slane %v3165_v25, 4 }
 0x1eb   : > { %4202 = vst [vmem:[#allocation115_spill] sm:$0xff] %v3170_v8  ;;  %v3176_v43 = vpop.permute.xlu0 %1269  ;;  %v1013_v8 = vmul.f32 %v3184_v9, %v2997_v49 }
 0x1ec   : > { %4203 = vst [vmem:[#allocation116_spill] sm:$0xff] %v3176_v43  ;;  %v852_v29 = vadd.f32 %v820_v27, %v627_v2  ;;  %v1206_v43 = vmul.f32 %v3191_v31, %v3087_v53  ;;  %v823_v2 = vmul.f32 %v3173_v4, %v2916_v46 }
 0x1ee   : > { %v1045_v11 = vadd.f32 %v1013_v8, %v852_v29  ;;  %v1209_v29 = vmul.f32 %v3191_v31, %v3096_v45  ;;  %v633_v45 = vmul.f32 %v3179_v41, %v2835_v60 }
 0x1f0   : > { %1478 = vperm.xlu2 %2238, %v2556_v18   ;;  %v1238_v27 = vadd.f32 %v1206_v43, %v1045_v11  ;;  %v1016_v18 = vmul.f32 %v3184_v9, %v3006_v23  ;;  %v826_v23 = vmul.f32 %v3173_v4, %v2925_v37 }
 0x1f1   : > { %1474 = vperm.xlu1 %2240, %v2533_v63   ;;  %v3197_v3 = vpop.permute.xlu1 %1184  ;;  %v3199_v0 = vpop.permute.xlu2 %1285  ;;  %v630_v63 = vmul.f32 %v3179_v41, %v2826_v1 }
 0x1f2   : > { %4204 = vst [vmem:[#allocation117_spill] sm:$0xff] %v3199_v0  ;;  %1530 = vperm.xlu0 %2239, %v2723_v39  }
 0x1f3   : > { %v1290_v49 = vpop.permute.xlu0 %1289  ;;  %v855_v8 = vadd.f32 %v823_v2, %v630_v63  ;;  %v1019_v2 = vmul.f32 %v3184_v9, %v3015_v14  ;;  %v829_v14 = vmul.f32 %v3173_v4, %v2934_v7 }
 0x1f4   : > { %v1399_v53 = vmul.f32 %v3202_v57, %v1290_v49 }
 0x1f5   : > { %v1048_v11 = vadd.f32 %v1016_v18, %v855_v8  ;;  %v1212_v18 = vmul.f32 %v3191_v31, %v3105_v48  ;;  %v636_v48 = vmul.f32 %v3179_v41, %v2844_v12 }
 0x1f6   : > { %v3212_v0 = vadd.f32 %v1399_v53, %v1238_v27  ;;  %v858_v53 = vadd.f32 %v826_v23, %v633_v45  ;;  %v1022_v23 = vmul.f32 %v3184_v9, %v3024_v26  ;;  %v1215_v45 = vmul.f32 %v3191_v31, %v3114_v13 }
 0x1f7   : > { %v1241_v49 = vadd.f32 %v1209_v29, %v1048_v11  ;;  %v638_v26 = vmul.f32 %v3179_v41, %v2812_v40  ;;  %v832_v13 = vmul.f32 %v3173_v4, %v2943_v21  ;;  %v1217_v40 = vmul.f32 %v3191_v31, %v3109_v62 }
 0x1f8   : > { %1490 = vperm.xlu2 %2238, %v2595_v51   ;;  %v1051_v8 = vadd.f32 %v1019_v2, %v858_v53  ;;  %v831_v2 = vmul.f32 %v3173_v4, %v2911_v38  ;;  %v639_v38 = vmul.f32 %v3179_v41, %v2853_v50  ;;  %v834_v50 = vmul.f32 %v3173_v4, %v2920_v33 }
 0x1f9   : > { %1486 = vperm.xlu1 %2240, %v2600_v56   ;;  %v3218_v46 = vpop.permute.xlu1 %1196  ;;  %v3220_v43 = vpop.permute.xlu2 %1297 }
 0x1fa   : > { %1542 = vperm.xlu0 %2239, %v2737_v59   ;;  %v1244_v11 = vadd.f32 %v1212_v18, %v1051_v8  ;;  %v1024_v8 = vmul.f32 %v3184_v9, %v3010_v55  ;;  %v1218_v55 = vmul.f32 %v3191_v31, %v3123_v30  ;;  %v835_v30 = vmul.f32 %v3173_v4, %v2952_v20 }
 0x1fb   : > { %v1302_v1 = vpop.permute.xlu0 %1301 }
 0x1fc   : > { %v1402_v63 = vmul.f32 %v3202_v57, %v1302_v1 }
 0x1fe   : > { %v3230_v27 = vadd.f32 %v1402_v63, %v1241_v49  ;;  %v861_v63 = vadd.f32 %v829_v14, %v636_v48 }
 0x200   : > { %1502 = vperm.xlu2 %2238, %v2633_v16   ;;  %v1054_v53 = vadd.f32 %v1022_v23, %v861_v63  ;;  %v864_v23 = vadd.f32 %v832_v13, %v639_v38 }
 0x201   : > { %1498 = vperm.xlu1 %2240, %v2645_v34   ;;  %v3236_v37 = vpop.permute.xlu2 %1309 }
 0x202   : > { %1554 = vperm.xlu0 %2239, %v2751_v10   ;;  %v3239_v29 = vpop.permute.xlu1 %1273 }
 0x203   : > { %v1314_v60 = vpop.permute.xlu0 %1313 }
 0x204   : > { %v1405_v1 = vmul.f32 %v3202_v57, %v1314_v60  ;;  %v1247_v60 = vadd.f32 %v1215_v45, %v1054_v53  ;;  %v641_v53 = vmul.f32 %v3179_v41, %v2821_v32  ;;  %v1220_v32 = vmul.f32 %v3191_v31, %v3118_v15 }
 0x206   : > { %v3248_v49 = vadd.f32 %v1405_v1, %v1244_v11  ;;  %v863_v11 = vadd.f32 %v831_v2, %v638_v26  ;;  %v1025_v1 = vmul.f32 %v3184_v9, %v3033_v47 }
 0x208   : > { %1514 = vperm.xlu2 %2238, %v2678_v58   ;;  %v1056_v21 = vadd.f32 %v1024_v8, %v863_v11  ;;  %v1057_v45 = vadd.f32 %v1025_v1, %v864_v23  ;;  %v866_v11 = vadd.f32 %v834_v50, %v641_v53  ;;  %v4207_v1 = vld [vmem:[#allocation87_spill] sm:$0xff] }
 0x209   : > { %1510 = vperm.xlu1 %2240, %v2683_v44   ;;  %v3254_v7 = vpop.permute.xlu2 %1321 }
 0x20a   : > { %1566 = vperm.xlu0 %2239, %v2763_v6   ;;  %v3259_v12 = vpop.permute.xlu1 %1281  ;;  %v1249_v47 = vadd.f32 %v1217_v40, %v1056_v21  ;;  %v1250_v8 = vadd.f32 %v1218_v55, %v1057_v45  ;;  %v1028_v40 = vmul.f32 %v3184_v9, %v4207_v1  ;;  %v1221_v55 = vmul.f32 %v3191_v31, %v3132_v22  ;;  %v4209_v45 = vld [vmem:[#allocation14_spill] sm:$0xff] }
 0x20b   : > { %v1326_v18 = vpop.permute.xlu0 %1325 }
 0x20c   : > { %v1408_v14 = vmul.f32 %v3202_v57, %v1326_v18  ;;  %v4205_v18 = vld [vmem:[#allocation81_spill] sm:$0xff] }
 0x20d   : > { %v1027_v13 = vmul.f32 %v3184_v9, %v4205_v18  ;;  %v4081_v18 = vmov 6  }
 0x20e   : > { %v3274_v48 = vadd.f32 %v1408_v14, %v1247_v60  ;;  %v4206_v14 = vld [vmem:[#allocation41_spill] sm:$0xff] }
 0x20f   : > { %v642_v38 = vmul.f32 %v3179_v41, %v4206_v14  ;;  %v1059_v21 = vadd.f32 %v1027_v13, %v866_v11  ;;  %v4212_v13 = vld [vmem:[#allocation33_spill] sm:$0xff] }
 0x210   : > { %1526 = vperm.xlu2 %2238, %v2701_v5   ;;  %v644_v22 = vmul.f32 %v3179_v41, %v4212_v13 }
 0x211   : > { %1522 = vperm.xlu1 %2240, %v2705_v24   ;;  %v1334_v63 = vpop.permute.xlu2 %1333  ;;  %v867_v23 = vadd.f32 %v835_v30, %v642_v38  ;;  %v4214_v38 = vld [vmem:[#allocation83_spill] sm:$0xff] }
 0x212   : > { %1578 = vperm.xlu0 %2239, %v2772_v36   ;;  %v3283_v62 = vpop.permute.xlu1 %1293  ;;  %v1410_v2 = vmul.f32 %v3202_v57, %v1334_v63  ;;  %v4208_v63 = vld [vmem:[#allocation13_spill] sm:$0xff]  ;;  %v1030_v11 = vmul.f32 %v3184_v9, %v4214_v38 }
 0x213   : > { %v1338_v26 = vpop.permute.xlu0 %1337  ;;  %v1060_v53 = vadd.f32 %v1028_v40, %v867_v23  ;;  %v4216_v23 = vld [vmem:[#allocation44_spill] sm:$0xff] }
 0x214   : > { %v3292_v33 = vadd.f32 %v1410_v2, %v1249_v47  ;;  %v1411_v60 = vmul.f32 %v3202_v57, %v1338_v26  ;;  %v4210_v2 = vld [vmem:[#allocation58_spill] sm:$0xff]  ;;  %v1252_v26 = vadd.f32 %v1220_v32, %v1059_v21  ;;  %v645_v21 = vmul.f32 %v3179_v41, %v4216_v23 }
 0x215   : > { %v837_v50 = vmul.f32 %v3173_v4, %v4210_v2  ;;  %v1253_v1 = vadd.f32 %v1221_v55, %v1060_v53  ;;  %v4217_v2 = vld [vmem:[#allocation90_spill] sm:$0xff]  ;;  %v1224_v55 = vmul.f32 %v3191_v31, %v3141_v54  ;;  %v4218_v53 = vld [vmem:[#allocation15_spill] sm:$0xff] }
 0x216   : > { %v3301_v20 = vadd.f32 %v1411_v60, %v1250_v8  ;;  %v4213_v8 = vld [vmem:[#allocation66_spill] sm:$0xff]  ;;  %v1031_v13 = vmul.f32 %v3184_v9, %v4217_v2 }
 0x217   : > { %v838_v60 = vmul.f32 %v3173_v4, %v4213_v8  ;;  %v1223_v8 = vmul.f32 %v3191_v31, %v3127_v19 }
 0x218   : > { %1538 = vperm.xlu2 %2238, %v4208_v63  }
 0x219   : > { %1534 = vperm.xlu1 %2240, %v4209_v45   ;;  %v1346_v47 = vpop.permute.xlu2 %1345  ;;  %v870_v45 = vadd.f32 %v838_v60, %v645_v21  ;;  %v4224_v21 = vld [vmem:[#allocation85_spill] sm:$0xff] }
 0x21a   : > { %2242 = vset.pattern.permute.xlu0 %v4081_v18  ;;  %v3310_v15 = vpop.permute.xlu1 %1305  ;;  %v1413_v30 = vmul.f32 %v3202_v57, %v1346_v47  ;;  %v869_v47 = vadd.f32 %v837_v50, %v644_v22 }
 0x21b   : > { %4211 = vst [vmem:[#allocation81_spill] sm:$0xff] %v3310_v15  ;;  %1655 = vperm.xlu0 %2242, %v2568_v28   ;;  %v1350_v14 = vpop.permute.xlu0 %1349  ;;  %v1063_v22 = vadd.f32 %v1031_v13, %v870_v45  ;;  %v4226_v45 = vld [vmem:[#allocation47_spill] sm:$0xff] }
 0x21c   : > { %v3320_v40 = vadd.f32 %v1413_v30, %v1252_v26  ;;  %v1414_v32 = vmul.f32 %v3202_v57, %v1350_v14  ;;  %v1062_v63 = vadd.f32 %v1030_v11, %v869_v47  ;;  %v4219_v26 = vld [vmem:[#allocation16_spill] sm:$0xff]  ;;  %v4223_v11 = vld [vmem:[#allocation69_spill] sm:$0xff]  ;;  %v1033_v47 = vmul.f32 %v3184_v9, %v4224_v21 }
 0x21d   : > { %v4220_v14 = vld [vmem:[#allocation60_spill] sm:$0xff]  ;;  %v841_v54 = vmul.f32 %v3173_v4, %v4223_v11  ;;  %v1256_v2 = vadd.f32 %v1224_v55, %v1063_v22  ;;  %v648_v13 = vmul.f32 %v3179_v41, %v4226_v45  ;;  %v1226_v11 = vmul.f32 %v3191_v31, %v3136_v17  ;;  %v4229_v22 = vld [vmem:[#allocation17_spill] sm:$0xff] }
 0x21e   : > { %4215 = vst [vmem:[#allocation41_spill] sm:$0xff] %v3320_v40  ;;  %v3329_v18 = vadd.f32 %v1414_v32, %v1253_v1  ;;  %v840_v50 = vmul.f32 %v3173_v4, %v4220_v14  ;;  %v1255_v38 = vadd.f32 %v1223_v8, %v1062_v63  ;;  %v4222_v1 = vld [vmem:[#allocation35_spill] sm:$0xff]  ;;  %v1227_v55 = vmul.f32 %v3191_v31, %v3150_v52 }
 0x21f   : > { %v647_v60 = vmul.f32 %v3179_v41, %v4222_v1 }
 0x220   : > { %1550 = vperm.xlu2 %2238, %v4218_v53   ;;  %v873_v53 = vadd.f32 %v841_v54, %v648_v13 }
 0x221   : > { %1546 = vperm.xlu1 %2240, %v4219_v26   ;;  %v1358_v30 = vpop.permute.xlu2 %1357  ;;  %v872_v8 = vadd.f32 %v840_v50, %v647_v60 }
 0x222   : > { %v3337_v23 = vpop.permute.xlu1 %1317  ;;  %v1416_v19 = vmul.f32 %v3202_v57, %v1358_v30  ;;  %v4227_v30 = vld [vmem:[#allocation93_spill] sm:$0xff] }
 0x223   : > { %4221 = vst [vmem:[#allocation87_spill] sm:$0xff] %v3337_v23  ;;  %1675 = vperm.xlu0 %2242, %v2605_v61   ;;  %v1362_v32 = vpop.permute.xlu0 %1361  ;;  %v1034_v1 = vmul.f32 %v3184_v9, %v4227_v30  ;;  %v1065_v23 = vadd.f32 %v1033_v47, %v872_v8  ;;  %v4234_v47 = vld [vmem:[#allocation63_spill] sm:$0xff]  ;;  %v4236_v30 = vld [vmem:[#allocation88_spill] sm:$0xff] }
 0x224   : > { %v3347_v14 = vadd.f32 %v1416_v19, %v1255_v38  ;;  %v1417_v63 = vmul.f32 %v3202_v57, %v1362_v32  ;;  %v4230_v38 = vld [vmem:[#allocation18_spill] sm:$0xff]  ;;  %v833_v52 = vmul.f32 %v3173_v4, %v4234_v47  ;;  %v4258_v61 = vld [vmem:[#allocation92_spill] sm:$0xff] }
 0x225   : > { %v4231_v32 = vld [vmem:[#allocation62_spill] sm:$0xff]  ;;  %v1066_v60 = vadd.f32 %v1034_v1, %v873_v53  ;;  %v1258_v21 = vadd.f32 %v1226_v11, %v1065_v23  ;;  %v1036_v53 = vmul.f32 %v3184_v9, %v4236_v30  ;;  %v4244_v30 = vld [vmem:[#allocation27_spill] sm:$0xff] }
 0x226   : > { %4225 = vst [vmem:[#allocation58_spill] sm:$0xff] %v3347_v14  ;;  %v3356_v26 = vadd.f32 %v1417_v63, %v1256_v2  ;;  %v843_v50 = vmul.f32 %v3173_v4, %v4231_v32  ;;  %v4233_v2 = vld [vmem:[#allocation37_spill] sm:$0xff]  ;;  %v4235_v63 = vld [vmem:[#allocation72_spill] sm:$0xff] }
 0x227   : > { %v650_v54 = vmul.f32 %v3179_v41, %v4233_v2  ;;  %v844_v13 = vmul.f32 %v3173_v4, %v4235_v63  ;;  %v1259_v23 = vadd.f32 %v1227_v55, %v1066_v60  ;;  %v4239_v2 = vld [vmem:[#allocation50_spill] sm:$0xff]  ;;  %v1229_v55 = vmul.f32 %v3191_v31, %v3145_v42  ;;  %v4248_v42 = vld [vmem:[#allocation40_spill] sm:$0xff] }
 0x228   : > { %4228 = vst [vmem:[#allocation33_spill] sm:$0xff] %v3356_v26  ;;  %1562 = vperm.xlu2 %2238, %v4229_v22   ;;  %v651_v47 = vmul.f32 %v3179_v41, %v4239_v2  ;;  %v4253_v26 = vld [vmem:[#allocation65_spill] sm:$0xff] }
 0x229   : > { %1558 = vperm.xlu1 %2240, %v4230_v38   ;;  %v1370_v19 = vpop.permute.xlu2 %1369  ;;  %v4240_v38 = vld [vmem:[#allocation89_spill] sm:$0xff]  ;;  %v875_v22 = vadd.f32 %v843_v50, %v650_v54  ;;  %v4246_v50 = vld [vmem:[#allocation19_spill] sm:$0xff] }
 0x22a   : > { %v3364_v45 = vpop.permute.xlu1 %1329  ;;  %v1419_v17 = vmul.f32 %v3202_v57, %v1370_v19  ;;  %v4238_v19 = vld [vmem:[#allocation38_spill] sm:$0xff]  ;;  %v1026_v63 = vmul.f32 %v3184_v9, %v4240_v38  ;;  %v876_v2 = vadd.f32 %v844_v13, %v651_v47  ;;  %v4251_v13 = vld [vmem:[#allocation64_spill] sm:$0xff] }
 0x22b   : > { %4232 = vst [vmem:[#allocation66_spill] sm:$0xff] %v3364_v45  ;;  %1687 = vperm.xlu0 %2242, %v2650_v35   ;;  %v1374_v8 = vpop.permute.xlu0 %1373  ;;  %v640_v32 = vmul.f32 %v3179_v41, %v4238_v19  ;;  %v4241_v45 = vld [vmem:[#allocation96_spill] sm:$0xff]  ;;  %v621_v19 = vmul.f32 %v3179_v41, %v4244_v30  ;;  %v4245_v35 = vld [vmem:[#allocation113_spill] sm:$0xff] }
 0x22c   : > { %v3376_v1 = vadd.f32 %v1419_v17, %v1258_v21  ;;  %v1420_v11 = vmul.f32 %v3202_v57, %v1374_v8  ;;  %v1037_v14 = vmul.f32 %v3184_v9, %v4241_v45  ;;  %v4243_v17 = vld [vmem:[#allocation110_spill] sm:$0xff]  ;;  %v1230_v38 = vmul.f32 %v3191_v31, %v4245_v35 }
 0x22d   : > { %v865_v21 = vadd.f32 %v833_v52, %v640_v32  ;;  %v1219_v8 = vmul.f32 %v3191_v31, %v4243_v17  ;;  %v4247_v45 = vld [vmem:[#allocation30_spill] sm:$0xff]  ;;  %v4249_v52 = vld [vmem:[#allocation53_spill] sm:$0xff]  ;;  %v4250_v17 = vld [vmem:[#allocation20_spill] sm:$0xff] }
 0x22e   : > { %4237 = vst [vmem:[#allocation83_spill] sm:$0xff] %v3376_v1  ;;  %v3389_v60 = vadd.f32 %v1420_v11, %v1259_v23  ;;  %v1068_v1 = vadd.f32 %v1036_v53, %v875_v22  ;;  %v622_v54 = vmul.f32 %v3179_v41, %v4247_v45  ;;  %v814_v23 = vmul.f32 %v3173_v4, %v4248_v42 }
 0x22f   : > { %v815_v11 = vmul.f32 %v3173_v4, %v4249_v52  ;;  %v1058_v32 = vadd.f32 %v1026_v63, %v865_v21  ;;  %v836_v22 = vmul.f32 %v3173_v4, %v4251_v13  ;;  %v1069_v53 = vadd.f32 %v1037_v14, %v876_v2  ;;  %v4254_v21 = vld [vmem:[#allocation11_spill] sm:$0xff] }
 0x230   : > { %4242 = vst [vmem:[#allocation44_spill] sm:$0xff] %v3389_v60  ;;  %1574 = vperm.xlu2 %2238, %v4246_v50   ;;  %v1261_v35 = vadd.f32 %v1229_v55, %v1068_v1  ;;  %v4252_v60 = vld [vmem:[#allocation39_spill] sm:$0xff]  ;;  %v1007_v42 = vmul.f32 %v3184_v9, %v4253_v26  ;;  %v846_v2 = vadd.f32 %v814_v23, %v621_v19  ;;  %v4262_v19 = vld [vmem:[#allocation112_spill] sm:$0xff] }
 0x231   : > { %1570 = vperm.xlu1 %2240, %v4250_v17   ;;  %v1382_v30 = vpop.permute.xlu2 %1381  ;;  %v643_v45 = vmul.f32 %v3179_v41, %v4252_v60  ;;  %v1251_v40 = vadd.f32 %v1219_v8, %v1058_v32  ;;  %v4255_v17 = vld [vmem:[#allocation75_spill] sm:$0xff]  ;;  %v1262_v14 = vadd.f32 %v1230_v38, %v1069_v53  ;;  %v1200_v26 = vmul.f32 %v3191_v31, %v4258_v61 }
 0x232   : > { %v1342_v47 = vpop.permute.xlu1 %1341  ;;  %v1422_v50 = vmul.f32 %v3202_v57, %v1382_v30  ;;  %v1008_v13 = vmul.f32 %v3184_v9, %v4255_v17  ;;  %v4257_v30 = vld [vmem:[#allocation91_spill] sm:$0xff]  ;;  %v847_v32 = vadd.f32 %v815_v11, %v622_v54  ;;  %v1039_v38 = vadd.f32 %v1007_v42, %v846_v2 }
 0x233   : > { %v1412_v63 = vmul.f32 %v3202_v57, %v1342_v47  ;;  %1699 = vperm.xlu0 %2242, %v4254_v21   ;;  %v1386_v52 = vpop.permute.xlu0 %1385  ;;  %v1029_v60 = vmul.f32 %v3184_v9, %v4257_v30  ;;  %v868_v47 = vadd.f32 %v836_v22, %v643_v45  ;;  %v4260_v21 = vld [vmem:[#allocation99_spill] sm:$0xff]  ;;  %v1393_v23 = vmul.f32 %v3202_v57, %v4262_v19 }
 0x234   : > { %v3416_v1 = vadd.f32 %v1422_v50, %v1261_v35  ;;  %v1423_v55 = vmul.f32 %v3202_v57, %v1386_v52  ;;  %v1201_v15 = vmul.f32 %v3191_v31, %v4260_v21  ;;  %v4261_v50 = vld [vmem:[#allocation111_spill] sm:$0xff]  ;;  %v3434_v35 = vperm.slane %v3165_v25, 5  ;;  %v4266_v21 = vld [vmem:[#allocation21_spill] sm:$0xff]  ;;  %v4267_v52 = vld [vmem:[#allocation4_spill] sm:$0xff] }
 0x235   : > { %v3423_v8 = vadd.f32 %v1412_v63, %v1251_v40  ;;  %v1222_v53 = vmul.f32 %v3191_v31, %v4261_v50  ;;  %v4263_v61 = vld [vmem:[#allocation43_spill] sm:$0xff]  ;;  %v1040_v54 = vadd.f32 %v1008_v13, %v847_v32  ;;  %v4264_v11 = vmov 6   ;;  %v4265_v63 = vld [vmem:[#allocation116_spill] sm:$0xff] }
 0x236   : > { %4256 = vst [vmem:[#allocation90_spill] sm:$0xff] %v3416_v1  ;;  %v3427_v17 = vadd.f32 %v1423_v55, %v1262_v14  ;;  %v817_v40 = vmul.f32 %v3173_v4, %v4263_v61  ;;  %v1061_v22 = vadd.f32 %v1029_v60, %v868_v47  ;;  %v1232_v45 = vadd.f32 %v1200_v26, %v1039_v38  ;;  %v4268_v14 = vld [vmem:[#allocation29_spill] sm:$0xff]  ;;  %v4269_v2 = vld [vmem:[#allocation67_spill] sm:$0xff]  ;;  %v4270_v50 = vld [vmem:[#allocation68_spill] sm:$0xff] }
 0x237   : > { %4259 = vst [vmem:[#allocation60_spill] sm:$0xff] %v3423_v8  ;;  %v1394_v42 = vmul.f32 %v3202_v57, %v4265_v63  ;;  %v624_v55 = vmul.f32 %v3179_v41, %v4268_v14  ;;  %v839_v30 = vmul.f32 %v3173_v4, %v4269_v2  ;;  %v1010_v13 = vmul.f32 %v3184_v9, %v4270_v50  ;;  %v4271_v61 = vld [vmem:[#allocation12_spill] sm:$0xff]  ;;  %v4273_v8 = vld [vmem:[#allocation94_spill] sm:$0xff]  ;;  %v4274_v1 = vld [vmem:[#allocation95_spill] sm:$0xff] }
 0x238   : > { %2241 = vset.pattern.permute.xlu2 %v4264_v11  ;;  %v1233_v32 = vadd.f32 %v1201_v15, %v1040_v54  ;;  %v1254_v26 = vadd.f32 %v1222_v53, %v1061_v22  ;;  %v1425_v47 = vadd.f32 %v1393_v23, %v1232_v45  ;;  %v1032_v2 = vmul.f32 %v3184_v9, %v4273_v8 }
 0x239   : > { %1582 = vperm.xlu1 %2240, %v4266_v21   ;;  %1651 = vperm.xlu2 %2241, %v4267_v52   ;;  %v4272_v52 = vld [vmem:[#allocation42_spill] sm:$0xff]  ;;  %v849_v21 = vadd.f32 %v817_v40, %v624_v55  ;;  %v1203_v15 = vmul.f32 %v3191_v31, %v4274_v1  ;;  %v4276_v40 = vld [vmem:[#allocation115_spill] sm:$0xff] }
 0x23a   : > { %v1354_v19 = vpop.permute.xlu1 %1353  ;;  %v1459_v60 = vpop.permute.xlu2 %1458  ;;  %v646_v14 = vmul.f32 %v3179_v41, %v4272_v52  ;;  %v1426_v50 = vadd.f32 %v1394_v42, %v1233_v32  ;;  %v1396_v55 = vmul.f32 %v3202_v57, %v4276_v40 }
 0x23b   : > { %v1415_v38 = vmul.f32 %v3202_v57, %v1354_v19  ;;  %1711 = vperm.xlu0 %2242, %v4271_v61   ;;  %v1586_v63 = vmul.f32 %v3434_v35, %v1459_v60  ;;  %v1042_v19 = vadd.f32 %v1010_v13, %v849_v21  ;;  %v4275_v60 = vld [vmem:[#allocation114_spill] sm:$0xff] }
 0x23c   : > { %v1463_v54 = vpop.permute.xlu0 %1462  ;;  %v871_v45 = vadd.f32 %v839_v30, %v646_v14  ;;  %v1225_v52 = vmul.f32 %v3191_v31, %v4275_v60  ;;  %v4277_v61 = vld [vmem:[#allocation46_spill] sm:$0xff]  ;;  %v4282_v14 = vld [vmem:[#allocation3_spill] sm:$0xff]  ;;  %v4284_v60 = vld [vmem:[#allocation97_spill] sm:$0xff] }
 0x23d   : > { %v3458_v53 = vadd.f32 %v1415_v38, %v1254_v26  ;;  %v3460_v23 = vadd.f32 %v1586_v63, %v1425_v47  ;;  %v1587_v22 = vmul.f32 %v3434_v35, %v1463_v54  ;;  %v819_v1 = vmul.f32 %v3173_v4, %v4277_v61  ;;  %v4278_v26 = vld [vmem:[#allocation6_spill] sm:$0xff]  ;;  %v4279_v47 = vld [vmem:[#allocation23_spill] sm:$0xff] }
 0x23e   : > { %v1064_v42 = vadd.f32 %v1032_v2, %v871_v45  ;;  %v1235_v32 = vadd.f32 %v1203_v15, %v1042_v19  ;;  %v626_v21 = vmul.f32 %v3179_v41, %v4279_v47  ;;  %v4280_v30 = vld [vmem:[#allocation70_spill] sm:$0xff]  ;;  %v4281_v38 = vld [vmem:[#allocation71_spill] sm:$0xff]  ;;  %v1035_v40 = vmul.f32 %v3184_v9, %v4284_v60 }
 0x23f   : > { %v3467_v8 = vadd.f32 %v1587_v22, %v1426_v50  ;;  %v842_v13 = vmul.f32 %v3173_v4, %v4280_v30  ;;  %v1012_v63 = vmul.f32 %v3184_v9, %v4281_v38  ;;  %v4283_v22 = vld [vmem:[#allocation45_spill] sm:$0xff]  ;;  %v4285_v30 = vld [vmem:[#allocation98_spill] sm:$0xff] }
 0x240   : > { %v1257_v61 = vadd.f32 %v1225_v52, %v1064_v42  ;;  %v1428_v2 = vadd.f32 %v1396_v55, %v1235_v32  ;;  %v649_v45 = vmul.f32 %v3179_v41, %v4283_v22  ;;  %v851_v19 = vadd.f32 %v819_v1, %v626_v21  ;;  %v4288_v22 = vld [vmem:[#allocation49_spill] sm:$0xff] }
 0x241   : > { %2243 = vset.pattern.permute.xlu1 %v4264_v11  ;;  %1663 = vperm.xlu2 %2241, %v4278_v26   ;;  %v1205_v38 = vmul.f32 %v3191_v31, %v4285_v30  ;;  %v822_v60 = vmul.f32 %v3173_v4, %v4288_v22 }
 0x242   : > { %1659 = vperm.xlu1 %2243, %v4282_v14   ;;  %v1366_v54 = vpop.permute.xlu1 %1365  ;;  %v1471_v50 = vpop.permute.xlu2 %1470  ;;  %v874_v42 = vadd.f32 %v842_v13, %v649_v45  ;;  %v1044_v32 = vadd.f32 %v1012_v63, %v851_v19  ;;  %v4291_v63 = vld [vmem:[#allocation73_spill] sm:$0xff] }
 0x243   : > { %v1418_v15 = vmul.f32 %v3202_v57, %v1366_v54  ;;  %1723 = vperm.xlu0 %2242, %v2723_v39   ;;  %v1589_v11 = vmul.f32 %v3434_v35, %v1471_v50  ;;  %v1228_v54 = vmul.f32 %v3191_v31, %v3197_v3  ;;  %v4287_v50 = vld [vmem:[#allocation117_spill] sm:$0xff]  ;;  %v845_v45 = vmul.f32 %v3173_v4, %v4291_v63  ;;  %v4292_v3 = vld [vmem:[#allocation74_spill] sm:$0xff] }
 0x244   : > { %v1483_v47 = vpop.permute.xlu0 %1482  ;;  %v1398_v1 = vmul.f32 %v3202_v57, %v4287_v50  ;;  %v1015_v19 = vmul.f32 %v3184_v9, %v4292_v3 }
 0x245   : > { %v3489_v14 = vadd.f32 %v1418_v15, %v1257_v61  ;;  %v3491_v52 = vadd.f32 %v1589_v11, %v1428_v2  ;;  %v1592_v55 = vmul.f32 %v3434_v35, %v1483_v47  ;;  %v1067_v61 = vadd.f32 %v1035_v40, %v874_v42  ;;  %v4289_v2 = vld [vmem:[#allocation5_spill] sm:$0xff]  ;;  %v4290_v11 = vld [vmem:[#allocation24_spill] sm:$0xff]  ;;  %v4293_v47 = vld [vmem:[#allocation2_spill] sm:$0xff] }
 0x246   : > { %v1237_v15 = vadd.f32 %v1205_v38, %v1044_v32  ;;  %v629_v13 = vmul.f32 %v3179_v41, %v4290_v11  ;;  %v4294_v42 = vld [vmem:[#allocation48_spill] sm:$0xff] }
 0x247   : > { %4286 = vst [vmem:[#allocation35_spill] sm:$0xff] %v3491_v52  ;;  %v3499_v21 = vadd.f32 %v1592_v55, %v3212_v0  ;;  %v1260_v55 = vadd.f32 %v1228_v54, %v1067_v61  ;;  %v652_v32 = vmul.f32 %v3179_v41, %v4294_v42  ;;  %v4295_v11 = vld [vmem:[#allocation100_spill] sm:$0xff] }
 0x248   : > { %v1430_v50 = vadd.f32 %v1398_v1, %v1237_v15  ;;  %v854_v22 = vadd.f32 %v822_v60, %v629_v13  ;;  %v1038_v63 = vmul.f32 %v3184_v9, %v4295_v11  ;;  %v1401_v60 = vmul.f32 %v3202_v57, %v3220_v43 }
 0x249   : > { %1671 = vperm.xlu2 %2241, %v4289_v2   ;;  %v4296_v2 = vld [vmem:[#allocation101_spill] sm:$0xff]  ;;  %v877_v61 = vadd.f32 %v845_v45, %v652_v32 }
 0x24a   : > { %1667 = vperm.xlu1 %2243, %v4293_v47   ;;  %v1378_v0 = vpop.permute.xlu1 %1377  ;;  %v1479_v30 = vpop.permute.xlu2 %1478  ;;  %v1208_v47 = vmul.f32 %v3191_v31, %v4296_v2  ;;  %v1047_v15 = vadd.f32 %v1015_v19, %v854_v22  ;;  %v4299_v19 = vld [vmem:[#allocation52_spill] sm:$0xff] }
 0x24b   : > { %v1421_v40 = vmul.f32 %v3202_v57, %v1378_v0  ;;  %1735 = vperm.xlu0 %2242, %v2737_v59   ;;  %v1591_v38 = vmul.f32 %v3434_v35, %v1479_v30  ;;  %v1231_v0 = vmul.f32 %v3191_v31, %v3218_v46  ;;  %v4297_v30 = vld [vmem:[#allocation51_spill] sm:$0xff]  ;;  %v4300_v46 = vld [vmem:[#allocation76_spill] sm:$0xff] }
 0x24c   : > { %v1495_v3 = vpop.permute.xlu0 %1494  ;;  %v825_v2 = vmul.f32 %v3173_v4, %v4297_v30  ;;  %v1018_v42 = vmul.f32 %v3184_v9, %v4300_v46 }
 0x24d   : > { %v3520_v52 = vadd.f32 %v1421_v40, %v1260_v55  ;;  %v3522_v54 = vadd.f32 %v1591_v38, %v1430_v50  ;;  %v1595_v1 = vmul.f32 %v3434_v35, %v1495_v3  ;;  %v1070_v55 = vadd.f32 %v1038_v63, %v877_v61  ;;  %v4298_v50 = vld [vmem:[#allocation25_spill] sm:$0xff]  ;;  %v4301_v63 = vld [vmem:[#allocation26_spill] sm:$0xff] }
 0x24e   : > { %v1240_v40 = vadd.f32 %v1208_v47, %v1047_v15  ;;  %v632_v45 = vmul.f32 %v3179_v41, %v4298_v50  ;;  %v816_v38 = vmul.f32 %v3173_v4, %v4299_v19  ;;  %v623_v3 = vmul.f32 %v3179_v41, %v4301_v63  ;;  %v4302_v61 = vld [vmem:[#allocation77_spill] sm:$0xff]  ;;  %v4303_v50 = vld [vmem:[#allocation102_spill] sm:$0xff] }
 0x24f   : > { %v3530_v13 = vadd.f32 %v1595_v1, %v3230_v27  ;;  %v1263_v32 = vadd.f32 %v1231_v0, %v1070_v55  ;;  %v1009_v15 = vmul.f32 %v3184_v9, %v4302_v61  ;;  %v1211_v19 = vmul.f32 %v3191_v31, %v4303_v50  ;;  %v4308_v61 = vld [vmem:[#allocation78_spill] sm:$0xff] }
 0x250   : > { %v1433_v22 = vadd.f32 %v1401_v60, %v1240_v40  ;;  %v857_v1 = vadd.f32 %v825_v2, %v632_v45  ;;  %v848_v55 = vadd.f32 %v816_v38, %v623_v3  ;;  %v4304_v40 = vld [vmem:[#allocation103_spill] sm:$0xff]  ;;  %v1404_v2 = vmul.f32 %v3202_v57, %v3236_v37 }
 0x251   : > { %1683 = vperm.xlu2 %2241, %v2595_v51   ;;  %v4306_v38 = vld [vmem:[#allocation55_spill] sm:$0xff] }
 0x252   : > { %1679 = vperm.xlu1 %2243, %v2600_v56   ;;  %v1390_v43 = vpop.permute.xlu1 %1389  ;;  %v1491_v27 = vpop.permute.xlu2 %1490  ;;  %v1041_v63 = vadd.f32 %v1009_v15, %v848_v55  ;;  %v818_v3 = vmul.f32 %v3173_v4, %v4306_v38  ;;  %v1021_v15 = vmul.f32 %v3184_v9, %v4308_v61  ;;  %v4310_v55 = vld [vmem:[#allocation79_spill] sm:$0xff]  ;;  %v4311_v38 = vld [vmem:[#allocation104_spill] sm:$0xff] }
 0x253   : > { %v1424_v11 = vmul.f32 %v3202_v57, %v1390_v43  ;;  %1747 = vperm.xlu0 %2242, %v2751_v10   ;;  %v1594_v47 = vmul.f32 %v3434_v35, %v1491_v27  ;;  %v1202_v43 = vmul.f32 %v3191_v31, %v4304_v40  ;;  %v1050_v27 = vadd.f32 %v1018_v42, %v857_v1  ;;  %v4307_v1 = vld [vmem:[#allocation28_spill] sm:$0xff] }
 0x254   : > { %v1507_v30 = vpop.permute.xlu0 %1506  ;;  %v1011_v40 = vmul.f32 %v3184_v9, %v4310_v55  ;;  %v4314_v55 = vld [vmem:[#allocation31_spill] sm:$0xff] }
 0x255   : > { %v3551_v46 = vadd.f32 %v1424_v11, %v1263_v32  ;;  %v3553_v0 = vadd.f32 %v1594_v47, %v1433_v22  ;;  %v1598_v60 = vmul.f32 %v3434_v35, %v1507_v30  ;;  %v1395_v32 = vmul.f32 %v3202_v57, %v3239_v29  ;;  %v4305_v11 = vld [vmem:[#allocation54_spill] sm:$0xff] }
 0x256   : > { %v828_v22 = vmul.f32 %v3173_v4, %v4305_v11  ;;  %v1243_v47 = vadd.f32 %v1211_v19, %v1050_v27  ;;  %v1234_v42 = vadd.f32 %v1202_v43, %v1041_v63  ;;  %v4309_v19 = vld [vmem:[#allocation22_spill] sm:$0xff] }
 0x257   : > { %v3561_v45 = vadd.f32 %v1598_v60, %v3248_v49  ;;  %v635_v49 = vmul.f32 %v3179_v41, %v4307_v1  ;;  %v625_v60 = vmul.f32 %v3179_v41, %v4309_v19  ;;  %v1214_v1 = vmul.f32 %v3191_v31, %v4311_v38 }
 0x258   : > { %v1436_v29 = vadd.f32 %v1404_v2, %v1243_v47  ;;  %v1427_v43 = vadd.f32 %v1395_v32, %v1234_v42  ;;  %v1407_v32 = vmul.f32 %v3202_v57, %v3254_v7 }
 0x259   : > { %1695 = vperm.xlu2 %2241, %v2633_v16   ;;  %v860_v11 = vadd.f32 %v828_v22, %v635_v49  ;;  %v850_v61 = vadd.f32 %v818_v3, %v625_v60  ;;  %v1397_v49 = vmul.f32 %v3202_v57, %v3259_v12  ;;  %v4313_v3 = vld [vmem:[#allocation56_spill] sm:$0xff] }
 0x25a   : > { %1691 = vperm.xlu1 %2243, %v2645_v34   ;;  %v1503_v37 = vpop.permute.xlu2 %1502  ;;  %v4315_v12 = vld [vmem:[#allocation80_spill] sm:$0xff] }
 0x25b   : > { %1759 = vperm.xlu0 %2242, %v2763_v6   ;;  %v1467_v30 = vpop.permute.xlu1 %1466  ;;  %v1597_v50 = vmul.f32 %v3434_v35, %v1503_v37  ;;  %v4312_v37 = vld [vmem:[#allocation105_spill] sm:$0xff]  ;;  %v1053_v16 = vadd.f32 %v1021_v15, %v860_v11  ;;  %v1043_v22 = vadd.f32 %v1011_v40, %v850_v61  ;;  %v628_v40 = vmul.f32 %v3179_v41, %v4314_v55 }
 0x25c   : > { %v1588_v27 = vmul.f32 %v3434_v35, %v1467_v30  ;;  %v1519_v63 = vpop.permute.xlu0 %1518  ;;  %v1204_v34 = vmul.f32 %v3191_v31, %v4312_v37  ;;  %v821_v30 = vmul.f32 %v3173_v4, %v4313_v3 }
 0x25d   : > { %v3584_v2 = vadd.f32 %v1597_v50, %v1436_v29  ;;  %v1601_v47 = vmul.f32 %v3434_v35, %v1519_v63  ;;  %v1246_v29 = vadd.f32 %v1214_v1, %v1053_v16  ;;  %v1014_v16 = vmul.f32 %v3184_v9, %v4315_v12  ;;  %v4316_v1 = vld [vmem:[#allocation106_spill] sm:$0xff] }
 0x25e   : > { %v3589_v19 = vadd.f32 %v1588_v27, %v1427_v43  ;;  %v1236_v50 = vadd.f32 %v1204_v34, %v1043_v22  ;;  %v853_v38 = vadd.f32 %v821_v30, %v628_v40  ;;  %v1400_v22 = vmul.f32 %v3202_v57, %v3283_v62 }
 0x25f   : > { %v3594_v42 = vadd.f32 %v1601_v47, %v3274_v48  ;;  %v1439_v60 = vadd.f32 %v1407_v32, %v1246_v29  ;;  %v1207_v47 = vmul.f32 %v3191_v31, %v4316_v1 }
 0x260   : > { %v1429_v43 = vadd.f32 %v1397_v49, %v1236_v50  ;;  %v1046_v32 = vadd.f32 %v1014_v16, %v853_v38  ;;  %v4317_v49 = vld [vmem:[#allocation57_spill] sm:$0xff]  ;;  %v4087_v50 = vmov 7  }
 0x261   : > { %1707 = vperm.xlu2 %2241, %v2678_v58   ;;  %v824_v29 = vmul.f32 %v3173_v4, %v4317_v49  ;;  %v4323_v49 = vld [vmem:[#allocation59_spill] sm:$0xff] }
 0x262   : > { %1703 = vperm.xlu1 %2243, %v2683_v44   ;;  %v1515_v15 = vpop.permute.xlu2 %1514  ;;  %v1239_v3 = vadd.f32 %v1207_v47, %v1046_v32  ;;  %v4321_v32 = vld [vmem:[#allocation81_spill] sm:$0xff] }
 0x263   : > { %1771 = vperm.xlu0 %2242, %v2772_v36   ;;  %v1475_v7 = vpop.permute.xlu1 %1474  ;;  %v1600_v48 = vmul.f32 %v3434_v35, %v1515_v15 }
 0x264   : > { %v1590_v27 = vmul.f32 %v3434_v35, %v1475_v7  ;;  %v1531_v63 = vpop.permute.xlu0 %1530  ;;  %v1432_v55 = vadd.f32 %v1400_v22, %v1239_v3  ;;  %v1403_v22 = vmul.f32 %v3202_v57, %v4321_v32 }
 0x265   : > { %v3609_v34 = vadd.f32 %v1600_v48, %v1439_v60  ;;  %v1604_v11 = vmul.f32 %v3434_v35, %v1531_v63  ;;  %v4318_v60 = vld [vmem:[#allocation32_spill] sm:$0xff]  ;;  %v4319_v48 = vld [vmem:[#allocation82_spill] sm:$0xff]  ;;  %v4320_v63 = vld [vmem:[#allocation107_spill] sm:$0xff] }
 0x266   : > { %v3614_v61 = vadd.f32 %v1590_v27, %v1429_v43  ;;  %v631_v7 = vmul.f32 %v3179_v41, %v4318_v60  ;;  %v1017_v62 = vmul.f32 %v3184_v9, %v4319_v48  ;;  %v4325_v60 = vld [vmem:[#allocation34_spill] sm:$0xff] }
 0x267   : > { %v3617_v37 = vadd.f32 %v1604_v11, %v3301_v20  ;;  %v1210_v11 = vmul.f32 %v3191_v31, %v4320_v63 }
 0x268   : > { %v856_v27 = vadd.f32 %v824_v29, %v631_v7  ;;  %v4326_v7 = vld [vmem:[#allocation84_spill] sm:$0xff] }
 0x269   : > { %1719 = vperm.xlu2 %2241, %v2701_v5   ;;  %v1020_v48 = vmul.f32 %v3184_v9, %v4326_v7  ;;  %v4332_v7 = vld [vmem:[#allocation15_spill] sm:$0xff] }
 0x26a   : > { %1715 = vperm.xlu1 %2243, %v2705_v24   ;;  %v1527_v30 = vpop.permute.xlu2 %1526  ;;  %v1049_v47 = vadd.f32 %v1017_v62, %v856_v27 }
 0x26b   : > { %2245 = vset.pattern.permute.xlu0 %v4087_v50  ;;  %v1487_v15 = vpop.permute.xlu1 %1486  ;;  %v1603_v20 = vmul.f32 %v3434_v35, %v1527_v30  ;;  %v4324_v30 = vld [vmem:[#allocation14_spill] sm:$0xff] }
 0x26c   : > { %v1593_v40 = vmul.f32 %v3434_v35, %v1487_v15  ;;  %1848 = vperm.xlu0 %2245, %v2568_v28   ;;  %v1543_v12 = vpop.permute.xlu0 %1542  ;;  %v4322_v28 = vld [vmem:[#allocation13_spill] sm:$0xff]  ;;  %v1242_v3 = vadd.f32 %v1210_v11, %v1049_v47  ;;  %v4329_v47 = vld [vmem:[#allocation108_spill] sm:$0xff] }
 0x26d   : > { %v3634_v16 = vadd.f32 %v1603_v20, %v3292_v33  ;;  %v1607_v43 = vmul.f32 %v3434_v35, %v1543_v12  ;;  %v827_v33 = vmul.f32 %v3173_v4, %v4323_v49  ;;  %v1213_v32 = vmul.f32 %v3191_v31, %v4329_v47  ;;  %v4336_v47 = vld [vmem:[#allocation86_spill] sm:$0xff] }
 0x26e   : > { %v3639_v38 = vadd.f32 %v1593_v40, %v1432_v55  ;;  %v1435_v62 = vadd.f32 %v1403_v22, %v1242_v3  ;;  %v4327_v40 = vld [vmem:[#allocation7_spill] sm:$0xff] }
 0x26f   : > { %v3642_v1 = vadd.f32 %v1607_v43, %v3329_v18  ;;  %v634_v18 = vmul.f32 %v3179_v41, %v4325_v60  ;;  %v4328_v43 = vld [vmem:[#allocation41_spill] sm:$0xff]  ;;  %v4331_v3 = vld [vmem:[#allocation87_spill] sm:$0xff] }
 0x271   : > { %1731 = vperm.xlu2 %2241, %v4322_v28   ;;  %v859_v11 = vadd.f32 %v827_v33, %v634_v18 }
 0x272   : > { %1727 = vperm.xlu1 %2243, %v4324_v30   ;;  %v1539_v29 = vpop.permute.xlu2 %1538 }
 0x273   : > { %v1499_v15 = vpop.permute.xlu1 %1498  ;;  %v1606_v20 = vmul.f32 %v3434_v35, %v1539_v29  ;;  %v4330_v29 = vld [vmem:[#allocation33_spill] sm:$0xff]  ;;  %v1052_v22 = vadd.f32 %v1020_v48, %v859_v11  ;;  %v1023_v48 = vmul.f32 %v3184_v9, %v4336_v47 }
 0x274   : > { %v1596_v55 = vmul.f32 %v3434_v35, %v1499_v15  ;;  %1868 = vperm.xlu0 %2245, %v4327_v40   ;;  %v1555_v12 = vpop.permute.xlu0 %1554  ;;  %v1406_v15 = vmul.f32 %v3202_v57, %v4331_v3  ;;  %v4333_v40 = vld [vmem:[#allocation61_spill] sm:$0xff]  ;;  %v4337_v3 = vld [vmem:[#allocation10_spill] sm:$0xff] }
 0x275   : > { %v3658_v27 = vadd.f32 %v1606_v20, %v4328_v43  ;;  %v1610_v63 = vmul.f32 %v3434_v35, %v1555_v12  ;;  %v830_v20 = vmul.f32 %v3173_v4, %v4333_v40  ;;  %v1245_v43 = vadd.f32 %v1213_v32, %v1052_v22  ;;  %v4334_v12 = vld [vmem:[#allocation16_spill] sm:$0xff]  ;;  %v4338_v4 = vld [vmem:[#allocation58_spill] sm:$0xff] }
 0x276   : > { %v3663_v49 = vadd.f32 %v1596_v55, %v1435_v62  ;;  %v4335_v55 = vld [vmem:[#allocation36_spill] sm:$0xff] }
 0x277   : > { %v3666_v60 = vadd.f32 %v1610_v63, %v4330_v29  ;;  %v637_v63 = vmul.f32 %v3179_v41, %v4335_v55  ;;  %v1438_v11 = vadd.f32 %v1406_v15, %v1245_v43  ;;  %v4340_v41 = vld [vmem:[#allocation44_spill] sm:$0xff]  ;;  %v4341_v15 = vld [vmem:[#allocation66_spill] sm:$0xff] }
 0x278   : > { %v1409_v43 = vmul.f32 %v3202_v57, %v4341_v15 }
 0x279   : > { %1743 = vperm.xlu2 %2241, %v4332_v7   ;;  %v862_v40 = vadd.f32 %v830_v20, %v637_v63 }
 0x27a   : > { %1739 = vperm.xlu1 %2243, %v4334_v12   ;;  %v1551_v33 = vpop.permute.xlu2 %1550  ;;  %v4339_v12 = vld [vmem:[#allocation109_spill] sm:$0xff] }
 0x27b   : > { %v1511_v18 = vpop.permute.xlu1 %1510  ;;  %v1609_v62 = vmul.f32 %v3434_v35, %v1551_v33  ;;  %v1216_v33 = vmul.f32 %v3191_v31, %v4339_v12  ;;  %v1055_v9 = vadd.f32 %v1023_v48, %v862_v40  ;;  %v4344_v12 = vld [vmem:[#allocation11_spill] sm:$0xff] }
 0x27c   : > { %v1599_v29 = vmul.f32 %v3434_v35, %v1511_v18  ;;  %1880 = vperm.xlu0 %2245, %v4337_v3   ;;  %v1567_v50 = vpop.permute.xlu0 %1566  ;;  %v4342_v18 = vld [vmem:[#allocation17_spill] sm:$0xff]  ;;  %v4346_v40 = vld [vmem:[#allocation19_spill] sm:$0xff] }
 0x27d   : > { %v3682_v32 = vadd.f32 %v1609_v62, %v4338_v4  ;;  %v1613_v22 = vmul.f32 %v3434_v35, %v1567_v50  ;;  %v1248_v47 = vadd.f32 %v1216_v33, %v1055_v9  ;;  %v4343_v62 = vld [vmem:[#allocation18_spill] sm:$0xff]  ;;  %v4347_v33 = vld [vmem:[#allocation20_spill] sm:$0xff]  ;;  %v3711_v9 = vperm.slane %v3165_v25, 6 }
 0x27e   : > { %v3687_v7 = vadd.f32 %v1599_v29, %v1438_v11  ;;  %v4345_v29 = vld [vmem:[#allocation83_spill] sm:$0xff]  ;;  %v4351_v25 = vmov 7  }
 0x27f   : > { %v3690_v55 = vadd.f32 %v1613_v22, %v4340_v41  ;;  %v1441_v63 = vadd.f32 %v1409_v43, %v1248_v47 }
 0x281   : > { %1755 = vperm.xlu2 %2241, %v4342_v18  }
 0x282   : > { %1751 = vperm.xlu1 %2243, %v4343_v62   ;;  %v1563_v3 = vpop.permute.xlu2 %1562 }
 0x283   : > { %v1523_v50 = vpop.permute.xlu1 %1522  ;;  %v1612_v20 = vmul.f32 %v3434_v35, %v1563_v3  ;;  %v4348_v3 = vld [vmem:[#allocation12_spill] sm:$0xff] }
 0x284   : > { %v1602_v31 = vmul.f32 %v3434_v35, %v1523_v50  ;;  %1892 = vperm.xlu0 %2245, %v4344_v12   ;;  %v1579_v11 = vpop.permute.xlu0 %1578  ;;  %v4349_v50 = vld [vmem:[#allocation90_spill] sm:$0xff] }
 0x285   : > { %v3700_v48 = vadd.f32 %v1612_v20, %v4345_v29  ;;  %v1616_v57 = vmul.f32 %v3434_v35, %v1579_v11  ;;  %v4352_v29 = vld [vmem:[#allocation21_spill] sm:$0xff] }
 0x286   : > { %v3703_v4 = vadd.f32 %v1602_v31, %v1441_v63  ;;  %v4350_v63 = vld [vmem:[#allocation60_spill] sm:$0xff] }
 0x287   : > { %v3706_v22 = vadd.f32 %v1616_v57, %v3427_v17  ;;  %v4353_v57 = vld [vmem:[#allocation4_spill] sm:$0xff] }
 0x289   : > { %1767 = vperm.xlu2 %2241, %v4346_v40  }
 0x28a   : > { %1763 = vperm.xlu1 %2243, %v4347_v33   ;;  %v1575_v41 = vpop.permute.xlu2 %1574 }
 0x28b   : > { %v1535_v15 = vpop.permute.xlu1 %1534  ;;  %v1615_v43 = vmul.f32 %v3434_v35, %v1575_v41 }
 0x28c   : > { %v1605_v47 = vmul.f32 %v3434_v35, %v1535_v15  ;;  %1904 = vperm.xlu0 %2245, %v4348_v3  }
 0x28d   : > { %v3717_v20 = vadd.f32 %v1615_v43, %v4349_v50  ;;  %v1656_v17 = vpop.permute.xlu0 %1655 }
 0x28e   : > { %v3720_v31 = vadd.f32 %v1605_v47, %v4350_v63  ;;  %v1780_v12 = vmul.f32 %v3711_v9, %v1656_v17 }
 0x290   : > { %v3724_v11 = vadd.f32 %v1780_v12, %v3467_v8  ;;  %v4354_v12 = vld [vmem:[#allocation3_spill] sm:$0xff] }
 0x291   : > { %2244 = vset.pattern.permute.xlu2 %v4351_v25 }
 0x292   : > { %1775 = vperm.xlu1 %2243, %v4352_v29   ;;  %1844 = vperm.xlu2 %2244, %v4353_v57  }
 0x293   : > { %v1547_v41 = vpop.permute.xlu1 %1546  ;;  %v1652_v15 = vpop.permute.xlu2 %1651 }
 0x294   : > { %v1608_v43 = vmul.f32 %v3434_v35, %v1547_v41  ;;  %1916 = vperm.xlu0 %2245, %v2723_v39   ;;  %v1779_v47 = vmul.f32 %v3711_v9, %v1652_v15 }
 0x295   : > { %v1676_v3 = vpop.permute.xlu0 %1675 }
 0x296   : > { %v3733_v50 = vadd.f32 %v1608_v43, %v3458_v53  ;;  %v3736_v8 = vadd.f32 %v1779_v47, %v3460_v23  ;;  %v1785_v17 = vmul.f32 %v3711_v9, %v1676_v3  ;;  %v4356_v47 = vld [vmem:[#allocation5_spill] sm:$0xff]  ;;  %v4357_v3 = vld [vmem:[#allocation2_spill] sm:$0xff] }
 0x298   : > { %v3740_v63 = vadd.f32 %v1785_v17, %v3499_v21  ;;  %v4355_v21 = vld [vmem:[#allocation35_spill] sm:$0xff] }
 0x29a   : > { %2246 = vset.pattern.permute.xlu1 %v4351_v25  ;;  %1856 = vperm.xlu2 %2244, %v4278_v26  }
 0x29b   : > { %1852 = vperm.xlu1 %2246, %v4354_v12   ;;  %v1559_v39 = vpop.permute.xlu1 %1558  ;;  %v1664_v57 = vpop.permute.xlu2 %1663 }
 0x29c   : > { %v1611_v41 = vmul.f32 %v3434_v35, %v1559_v39  ;;  %1928 = vperm.xlu0 %2245, %v2737_v59   ;;  %v1782_v53 = vmul.f32 %v3711_v9, %v1664_v57 }
 0x29d   : > { %v1688_v23 = vpop.permute.xlu0 %1687 }
 0x29e   : > { %v3749_v15 = vadd.f32 %v1611_v41, %v3489_v14  ;;  %v3752_v43 = vadd.f32 %v1782_v53, %v4355_v21  ;;  %v1788_v25 = vmul.f32 %v3711_v9, %v1688_v23 }
 0x2a0   : > { %v3756_v26 = vadd.f32 %v1788_v25, %v3530_v13 }
 0x2a2   : > { %1864 = vperm.xlu2 %2244, %v4356_v47  }
 0x2a3   : > { %1860 = vperm.xlu1 %2246, %v4357_v3   ;;  %v1571_v17 = vpop.permute.xlu1 %1570  ;;  %v1672_v59 = vpop.permute.xlu2 %1671  ;;  %v4359_v3 = vld [vmem:[#allocation9_spill] sm:$0xff] }
 0x2a4   : > { %v1614_v12 = vmul.f32 %v3434_v35, %v1571_v17  ;;  %1940 = vperm.xlu0 %2245, %v2751_v10   ;;  %v1784_v14 = vmul.f32 %v3711_v9, %v1672_v59 }
 0x2a5   : > { %v1700_v39 = vpop.permute.xlu0 %1699 }
 0x2a6   : > { %v3764_v57 = vadd.f32 %v1614_v12, %v3520_v52  ;;  %v3767_v41 = vadd.f32 %v1784_v14, %v3522_v54  ;;  %v1791_v13 = vmul.f32 %v3711_v9, %v1700_v39 }
 0x2a8   : > { %v3771_v53 = vadd.f32 %v1791_v13, %v3561_v45 }
 0x2aa   : > { %1876 = vperm.xlu2 %2244, %v2595_v51  }
 0x2ab   : > { %1872 = vperm.xlu1 %2246, %v2600_v56   ;;  %v1583_v23 = vpop.permute.xlu1 %1582  ;;  %v1684_v10 = vpop.permute.xlu2 %1683  ;;  %v4358_v56 = vld [vmem:[#allocation8_spill] sm:$0xff] }
 0x2ac   : > { %v1617_v21 = vmul.f32 %v3434_v35, %v1583_v23  ;;  %1952 = vperm.xlu0 %2245, %v2763_v6   ;;  %v1787_v52 = vmul.f32 %v3711_v9, %v1684_v10 }
 0x2ad   : > { %v1712_v25 = vpop.permute.xlu0 %1711 }
 0x2ae   : > { %v3779_v54 = vadd.f32 %v1617_v21, %v3551_v46  ;;  %v3782_v47 = vadd.f32 %v1787_v52, %v3553_v0  ;;  %v1794_v45 = vmul.f32 %v3711_v9, %v1712_v25 }
 0x2b0   : > { %v3786_v51 = vadd.f32 %v1794_v45, %v3594_v42 }
 0x2b2   : > { %1888 = vperm.xlu2 %2244, %v4358_v56  }
 0x2b3   : > { %1884 = vperm.xlu1 %2246, %v4359_v3   ;;  %v1696_v35 = vpop.permute.xlu2 %1695 }
 0x2b4   : > { %1964 = vperm.xlu0 %2245, %v2772_v36   ;;  %v1660_v6 = vpop.permute.xlu1 %1659  ;;  %v1790_v17 = vmul.f32 %v3711_v9, %v1696_v35 }
 0x2b5   : > { %v1781_v46 = vmul.f32 %v3711_v9, %v1660_v6  ;;  %v1724_v59 = vpop.permute.xlu0 %1723 }
 0x2b6   : > { %v3794_v0 = vadd.f32 %v1790_v17, %v3584_v2  ;;  %v1797_v12 = vmul.f32 %v3711_v9, %v1724_v59 }
 0x2b7   : > { %v3798_v42 = vadd.f32 %v1781_v46, %v3589_v19 }
 0x2b8   : > { %v3801_v14 = vadd.f32 %v1797_v12, %v3617_v37 }
 0x2ba   : > { %1900 = vperm.xlu2 %2244, %v2678_v58  }
 0x2bb   : > { %1896 = vperm.xlu1 %2246, %v2683_v44   ;;  %v1708_v36 = vpop.permute.xlu2 %1707 }
 0x2bc   : > { %v1668_v39 = vpop.permute.xlu1 %1667  ;;  %v1793_v13 = vmul.f32 %v3711_v9, %v1708_v36 }
 0x2bd   : > { %v1783_v23 = vmul.f32 %v3711_v9, %v1668_v39  ;;  %v1736_v2 = vpop.permute.xlu0 %1735 }
 0x2be   : > { %v3808_v10 = vadd.f32 %v1793_v13, %v3609_v34  ;;  %v1800_v19 = vmul.f32 %v3711_v9, %v1736_v2  ;;  %v2375_v2 = vld [vmem:[%s4047_s2] sm:$0xff] }
 0x2bf   : > { %v3812_v21 = vadd.f32 %v1783_v23, %v3614_v61 }
 0x2c0   : > { %v3815_v37 = vadd.f32 %v1800_v19, %v3642_v1 }
 0x2c2   : > { %1912 = vperm.xlu2 %2244, %v2701_v5  }
 0x2c3   : > { %1908 = vperm.xlu1 %2246, %v2705_v24   ;;  %v1720_v58 = vpop.permute.xlu2 %1719 }
 0x2c4   : > { %v1680_v44 = vpop.permute.xlu1 %1679  ;;  %v1796_v52 = vmul.f32 %v3711_v9, %v1720_v58 }
 0x2c5   : > { %v1786_v25 = vmul.f32 %v3711_v9, %v1680_v44  ;;  %v1748_v34 = vpop.permute.xlu0 %1747 }
 0x2c6   : > { %v3822_v45 = vadd.f32 %v1796_v52, %v3634_v16  ;;  %v1803_v61 = vmul.f32 %v3711_v9, %v1748_v34 }
 0x2c7   : > { %v3826_v56 = vadd.f32 %v1786_v25, %v3639_v38 }
 0x2c8   : > { %v3829_v1 = vadd.f32 %v1803_v61, %v3666_v60 }
 0x2ca   : > { %1924 = vperm.xlu2 %2244, %v4322_v28   ;;  %v4360_v28 = vld [vmem:[#allocation15_spill] sm:$0xff] }
 0x2cb   : > { %1920 = vperm.xlu1 %2246, %v4324_v30   ;;  %v1732_v5 = vpop.permute.xlu2 %1731  ;;  %v4361_v30 = vld [vmem:[#allocation16_spill] sm:$0xff] }
 0x2cc   : > { %v1692_v24 = vpop.permute.xlu1 %1691  ;;  %v1799_v3 = vmul.f32 %v3711_v9, %v1732_v5 }
 0x2cd   : > { %v1789_v35 = vmul.f32 %v3711_v9, %v1692_v24  ;;  %v1760_v16 = vpop.permute.xlu0 %1759 }
 0x2ce   : > { %v3836_v6 = vadd.f32 %v1799_v3, %v3658_v27  ;;  %v1806_v38 = vmul.f32 %v3711_v9, %v1760_v16 }
 0x2cf   : > { %v3840_v17 = vadd.f32 %v1789_v35, %v3663_v49 }
 0x2d0   : > { %v3843_v60 = vadd.f32 %v1806_v38, %v3690_v55 }
 0x2d2   : > { %1936 = vperm.xlu2 %2244, %v4360_v28  }
 0x2d3   : > { %1932 = vperm.xlu1 %2246, %v4361_v30   ;;  %v1744_v46 = vpop.permute.xlu2 %1743 }
 0x2d4   : > { %v1704_v59 = vpop.permute.xlu1 %1703  ;;  %v1802_v12 = vmul.f32 %v3711_v9, %v1744_v46 }
 0x2d5   : > { %v1792_v36 = vmul.f32 %v3711_v9, %v1704_v59  ;;  %v1772_v27 = vpop.permute.xlu0 %1771 }
 0x2d6   : > { %v3850_v39 = vadd.f32 %v1802_v12, %v3682_v32  ;;  %v1809_v49 = vmul.f32 %v3711_v9, %v1772_v27  ;;  %v3864_v32 = vperm.slane %v2375_v2, 7 }
 0x2d7   : > { %v3854_v55 = vadd.f32 %v1792_v36, %v3687_v7 }
 0x2d8   : > { %v3857_v13 = vadd.f32 %v1809_v49, %v3706_v22 }
 0x2da   : > { %1948 = vperm.xlu2 %2244, %v4342_v18  }
 0x2db   : > { %1944 = vperm.xlu1 %2246, %v4343_v62   ;;  %v1756_v23 = vpop.permute.xlu2 %1755 }
 0x2dc   : > { %v1716_v19 = vpop.permute.xlu1 %1715  ;;  %v1805_v58 = vmul.f32 %v3711_v9, %v1756_v23 }
 0x2dd   : > { %v1795_v7 = vmul.f32 %v3711_v9, %v1716_v19 }
 0x2de   : > { %v3869_v44 = vadd.f32 %v1805_v58, %v3700_v48  ;;  %v1849_v22 = vpop.permute.xlu0 %1848 }
 0x2df   : > { %v3872_v18 = vadd.f32 %v1795_v7, %v3703_v4  ;;  %v1973_v62 = vmul.f32 %v3864_v32, %v1849_v22 }
 0x2e1   : > { %v2005_v52 = vadd.f32 %v1973_v62, %v3724_v11 }
 0x2e2   : > { %1960 = vperm.xlu2 %2244, %v4346_v40  }
 0x2e3   : > { %2038 = vst.msk [vmem:[%s3880_s30 + $0x8] sm:$0xff] %vm2036_vm0, %v2005_v52  ;;  %1956 = vperm.xlu1 %2246, %v4347_v33   ;;  %v1768_v48 = vpop.permute.xlu2 %1767 }
 0x2e4   : > { %v1728_v4 = vpop.permute.xlu1 %1727  ;;  %v1808_v25 = vmul.f32 %v3711_v9, %v1768_v48 }
 0x2e5   : > { %v1798_v34 = vmul.f32 %v3711_v9, %v1728_v4 }
 0x2e6   : > { %v3890_v61 = vadd.f32 %v1808_v25, %v3717_v20  ;;  %v1869_v5 = vpop.permute.xlu0 %1868 }
 0x2e7   : > { %v3893_v11 = vadd.f32 %v1798_v34, %v3720_v31  ;;  %v1978_v40 = vmul.f32 %v3864_v32, %v1869_v5 }
 0x2e9   : > { %v2010_v24 = vadd.f32 %v1978_v40, %v3740_v63 }
 0x2eb   : > { %2043 = vst.msk [vmem:[%s3880_s30 + $0x30] sm:$0xff] %vm2036_vm0, %v2010_v24  ;;  %1968 = vperm.xlu1 %2246, %v4352_v29  }
 0x2ec   : > { %v1740_v33 = vpop.permute.xlu1 %1739  ;;  %v1845_v3 = vpop.permute.xlu2 %1844 }
 0x2ed   : > { %v1801_v35 = vmul.f32 %v3711_v9, %v1740_v33  ;;  %v1972_v20 = vmul.f32 %v3864_v32, %v1845_v3 }
 0x2ee   : > { %v1881_v16 = vpop.permute.xlu0 %1880 }
 0x2ef   : > { %v3903_v38 = vadd.f32 %v1801_v35, %v3733_v50  ;;  %v2004_v31 = vadd.f32 %v1972_v20, %v3736_v8  ;;  %v1981_v63 = vmul.f32 %v3864_v32, %v1881_v16 }
 0x2f1   : > { %2037 = vst.msk [vmem:[%s3880_s30] sm:$0xff] %vm2036_vm0, %v2004_v31  ;;  %v2013_v29 = vadd.f32 %v1981_v63, %v3756_v26 }
 0x2f3   : > { %2046 = vst.msk [vmem:[%s3880_s30 + $0x48] sm:$0xff] %vm2036_vm0, %v2013_v29 }
 0x2f4   : > { %v1752_v28 = vpop.permute.xlu1 %1751  ;;  %v1857_v30 = vpop.permute.xlu2 %1856 }
 0x2f5   : > { %v1804_v46 = vmul.f32 %v3711_v9, %v1752_v28  ;;  %v1975_v59 = vmul.f32 %v3864_v32, %v1857_v30 }
 0x2f6   : > { %v1893_v50 = vpop.permute.xlu0 %1892 }
 0x2f7   : > { %v3915_v12 = vadd.f32 %v1804_v46, %v3749_v15  ;;  %v2007_v8 = vadd.f32 %v1975_v59, %v3752_v43  ;;  %v1984_v36 = vmul.f32 %v3864_v32, %v1893_v50 }
 0x2f9   : > { %2040 = vst.msk [vmem:[%s3880_s30 + $0x18] sm:$0xff] %vm2036_vm0, %v2007_v8  ;;  %v2016_v26 = vadd.f32 %v1984_v36, %v3771_v53 }
 0x2fb   : > { %2049 = vst.msk [vmem:[%s3880_s30 + $0x60] sm:$0xff] %vm2036_vm0, %v2016_v26 }
 0x2fc   : > { %v1764_v27 = vpop.permute.xlu1 %1763  ;;  %v1865_v49 = vpop.permute.xlu2 %1864 }
 0x2fd   : > { %v1807_v23 = vmul.f32 %v3711_v9, %v1764_v27  ;;  %v1977_v2 = vmul.f32 %v3864_v32, %v1865_v49 }
 0x2fe   : > { %v1905_v15 = vpop.permute.xlu0 %1904 }
 0x2ff   : > { %v3927_v19 = vadd.f32 %v1807_v23, %v3764_v57  ;;  %v2009_v43 = vadd.f32 %v1977_v2, %v3767_v41  ;;  %v1987_v58 = vmul.f32 %v3864_v32, %v1905_v15 }
 0x301   : > { %2042 = vst.msk [vmem:[%s3880_s30 + $0x28] sm:$0xff] %vm2036_vm0, %v2009_v43  ;;  %v2019_v53 = vadd.f32 %v1987_v58, %v3786_v51 }
 0x303   : > { %2052 = vst.msk [vmem:[%s3880_s30 + $0x78] sm:$0xff] %vm2036_vm0, %v2019_v53 }
 0x304   : > { %v1776_v7 = vpop.permute.xlu1 %1775  ;;  %v1877_v22 = vpop.permute.xlu2 %1876 }
 0x305   : > { %v1810_v62 = vmul.f32 %v3711_v9, %v1776_v7  ;;  %v1980_v52 = vmul.f32 %v3864_v32, %v1877_v22 }
 0x306   : > { %v1917_v57 = vpop.permute.xlu0 %1916 }
 0x307   : > { %v3939_v48 = vadd.f32 %v1810_v62, %v3779_v54  ;;  %v2012_v41 = vadd.f32 %v1980_v52, %v3782_v47  ;;  %v1990_v4 = vmul.f32 %v3864_v32, %v1917_v57 }
 0x309   : > { %2045 = vst.msk [vmem:[%s3880_s30 + $0x40] sm:$0xff] %vm2036_vm0, %v2012_v41  ;;  %v2022_v51 = vadd.f32 %v1990_v4, %v3801_v14 }
 0x30b   : > { %2055 = vst.msk [vmem:[%s3880_s30 + $0x90] sm:$0xff] %vm2036_vm0, %v2022_v51 }
 0x30c   : > { %v1889_v9 = vpop.permute.xlu2 %1888 }
 0x30d   : > { %v1853_v25 = vpop.permute.xlu1 %1852  ;;  %v1983_v34 = vmul.f32 %v3864_v32, %v1889_v9 }
 0x30e   : > { %v1974_v5 = vmul.f32 %v3864_v32, %v1853_v25  ;;  %v1929_v54 = vpop.permute.xlu0 %1928 }
 0x30f   : > { %v2015_v40 = vadd.f32 %v1983_v34, %v3794_v0  ;;  %v1993_v47 = vmul.f32 %v3864_v32, %v1929_v54 }
 0x310   : > { %v2006_v24 = vadd.f32 %v1974_v5, %v3798_v42 }
 0x311   : > { %2048 = vst.msk [vmem:[%s3880_s30 + $0x58] sm:$0xff] %vm2036_vm0, %v2015_v40  ;;  %v2025_v14 = vadd.f32 %v1993_v47, %v3815_v37 }
 0x312   : > { %2039 = vst.msk [vmem:[%s3880_s30 + $0x10] sm:$0xff] %vm2036_vm0, %v2006_v24 }
 0x313   : > { %2058 = vst.msk [vmem:[%s3880_s30 + $0xa8] sm:$0xff] %vm2036_vm0, %v2025_v14 }
 0x314   : > { %v1901_v33 = vpop.permute.xlu2 %1900 }
 0x315   : > { %v1861_v3 = vpop.permute.xlu1 %1860  ;;  %v1986_v35 = vmul.f32 %v3864_v32, %v1901_v33 }
 0x316   : > { %v1976_v0 = vmul.f32 %v3864_v32, %v1861_v3  ;;  %v1941_v20 = vpop.permute.xlu0 %1940 }
 0x317   : > { %v2018_v16 = vadd.f32 %v1986_v35, %v3808_v10  ;;  %v1996_v42 = vmul.f32 %v3864_v32, %v1941_v20 }
 0x318   : > { %v2008_v31 = vadd.f32 %v1976_v0, %v3812_v21 }
 0x319   : > { %2051 = vst.msk [vmem:[%s3880_s30 + $0x70] sm:$0xff] %vm2036_vm0, %v2018_v16  ;;  %v2028_v37 = vadd.f32 %v1996_v42, %v3829_v1 }
 0x31a   : > { %2041 = vst.msk [vmem:[%s3880_s30 + $0x20] sm:$0xff] %vm2036_vm0, %v2008_v31 }
 0x31b   : > { %2061 = vst.msk [vmem:[%s3880_s30 + $0xc0] sm:$0xff] %vm2036_vm0, %v2028_v37 }
 0x31c   : > { %v1913_v63 = vpop.permute.xlu2 %1912 }
 0x31d   : > { %v1873_v29 = vpop.permute.xlu1 %1872  ;;  %v1989_v28 = vmul.f32 %v3864_v32, %v1913_v63 }
 0x31e   : > { %v1979_v10 = vmul.f32 %v3864_v32, %v1873_v29  ;;  %v1953_v30 = vpop.permute.xlu0 %1952 }
 0x31f   : > { %v2021_v46 = vadd.f32 %v1989_v28, %v3822_v45  ;;  %v1999_v21 = vmul.f32 %v3864_v32, %v1953_v30 }
 0x320   : > { %v2011_v59 = vadd.f32 %v1979_v10, %v3826_v56 }
 0x321   : > { %2054 = vst.msk [vmem:[%s3880_s30 + $0x88] sm:$0xff] %vm2036_vm0, %v2021_v46  ;;  %v2031_v1 = vadd.f32 %v1999_v21, %v3843_v60 }
 0x322   : > { %2044 = vst.msk [vmem:[%s3880_s30 + $0x38] sm:$0xff] %vm2036_vm0, %v2011_v59 }
 0x323   : > { %2064 = vst.msk [vmem:[%s3880_s30 + $0xd8] sm:$0xff] %vm2036_vm0, %v2031_v1 }
 0x324   : > { %v1925_v50 = vpop.permute.xlu2 %1924 }
 0x325   : > { %v1885_v8 = vpop.permute.xlu1 %1884  ;;  %v1992_v36 = vmul.f32 %v3864_v32, %v1925_v50 }
 0x326   : > { %v1982_v45 = vmul.f32 %v3864_v32, %v1885_v8  ;;  %v1965_v26 = vpop.permute.xlu0 %1964 }
 0x327   : > { %v2024_v56 = vadd.f32 %v1992_v36, %v3836_v6  ;;  %v2002_v27 = vmul.f32 %v3864_v32, %v1965_v26 }
 0x328   : > { %v2014_v49 = vadd.f32 %v1982_v45, %v3840_v17 }
 0x329   : > { %2057 = vst.msk [vmem:[%s3880_s30 + $0xa0] sm:$0xff] %vm2036_vm0, %v2024_v56  ;;  %v2034_v60 = vadd.f32 %v2002_v27, %v3857_v13 }
 0x32a   : > { %2047 = vst.msk [vmem:[%s3880_s30 + $0x50] sm:$0xff] %vm2036_vm0, %v2014_v49 }
 0x32b   : > { %2067 = vst.msk [vmem:[%s3880_s30 + $0xf0] sm:$0xff] %vm2036_vm0, %v2034_v60 }
 0x32c   : > { %v1937_v23 = vpop.permute.xlu2 %1936 }
 0x32d   : > { %v1897_v2 = vpop.permute.xlu1 %1896  ;;  %v1995_v15 = vmul.f32 %v3864_v32, %v1937_v23 }
 0x32e   : > { %v1985_v6 = vmul.f32 %v3864_v32, %v1897_v2 }
 0x32f   : > { %v2027_v43 = vadd.f32 %v1995_v15, %v3850_v39 }
 0x330   : > { %v2017_v17 = vadd.f32 %v1985_v6, %v3854_v55 }
 0x331   : > { %2060 = vst.msk [vmem:[%s3880_s30 + $0xb8] sm:$0xff] %vm2036_vm0, %v2027_v43 }
 0x332   : > { %2050 = vst.msk [vmem:[%s3880_s30 + $0x68] sm:$0xff] %vm2036_vm0, %v2017_v17 }
 0x334   : > { %v1949_v13 = vpop.permute.xlu2 %1948 }
 0x335   : > { %v1909_v58 = vpop.permute.xlu1 %1908  ;;  %v1998_v53 = vmul.f32 %v3864_v32, %v1949_v13 }
 0x336   : > { %v1988_v7 = vmul.f32 %v3864_v32, %v1909_v58 }
 0x337   : > { %v2030_v22 = vadd.f32 %v1998_v53, %v3869_v44 }
 0x338   : > { %v2020_v62 = vadd.f32 %v1988_v7, %v3872_v18 }
 0x339   : > { %2063 = vst.msk [vmem:[%s3880_s30 + $0xd0] sm:$0xff] %vm2036_vm0, %v2030_v22 }
 0x33a   : > { %2053 = vst.msk [vmem:[%s3880_s30 + $0x80] sm:$0xff] %vm2036_vm0, %v2020_v62 }
 0x33c   : > { %v1961_v39 = vpop.permute.xlu2 %1960 }
 0x33d   : > { %v1921_v55 = vpop.permute.xlu1 %1920  ;;  %v2001_v52 = vmul.f32 %v3864_v32, %v1961_v39 }
 0x33e   : > { %v1991_v57 = vmul.f32 %v3864_v32, %v1921_v55 }
 0x33f   : > { %v2033_v41 = vadd.f32 %v2001_v52, %v3890_v61 }
 0x340   : > { %v2023_v4 = vadd.f32 %v1991_v57, %v3893_v11 }
 0x341   : > { %2066 = vst.msk [vmem:[%s3880_s30 + $0xe8] sm:$0xff] %vm2036_vm0, %v2033_v41 }
 0x342   : > { %2056 = vst.msk [vmem:[%s3880_s30 + $0x98] sm:$0xff] %vm2036_vm0, %v2023_v4 }
 0x345   : > { %v1933_v44 = vpop.permute.xlu1 %1932 }
 0x346   : > { %v1994_v18 = vmul.f32 %v3864_v32, %v1933_v44 }
 0x348   : > { %v2026_v51 = vadd.f32 %v1994_v18, %v3903_v38 }
 0x34a   : > { %2059 = vst.msk [vmem:[%s3880_s30 + $0xb0] sm:$0xff] %vm2036_vm0, %v2026_v51 }
 0x34d   : > { %v1945_v9 = vpop.permute.xlu1 %1944 }
 0x34e   : > { %v1997_v25 = vmul.f32 %v3864_v32, %v1945_v9 }
 0x350   : > { %v2029_v34 = vadd.f32 %v1997_v25, %v3915_v12 }
 0x352   : > { %2062 = vst.msk [vmem:[%s3880_s30 + $0xc8] sm:$0xff] %vm2036_vm0, %v2029_v34 }
 0x355   : > { %v1957_v61 = vpop.permute.xlu1 %1956 }
 0x356   : > { %v2000_v11 = vmul.f32 %v3864_v32, %v1957_v61 }
 0x358   : > { %v2032_v5 = vadd.f32 %v2000_v11, %v3927_v19 }
 0x35a   : > { %2065 = vst.msk [vmem:[%s3880_s30 + $0xe0] sm:$0xff] %vm2036_vm0, %v2032_v5 }
 0x35d   : > { %v1969_v54 = vpop.permute.xlu1 %1968 }
 0x35e   : > { %v2003_v40 = vmul.f32 %v3864_v32, %v1969_v54 }
 0x360   : > { %v2035_v38 = vadd.f32 %v2003_v40, %v3939_v48 }
 0x362   : > { %2068 = vst.msk [vmem:[%s3880_s30 + $0xf8] sm:$0xff] %vm2036_vm0, %v2035_v38 }
 0x363 PF: > { %s13_s14 = sadd.s32 1, %s2398_s14   ;;  %s4362_s12 = smov %s2394_s13 }
 0x364   : > { %p10_p5 = scmp.ge.s32.totalorder %s13_s14, 4   ;;  %s4363_s13 = smov %s4365_s15 }
 0x366   :  { %12 = sbr.rel (!%p10_p5) target bundleno = 2 (0x2), region = 65 }

// kernel: additional_conv_pallas.4
= control target key start
LH: loop header
LB: loop body
LE: loop exit
PB: predicated region body
PF: predicated region fallthrough
CT: control target
= control target key end

     0   :  { %s2718_s18 = smov 0   ;;  %s2720_s19 = smov 0   ;;  %s5876_s0 = inlined_call_operand.vmem [shape: f32[2,16,18,4], index: 0, kind: input, shape index: {}, may-alias: {0,1,2}]   ;;  %s5877_s1 = inlined_call_operand.vmem [shape: f32[2,16,18,4], index: 1, kind: input, shape index: {}, may-alias: {0,1,2}]   ;;  %s5878_s2 = inlined_call_operand.vmem [shape: f32[2,16,18,4], index: 2, kind: input, shape index: {}, may-alias: {0,1,2}]   ;;  %s5879_s3 = inlined_call_operand.vmem [shape: f32[3,3,4], index: 3, kind: input, shape index: {}]   ;;  %s5880_s4 = inlined_call_operand.vmem [shape: f32[2,16,16,4], index: 4, kind: output, shape index: {0}]   ;;  %s5881_s5 = inlined_call_operand.vmem [shape: f32[2,1,8,128], index: 5, kind: output, shape index: {1}]  }
   0x1   :  { %s2722_s20 = smov 0  }
   0x2 LB: > { %s28_s21 = sadd.s32 1, %s2681_s19  ;;  %p2567_p0 = scmp.ge.s32.totalorder %s2685_s20, 1  ;;  %s2685_s20 = sphi %s2722_s20, %s16_s20   ;;  %s2681_s19 = sphi %s2720_s19, %s6744_s19   ;;  %s2677_s18 = sphi %s2718_s18, %s6743_s18  }
   0x3   : > { %p30_p1 = scmp.ge.s32.totalorder %s28_s21, 2  ;;  %p278_p2 = scmp.lt.s32.totalorder %s2685_s20, 3 }
   0x5   : > { %s6746_s21 = smov (%p30_p1, %s28_s21), 0  ;;  %p279_p3 = pnand %p2567_p0, %p278_p2 }
   0x7   : > { %282 = sbr.rel (%p279_p3) target bundleno = 881 (0x371), region = 36 }
   0xc   : > { %p350_p4 = scmp.lt.s32.totalorder %s2677_s18, 1  ;;  %v2754_v2 = vld [vmem:[%s5879_s3] sm:$0x7]  ;;  %vm645_vm0 = vcmask 1046528   ;;  %vm887_vm1 = vcmask 1045504   ;;  %vm2126_vm2 = vcmask 31744  }
   0xd   : > { %6078 = vst [vmem:[#allocation2_spill] sm:$0xff] %v2754_v2  ;;  %v2757_v4 = vperm.slane %v2754_v2, 0  ;;  %v2767_v8 = vperm.slane %v2754_v2, 1 }
   0xe   : > { %s6748_s18 = smov (!%p350_p4, %s2677_s18), 1 }
   0xf   : > { %s2739_s22 = smul.u32 384, %s6748_s18  ;;  %s2578_s14 = sshll.u32 %s6748_s18, 8 }
  0x10   : > { %s5653_s17 = scalar_lea.vmem %s5880_s4, %s2578_s14 }
  0x11   : > { %s372_s25 = scalar_lea.vmem %s5877_s1, %s2739_s22  ;;  %s2749_s28 = scalar_lea.vmem %s5876_s0, %s2739_s22 }
  0x12   : > { %v418_v0 = vld [vmem:[%s372_s25] sm:$0xff]  ;;  %v419_v1 = vld [vmem:[%s372_s25 + $0x8] sm:$0xff]  ;;  %v420_v3 = vld [vmem:[%s372_s25 + $0x10] sm:$0x3]  ;;  %s2577_s6 = sadd.s32 360, %s2739_s22  ;;  %s2573_s25 = sshll.u32 %s6748_s18, 3 }
  0x13   : > { %v2759_v5 = vmul.f32 0.0, %v418_v0  ;;  %v2761_v6 = vmul.f32 0.0, %v419_v1  ;;  %v2764_v7 = vld [vmem:[%s2749_s28] sm:$0xff]  ;;  %v2769_v9 = vmul.f32 0.0, %v420_v3  ;;  %v2772_v10 = vld [vmem:[%s2749_s28 + $0x8] sm:$0xff]  ;;  %v2775_v11 = vld [vmem:[%s2749_s28 + $0x18] sm:$0xff]  ;;  %s389_s9 = scalar_lea.vmem %s5878_s2, %s2577_s6 }
  0x14   : > { %6081 = vst [vmem:[#allocation5_spill] sm:$0xff] %v2764_v7  ;;  %v2778_v12 = vld [vmem:[%s2749_s28 + $0x20] sm:$0xff]  ;;  %v2782_v13 = vmul.f32 %v2757_v4, %v2764_v7  ;;  %v2786_v14 = vmul.f32 %v2757_v4, %v2772_v10  ;;  %v2790_v15 = vmul.f32 %v2757_v4, %v2775_v11  ;;  %v2793_v16 = vld [vmem:[%s2749_s28 + $0x10] sm:$0x3]  ;;  %v2799_v18 = vld [vmem:[%s2749_s28 + $0x38] sm:$0xff]  ;;  %v2815_v22 = vmul.f32 %v2767_v8, %v2764_v7 }
  0x15   : > { %6079 = vst [vmem:[#allocation3_spill] sm:$0xff] %v2759_v5  ;;  %v2796_v17 = vld [vmem:[%s2749_s28 + $0x30] sm:$0xff]  ;;  %v2803_v19 = vmul.f32 %v2757_v4, %v2759_v5  ;;  %v2807_v20 = vmul.f32 %v2757_v4, %v2761_v6  ;;  %v2811_v21 = vmul.f32 %v2757_v4, %v2778_v12  ;;  %v2818_v23 = vld [vmem:[%s2749_s28 + $0x28] sm:$0x3]  ;;  %v2832_v27 = vmul.f32 %v2757_v4, %v2799_v18  ;;  %v2843_v30 = vld [vmem:[%s2749_s28 + $0x60] sm:$0xff] }
  0x16   : > { %6080 = vst [vmem:[#allocation4_spill] sm:$0xff] %v2761_v6  ;;  %v2821_v24 = vld [vmem:[%s2749_s28 + $0x48] sm:$0xff]  ;;  %v2824_v25 = vld [vmem:[%s2749_s28 + $0x50] sm:$0xff]  ;;  %v2828_v26 = vmul.f32 %v2757_v4, %v2796_v17  ;;  %v2836_v28 = vmul.f32 %v2767_v8, %v2759_v5  ;;  %v2840_v29 = vmul.f32 %v2767_v8, %v2761_v6  ;;  %v2858_v34 = vmul.f32 %v2767_v8, %v2769_v9  ;;  %v2865_v36 = vld [vmem:[%s2749_s28 + $0x40] sm:$0x3] }
  0x17   : > { %6082 = vst [vmem:[#allocation6_spill] sm:$0xff] %v2769_v9  ;;  %v2846_v31 = vld [vmem:[%s2749_s28 + $0x68] sm:$0xff]  ;;  %v2850_v32 = vmul.f32 %v2757_v4, %v2821_v24  ;;  %v2854_v33 = vmul.f32 %v2757_v4, %v2824_v25  ;;  %v2862_v35 = vmul.f32 %v2767_v8, %v2772_v10  ;;  %v2868_v37 = vld [vmem:[%s2749_s28 + $0x78] sm:$0xff]  ;;  %v2871_v38 = vld [vmem:[%s2749_s28 + $0x80] sm:$0xff]  ;;  %v2875_v39 = vmul.f32 %v2757_v4, %v2843_v30 }
  0x18   : > { %6083 = vst [vmem:[#allocation7_spill] sm:$0xff] %v2772_v10  ;;  %v2879_v40 = vmul.f32 %v2757_v4, %v2846_v31  ;;  %v2883_v41 = vmul.f32 %v2767_v8, %v2793_v16  ;;  %v2887_v42 = vmul.f32 %v2767_v8, %v2775_v11  ;;  %v2890_v43 = vld [vmem:[%s2749_s28 + $0x58] sm:$0x3]  ;;  %v2893_v44 = vld [vmem:[%s2749_s28 + $0x90] sm:$0xff]  ;;  %v2900_v46 = vmul.f32 %v2757_v4, %v2868_v37  ;;  %v2918_v51 = vld [vmem:[%s2749_s28 + $0xa8] sm:$0xff] }
  0x19   : > { %6084 = vst [vmem:[#allocation8_spill] sm:$0xff] %v2775_v11  ;;  %v2896_v45 = vld [vmem:[%s2749_s28 + $0x98] sm:$0xff]  ;;  %v2904_v47 = vmul.f32 %v2757_v4, %v2871_v38  ;;  %v2908_v48 = vmul.f32 %v2767_v8, %v2778_v12  ;;  %v2912_v49 = vmul.f32 %v2767_v8, %v2818_v23  ;;  %v2915_v50 = vld [vmem:[%s2749_s28 + $0x70] sm:$0x3]  ;;  %v2925_v53 = vmul.f32 %v2757_v4, %v2893_v44  ;;  %v2941_v57 = vld [vmem:[%s2749_s28 + $0x88] sm:$0x3] }
  0x1a   : > { %6085 = vst [vmem:[#allocation9_spill] sm:$0xff] %v2778_v12  ;;  %v2921_v52 = vld [vmem:[%s2749_s28 + $0xb0] sm:$0xff]  ;;  %v2929_v54 = vmul.f32 %v2757_v4, %v2896_v45  ;;  %v2933_v55 = vmul.f32 %v2767_v8, %v2796_v17  ;;  %v2937_v56 = vmul.f32 %v2767_v8, %v2799_v18  ;;  %v2944_v58 = vld [vmem:[%s2749_s28 + $0xc0] sm:$0xff]  ;;  %v2947_v59 = vld [vmem:[%s2749_s28 + $0xc8] sm:$0xff]  ;;  %v2951_v60 = vmul.f32 %v2757_v4, %v2918_v51 }
  0x1b   : > { %6086 = vst [vmem:[#allocation10_spill] sm:$0xff] %v2793_v16  ;;  %v2955_v61 = vmul.f32 %v2757_v4, %v2921_v52  ;;  %v2959_v62 = vmul.f32 %v2767_v8, %v2865_v36  ;;  %v2963_v63 = vmul.f32 %v2767_v8, %v2821_v24  ;;  %v2966_v0 = vld [vmem:[%s2749_s28 + $0xa0] sm:$0x3]  ;;  %v2969_v1 = vld [vmem:[%s2749_s28 + $0xd8] sm:$0xff]  ;;  %v2994_v12 = vld [vmem:[%s2749_s28 + $0xf0] sm:$0xff]  ;;  %v3013_v10 = vmul.f32 %v2767_v8, %v2846_v31 }
  0x1c   : > { %6087 = vst [vmem:[#allocation11_spill] sm:$0xff] %v2796_v17  ;;  %v2972_v3 = vld [vmem:[%s2749_s28 + $0xe0] sm:$0xff]  ;;  %v2988_v17 = vmul.f32 %v2767_v8, %v2890_v43  ;;  %v2997_v11 = vld [vmem:[%s2749_s28 + $0xf8] sm:$0xff]  ;;  %v3001_v16 = vmul.f32 %v2757_v4, %v2969_v1  ;;  %v3019_v7 = vld [vmem:[%s2749_s28 + $0xd0] sm:$0x3]  ;;  %v3037_v5 = vmul.f32 %v2767_v8, %v2915_v50 }
  0x1d   : > { %6088 = vst [vmem:[#allocation12_spill] sm:$0xff] %v2799_v18  ;;  %v2976_v18 = vmul.f32 %v2757_v4, %v2944_v58  ;;  %v3022_v9 = vld [vmem:[%s2749_s28 + $0x108] sm:$0xff]  ;;  %v3025_v6 = vld [vmem:[%s2749_s28 + $0x110] sm:$0xff]  ;;  %v3050_v2 = vld [vmem:[%s2749_s28 + $0x138] sm:$0xff] }
  0x1e   : > { %6089 = vst [vmem:[#allocation13_spill] sm:$0xff] %v2818_v23  ;;  %v2991_v23 = vld [vmem:[%s2749_s28 + $0xb8] sm:$0x3] }
  0x1f   : > { %6090 = vst [vmem:[#allocation14_spill] sm:$0xff] %v2821_v24  ;;  %v2984_v24 = vmul.f32 %v2767_v8, %v2824_v25 }
  0x20   : > { %6091 = vst [vmem:[#allocation15_spill] sm:$0xff] %v2824_v25  ;;  %v3005_v25 = vmul.f32 %v2757_v4, %v2972_v3 }
  0x21   : > { %6092 = vst [vmem:[#allocation16_spill] sm:$0xff] %v2832_v27 }
  0x22   : > { %6093 = vst [vmem:[#allocation17_spill] sm:$0xff] %v2843_v30 }
  0x23   : > { %6094 = vst [vmem:[#allocation18_spill] sm:$0xff] %v2846_v31  ;;  %v3033_v31 = vmul.f32 %v2757_v4, %v2997_v11 }
  0x24   : > { %6095 = vst [vmem:[#allocation19_spill] sm:$0xff] %v2850_v32 }
  0x25   : > { %6096 = vst [vmem:[#allocation20_spill] sm:$0xff] %v2854_v33  ;;  %v3136_v33 = vmul.f32 %v2767_v8, %v2944_v58 }
  0x26   : > { %6097 = vst [vmem:[#allocation21_spill] sm:$0xff] %v2865_v36  ;;  %v2980_v36 = vmul.f32 %v2757_v4, %v2947_v59 }
  0x27   : > { %6098 = vst [vmem:[#allocation22_spill] sm:$0xff] %v2868_v37 }
  0x28   : > { %6099 = vst [vmem:[#allocation23_spill] sm:$0xff] %v2871_v38 }
  0x29   : > { %6100 = vst [vmem:[#allocation24_spill] sm:$0xff] %v2875_v39  ;;  %v3132_v39 = vld [vmem:[%s2749_s28 + $0x118] sm:$0x3] }
  0x2a   : > { %6101 = vst [vmem:[#allocation25_spill] sm:$0xff] %v2879_v40  ;;  %v3113_v40 = vld [vmem:[%s2749_s28 + $0x100] sm:$0x3] }
  0x2b   : > { %6102 = vst [vmem:[#allocation26_spill] sm:$0xff] %v2890_v43  ;;  %v3009_v43 = vmul.f32 %v2767_v8, %v2843_v30  ;;  %v3029_v30 = vmul.f32 %v2757_v4, %v2994_v12 }
  0x2c   : > { %6103 = vst [vmem:[#allocation27_spill] sm:$0xff] %v2893_v44 }
  0x2d   : > { %6104 = vst [vmem:[#allocation28_spill] sm:$0xff] %v2896_v45 }
  0x2e   : > { %6105 = vst [vmem:[#allocation29_spill] sm:$0xff] %v2900_v46  ;;  %v3110_v46 = vld [vmem:[%s2749_s28 + $0xe8] sm:$0x3] }
  0x2f   : > { %6106 = vst [vmem:[#allocation30_spill] sm:$0xff] %v2904_v47  ;;  %v475_v47 = vld [vmem:[%s389_s9 + $0x10] sm:$0x3] }
  0x30   : > { %6107 = vst [vmem:[#allocation31_spill] sm:$0xff] %v2915_v50  ;;  %v3062_v50 = vmul.f32 %v2767_v8, %v2871_v38  ;;  %v3154_v32 = vmul.f32 0.0, %v475_v47  ;;  %v3177_v47 = vmul.f32 %v2767_v8, %v3113_v40 }
  0x31   : > { %6108 = vst [vmem:[#allocation32_spill] sm:$0xff] %v2918_v51 }
  0x32   : > { %6109 = vst [vmem:[#allocation33_spill] sm:$0xff] %v2921_v52 }
  0x33   : > { %6110 = vst [vmem:[#allocation34_spill] sm:$0xff] %v2925_v53  ;;  %v474_v53 = vld [vmem:[%s389_s9 + $0x8] sm:$0xff] }
  0x34   : > { %6111 = vst [vmem:[#allocation35_spill] sm:$0xff] %v2929_v54  ;;  %v473_v54 = vld [vmem:[%s389_s9] sm:$0xff] }
  0x35   : > { %6112 = vst [vmem:[#allocation36_spill] sm:$0xff] %v2941_v57 }
  0x36   : > { %6113 = vst [vmem:[#allocation37_spill] sm:$0xff] %v2944_v58  ;;  %v3158_v58 = vmul.f32 %v2767_v8, %v2972_v3 }
  0x37   : > { %6114 = vst [vmem:[#allocation38_spill] sm:$0xff] %v2947_v59 }
  0x38   : > { %6115 = vst [vmem:[#allocation39_spill] sm:$0xff] %v2951_v60  ;;  %v3075_v60 = vld [vmem:[%s2749_s28 + $0x158] sm:$0xff] }
  0x39   : > { %6116 = vst [vmem:[#allocation40_spill] sm:$0xff] %v2955_v61  ;;  %v3072_v61 = vld [vmem:[%s2749_s28 + $0x150] sm:$0xff] }
  0x3a   : > { %6117 = vst [vmem:[#allocation41_spill] sm:$0xff] %v2966_v0 }
  0x3b   : > { %6118 = vst [vmem:[#allocation42_spill] sm:$0xff] %v2969_v1 }
  0x3c   : > { %6119 = vst [vmem:[#allocation43_spill] sm:$0xff] %v2972_v3  ;;  %v651_v3 = vrot.slane %v2815_v22, 1 }
  0x3d   : > { %6120 = vst [vmem:[#allocation44_spill] sm:$0xff] %v2976_v18  ;;  %v3069_v18 = vld [vmem:[%s2749_s28 + $0x140] sm:$0xff] }
  0x3e   : > { %6121 = vst [vmem:[#allocation45_spill] sm:$0xff] %v2980_v36  ;;  %v3047_v36 = vld [vmem:[%s2749_s28 + $0x128] sm:$0xff]  ;;  %v3221_v22 = vmul.f32 %v2767_v8, %v3069_v18 }
  0x3f   : > { %6122 = vst [vmem:[#allocation46_spill] sm:$0xff] %v2991_v23  ;;  %v3083_v38 = vmul.f32 %v2757_v4, %v3047_v36 }
  0x40   : > { %6123 = vst [vmem:[#allocation47_spill] sm:$0xff] %v2994_v12 }
  0x41   : > { %6124 = vst [vmem:[#allocation48_spill] sm:$0xff] %v2997_v11 }
  0x42   : > { %6125 = vst [vmem:[#allocation49_spill] sm:$0xff] %v3001_v16  ;;  %v3044_v16 = vld [vmem:[%s2749_s28 + $0x120] sm:$0xff] }
  0x43   : > { %6126 = vst [vmem:[#allocation50_spill] sm:$0xff] %v3005_v25  ;;  %v3041_v25 = vmul.f32 %v2767_v8, %v2868_v37  ;;  %v3066_v37 = vmul.f32 %v2767_v8, %v2941_v57  ;;  %v3087_v57 = vmul.f32 %v2767_v8, %v2893_v44  ;;  %v3103_v44 = vmul.f32 %v2767_v8, %v2966_v0 }
  0x44   : > { %6127 = vst [vmem:[#allocation51_spill] sm:$0xff] %v3019_v7  ;;  %v3125_v0 = vmul.f32 %v2767_v8, %v2921_v52  ;;  %v3148_v52 = vmul.f32 %v2767_v8, %v2969_v1  ;;  %v3169_v1 = vmul.f32 %v2767_v8, %v2994_v12  ;;  %v3196_v12 = vld [vmem:[%s2749_s28 + $0x160] sm:$0x3] }
  0x45   : > { %6128 = vst [vmem:[#allocation52_spill] sm:$0xff] %v3022_v9 }
  0x46   : > { %6129 = vst [vmem:[#allocation53_spill] sm:$0xff] %v3025_v6 }
  0x47   : > { %6130 = vst [vmem:[#allocation54_spill] sm:$0xff] %v3029_v30  ;;  %v3054_v30 = vmul.f32 %v2757_v4, %v3022_v9 }
  0x48   : > { %6131 = vst [vmem:[#allocation55_spill] sm:$0xff] %v3033_v31  ;;  %v3058_v31 = vmul.f32 %v2757_v4, %v3025_v6 }
  0x49   : > { %6132 = vst [vmem:[#allocation56_spill] sm:$0xff] %v3044_v16 }
  0x4a   : > { %6133 = vst [vmem:[#allocation57_spill] sm:$0xff] %v3047_v36 }
  0x4b   : > { %6134 = vst [vmem:[#allocation58_spill] sm:$0xff] %v3050_v2 }
  0x4c   : > { %6135 = vst [vmem:[#allocation59_spill] sm:$0xff] %v3054_v30  ;;  %v3079_v30 = vmul.f32 %v2757_v4, %v3044_v16 }
  0x4d   : > { %6136 = vst [vmem:[#allocation60_spill] sm:$0xff] %v3058_v31  ;;  %v3091_v31 = vmul.f32 %v2767_v8, %v2896_v45  ;;  %v3107_v45 = vmul.f32 %v2767_v8, %v2918_v51  ;;  %v3129_v51 = vmul.f32 %v2767_v8, %v2991_v23  ;;  %v3150_v23 = vmul.f32 0.0, %v473_v54  ;;  %v3180_v54 = vld [vmem:[%s2749_s28 + $0x148] sm:$0x3] }
  0x4e   : > { %6137 = vst [vmem:[#allocation61_spill] sm:$0xff] %v3069_v18 }
  0x4f   : > { %6138 = vst [vmem:[#allocation62_spill] sm:$0xff] %v3072_v61 }
  0x50   : > { %6139 = vst [vmem:[#allocation63_spill] sm:$0xff] %v3075_v60 }
  0x51   : > { %6140 = vst [vmem:[#allocation64_spill] sm:$0xff] %v3079_v30  ;;  %v3095_v30 = vmul.f32 %v2757_v4, %v3050_v2 }
  0x52   : > { %6141 = vst [vmem:[#allocation65_spill] sm:$0xff] %v3083_v38  ;;  %v3099_v38 = vmul.f32 %v2757_v4, %v3069_v18  ;;  %v657_v18 = vrot.slane %v2908_v48, 1  ;;  %v664_v48 = vrot.slane %v2959_v62, 1  ;;  %v681_v62 = vrot.slane %v3087_v57, 1 }
  0x53   : > { %6142 = vst [vmem:[#allocation66_spill] sm:$0xff] %v3095_v30  ;;  %v3117_v30 = vmul.f32 %v2757_v4, %v3072_v61 }
  0x54   : > { %6143 = vst [vmem:[#allocation67_spill] sm:$0xff] %v3099_v38  ;;  %v3121_v38 = vmul.f32 %v2757_v4, %v3075_v60  ;;  %v3144_v4 = vmul.f32 %v2767_v8, %v3019_v7  ;;  %v3165_v7 = vmul.f32 %v2767_v8, %v3110_v46 }
  0x55   : > { %6144 = vst [vmem:[#allocation68_spill] sm:$0xff] %v3110_v46  ;;  %v649_v46 = vrot.slane %v2858_v34, 1  ;;  %v3217_v34 = vmul.f32 %v2767_v8, %v3050_v2  ;;  %v656_v2 = vrot.slane %v2887_v42, 1  ;;  %v662_v42 = vrot.slane %v2937_v56, 1 }
  0x56   : > { %6145 = vst [vmem:[#allocation69_spill] sm:$0xff] %v3113_v40  ;;  %v647_v40 = vrot.slane %v2840_v29, 1  ;;  %v654_v29 = vrot.slane %v2883_v41, 1  ;;  %v3237_v41 = vmul.f32 %v2767_v8, %v3196_v12  ;;  %v679_v56 = vrot.slane %v3066_v37, 1 }
  0x57   : > { %6146 = vst [vmem:[#allocation70_spill] sm:$0xff] %v3117_v30  ;;  %v3140_v30 = vmul.f32 %v2767_v8, %v2947_v59  ;;  %v3161_v59 = vld [vmem:[%s2749_s28 + $0x130] sm:$0x3]  ;;  %v665_v37 = vsel %vm645_vm0, %v662_v42, %v664_v48  ;;  %v696_v48 = vrot.slane %v3148_v52, 1 }
  0x58   : > { %6147 = vst [vmem:[#allocation71_spill] sm:$0xff] %v3121_v38  ;;  %v3152_v38 = vmul.f32 0.0, %v474_v53  ;;  %v3173_v53 = vmul.f32 %v2767_v8, %v2997_v11  ;;  %v646_v11 = vrot.slane %v2836_v28, 1  ;;  %v3212_v28 = vmul.f32 %v2767_v8, %v3161_v59 }
  0x59   : > { %6148 = vst [vmem:[#allocation72_spill] sm:$0xff] %v3132_v39 }
  0x5a   : > { %6149 = vst [vmem:[#allocation73_spill] sm:$0xff] %v3150_v23  ;;  %v3184_v23 = vmul.f32 %v2767_v8, %v3022_v9  ;;  %v652_v9 = vrot.slane %v2862_v35, 1  ;;  %v3225_v35 = vmul.f32 %v2767_v8, %v3180_v54 }
  0x5b   : > { %6150 = vst [vmem:[#allocation74_spill] sm:$0xff] %v3152_v38  ;;  %v3192_v38 = vmul.f32 %v2767_v8, %v3132_v39  ;;  %v3208_v39 = vmul.f32 %v2767_v8, %v3047_v36  ;;  %v3229_v36 = vmul.f32 %v2767_v8, %v3072_v61 }
  0x5c   : > { %6151 = vst [vmem:[#allocation75_spill] sm:$0xff] %v3154_v32  ;;  %v3188_v32 = vmul.f32 %v2767_v8, %v3025_v6  ;;  %v3204_v6 = vmul.f32 %v2767_v8, %v3044_v16  ;;  %v3242_v16 = vsel %vm645_vm0, %v646_v11, %v647_v40  ;;  %v3248_v61 = vsel %vm645_vm0, %v651_v3, %v652_v9 }
  0x5d   : > { %6152 = vst [vmem:[#allocation76_spill] sm:$0xff] %v3161_v59  ;;  %v3233_v59 = vmul.f32 %v2767_v8, %v3075_v60  ;;  %v659_v60 = vrot.slane %v2912_v49, 1  ;;  %v3252_v27 = vsel %vm645_vm0, %v652_v9, %v654_v29  ;;  %v661_v8 = vrot.slane %v2933_v55, 1 }
  0x5e   : > { %6153 = vst [vmem:[#allocation77_spill] sm:$0xff] %v3180_v54  ;;  %v3245_v54 = vsel %vm645_vm0, %v647_v40, %v649_v46  ;;  %v666_v11 = vrot.slane %v2963_v63, 1  ;;  %v669_v40 = vrot.slane %v2988_v17, 1  ;;  %v671_v46 = vrot.slane %v3009_v43, 1 }
  0x5f   : > { %6154 = vst [vmem:[#allocation78_spill] sm:$0xff] %v3196_v12  ;;  %v667_v12 = vrot.slane %v2984_v24, 1  ;;  %v672_v3 = vrot.slane %v3013_v10, 1  ;;  %v674_v49 = vrot.slane %v3037_v5, 1  ;;  %v676_v9 = vrot.slane %v3041_v25, 1 }
  0x60   : > { %v677_v55 = vrot.slane %v3062_v50, 1  ;;  %v682_v63 = vrot.slane %v3091_v31, 1  ;;  %v684_v24 = vrot.slane %v3103_v44, 1  ;;  %v658_v17 = vsel %vm645_vm0, %v656_v2, %v657_v18 }
  0x61   : > { %v686_v43 = vrot.slane %v3107_v45, 1  ;;  %v687_v10 = vrot.slane %v3125_v0, 1  ;;  %v689_v5 = vrot.slane %v3129_v51, 1  ;;  %v660_v25 = vsel %vm645_vm0, %v657_v18, %v659_v60 }
  0x62   : > { %v663_v50 = vsel %vm645_vm0, %v661_v8, %v662_v42  ;;  %v668_v57 = vsel %vm645_vm0, %v666_v11, %v667_v12  ;;  %v670_v31 = vsel %vm645_vm0, %v667_v12, %v669_v40  ;;  %v673_v44 = vsel %vm645_vm0, %v671_v46, %v672_v3 }
  0x63   : > { %v675_v2 = vsel %vm645_vm0, %v672_v3, %v674_v49  ;;  %v678_v45 = vsel %vm645_vm0, %v676_v9, %v677_v55  ;;  %v680_v0 = vsel %vm645_vm0, %v677_v55, %v679_v56  ;;  %v683_v51 = vsel %vm645_vm0, %v681_v62, %v682_v63 }
  0x64   : > { %v685_v18 = vsel %vm645_vm0, %v682_v63, %v684_v24  ;;  %v691_v60 = vrot.slane %v3136_v33, 1  ;;  %v688_v29 = vsel %vm645_vm0, %v686_v43, %v687_v10  ;;  %v690_v8 = vsel %vm645_vm0, %v687_v10, %v689_v5 }
  0x65   : > { %v692_v12 = vrot.slane %v3140_v30, 1  ;;  %v694_v42 = vrot.slane %v3144_v4, 1  ;;  %v697_v11 = vrot.slane %v3158_v58, 1  ;;  %v699_v40 = vrot.slane %v3165_v7, 1 }
  0x66   : > { %v701_v46 = vrot.slane %v3169_v1, 1  ;;  %v702_v3 = vrot.slane %v3173_v53, 1  ;;  %v704_v33 = vrot.slane %v3177_v47, 1  ;;  %v706_v49 = vrot.slane %v3184_v23, 1 }
  0x67   : > { %v707_v9 = vrot.slane %v3188_v32, 1  ;;  %v709_v30 = vrot.slane %v3192_v38, 1  ;;  %v711_v4 = vrot.slane %v3204_v6, 1  ;;  %v712_v52 = vrot.slane %v3208_v39, 1 }
  0x68   : > { %v714_v58 = vrot.slane %v3212_v28, 1  ;;  %v693_v7 = vsel %vm645_vm0, %v691_v60, %v692_v12  ;;  %v716_v1 = vrot.slane %v3217_v34, 1  ;;  %v717_v53 = vrot.slane %v3221_v22, 1 }
  0x69   : > { %v719_v47 = vrot.slane %v3225_v35, 1  ;;  %v695_v23 = vsel %vm645_vm0, %v692_v12, %v694_v42  ;;  %v721_v32 = vrot.slane %v3229_v36, 1  ;;  %v722_v38 = vrot.slane %v3233_v59, 1  ;;  %v6158_v12 = vld [vmem:[#allocation19_spill] sm:$0xff] }
  0x6a   : > { %v724_v6 = vrot.slane %v3237_v41, 1  ;;  %v698_v39 = vsel %vm645_vm0, %v696_v48, %v697_v11  ;;  %v700_v28 = vsel %vm645_vm0, %v697_v11, %v699_v40  ;;  %v703_v55 = vsel %vm645_vm0, %v701_v46, %v702_v3 }
  0x6b   : > { %v705_v34 = vsel %vm645_vm0, %v702_v3, %v704_v33  ;;  %v708_v22 = vsel %vm645_vm0, %v706_v49, %v707_v9  ;;  %v710_v35 = vsel %vm645_vm0, %v707_v9, %v709_v30  ;;  %v713_v56 = vsel %vm645_vm0, %v711_v4, %v712_v52  ;;  %v6184_v49 = vld [vmem:[#allocation49_spill] sm:$0xff]  ;;  %v6186_v9 = vld [vmem:[#allocation50_spill] sm:$0xff] }
  0x6c   : > { %v715_v36 = vsel %vm645_vm0, %v712_v52, %v714_v58  ;;  %v718_v59 = vsel %vm645_vm0, %v716_v1, %v717_v53  ;;  %v720_v41 = vsel %vm645_vm0, %v717_v53, %v719_v47  ;;  %v3321_v62 = vadd.f32 %v3242_v16, %v2803_v19  ;;  %v6188_v30 = vld [vmem:[#allocation54_spill] sm:$0xff]  ;;  %v6190_v52 = vld [vmem:[#allocation55_spill] sm:$0xff]  ;;  %v6194_v53 = vld [vmem:[#allocation60_spill] sm:$0xff] }
  0x6d   : > { %v3325_v63 = vadd.f32 %v3245_v54, %v2807_v20  ;;  %v723_v24 = vsel %vm645_vm0, %v721_v32, %v722_v38  ;;  %v725_v43 = vsel %vm645_vm0, %v722_v38, %v724_v6  ;;  %v3331_v10 = vadd.f32 %v3248_v61, %v2782_v13  ;;  %v6156_v20 = vld [vmem:[#allocation16_spill] sm:$0xff]  ;;  %v6198_v38 = vld [vmem:[#allocation65_spill] sm:$0xff] }
  0x6e   : > { %v3335_v5 = vadd.f32 %v3252_v27, %v2786_v14  ;;  %v3338_v60 = vadd.f32 %v658_v17, %v2790_v15  ;;  %v3341_v16 = vadd.f32 %v660_v25, %v2811_v21  ;;  %v3344_v19 = vadd.f32 %v663_v50, %v2828_v26  ;;  %v6160_v13 = vld [vmem:[#allocation20_spill] sm:$0xff]  ;;  %v6164_v15 = vld [vmem:[#allocation25_spill] sm:$0xff]  ;;  %v6168_v26 = vld [vmem:[#allocation30_spill] sm:$0xff] }
  0x6f   : > { %v3347_v54 = vadd.f32 %v665_v37, %v6156_v20  ;;  %v3350_v42 = vadd.f32 %v668_v57, %v6158_v12  ;;  %v3353_v61 = vadd.f32 %v670_v31, %v6160_v13  ;;  %v6162_v14 = vld [vmem:[#allocation24_spill] sm:$0xff]  ;;  %v3359_v17 = vadd.f32 %v675_v2, %v6164_v15  ;;  %v6166_v21 = vld [vmem:[#allocation29_spill] sm:$0xff]  ;;  %v6170_v37 = vld [vmem:[#allocation34_spill] sm:$0xff] }
  0x70   : > { %6155 = vst [vmem:[#allocation79_spill] sm:$0xff] %v3344_v19  ;;  %v3356_v27 = vadd.f32 %v673_v44, %v6162_v14  ;;  %v3362_v25 = vadd.f32 %v678_v45, %v6166_v21  ;;  %v3365_v50 = vadd.f32 %v680_v0, %v6168_v26  ;;  %v3368_v48 = vadd.f32 %v683_v51, %v6170_v37  ;;  %v6172_v57 = vld [vmem:[#allocation35_spill] sm:$0xff]  ;;  %v6176_v44 = vld [vmem:[#allocation40_spill] sm:$0xff]  ;;  %v6180_v45 = vld [vmem:[#allocation2_spill] sm:$0xff] }
  0x71   : > { %6157 = vst [vmem:[#allocation16_spill] sm:$0xff] %v3347_v54  ;;  %v3371_v11 = vadd.f32 %v685_v18, %v6172_v57  ;;  %v6174_v31 = vld [vmem:[#allocation39_spill] sm:$0xff]  ;;  %v3377_v46 = vadd.f32 %v690_v8, %v6176_v44  ;;  %v6178_v2 = vld [vmem:[#allocation44_spill] sm:$0xff]  ;;  %v3383_v33 = vperm.slane %v6180_v45, 2  ;;  %v3388_v0 = vld [vmem:[%s5879_s3 + $0x4] sm:$0x7]  ;;  %v3397_v8 = vadd.f32 %v700_v28, %v6186_v9 }
  0x72   : > { %6159 = vst [vmem:[#allocation19_spill] sm:$0xff] %v3350_v42  ;;  %v3374_v40 = vadd.f32 %v688_v29, %v6174_v31  ;;  %v3380_v3 = vadd.f32 %v693_v7, %v6178_v2  ;;  %v6182_v51 = vld [vmem:[#allocation45_spill] sm:$0xff]  ;;  %v3394_v29 = vadd.f32 %v698_v39, %v6184_v49  ;;  %v3400_v4 = vadd.f32 %v703_v55, %v6188_v30  ;;  %v6192_v7 = vld [vmem:[#allocation59_spill] sm:$0xff]  ;;  %v6200_v39 = vld [vmem:[#allocation66_spill] sm:$0xff] }
  0x73   : > { %6161 = vst [vmem:[#allocation20_spill] sm:$0xff] %v3353_v61  ;;  %v3391_v18 = vadd.f32 %v695_v23, %v6182_v51  ;;  %v3403_v58 = vadd.f32 %v705_v34, %v6190_v52  ;;  %v3406_v1 = vadd.f32 %v708_v22, %v6192_v7  ;;  %v3409_v47 = vadd.f32 %v710_v35, %v6194_v53  ;;  %v6196_v23 = vld [vmem:[#allocation64_spill] sm:$0xff]  ;;  %v6202_v55 = vld [vmem:[#allocation67_spill] sm:$0xff]  ;;  %v6204_v34 = vld [vmem:[#allocation70_spill] sm:$0xff] }
  0x74   : > { %6163 = vst [vmem:[#allocation24_spill] sm:$0xff] %v3356_v27  ;;  %v3412_v32 = vadd.f32 %v713_v56, %v6196_v23  ;;  %v3415_v6 = vadd.f32 %v715_v36, %v6198_v38  ;;  %v3418_v28 = vadd.f32 %v718_v59, %v6200_v39  ;;  %v3421_v20 = vadd.f32 %v720_v41, %v6202_v55  ;;  %v6206_v22 = vld [vmem:[#allocation71_spill] sm:$0xff]  ;;  %v6209_v56 = vld [vmem:[#allocation4_spill] sm:$0xff]  ;;  %v6211_v59 = vld [vmem:[#allocation6_spill] sm:$0xff] }
  0x75   : > { %6165 = vst [vmem:[#allocation25_spill] sm:$0xff] %v3359_v17  ;;  %v3424_v12 = vadd.f32 %v723_v24, %v6204_v34  ;;  %v3427_v13 = vadd.f32 %v725_v43, %v6206_v22  ;;  %v6208_v35 = vld [vmem:[#allocation3_spill] sm:$0xff]  ;;  %v792_v15 = vmul.f32 %v3383_v33, %v6209_v56  ;;  %v3434_v36 = vperm.slane %v3388_v0, 0  ;;  %v6212_v41 = vld [vmem:[#allocation5_spill] sm:$0xff]  ;;  %v6214_v37 = vld [vmem:[#allocation10_spill] sm:$0xff] }
  0x76   : > { %6167 = vst [vmem:[#allocation29_spill] sm:$0xff] %v3362_v25  ;;  %v791_v14 = vmul.f32 %v3383_v33, %v6208_v35  ;;  %v793_v21 = vmul.f32 %v3383_v33, %v6211_v59  ;;  %v3440_v26 = vmul.f32 %v3383_v33, %v6212_v41  ;;  %v6213_v24 = vld [vmem:[#allocation7_spill] sm:$0xff]  ;;  %v3448_v57 = vmul.f32 %v3383_v33, %v6214_v37  ;;  %v6215_v31 = vld [vmem:[#allocation8_spill] sm:$0xff]  ;;  %v6216_v2 = vld [vmem:[#allocation9_spill] sm:$0xff] }
  0x77   : > { %6169 = vst [vmem:[#allocation30_spill] sm:$0xff] %v3365_v50  ;;  %v3444_v43 = vmul.f32 %v3383_v33, %v6213_v24  ;;  %v3452_v44 = vmul.f32 %v3383_v33, %v6215_v31  ;;  %v3456_v45 = vmul.f32 %v3383_v33, %v6216_v2  ;;  %v6217_v51 = vld [vmem:[#allocation13_spill] sm:$0xff]  ;;  %v6218_v9 = vld [vmem:[#allocation11_spill] sm:$0xff]  ;;  %v6219_v52 = vld [vmem:[#allocation12_spill] sm:$0xff] }
  0x78   : > { %6171 = vst [vmem:[#allocation34_spill] sm:$0xff] %v3368_v48  ;;  %v3460_v49 = vmul.f32 %v3383_v33, %v6217_v51  ;;  %v3464_v30 = vmul.f32 %v3383_v33, %v6218_v9  ;;  %v3468_v7 = vmul.f32 %v3383_v33, %v6219_v52  ;;  %v6220_v53 = vld [vmem:[#allocation21_spill] sm:$0xff]  ;;  %v6221_v38 = vld [vmem:[#allocation14_spill] sm:$0xff]  ;;  %v6222_v55 = vld [vmem:[#allocation15_spill] sm:$0xff]  ;;  %v893_v61 = vrot.slane %v3440_v26, 2 }
  0x79   : > { %6173 = vst [vmem:[#allocation35_spill] sm:$0xff] %v3371_v11  ;;  %v3472_v23 = vmul.f32 %v3383_v33, %v6220_v53  ;;  %v3476_v39 = vmul.f32 %v3383_v33, %v6221_v38  ;;  %v3480_v34 = vmul.f32 %v3383_v33, %v6222_v55  ;;  %v6223_v22 = vld [vmem:[#allocation26_spill] sm:$0xff]  ;;  %v6224_v56 = vld [vmem:[#allocation17_spill] sm:$0xff]  ;;  %v6226_v37 = vld [vmem:[#allocation31_spill] sm:$0xff]  ;;  %v896_v42 = vrot.slane %v3448_v57, 2 }
  0x7a   : > { %6175 = vst [vmem:[#allocation39_spill] sm:$0xff] %v3374_v40  ;;  %v3484_v35 = vmul.f32 %v3383_v33, %v6223_v22  ;;  %v3488_v59 = vmul.f32 %v3383_v33, %v6224_v56  ;;  %v6225_v51 = vld [vmem:[#allocation18_spill] sm:$0xff]  ;;  %v6228_v52 = vld [vmem:[#allocation23_spill] sm:$0xff]  ;;  %v6229_v9 = vld [vmem:[#allocation36_spill] sm:$0xff]  ;;  %v898_v54 = vrot.slane %v3452_v44, 2  ;;  %v901_v19 = vrot.slane %v3460_v49, 2 }
  0x7b   : > { %6177 = vst [vmem:[#allocation40_spill] sm:$0xff] %v3377_v46  ;;  %v3492_v53 = vmul.f32 %v3383_v33, %v6225_v51  ;;  %v6227_v38 = vld [vmem:[#allocation22_spill] sm:$0xff]  ;;  %v3504_v22 = vmul.f32 %v3383_v33, %v6228_v52  ;;  %v3508_v56 = vmul.f32 %v3383_v33, %v6229_v9  ;;  %v6230_v2 = vld [vmem:[#allocation27_spill] sm:$0xff]  ;;  %v6231_v31 = vld [vmem:[#allocation28_spill] sm:$0xff]  ;;  %v889_v46 = vrot.slane %v792_v15, 2 }
  0x7c   : > { %6179 = vst [vmem:[#allocation44_spill] sm:$0xff] %v3380_v3  ;;  %v3500_v55 = vmul.f32 %v3383_v33, %v6227_v38  ;;  %v3512_v51 = vmul.f32 %v3383_v33, %v6230_v2  ;;  %v6232_v24 = vld [vmem:[#allocation41_spill] sm:$0xff]  ;;  %v888_v3 = vrot.slane %v791_v14, 2  ;;  %v6248_v40 = vld [vmem:[#allocation56_spill] sm:$0xff]  ;;  %v6255_v17 = vld [vmem:[#allocation63_spill] sm:$0xff]  ;;  %v904_v26 = vrot.slane %v3468_v7, 2 }
  0x7d   : > { %6181 = vst [vmem:[#allocation2_spill] sm:$0xff] %v3388_v0  ;;  %v3496_v0 = vmul.f32 %v3383_v33, %v6226_v37  ;;  %v3516_v37 = vmul.f32 %v3383_v33, %v6231_v31  ;;  %v3520_v38 = vmul.f32 %v3383_v33, %v6232_v24  ;;  %v6234_v41 = vld [vmem:[#allocation33_spill] sm:$0xff]  ;;  %v3584_v11 = vmul.f32 %v3383_v33, %v6248_v40  ;;  %v6254_v40 = vld [vmem:[#allocation62_spill] sm:$0xff] }
  0x7e   : > { %6183 = vst [vmem:[#allocation45_spill] sm:$0xff] %v3391_v18  ;;  %v3528_v9 = vmul.f32 %v3383_v33, %v6234_v41  ;;  %v6247_v18 = vld [vmem:[#allocation72_spill] sm:$0xff]  ;;  %v6253_v15 = vld [vmem:[#allocation77_spill] sm:$0xff]  ;;  %v6256_v27 = vld [vmem:[#allocation78_spill] sm:$0xff]  ;;  %v908_v57 = vrot.slane %v3476_v39, 2  ;;  %v919_v49 = vrot.slane %v3504_v22, 2 }
  0x7f   : > { %6185 = vst [vmem:[#allocation49_spill] sm:$0xff] %v3394_v29  ;;  %v6246_v29 = vld [vmem:[#allocation53_spill] sm:$0xff]  ;;  %v916_v44 = vrot.slane %v3496_v0, 2  ;;  %v923_v7 = vrot.slane %v3512_v51, 2  ;;  %v926_v39 = vrot.slane %v3520_v38, 2 }
  0x80   : > { %6187 = vst [vmem:[#allocation50_spill] sm:$0xff] %v3397_v8  ;;  %v6245_v8 = vld [vmem:[#allocation52_spill] sm:$0xff]  ;;  %v929_v0 = vrot.slane %v3528_v9, 2 }
  0x81   : > { %6189 = vst [vmem:[#allocation54_spill] sm:$0xff] %v3400_v4  ;;  %v6244_v4 = vld [vmem:[#allocation69_spill] sm:$0xff] }
  0x82   : > { %6191 = vst [vmem:[#allocation55_spill] sm:$0xff] %v3403_v58  ;;  %v6243_v58 = vld [vmem:[#allocation48_spill] sm:$0xff] }
  0x83   : > { %6193 = vst [vmem:[#allocation59_spill] sm:$0xff] %v3406_v1  ;;  %v6242_v1 = vld [vmem:[#allocation47_spill] sm:$0xff] }
  0x84   : > { %6195 = vst [vmem:[#allocation60_spill] sm:$0xff] %v3409_v47  ;;  %v6241_v47 = vld [vmem:[#allocation68_spill] sm:$0xff] }
  0x85   : > { %6197 = vst [vmem:[#allocation64_spill] sm:$0xff] %v3412_v32  ;;  %v6240_v32 = vld [vmem:[#allocation43_spill] sm:$0xff] }
  0x86   : > { %6199 = vst [vmem:[#allocation65_spill] sm:$0xff] %v3415_v6  ;;  %v6239_v6 = vld [vmem:[#allocation42_spill] sm:$0xff] }
  0x87   : > { %6201 = vst [vmem:[#allocation66_spill] sm:$0xff] %v3418_v28  ;;  %v6238_v28 = vld [vmem:[#allocation51_spill] sm:$0xff]  ;;  %v3548_v41 = vmul.f32 %v3383_v33, %v6239_v6  ;;  %v3568_v6 = vmul.f32 %v3383_v33, %v6244_v4  ;;  %v6249_v4 = vld [vmem:[#allocation57_spill] sm:$0xff] }
  0x88   : > { %6203 = vst [vmem:[#allocation67_spill] sm:$0xff] %v3421_v20  ;;  %v6237_v20 = vld [vmem:[#allocation38_spill] sm:$0xff]  ;;  %v3588_v48 = vmul.f32 %v3383_v33, %v6249_v4  ;;  %v3608_v4 = vmul.f32 %v3383_v33, %v6254_v40 }
  0x89   : > { %6205 = vst [vmem:[#allocation70_spill] sm:$0xff] %v3424_v12  ;;  %v6236_v12 = vld [vmem:[#allocation37_spill] sm:$0xff]  ;;  %v3540_v24 = vmul.f32 %v3383_v33, %v6237_v20  ;;  %v3560_v20 = vmul.f32 %v3383_v33, %v6242_v1  ;;  %v3580_v1 = vmul.f32 %v3383_v33, %v6247_v18 }
  0x8a   : > { %6207 = vst [vmem:[#allocation71_spill] sm:$0xff] %v3427_v13  ;;  %v6235_v13 = vld [vmem:[#allocation46_spill] sm:$0xff]  ;;  %v3536_v31 = vmul.f32 %v3383_v33, %v6236_v12  ;;  %v3556_v12 = vmul.f32 %v3383_v33, %v6241_v47  ;;  %v3576_v47 = vmul.f32 %v3383_v33, %v6246_v29  ;;  %v6252_v18 = vld [vmem:[#allocation61_spill] sm:$0xff] }
  0x8b   : > { %6210 = vst [vmem:[#allocation3_spill] sm:$0xff] %v3434_v36  ;;  %v6233_v36 = vld [vmem:[#allocation32_spill] sm:$0xff]  ;;  %v3532_v2 = vmul.f32 %v3383_v33, %v6235_v13  ;;  %v3552_v13 = vmul.f32 %v3383_v33, %v6240_v32  ;;  %v3572_v32 = vmul.f32 %v3383_v33, %v6245_v8  ;;  %v6251_v29 = vld [vmem:[#allocation58_spill] sm:$0xff]  ;;  %v3600_v14 = vmul.f32 %v3383_v33, %v6252_v18 }
  0x8c   : > { %v3524_v52 = vmul.f32 %v3383_v33, %v6233_v36  ;;  %v3544_v36 = vmul.f32 %v3383_v33, %v6238_v28  ;;  %v3564_v28 = vmul.f32 %v3383_v33, %v6243_v58  ;;  %v891_v58 = vrot.slane %v793_v21, 2  ;;  %v6250_v8 = vld [vmem:[#allocation76_spill] sm:$0xff] }
  0x8d   : > { %v3592_v50 = vmul.f32 %v3383_v33, %v6250_v8  ;;  %v3596_v25 = vmul.f32 %v3383_v33, %v6251_v29  ;;  %v3604_v21 = vmul.f32 %v3383_v33, %v6253_v15  ;;  %v3612_v8 = vmul.f32 %v3383_v33, %v6255_v17 }
  0x8e   : > { %v3616_v29 = vmul.f32 %v3383_v33, %v6256_v27  ;;  %v894_v18 = vrot.slane %v3444_v43, 2  ;;  %v3622_v15 = vsel %vm887_vm1, %v888_v3, %v889_v46  ;;  %v3625_v40 = vsel %vm887_vm1, %v889_v46, %v891_v58 }
  0x8f   : > { %v899_v17 = vrot.slane %v3456_v45, 2  ;;  %v903_v33 = vrot.slane %v3464_v30, 2  ;;  %v906_v43 = vrot.slane %v3472_v23, 2  ;;  %v909_v3 = vrot.slane %v3480_v34, 2 }
  0x90   : > { %v911_v27 = vrot.slane %v3484_v35, 2  ;;  %v913_v46 = vrot.slane %v3488_v59, 2  ;;  %v914_v58 = vrot.slane %v3492_v53, 2  ;;  %v918_v45 = vrot.slane %v3500_v55, 2 }
  0x91   : > { %v921_v30 = vrot.slane %v3508_v56, 2  ;;  %v924_v23 = vrot.slane %v3516_v37, 2  ;;  %v895_v34 = vsel %vm887_vm1, %v893_v61, %v894_v18  ;;  %v897_v35 = vsel %vm887_vm1, %v894_v18, %v896_v42 }
  0x92   : > { %v928_v53 = vrot.slane %v3524_v52, 2  ;;  %v900_v55 = vsel %vm887_vm1, %v898_v54, %v899_v17  ;;  %v902_v22 = vsel %vm887_vm1, %v899_v17, %v901_v19  ;;  %v905_v56 = vsel %vm887_vm1, %v903_v33, %v904_v26 }
  0x93   : > { %v907_v51 = vsel %vm887_vm1, %v904_v26, %v906_v43  ;;  %v910_v37 = vsel %vm887_vm1, %v908_v57, %v909_v3  ;;  %v912_v38 = vsel %vm887_vm1, %v909_v3, %v911_v27  ;;  %v915_v61 = vsel %vm887_vm1, %v913_v46, %v914_v58 }
  0x94   : > { %v917_v42 = vsel %vm887_vm1, %v914_v58, %v916_v44  ;;  %v920_v18 = vsel %vm887_vm1, %v918_v45, %v919_v49  ;;  %v922_v9 = vsel %vm887_vm1, %v919_v49, %v921_v30  ;;  %v925_v54 = vsel %vm887_vm1, %v923_v7, %v924_v23 }
  0x95   : > { %v927_v19 = vsel %vm887_vm1, %v924_v23, %v926_v39  ;;  %v930_v17 = vsel %vm887_vm1, %v928_v53, %v929_v0  ;;  %v931_v52 = vrot.slane %v3532_v2, 2  ;;  %v933_v59 = vrot.slane %v3536_v31, 2 }
  0x96   : > { %v934_v27 = vrot.slane %v3540_v24, 2  ;;  %v936_v33 = vrot.slane %v3544_v36, 2  ;;  %v938_v26 = vrot.slane %v3548_v41, 2  ;;  %v939_v43 = vrot.slane %v3552_v13, 2 }
  0x97   : > { %v941_v57 = vrot.slane %v3556_v12, 2  ;;  %v943_v3 = vrot.slane %v3560_v20, 2  ;;  %v944_v46 = vrot.slane %v3564_v28, 2  ;;  %v946_v58 = vrot.slane %v3568_v6, 2 }
  0x98   : > { %v948_v2 = vrot.slane %v3572_v32, 2  ;;  %v949_v31 = vrot.slane %v3576_v47, 2  ;;  %v951_v24 = vrot.slane %v3580_v1, 2  ;;  %v953_v36 = vrot.slane %v3584_v11, 2 }
  0x99   : > { %v954_v41 = vrot.slane %v3588_v48, 2  ;;  %v956_v13 = vrot.slane %v3592_v50, 2  ;;  %v958_v12 = vrot.slane %v3596_v25, 2  ;;  %v959_v20 = vrot.slane %v3600_v14, 2 }
  0x9a   : > { %v961_v28 = vrot.slane %v3604_v21, 2  ;;  %v932_v6 = vsel %vm887_vm1, %v929_v0, %v931_v52  ;;  %v963_v32 = vrot.slane %v3608_v4, 2  ;;  %v964_v47 = vrot.slane %v3612_v8, 2 }
  0x9b   : > { %v966_v1 = vrot.slane %v3616_v29, 2  ;;  %v935_v11 = vsel %vm887_vm1, %v933_v59, %v934_v27  ;;  %v937_v48 = vsel %vm887_vm1, %v934_v27, %v936_v33  ;;  %v940_v50 = vsel %vm887_vm1, %v938_v26, %v939_v43  ;;  %v6257_v27 = vld [vmem:[#allocation79_spill] sm:$0xff] }
  0x9c   : > { %v942_v25 = vsel %vm887_vm1, %v939_v43, %v941_v57  ;;  %v945_v14 = vsel %vm887_vm1, %v943_v3, %v944_v46  ;;  %v947_v21 = vsel %vm887_vm1, %v944_v46, %v946_v58  ;;  %v950_v44 = vsel %vm887_vm1, %v948_v2, %v949_v31 }
  0x9d   : > { %v952_v4 = vsel %vm887_vm1, %v949_v31, %v951_v24  ;;  %v955_v8 = vsel %vm887_vm1, %v953_v36, %v954_v41  ;;  %v957_v29 = vsel %vm887_vm1, %v954_v41, %v956_v13  ;;  %v960_v45 = vsel %vm887_vm1, %v958_v12, %v959_v20  ;;  %v6275_v13 = vld [vmem:[#allocation59_spill] sm:$0xff] }
  0x9e   : > { %v962_v49 = vsel %vm887_vm1, %v959_v20, %v961_v28  ;;  %v965_v30 = vsel %vm887_vm1, %v963_v32, %v964_v47  ;;  %v967_v7 = vsel %vm887_vm1, %v964_v47, %v966_v1  ;;  %v3701_v23 = vadd.f32 %v3622_v15, %v3321_v62  ;;  %v6258_v62 = vld [vmem:[#allocation16_spill] sm:$0xff]  ;;  %v6281_v47 = vld [vmem:[#allocation65_spill] sm:$0xff] }
  0x9f   : > { %v3705_v39 = vadd.f32 %v3625_v40, %v3325_v63  ;;  %v3708_v53 = vadd.f32 %v895_v34, %v3331_v10  ;;  %v3711_v0 = vadd.f32 %v897_v35, %v3335_v5  ;;  %v3714_v52 = vadd.f32 %v900_v55, %v3338_v60  ;;  %v6259_v63 = vld [vmem:[#allocation19_spill] sm:$0xff]  ;;  %v6260_v10 = vld [vmem:[#allocation20_spill] sm:$0xff]  ;;  %v6262_v60 = vld [vmem:[#allocation25_spill] sm:$0xff] }
  0xa0   : > { %v3717_v59 = vadd.f32 %v902_v22, %v3341_v16  ;;  %v3720_v33 = vadd.f32 %v905_v56, %v6257_v27  ;;  %v3723_v15 = vadd.f32 %v907_v51, %v6258_v62  ;;  %v3726_v40 = vadd.f32 %v910_v37, %v6259_v63  ;;  %v6261_v5 = vld [vmem:[#allocation24_spill] sm:$0xff]  ;;  %v6263_v16 = vld [vmem:[#allocation29_spill] sm:$0xff]  ;;  %v6264_v56 = vld [vmem:[#allocation30_spill] sm:$0xff] }
  0xa1   : > { %v3729_v34 = vadd.f32 %v912_v38, %v6260_v10  ;;  %v3732_v35 = vadd.f32 %v915_v61, %v6261_v5  ;;  %v3735_v55 = vadd.f32 %v917_v42, %v6262_v60  ;;  %v3738_v22 = vadd.f32 %v920_v18, %v6263_v16  ;;  %v6265_v51 = vld [vmem:[#allocation34_spill] sm:$0xff]  ;;  %v6266_v37 = vld [vmem:[#allocation35_spill] sm:$0xff]  ;;  %v6268_v61 = vld [vmem:[#allocation40_spill] sm:$0xff] }
  0xa2   : > { %v3741_v26 = vadd.f32 %v922_v9, %v6264_v56  ;;  %v3744_v43 = vadd.f32 %v925_v54, %v6265_v51  ;;  %v3747_v57 = vadd.f32 %v927_v19, %v6266_v37  ;;  %v6267_v38 = vld [vmem:[#allocation39_spill] sm:$0xff]  ;;  %v3753_v46 = vadd.f32 %v932_v6, %v6268_v61  ;;  %v6269_v42 = vld [vmem:[#allocation44_spill] sm:$0xff]  ;;  %v6270_v18 = vld [vmem:[#allocation45_spill] sm:$0xff] }
  0xa3   : > { %v3750_v3 = vadd.f32 %v930_v17, %v6267_v38  ;;  %v3756_v58 = vadd.f32 %v935_v11, %v6269_v42  ;;  %v3759_v2 = vadd.f32 %v937_v48, %v6270_v18  ;;  %v6271_v9 = vld [vmem:[#allocation49_spill] sm:$0xff]  ;;  %v6272_v54 = vld [vmem:[#allocation50_spill] sm:$0xff]  ;;  %v6274_v17 = vld [vmem:[#allocation55_spill] sm:$0xff]  ;;  %v3774_v12 = vadd.f32 %v950_v44, %v6275_v13 }
  0xa4   : > { %v3762_v31 = vadd.f32 %v940_v50, %v6271_v9  ;;  %v3765_v24 = vadd.f32 %v942_v25, %v6272_v54  ;;  %v6273_v19 = vld [vmem:[#allocation54_spill] sm:$0xff]  ;;  %v3771_v41 = vadd.f32 %v947_v21, %v6274_v17  ;;  %v6277_v20 = vld [vmem:[#allocation60_spill] sm:$0xff]  ;;  %v3783_v1 = vadd.f32 %v957_v29, %v6281_v47  ;;  %v6285_v50 = vld [vmem:[#allocation67_spill] sm:$0xff] }
  0xa5   : > { %v3768_v36 = vadd.f32 %v945_v14, %v6273_v19  ;;  %6276 = vst [vmem:[#allocation4_spill] sm:$0xff] %v3774_v12  ;;  %v3777_v28 = vadd.f32 %v952_v4, %v6277_v20  ;;  %v6279_v6 = vld [vmem:[#allocation64_spill] sm:$0xff]  ;;  %v6283_v11 = vld [vmem:[#allocation66_spill] sm:$0xff]  ;;  %v3789_v25 = vadd.f32 %v962_v49, %v6285_v50  ;;  %v6289_v44 = vld [vmem:[#allocation71_spill] sm:$0xff] }
  0xa6   : > { %v3780_v32 = vadd.f32 %v955_v8, %v6279_v6  ;;  %6282 = vst [vmem:[#allocation16_spill] sm:$0xff] %v3783_v1  ;;  %v3786_v48 = vadd.f32 %v960_v45, %v6283_v11  ;;  %v6287_v14 = vld [vmem:[#allocation70_spill] sm:$0xff]  ;;  %v3795_v27 = vadd.f32 %v967_v7, %v6289_v44  ;;  %v6291_v4 = vld [vmem:[#allocation5_spill] sm:$0xff]  ;;  %v6292_v62 = vld [vmem:[#allocation3_spill] sm:$0xff] }
  0xa7   : > { %6278 = vst [vmem:[#allocation6_spill] sm:$0xff] %v3777_v28  ;;  %v3792_v21 = vadd.f32 %v965_v30, %v6287_v14  ;;  %v1033_v63 = vmul.f32 %v6292_v62, %v6291_v4  ;;  %v6293_v8 = vld [vmem:[#allocation7_spill] sm:$0xff]  ;;  %v6294_v29 = vld [vmem:[#allocation8_spill] sm:$0xff]  ;;  %v6295_v45 = vld [vmem:[#allocation9_spill] sm:$0xff] }
  0xa8   : > { %6280 = vst [vmem:[#allocation79_spill] sm:$0xff] %v3780_v32  ;;  %v1034_v10 = vmul.f32 %v6292_v62, %v6293_v8  ;;  %v1035_v5 = vmul.f32 %v6292_v62, %v6294_v29  ;;  %v1036_v49 = vmul.f32 %v6292_v62, %v6295_v45  ;;  %v6296_v60 = vld [vmem:[#allocation11_spill] sm:$0xff]  ;;  %v6297_v16 = vld [vmem:[#allocation12_spill] sm:$0xff]  ;;  %v6298_v56 = vld [vmem:[#allocation14_spill] sm:$0xff] }
  0xa9   : > { %6284 = vst [vmem:[#allocation19_spill] sm:$0xff] %v3786_v48  ;;  %v1037_v30 = vmul.f32 %v6292_v62, %v6296_v60  ;;  %v1038_v7 = vmul.f32 %v6292_v62, %v6297_v16  ;;  %v1039_v51 = vmul.f32 %v6292_v62, %v6298_v56  ;;  %v6299_v37 = vld [vmem:[#allocation15_spill] sm:$0xff]  ;;  %v6300_v61 = vld [vmem:[#allocation17_spill] sm:$0xff]  ;;  %v6301_v18 = vld [vmem:[#allocation18_spill] sm:$0xff]  ;;  %v3868_v12 = vadd.f32 %v1033_v63, %v3701_v23 }
  0xaa   : > { %6286 = vst [vmem:[#allocation20_spill] sm:$0xff] %v3789_v25  ;;  %v1040_v38 = vmul.f32 %v6292_v62, %v6299_v37  ;;  %v1041_v42 = vmul.f32 %v6292_v62, %v6300_v61  ;;  %v1042_v9 = vmul.f32 %v6292_v62, %v6301_v18  ;;  %v6302_v54 = vld [vmem:[#allocation22_spill] sm:$0xff]  ;;  %v6303_v17 = vld [vmem:[#allocation23_spill] sm:$0xff]  ;;  %v6305_v47 = vld [vmem:[#allocation28_spill] sm:$0xff] }
  0xab   : > { %6288 = vst [vmem:[#allocation24_spill] sm:$0xff] %v3792_v21  ;;  %v1043_v19 = vmul.f32 %v6292_v62, %v6302_v54  ;;  %v1044_v13 = vmul.f32 %v6292_v62, %v6303_v17  ;;  %v6304_v20 = vld [vmem:[#allocation27_spill] sm:$0xff]  ;;  %v1046_v11 = vmul.f32 %v6292_v62, %v6305_v47  ;;  %v6306_v50 = vld [vmem:[#allocation32_spill] sm:$0xff]  ;;  %v6307_v44 = vld [vmem:[#allocation33_spill] sm:$0xff] }
  0xac   : > { %6290 = vst [vmem:[#allocation25_spill] sm:$0xff] %v3795_v27  ;;  %v1045_v6 = vmul.f32 %v6292_v62, %v6304_v20  ;;  %v1047_v14 = vmul.f32 %v6292_v62, %v6306_v50  ;;  %v1048_v61 = vmul.f32 %v6292_v62, %v6307_v44  ;;  %v6308_v18 = vld [vmem:[#allocation37_spill] sm:$0xff]  ;;  %v6309_v54 = vld [vmem:[#allocation38_spill] sm:$0xff]  ;;  %v3834_v17 = vld [vmem:[%s2749_s28 + $0x168] sm:$0xff]  ;;  %v3889_v23 = vadd.f32 %v1040_v38, %v3723_v15 }
  0xad   : > { %v1049_v37 = vmul.f32 %v6292_v62, %v6308_v18  ;;  %v1050_v56 = vmul.f32 %v6292_v62, %v6309_v54  ;;  %6310 = vst [vmem:[#allocation29_spill] sm:$0xff] %v3834_v17  ;;  %v6311_v16 = vld [vmem:[#allocation42_spill] sm:$0xff]  ;;  %v6312_v60 = vld [vmem:[#allocation43_spill] sm:$0xff]  ;;  %v6314_v29 = vld [vmem:[#allocation48_spill] sm:$0xff] }
  0xae   : > { %v1051_v20 = vmul.f32 %v6292_v62, %v6311_v16  ;;  %v1052_v47 = vmul.f32 %v6292_v62, %v6312_v60  ;;  %v6313_v45 = vld [vmem:[#allocation47_spill] sm:$0xff]  ;;  %v1054_v44 = vmul.f32 %v6292_v62, %v6314_v29  ;;  %v6315_v8 = vld [vmem:[#allocation52_spill] sm:$0xff]  ;;  %v6316_v4 = vld [vmem:[#allocation53_spill] sm:$0xff]  ;;  %6324 = vst [vmem:[#allocation34_spill] sm:$0xff] %v3889_v23  ;;  %v3910_v15 = vadd.f32 %v1047_v14, %v3744_v43 }
  0xaf   : > { %v1053_v50 = vmul.f32 %v6292_v62, %v6313_v45  ;;  %v1055_v18 = vmul.f32 %v6292_v62, %v6315_v8  ;;  %v1056_v54 = vmul.f32 %v6292_v62, %v6316_v4  ;;  %v6317_v27 = vld [vmem:[#allocation56_spill] sm:$0xff]  ;;  %v6318_v25 = vld [vmem:[#allocation57_spill] sm:$0xff]  ;;  %v6320_v60 = vld [vmem:[#allocation58_spill] sm:$0xff] }
  0xb0   : > { %v1057_v21 = vmul.f32 %v6292_v62, %v6317_v27  ;;  %v1058_v16 = vmul.f32 %v6292_v62, %v6318_v25  ;;  %v3853_v48 = vld [vmem:[%s2749_s28 + $0x170] sm:$0xff]  ;;  %v1059_v45 = vmul.f32 %v6292_v62, %v6320_v60  ;;  %v6321_v1 = vld [vmem:[#allocation61_spill] sm:$0xff]  ;;  %v6322_v32 = vld [vmem:[#allocation62_spill] sm:$0xff]  ;;  %v1063_v27 = vmul.f32 %v6292_v62, %v3834_v17  ;;  %6331 = vst [vmem:[#allocation50_spill] sm:$0xff] %v3910_v15 }
  0xb1   : > { %6319 = vst [vmem:[#allocation30_spill] sm:$0xff] %v3853_v48  ;;  %v1060_v29 = vmul.f32 %v6292_v62, %v6321_v1  ;;  %v1061_v8 = vmul.f32 %v6292_v62, %v6322_v32  ;;  %v6323_v28 = vld [vmem:[#allocation63_spill] sm:$0xff]  ;;  %v1064_v25 = vmul.f32 %v6292_v62, %v3853_v48  ;;  %v3871_v60 = vadd.f32 %v1034_v10, %v3705_v39  ;;  %v6338_v43 = vld [vmem:[#allocation2_spill] sm:$0xff] }
  0xb2   : > { %v1062_v4 = vmul.f32 %v6292_v62, %v6323_v28  ;;  %v3874_v1 = vadd.f32 %v1035_v5, %v3708_v53  ;;  %v3877_v32 = vadd.f32 %v1036_v49, %v3711_v0  ;;  %v3880_v28 = vadd.f32 %v1037_v30, %v3714_v52  ;;  %v6348_v30 = vld [vmem:[#allocation16_spill] sm:$0xff]  ;;  %v6368_v14 = vld [vmem:[#allocation14_spill] sm:$0xff] }
  0xb3   : > { %v3883_v17 = vadd.f32 %v1038_v7, %v3717_v59  ;;  %v3886_v62 = vadd.f32 %v1039_v51, %v3720_v33  ;;  %v3892_v39 = vadd.f32 %v1041_v42, %v3726_v40  ;;  %v3895_v53 = vadd.f32 %v1042_v9, %v3729_v34 }
  0xb4   : > { %v3898_v0 = vadd.f32 %v1043_v19, %v3732_v35  ;;  %v3901_v52 = vadd.f32 %v1044_v13, %v3735_v55  ;;  %v3904_v59 = vadd.f32 %v1045_v6, %v3738_v22  ;;  %v3907_v33 = vadd.f32 %v1046_v11, %v3741_v26  ;;  %v6365_v13 = vld [vmem:[#allocation11_spill] sm:$0xff]  ;;  %v6366_v6 = vld [vmem:[#allocation12_spill] sm:$0xff]  ;;  %v6367_v11 = vld [vmem:[#allocation21_spill] sm:$0xff] }
  0xb5   : > { %6325 = vst [vmem:[#allocation35_spill] sm:$0xff] %v3892_v39  ;;  %v3913_v40 = vadd.f32 %v1048_v61, %v3747_v57  ;;  %v3916_v34 = vadd.f32 %v1049_v37, %v3750_v3  ;;  %v3919_v35 = vadd.f32 %v1050_v56, %v3753_v46  ;;  %v3922_v55 = vadd.f32 %v1051_v20, %v3756_v58  ;;  %v6342_v58 = vld [vmem:[#allocation4_spill] sm:$0xff]  ;;  %v6403_v39 = vld [vmem:[#allocation63_spill] sm:$0xff] }
  0xb6   : > { %6326 = vst [vmem:[#allocation39_spill] sm:$0xff] %v3895_v53  ;;  %v3925_v22 = vadd.f32 %v1052_v47, %v3759_v2  ;;  %v3928_v26 = vadd.f32 %v1053_v50, %v3762_v31  ;;  %v3931_v63 = vperm.slane %v6338_v43, 1  ;;  %v3934_v57 = vadd.f32 %v1054_v44, %v3765_v24  ;;  %v6344_v2 = vld [vmem:[#allocation6_spill] sm:$0xff]  ;;  %v6346_v31 = vld [vmem:[#allocation79_spill] sm:$0xff] }
  0xb7   : > { %6327 = vst [vmem:[#allocation40_spill] sm:$0xff] %v3898_v0  ;;  %v3937_v3 = vadd.f32 %v1055_v18, %v3768_v36  ;;  %v3940_v46 = vadd.f32 %v1056_v54, %v3771_v41  ;;  %v3943_v10 = vadd.f32 %v1057_v21, %v6342_v58  ;;  %v3946_v5 = vadd.f32 %v1058_v16, %v6344_v2  ;;  %v6350_v24 = vld [vmem:[#allocation19_spill] sm:$0xff]  ;;  %v6352_v36 = vld [vmem:[#allocation20_spill] sm:$0xff]  ;;  %v6356_v21 = vld [vmem:[#allocation25_spill] sm:$0xff] }
  0xb8   : > { %6328 = vst [vmem:[#allocation44_spill] sm:$0xff] %v3901_v52  ;;  %v3949_v49 = vadd.f32 %v1059_v45, %v6346_v31  ;;  %v3952_v7 = vadd.f32 %v1060_v29, %v6348_v30  ;;  %v3955_v56 = vadd.f32 %v1061_v8, %v6350_v24  ;;  %v3958_v51 = vadd.f32 %v1062_v4, %v6352_v36  ;;  %v6354_v41 = vld [vmem:[#allocation24_spill] sm:$0xff]  ;;  %v6359_v45 = vld [vmem:[#allocation5_spill] sm:$0xff]  ;;  %v6360_v29 = vld [vmem:[#allocation7_spill] sm:$0xff] }
  0xb9   : > { %6329 = vst [vmem:[#allocation45_spill] sm:$0xff] %v3904_v59  ;;  %v3961_v37 = vadd.f32 %v1063_v27, %v6354_v41  ;;  %v3964_v38 = vadd.f32 %v1064_v25, %v6356_v21  ;;  %v3967_v16 = vperm.slane %v6338_v43, 2  ;;  %v1098_v61 = vmul.f32 %v3931_v63, %v6359_v45  ;;  %v6361_v8 = vld [vmem:[#allocation10_spill] sm:$0xff]  ;;  %v6362_v4 = vld [vmem:[#allocation8_spill] sm:$0xff]  ;;  %v6363_v27 = vld [vmem:[#allocation9_spill] sm:$0xff] }
  0xba   : > { %6330 = vst [vmem:[#allocation49_spill] sm:$0xff] %v3907_v33  ;;  %v1099_v42 = vmul.f32 %v3931_v63, %v6360_v29  ;;  %v1100_v18 = vmul.f32 %v3931_v63, %v6361_v8  ;;  %v1101_v9 = vmul.f32 %v3931_v63, %v6362_v4  ;;  %v1102_v54 = vmul.f32 %v3931_v63, %v6363_v27  ;;  %v6364_v25 = vld [vmem:[#allocation13_spill] sm:$0xff]  ;;  %v6369_v43 = vld [vmem:[#allocation15_spill] sm:$0xff]  ;;  %v6370_v2 = vld [vmem:[#allocation26_spill] sm:$0xff] }
  0xbb   : > { %6332 = vst [vmem:[#allocation54_spill] sm:$0xff] %v3913_v40  ;;  %v1103_v19 = vmul.f32 %v3931_v63, %v6364_v25  ;;  %v3983_v20 = vmul.f32 %v3931_v63, %v6365_v13  ;;  %v3987_v47 = vmul.f32 %v3931_v63, %v6366_v6  ;;  %v3991_v50 = vmul.f32 %v3931_v63, %v6367_v11  ;;  %v6371_v30 = vld [vmem:[#allocation17_spill] sm:$0xff]  ;;  %v6372_v36 = vld [vmem:[#allocation18_spill] sm:$0xff]  ;;  %v6373_v21 = vld [vmem:[#allocation31_spill] sm:$0xff] }
  0xbc   : > { %6333 = vst [vmem:[#allocation55_spill] sm:$0xff] %v3916_v34  ;;  %v3995_v44 = vmul.f32 %v3931_v63, %v6368_v14  ;;  %v3999_v58 = vmul.f32 %v3931_v63, %v6369_v43  ;;  %v4003_v31 = vmul.f32 %v3931_v63, %v6370_v2  ;;  %v4007_v24 = vmul.f32 %v3931_v63, %v6371_v30  ;;  %v6374_v29 = vld [vmem:[#allocation22_spill] sm:$0xff]  ;;  %v6375_v4 = vld [vmem:[#allocation23_spill] sm:$0xff]  ;;  %v6376_v25 = vld [vmem:[#allocation36_spill] sm:$0xff] }
  0xbd   : > { %6334 = vst [vmem:[#allocation59_spill] sm:$0xff] %v3919_v35  ;;  %v4011_v41 = vmul.f32 %v3931_v63, %v6372_v36  ;;  %v4015_v45 = vmul.f32 %v3931_v63, %v6373_v21  ;;  %v4019_v8 = vmul.f32 %v3931_v63, %v6374_v29  ;;  %v4023_v27 = vmul.f32 %v3931_v63, %v6375_v4  ;;  %v6377_v6 = vld [vmem:[#allocation27_spill] sm:$0xff]  ;;  %v6378_v14 = vld [vmem:[#allocation28_spill] sm:$0xff]  ;;  %v6379_v2 = vld [vmem:[#allocation41_spill] sm:$0xff] }
  0xbe   : > { %6335 = vst [vmem:[#allocation60_spill] sm:$0xff] %v3922_v55  ;;  %v4027_v13 = vmul.f32 %v3931_v63, %v6376_v25  ;;  %v4031_v11 = vmul.f32 %v3931_v63, %v6377_v6  ;;  %v4035_v43 = vmul.f32 %v3931_v63, %v6378_v14  ;;  %v4039_v30 = vmul.f32 %v3931_v63, %v6379_v2  ;;  %v6380_v36 = vld [vmem:[#allocation32_spill] sm:$0xff]  ;;  %v6381_v29 = vld [vmem:[#allocation33_spill] sm:$0xff]  ;;  %v6382_v25 = vld [vmem:[#allocation46_spill] sm:$0xff] }
  0xbf   : > { %6336 = vst [vmem:[#allocation64_spill] sm:$0xff] %v3925_v22  ;;  %v4043_v21 = vmul.f32 %v3931_v63, %v6380_v36  ;;  %v4047_v4 = vmul.f32 %v3931_v63, %v6381_v29  ;;  %v4051_v6 = vmul.f32 %v3931_v63, %v6382_v25  ;;  %v6396_v22 = vld [vmem:[#allocation57_spill] sm:$0xff]  ;;  %v6397_v55 = vld [vmem:[#allocation76_spill] sm:$0xff]  ;;  %v6398_v35 = vld [vmem:[#allocation58_spill] sm:$0xff]  ;;  %v1195_v15 = vrot.slane %v1099_v42, 1 }
  0xc0   : > { %6337 = vst [vmem:[#allocation65_spill] sm:$0xff] %v3928_v26  ;;  %v6395_v26 = vld [vmem:[#allocation56_spill] sm:$0xff]  ;;  %v4118_v34 = vld [vmem:[%s2749_s28 + $0x178] sm:$0x3]  ;;  %v1197_v33 = vrot.slane %v1100_v18, 1  ;;  %v1199_v52 = vrot.slane %v1101_v9, 1  ;;  %v4134_v23 = vmul.f32 %v3931_v63, %v6403_v39 }
  0xc1   : > { %6339 = vst [vmem:[#allocation66_spill] sm:$0xff] %v3934_v57  ;;  %v6394_v57 = vld [vmem:[#allocation72_spill] sm:$0xff]  ;;  %v6401_v59 = vld [vmem:[#allocation77_spill] sm:$0xff]  ;;  %v1202_v0 = vrot.slane %v1103_v19, 1  ;;  %v6402_v53 = vld [vmem:[#allocation62_spill] sm:$0xff]  ;;  %v1204_v9 = vrot.slane %v3983_v20, 1 }
  0xc2   : > { %6340 = vst [vmem:[#allocation67_spill] sm:$0xff] %v3937_v3  ;;  %v6393_v3 = vld [vmem:[#allocation53_spill] sm:$0xff]  ;;  %v1205_v39 = vrot.slane %v3987_v47, 1  ;;  %v4158_v19 = vsel %vm645_vm0, %v1195_v15, %v1197_v33  ;;  %v1210_v20 = vrot.slane %v3999_v58, 1  ;;  %v1212_v47 = vrot.slane %v4003_v31, 1 }
  0xc3   : > { %6341 = vst [vmem:[#allocation70_spill] sm:$0xff] %v3940_v46  ;;  %v6392_v46 = vld [vmem:[#allocation52_spill] sm:$0xff]  ;;  %v6405_v42 = vld [vmem:[#allocation29_spill] sm:$0xff]  ;;  %v1217_v33 = vrot.slane %v4015_v45, 1  ;;  %v1227_v58 = vrot.slane %v4039_v30, 1  ;;  %v1229_v31 = vrot.slane %v4043_v21, 1 }
  0xc4   : > { %6343 = vst [vmem:[#allocation71_spill] sm:$0xff] %v3943_v10  ;;  %v6391_v10 = vld [vmem:[#allocation69_spill] sm:$0xff]  ;;  %v4142_v18 = vmul.f32 %v3931_v63, %v6405_v42  ;;  %v1209_v42 = vrot.slane %v3995_v44, 1  ;;  %v1224_v44 = vrot.slane %v4031_v11, 1  ;;  %v1206_v45 = vsel %vm645_vm0, %v1204_v9, %v1205_v39 }
  0xc5   : > { %6345 = vst [vmem:[#allocation3_spill] sm:$0xff] %v3946_v5  ;;  %v6390_v5 = vld [vmem:[#allocation48_spill] sm:$0xff] }
  0xc6   : > { %6347 = vst [vmem:[#allocation2_spill] sm:$0xff] %v3949_v49  ;;  %v6389_v49 = vld [vmem:[#allocation47_spill] sm:$0xff]  ;;  %v1211_v11 = vsel %vm645_vm0, %v1209_v42, %v1210_v20 }
  0xc7   : > { %6349 = vst [vmem:[#allocation4_spill] sm:$0xff] %v3952_v7  ;;  %v6388_v7 = vld [vmem:[#allocation68_spill] sm:$0xff] }
  0xc8   : > { %6351 = vst [vmem:[#allocation6_spill] sm:$0xff] %v3955_v56  ;;  %v6387_v56 = vld [vmem:[#allocation43_spill] sm:$0xff] }
  0xc9   : > { %6353 = vst [vmem:[#allocation79_spill] sm:$0xff] %v3958_v51  ;;  %v6386_v51 = vld [vmem:[#allocation42_spill] sm:$0xff]  ;;  %v4071_v25 = vmul.f32 %v3931_v63, %v6387_v56  ;;  %v4091_v56 = vmul.f32 %v3931_v63, %v6392_v46  ;;  %v4111_v46 = vmul.f32 %v3931_v63, %v6397_v55  ;;  %v1200_v55 = vrot.slane %v1102_v54, 1 }
  0xca   : > { %6355 = vst [vmem:[#allocation16_spill] sm:$0xff] %v3961_v37  ;;  %v6385_v37 = vld [vmem:[#allocation51_spill] sm:$0xff]  ;;  %v4067_v29 = vmul.f32 %v3931_v63, %v6386_v51  ;;  %v4087_v51 = vmul.f32 %v3931_v63, %v6391_v10  ;;  %v4107_v10 = vmul.f32 %v3931_v63, %v6396_v22  ;;  %v4126_v22 = vmul.f32 %v3931_v63, %v6401_v59 }
  0xcb   : > { %6357 = vst [vmem:[#allocation19_spill] sm:$0xff] %v3964_v38  ;;  %v6384_v38 = vld [vmem:[#allocation38_spill] sm:$0xff]  ;;  %v4063_v36 = vmul.f32 %v3931_v63, %v6385_v37  ;;  %v4083_v37 = vmul.f32 %v3931_v63, %v6390_v5  ;;  %v4103_v5 = vmul.f32 %v3931_v63, %v6395_v26  ;;  %v1194_v26 = vrot.slane %v1098_v61, 1 }
  0xcc   : > { %6358 = vst [vmem:[#allocation20_spill] sm:$0xff] %v3967_v16  ;;  %v6383_v16 = vld [vmem:[#allocation37_spill] sm:$0xff]  ;;  %v4059_v2 = vmul.f32 %v3931_v63, %v6384_v38  ;;  %v4079_v38 = vmul.f32 %v3931_v63, %v6389_v49  ;;  %v4099_v49 = vmul.f32 %v3931_v63, %v6394_v57  ;;  %v4146_v59 = vmul.f32 %v3931_v63, %v3853_v48 }
  0xcd   : > { %v4055_v14 = vmul.f32 %v3931_v63, %v6383_v16  ;;  %v4075_v16 = vmul.f32 %v3931_v63, %v6388_v7  ;;  %v4095_v7 = vmul.f32 %v3931_v63, %v6393_v3  ;;  %v4115_v3 = vmul.f32 %v3931_v63, %v6398_v35  ;;  %6399 = vst [vmem:[#allocation24_spill] sm:$0xff] %v4118_v34  ;;  %v6400_v57 = vld [vmem:[#allocation61_spill] sm:$0xff] }
  0xce   : > { %v4122_v40 = vmul.f32 %v3931_v63, %v6400_v57  ;;  %v4130_v35 = vmul.f32 %v3931_v63, %v6402_v53  ;;  %v6404_v57 = vld [vmem:[#allocation78_spill] sm:$0xff]  ;;  %v4150_v53 = vmul.f32 %v3931_v63, %v4118_v34  ;;  %v4155_v54 = vsel %vm645_vm0, %v1194_v26, %v1195_v15 }
  0xcf   : > { %v4138_v61 = vmul.f32 %v3931_v63, %v6404_v57  ;;  %v1207_v57 = vrot.slane %v3991_v50, 1  ;;  %v4163_v48 = vsel %vm645_vm0, %v1199_v52, %v1200_v55  ;;  %v4166_v63 = vsel %vm645_vm0, %v1200_v55, %v1202_v0 }
  0xd0   : > { %v1214_v26 = vrot.slane %v4007_v24, 1  ;;  %v1215_v34 = vrot.slane %v4011_v41, 1  ;;  %v1219_v15 = vrot.slane %v4019_v8, 1  ;;  %v1220_v50 = vrot.slane %v4023_v27, 1 }
  0xd1   : > { %v1222_v52 = vrot.slane %v4027_v13, 1  ;;  %v1225_v0 = vrot.slane %v4035_v43, 1  ;;  %v1230_v24 = vrot.slane %v4047_v4, 1  ;;  %v1232_v41 = vrot.slane %v4051_v6, 1 }
  0xd2   : > { %v1208_v8 = vsel %vm645_vm0, %v1205_v39, %v1207_v57  ;;  %v1234_v27 = vrot.slane %v4055_v14, 1  ;;  %v1235_v13 = vrot.slane %v4059_v2, 1  ;;  %v1213_v43 = vsel %vm645_vm0, %v1210_v20, %v1212_v47 }
  0xd3   : > { %v1216_v30 = vsel %vm645_vm0, %v1214_v26, %v1215_v34  ;;  %v1237_v21 = vrot.slane %v4063_v36, 1  ;;  %v1218_v4 = vsel %vm645_vm0, %v1215_v34, %v1217_v33  ;;  %v1221_v6 = vsel %vm645_vm0, %v1219_v15, %v1220_v50 }
  0xd4   : > { %v1223_v55 = vsel %vm645_vm0, %v1220_v50, %v1222_v52  ;;  %v1226_v9 = vsel %vm645_vm0, %v1224_v44, %v1225_v0  ;;  %v1228_v14 = vsel %vm645_vm0, %v1225_v0, %v1227_v58  ;;  %v1231_v2 = vsel %vm645_vm0, %v1229_v31, %v1230_v24 }
  0xd5   : > { %v1233_v42 = vsel %vm645_vm0, %v1230_v24, %v1232_v41  ;;  %v1239_v39 = vrot.slane %v4067_v29, 1  ;;  %v1236_v57 = vsel %vm645_vm0, %v1234_v27, %v1235_v13  ;;  %v1240_v36 = vrot.slane %v4071_v25, 1 }
  0xd6   : > { %v1242_v34 = vrot.slane %v4075_v16, 1  ;;  %v1244_v20 = vrot.slane %v4079_v38, 1  ;;  %v1238_v47 = vsel %vm645_vm0, %v1235_v13, %v1237_v21  ;;  %v1245_v26 = vrot.slane %v4083_v37, 1 }
  0xd7   : > { %v1247_v33 = vrot.slane %v4087_v51, 1  ;;  %v1249_v15 = vrot.slane %v4091_v56, 1  ;;  %v1250_v50 = vrot.slane %v4095_v7, 1  ;;  %v1252_v29 = vrot.slane %v4099_v49, 1 }
  0xd8   : > { %v1254_v52 = vrot.slane %v4103_v5, 1  ;;  %v1255_v25 = vrot.slane %v4107_v10, 1  ;;  %v1257_v16 = vrot.slane %v4111_v46, 1  ;;  %v1259_v38 = vrot.slane %v4115_v3, 1 }
  0xd9   : > { %v1260_v44 = vrot.slane %v4122_v40, 1  ;;  %v1262_v37 = vrot.slane %v4126_v22, 1  ;;  %v1241_v51 = vsel %vm645_vm0, %v1239_v39, %v1240_v36  ;;  %v1264_v56 = vrot.slane %v4130_v35, 1 }
  0xda   : > { %v1265_v7 = vrot.slane %v4134_v23, 1  ;;  %v1267_v49 = vrot.slane %v4138_v61, 1  ;;  %v1243_v5 = vsel %vm645_vm0, %v1240_v36, %v1242_v34  ;;  %v1269_v10 = vrot.slane %v4142_v18, 1  ;;  %v6412_v36 = vld [vmem:[#allocation35_spill] sm:$0xff] }
  0xdb   : > { %v1270_v46 = vrot.slane %v4146_v59, 1  ;;  %v1272_v3 = vrot.slane %v4150_v53, 1  ;;  %v1246_v40 = vsel %vm645_vm0, %v1244_v20, %v1245_v26  ;;  %v1248_v22 = vsel %vm645_vm0, %v1245_v26, %v1247_v33 }
  0xdc   : > { %v1251_v0 = vsel %vm645_vm0, %v1249_v15, %v1250_v50  ;;  %v1253_v35 = vsel %vm645_vm0, %v1250_v50, %v1252_v29  ;;  %v1256_v23 = vsel %vm645_vm0, %v1254_v52, %v1255_v25  ;;  %v1258_v61 = vsel %vm645_vm0, %v1255_v25, %v1257_v16  ;;  %v6436_v29 = vld [vmem:[#allocation65_spill] sm:$0xff]  ;;  %v6438_v52 = vld [vmem:[#allocation66_spill] sm:$0xff] }
  0xdd   : > { %v1261_v58 = vsel %vm645_vm0, %v1259_v38, %v1260_v44  ;;  %v1263_v18 = vsel %vm645_vm0, %v1260_v44, %v1262_v37  ;;  %v1266_v59 = vsel %vm645_vm0, %v1264_v56, %v1265_v7  ;;  %v1268_v53 = vsel %vm645_vm0, %v1265_v7, %v1267_v49  ;;  %v6442_v16 = vld [vmem:[#allocation70_spill] sm:$0xff]  ;;  %v6444_v38 = vld [vmem:[#allocation71_spill] sm:$0xff]  ;;  %v6450_v49 = vld [vmem:[#allocation4_spill] sm:$0xff] }
  0xde   : > { %v4234_v31 = vadd.f32 %v4155_v54, %v3868_v12  ;;  %v4238_v24 = vadd.f32 %v4158_v19, %v3871_v60  ;;  %v1271_v41 = vsel %vm645_vm0, %v1269_v10, %v1270_v46  ;;  %v1273_v27 = vsel %vm645_vm0, %v1270_v46, %v1272_v3  ;;  %v6410_v54 = vld [vmem:[#allocation34_spill] sm:$0xff]  ;;  %v6446_v37 = vld [vmem:[#allocation3_spill] sm:$0xff] }
  0xdf   : > { %v4244_v13 = vadd.f32 %v4163_v48, %v3874_v1  ;;  %v4248_v21 = vadd.f32 %v4166_v63, %v3877_v32  ;;  %v4251_v39 = vadd.f32 %v1206_v45, %v3880_v28  ;;  %v4254_v12 = vadd.f32 %v1208_v8, %v3883_v17  ;;  %v6414_v1 = vld [vmem:[#allocation39_spill] sm:$0xff]  ;;  %v6416_v32 = vld [vmem:[#allocation40_spill] sm:$0xff]  ;;  %v6420_v17 = vld [vmem:[#allocation45_spill] sm:$0xff] }
  0xe0   : > { %v4257_v60 = vadd.f32 %v1211_v11, %v3886_v62  ;;  %v4260_v19 = vadd.f32 %v1213_v43, %v6410_v54  ;;  %v4263_v34 = vadd.f32 %v1216_v30, %v6412_v36  ;;  %v4266_v48 = vadd.f32 %v1218_v4, %v6414_v1  ;;  %v6418_v28 = vld [vmem:[#allocation44_spill] sm:$0xff]  ;;  %v6422_v62 = vld [vmem:[#allocation49_spill] sm:$0xff]  ;;  %v6424_v43 = vld [vmem:[#allocation50_spill] sm:$0xff] }
  0xe1   : > { %6406 = vst [vmem:[#allocation25_spill] sm:$0xff] %v4248_v21  ;;  %v4269_v63 = vadd.f32 %v1221_v6, %v6416_v32  ;;  %v4272_v45 = vadd.f32 %v1223_v55, %v6418_v28  ;;  %v4275_v8 = vadd.f32 %v1226_v9, %v6420_v17  ;;  %v4278_v11 = vadd.f32 %v1228_v14, %v6422_v62  ;;  %v6426_v30 = vld [vmem:[#allocation54_spill] sm:$0xff]  ;;  %v6428_v4 = vld [vmem:[#allocation55_spill] sm:$0xff]  ;;  %v6432_v55 = vld [vmem:[#allocation60_spill] sm:$0xff] }
  0xe2   : > { %6407 = vst [vmem:[#allocation5_spill] sm:$0xff] %v4251_v39  ;;  %v4281_v20 = vadd.f32 %v1231_v2, %v6424_v43  ;;  %v4284_v26 = vadd.f32 %v1233_v42, %v6426_v30  ;;  %v4287_v33 = vadd.f32 %v1236_v57, %v6428_v4  ;;  %v6430_v6 = vld [vmem:[#allocation59_spill] sm:$0xff]  ;;  %v4293_v50 = vadd.f32 %v1241_v51, %v6432_v55  ;;  %v6434_v9 = vld [vmem:[#allocation64_spill] sm:$0xff]  ;;  %v6448_v56 = vld [vmem:[#allocation2_spill] sm:$0xff] }
  0xe3   : > { %6408 = vst [vmem:[#allocation7_spill] sm:$0xff] %v4254_v12  ;;  %v4290_v15 = vadd.f32 %v1238_v47, %v6430_v6  ;;  %v4296_v14 = vadd.f32 %v1243_v5, %v6434_v9  ;;  %v4299_v2 = vadd.f32 %v1246_v40, %v6436_v29  ;;  %v4302_v42 = vadd.f32 %v1248_v22, %v6438_v52  ;;  %v6440_v57 = vld [vmem:[#allocation67_spill] sm:$0xff]  ;;  %v6452_v10 = vld [vmem:[#allocation6_spill] sm:$0xff]  ;;  %v6456_v22 = vld [vmem:[#allocation16_spill] sm:$0xff] }
  0xe4   : > { %6409 = vst [vmem:[#allocation10_spill] sm:$0xff] %v4257_v60  ;;  %v4305_v25 = vadd.f32 %v1251_v0, %v6440_v57  ;;  %v4308_v47 = vadd.f32 %v1253_v35, %v6442_v16  ;;  %v4311_v44 = vadd.f32 %v1256_v23, %v6444_v38  ;;  %v4314_v51 = vadd.f32 %v1258_v61, %v6446_v37  ;;  %v6454_v3 = vld [vmem:[#allocation79_spill] sm:$0xff]  ;;  %v2615_v61 = vld [vmem:[%s2749_s28] sm:$0xff]  ;;  %v2617_v36 = vld [vmem:[%s2749_s28 + $0x10] sm:$0x3] }
  0xe5   : > { %6411 = vst [vmem:[#allocation8_spill] sm:$0xff] %v4260_v19  ;;  %v4317_v7 = vadd.f32 %v1261_v58, %v6448_v56  ;;  %v4320_v5 = vadd.f32 %v1263_v18, %v6450_v49  ;;  %v4323_v46 = vadd.f32 %v1266_v59, %v6452_v10  ;;  %v4326_v40 = vadd.f32 %v1268_v53, %v6454_v3  ;;  %v6458_v35 = vld [vmem:[#allocation19_spill] sm:$0xff]  ;;  %v6459_v58 = vld [vmem:[#allocation20_spill] sm:$0xff]  ;;  %v4354_v1 = vld [vmem:[%s2749_s28 + $0x20] sm:$0xff] }
  0xe6   : > { %6413 = vst [vmem:[#allocation9_spill] sm:$0xff] %v4263_v34  ;;  %v4329_v0 = vadd.f32 %v1271_v41, %v6456_v22  ;;  %v4332_v23 = vadd.f32 %v1273_v27, %v6458_v35  ;;  %v4336_v54 = vmul.f32 %v2615_v61, %v6459_v58  ;;  %v2616_v18 = vld [vmem:[%s2749_s28 + $0x8] sm:$0xff]  ;;  %v4344_v53 = vmul.f32 %v2617_v36, %v6459_v58  ;;  %v4347_v41 = vld [vmem:[%s2749_s28 + $0x18] sm:$0xff]  ;;  %v4368_v62 = vld [vmem:[%s2749_s28 + $0x30] sm:$0xff] }
  0xe7   : > { %6415 = vst [vmem:[#allocation13_spill] sm:$0xff] %v4266_v48  ;;  %v4340_v59 = vmul.f32 %v2616_v18, %v6459_v58  ;;  %v4351_v27 = vmul.f32 %v4347_v41, %v6459_v58  ;;  %v4358_v32 = vmul.f32 %v4354_v1, %v6459_v58  ;;  %v4361_v28 = vld [vmem:[%s2749_s28 + $0x28] sm:$0x3]  ;;  %v4372_v43 = vmul.f32 %v4368_v62, %v6459_v58  ;;  %v4375_v30 = vld [vmem:[%s2749_s28 + $0x38] sm:$0xff]  ;;  %v4382_v6 = vld [vmem:[%s2749_s28 + $0x40] sm:$0x3] }
  0xe8   : > { %6417 = vst [vmem:[#allocation11_spill] sm:$0xff] %v4269_v63  ;;  %v4365_v17 = vmul.f32 %v4361_v28, %v6459_v58  ;;  %v4379_v4 = vmul.f32 %v4375_v30, %v6459_v58  ;;  %v4386_v55 = vmul.f32 %v4382_v6, %v6459_v58  ;;  %v4389_v9 = vld [vmem:[%s2749_s28 + $0x48] sm:$0xff]  ;;  %v4396_v52 = vld [vmem:[%s2749_s28 + $0x50] sm:$0xff]  ;;  %v4407_v37 = vld [vmem:[%s2749_s28 + $0x58] sm:$0x3]  ;;  %v1438_v60 = vrot.slane %v4344_v53, 2 }
  0xe9   : > { %6419 = vst [vmem:[#allocation12_spill] sm:$0xff] %v4272_v45  ;;  %v4393_v29 = vmul.f32 %v4389_v9, %v6459_v58  ;;  %v4400_v57 = vmul.f32 %v4396_v52, %v6459_v58  ;;  %v6468_v16 = vld [vmem:[#allocation24_spill] sm:$0xff]  ;;  %v4411_v56 = vmul.f32 %v4407_v37, %v6459_v58  ;;  %v4414_v49 = vld [vmem:[%s2749_s28 + $0x60] sm:$0xff]  ;;  %v4421_v3 = vld [vmem:[%s2749_s28 + $0x68] sm:$0xff]  ;;  %v1441_v12 = vrot.slane %v4358_v32, 2 }
  0xea   : > { %6421 = vst [vmem:[#allocation21_spill] sm:$0xff] %v4275_v8  ;;  %v4404_v38 = vmul.f32 %v6459_v58, %v6468_v16  ;;  %v4418_v10 = vmul.f32 %v4414_v49, %v6459_v58  ;;  %v4425_v22 = vmul.f32 %v4421_v3, %v6459_v58  ;;  %v4428_v35 = vld [vmem:[%s2749_s28 + $0x70] sm:$0x3]  ;;  %v4435_v18 = vld [vmem:[%s2749_s28 + $0x78] sm:$0xff]  ;;  %v4442_v16 = vld [vmem:[%s2749_s28 + $0x80] sm:$0xff]  ;;  %v1443_v39 = vrot.slane %v4365_v17, 2 }
  0xeb   : > { %6423 = vst [vmem:[#allocation14_spill] sm:$0xff] %v4278_v11  ;;  %v4432_v61 = vmul.f32 %v4428_v35, %v6459_v58  ;;  %v4439_v36 = vmul.f32 %v4435_v18, %v6459_v58  ;;  %v1436_v11 = vrot.slane %v4340_v59, 2  ;;  %v4629_v45 = vld [vmem:[%s2749_s28 + $0x140] sm:$0xff]  ;;  %v4650_v59 = vld [vmem:[%s2749_s28 + $0x158] sm:$0xff]  ;;  %v1445_v21 = vrot.slane %v4372_v43, 2 }
  0xec   : > { %6425 = vst [vmem:[#allocation15_spill] sm:$0xff] %v4281_v20  ;;  %v1453_v53 = vrot.slane %v4411_v56, 2  ;;  %v1456_v32 = vrot.slane %v4425_v22, 2 }
  0xed   : > { %6427 = vst [vmem:[#allocation26_spill] sm:$0xff] %v4284_v26  ;;  %v1458_v17 = vrot.slane %v4432_v61, 2 }
  0xee   : > { %6429 = vst [vmem:[#allocation17_spill] sm:$0xff] %v4287_v33 }
  0xef   : > { %6431 = vst [vmem:[#allocation18_spill] sm:$0xff] %v4290_v15  ;;  %v4607_v15 = vld [vmem:[%s2749_s28 + $0x130] sm:$0x3] }
  0xf0   : > { %6433 = vst [vmem:[#allocation31_spill] sm:$0xff] %v4293_v50  ;;  %v4600_v50 = vld [vmem:[%s2749_s28 + $0x128] sm:$0xff] }
  0xf1   : > { %6435 = vst [vmem:[#allocation22_spill] sm:$0xff] %v4296_v14  ;;  %v4593_v14 = vld [vmem:[%s2749_s28 + $0x120] sm:$0xff] }
  0xf2   : > { %6437 = vst [vmem:[#allocation23_spill] sm:$0xff] %v4299_v2  ;;  %v4579_v2 = vld [vmem:[%s2749_s28 + $0x110] sm:$0xff] }
  0xf3   : > { %6439 = vst [vmem:[#allocation36_spill] sm:$0xff] %v4302_v42  ;;  %v4572_v42 = vld [vmem:[%s2749_s28 + $0x108] sm:$0xff] }
  0xf4   : > { %6441 = vst [vmem:[#allocation27_spill] sm:$0xff] %v4305_v25  ;;  %v4565_v25 = vld [vmem:[%s2749_s28 + $0x100] sm:$0x3] }
  0xf5   : > { %6443 = vst [vmem:[#allocation28_spill] sm:$0xff] %v4308_v47  ;;  %v4586_v47 = vld [vmem:[%s2749_s28 + $0x118] sm:$0x3] }
  0xf6   : > { %6445 = vst [vmem:[#allocation41_spill] sm:$0xff] %v4311_v44 }
  0xf7   : > { %6447 = vst [vmem:[#allocation32_spill] sm:$0xff] %v4314_v51 }
  0xf8   : > { %6449 = vst [vmem:[#allocation33_spill] sm:$0xff] %v4317_v7 }
  0xf9   : > { %6451 = vst [vmem:[#allocation46_spill] sm:$0xff] %v4320_v5  ;;  %v4540_v5 = vld [vmem:[%s5879_s3 + $0x8] sm:$0x7] }
  0xfa   : > { %6453 = vst [vmem:[#allocation37_spill] sm:$0xff] %v4323_v46  ;;  %v4524_v46 = vld [vmem:[%s2749_s28 + $0xd8] sm:$0xff]  ;;  %v4626_v8 = vperm.slane %v4540_v5, 0 }
  0xfb   : > { %6455 = vst [vmem:[#allocation38_spill] sm:$0xff] %v4326_v40  ;;  %v4517_v40 = vld [vmem:[%s2749_s28 + $0xd0] sm:$0x3] }
  0xfc   : > { %6457 = vst [vmem:[#allocation51_spill] sm:$0xff] %v4329_v0  ;;  %v4510_v0 = vld [vmem:[%s2749_s28 + $0xc8] sm:$0xff] }
  0xfd   : > { %6460 = vst [vmem:[#allocation42_spill] sm:$0xff] %v4347_v41  ;;  %v1513_v41 = vrot.slane %v4404_v38, 2  ;;  %v4528_v38 = vmul.f32 %v4524_v46, %v6459_v58 }
  0xfe   : > { %6461 = vst [vmem:[#allocation43_spill] sm:$0xff] %v4354_v1  ;;  %v4502_v1 = vld [vmem:[%s2749_s28 + $0xc0] sm:$0xff] }
  0xff   : > { %6462 = vst [vmem:[#allocation68_spill] sm:$0xff] %v4361_v28  ;;  %v6476_v28 = vld [vmem:[#allocation30_spill] sm:$0xff] }
 0x100   : > { %6463 = vst [vmem:[#allocation47_spill] sm:$0xff] %v4368_v62  ;;  %v4495_v62 = vld [vmem:[%s2749_s28 + $0xb8] sm:$0x3] }
 0x101   : > { %6464 = vst [vmem:[#allocation48_spill] sm:$0xff] %v4375_v30  ;;  %v4488_v30 = vld [vmem:[%s2749_s28 + $0xb0] sm:$0xff] }
 0x102   : > { %6465 = vst [vmem:[#allocation69_spill] sm:$0xff] %v4382_v6  ;;  %v4449_v6 = vld [vmem:[%s2749_s28 + $0x88] sm:$0x3] }
 0x103   : > { %6466 = vst [vmem:[#allocation52_spill] sm:$0xff] %v4389_v9  ;;  %v4481_v9 = vld [vmem:[%s2749_s28 + $0xa8] sm:$0xff] }
 0x104   : > { %6467 = vst [vmem:[#allocation53_spill] sm:$0xff] %v4396_v52 }
 0x105   : > { %6469 = vst [vmem:[#allocation72_spill] sm:$0xff] %v4407_v37  ;;  %v4446_v37 = vmul.f32 %v4442_v16, %v6459_v58 }
 0x106   : > { %6470 = vst [vmem:[#allocation56_spill] sm:$0xff] %v4414_v49 }
 0x107   : > { %6471 = vst [vmem:[#allocation57_spill] sm:$0xff] %v4421_v3  ;;  %v4457_v3 = vmul.f32 %v6459_v58, %v6476_v28  ;;  %v1461_v43 = vrot.slane %v4446_v37, 2 }
 0x108   : > { %6472 = vst [vmem:[#allocation76_spill] sm:$0xff] %v4428_v35  ;;  %v4453_v35 = vmul.f32 %v4449_v6, %v6459_v58 }
 0x109   : > { %6473 = vst [vmem:[#allocation58_spill] sm:$0xff] %v4435_v18  ;;  %v4460_v18 = vld [vmem:[%s2749_s28 + $0x90] sm:$0xff]  ;;  %v6499_v33 = vrot.slane %v4457_v3, 2 }
 0x10a   : > { %6474 = vst [vmem:[#allocation61_spill] sm:$0xff] %v4442_v16  ;;  %v4464_v49 = vmul.f32 %v4460_v18, %v6459_v58  ;;  %v4467_v16 = vld [vmem:[%s2749_s28 + $0x98] sm:$0xff] }
 0x10b   : > { %6475 = vst [vmem:[#allocation77_spill] sm:$0xff] %v4449_v6  ;;  %v4471_v52 = vmul.f32 %v4467_v16, %v6459_v58  ;;  %v4474_v6 = vld [vmem:[%s2749_s28 + $0xa0] sm:$0x3]  ;;  %v1514_v26 = vsel %vm887_vm1, %v6499_v33, %v1513_v41  ;;  %v4636_v33 = vld [vmem:[%s2749_s28 + $0x148] sm:$0x3] }
 0x10c   : > { %6477 = vst [vmem:[#allocation62_spill] sm:$0xff] %v4460_v18  ;;  %v4478_v28 = vmul.f32 %v4474_v6, %v6459_v58  ;;  %v4485_v18 = vmul.f32 %v4481_v9, %v6459_v58  ;;  %v4640_v41 = vmul.f32 %v4636_v33, %v6459_v58  ;;  %v1578_v34 = vadd.f32 %v1514_v26, %v4332_v23 }
 0x10d   : > { %6478 = vst [vmem:[#allocation63_spill] sm:$0xff] %v4467_v16  ;;  %v4492_v16 = vmul.f32 %v4488_v30, %v6459_v58  ;;  %v1448_v26 = vrot.slane %v4386_v55, 2  ;;  %v1450_v23 = vrot.slane %v4393_v29, 2  ;;  %v1465_v55 = vrot.slane %v4464_v49, 2 }
 0x10e   : > { %6479 = vst [vmem:[#allocation78_spill] sm:$0xff] %v4474_v6  ;;  %v4499_v6 = vmul.f32 %v4495_v62, %v6459_v58  ;;  %v1466_v29 = vrot.slane %v4471_v52, 2  ;;  %v1468_v56 = vrot.slane %v4478_v28, 2  ;;  %v1459_v28 = vsel %vm887_vm1, %v1456_v32, %v1458_v17 }
 0x10f   : > { %6480 = vst [vmem:[#allocation34_spill] sm:$0xff] %v4481_v9  ;;  %v4506_v9 = vmul.f32 %v4502_v1, %v6459_v58  ;;  %v1471_v22 = vrot.slane %v4492_v16, 2 }
 0x110   : > { %6481 = vst [vmem:[#allocation35_spill] sm:$0xff] %v4488_v30  ;;  %v4514_v30 = vmul.f32 %v4510_v0, %v6459_v58  ;;  %v1473_v37 = vrot.slane %v4499_v6, 2 }
 0x111   : > { %6482 = vst [vmem:[#allocation39_spill] sm:$0xff] %v4495_v62  ;;  %v4521_v62 = vmul.f32 %v4517_v40, %v6459_v58  ;;  %v1475_v6 = vrot.slane %v4506_v9, 2 }
 0x112   : > { %6483 = vst [vmem:[#allocation40_spill] sm:$0xff] %v4502_v1  ;;  %v4531_v1 = vld [vmem:[%s2749_s28 + $0xe0] sm:$0xff] }
 0x113   : > { %6484 = vst [vmem:[#allocation44_spill] sm:$0xff] %v4510_v0  ;;  %v4535_v0 = vmul.f32 %v4531_v1, %v6459_v58 }
 0x114   : > { %6485 = vst [vmem:[#allocation45_spill] sm:$0xff] %v4517_v40  ;;  %v4543_v40 = vld [vmem:[%s2749_s28 + $0xe8] sm:$0x3] }
 0x115   : > { %6486 = vst [vmem:[#allocation49_spill] sm:$0xff] %v4524_v46  ;;  %v4547_v7 = vmul.f32 %v4543_v40, %v6459_v58  ;;  %v4550_v46 = vld [vmem:[%s2749_s28 + $0xf0] sm:$0xff] }
 0x116   : > { %6487 = vst [vmem:[#allocation50_spill] sm:$0xff] %v4531_v1  ;;  %v4554_v51 = vmul.f32 %v4550_v46, %v6459_v58  ;;  %v4557_v1 = vld [vmem:[%s2749_s28 + $0xf8] sm:$0xff] }
 0x117   : > { %6488 = vst [vmem:[#allocation54_spill] sm:$0xff] %v4540_v5  ;;  %v4561_v44 = vmul.f32 %v4557_v1, %v6459_v58  ;;  %v4654_v5 = vmul.f32 %v4650_v59, %v6459_v58 }
 0x118   : > { %6489 = vst [vmem:[#allocation55_spill] sm:$0xff] %v4543_v40  ;;  %v4569_v40 = vmul.f32 %v4565_v25, %v6459_v58 }
 0x119   : > { %6490 = vst [vmem:[#allocation59_spill] sm:$0xff] %v4550_v46  ;;  %v4576_v46 = vmul.f32 %v4572_v42, %v6459_v58 }
 0x11a   : > { %6491 = vst [vmem:[#allocation60_spill] sm:$0xff] %v4557_v1  ;;  %v4583_v1 = vmul.f32 %v4579_v2, %v6459_v58 }
 0x11b   : > { %6492 = vst [vmem:[#allocation64_spill] sm:$0xff] %v4565_v25  ;;  %v4590_v25 = vmul.f32 %v4586_v47, %v6459_v58  ;;  %v1490_v9 = vrot.slane %v4576_v46, 2  ;;  %v1506_v46 = vrot.slane %v4654_v5, 2 }
 0x11c   : > { %6493 = vst [vmem:[#allocation65_spill] sm:$0xff] %v4572_v42  ;;  %v4597_v42 = vmul.f32 %v4593_v14, %v6459_v58 }
 0x11d   : > { %6494 = vst [vmem:[#allocation66_spill] sm:$0xff] %v4579_v2  ;;  %v4604_v2 = vmul.f32 %v4600_v50, %v6459_v58 }
 0x11e   : > { %6495 = vst [vmem:[#allocation67_spill] sm:$0xff] %v4586_v47  ;;  %v4611_v47 = vmul.f32 %v4607_v15, %v6459_v58 }
 0x11f   : > { %6496 = vst [vmem:[#allocation70_spill] sm:$0xff] %v4593_v14  ;;  %v4617_v14 = vld [vmem:[%s2749_s28 + $0x138] sm:$0xff] }
 0x120   : > { %6497 = vst [vmem:[#allocation71_spill] sm:$0xff] %v4600_v50  ;;  %v4621_v20 = vmul.f32 %v4617_v14, %v6459_v58  ;;  %v1435_v50 = vrot.slane %v4336_v54, 2 }
 0x121   : > { %6498 = vst [vmem:[#allocation3_spill] sm:$0xff] %v4607_v15  ;;  %v4633_v15 = vmul.f32 %v4629_v45, %v6459_v58 }
 0x122   : > { %6500 = vst [vmem:[#allocation2_spill] sm:$0xff] %v4617_v14  ;;  %v4643_v14 = vld [vmem:[%s2749_s28 + $0x150] sm:$0xff] }
 0x123   : > { %6501 = vst [vmem:[#allocation4_spill] sm:$0xff] %v4629_v45  ;;  %v4647_v54 = vmul.f32 %v4643_v14, %v6459_v58  ;;  %v4657_v45 = vld [vmem:[%s2749_s28 + $0x160] sm:$0x3] }
 0x124   : > { %6502 = vst [vmem:[#allocation6_spill] sm:$0xff] %v4636_v33  ;;  %v4661_v63 = vmul.f32 %v4657_v45, %v6459_v58  ;;  %v6506_v33 = vld [vmem:[#allocation29_spill] sm:$0xff] }
 0x125   : > { %6503 = vst [vmem:[#allocation79_spill] sm:$0xff] %v4643_v14  ;;  %v4665_v48 = vmul.f32 %v6459_v58, %v6506_v33  ;;  %v6507_v14 = vld [vmem:[#allocation74_spill] sm:$0xff]  ;;  %v1446_v58 = vrot.slane %v4379_v4, 2  ;;  %v1463_v4 = vrot.slane %v4453_v35, 2 }
 0x126   : > { %6504 = vst [vmem:[#allocation16_spill] sm:$0xff] %v4650_v59  ;;  %v1611_v19 = vmul.f32 %v4626_v8, %v6507_v14  ;;  %v1440_v59 = vrot.slane %v4351_v27, 2  ;;  %v1451_v14 = vrot.slane %v4400_v57, 2  ;;  %v1455_v27 = vrot.slane %v4418_v10, 2 }
 0x127   : > { %6505 = vst [vmem:[#allocation19_spill] sm:$0xff] %v4657_v45  ;;  %v4675_v45 = vsel %vm887_vm1, %v1435_v50, %v1436_v11  ;;  %v1460_v50 = vrot.slane %v4439_v36, 2  ;;  %v1439_v57 = vsel %vm887_vm1, %v1436_v11, %v1438_v60  ;;  %v1470_v10 = vrot.slane %v4485_v18, 2 }
 0x128   : > { %v4687_v33 = vadd.f32 %v1611_v19, %v1578_v34  ;;  %v1442_v61 = vsel %vm887_vm1, %v1440_v59, %v1441_v12  ;;  %v1444_v19 = vsel %vm887_vm1, %v1441_v12, %v1443_v39  ;;  %v1447_v34 = vsel %vm887_vm1, %v1445_v21, %v1446_v58 }
 0x129   : > { %v1449_v49 = vsel %vm887_vm1, %v1446_v58, %v1448_v26  ;;  %v1452_v52 = vsel %vm887_vm1, %v1450_v23, %v1451_v14  ;;  %v1454_v60 = vsel %vm887_vm1, %v1451_v14, %v1453_v53  ;;  %v1457_v11 = vsel %vm887_vm1, %v1455_v27, %v1456_v32 }
 0x12a   : > { %6508 = vst [vmem:[#allocation20_spill] sm:$0xff] %v4687_v33  ;;  %v1462_v16 = vsel %vm887_vm1, %v1460_v50, %v1461_v43  ;;  %v1464_v35 = vsel %vm887_vm1, %v1461_v43, %v1463_v4  ;;  %v1467_v39 = vsel %vm887_vm1, %v1465_v55, %v1466_v29  ;;  %v1469_v21 = vsel %vm887_vm1, %v1466_v29, %v1468_v56  ;;  %v6570_v33 = vld [vmem:[#allocation75_spill] sm:$0xff] }
 0x12b   : > { %v1472_v12 = vsel %vm887_vm1, %v1470_v10, %v1471_v22  ;;  %v1476_v18 = vrot.slane %v4514_v30, 2  ;;  %v1474_v14 = vsel %vm887_vm1, %v1471_v22, %v1473_v37  ;;  %v1478_v36 = vrot.slane %v4521_v62, 2  ;;  %v6510_v37 = vld [vmem:[#allocation25_spill] sm:$0xff] }
 0x12c   : > { %v1480_v59 = vrot.slane %v4528_v38, 2  ;;  %v1481_v58 = vrot.slane %v4535_v0, 2  ;;  %v1483_v26 = vrot.slane %v4547_v7, 2  ;;  %v1485_v23 = vrot.slane %v4554_v51, 2 }
 0x12d   : > { %v1486_v53 = vrot.slane %v4561_v44, 2  ;;  %v1488_v27 = vrot.slane %v4569_v40, 2  ;;  %v1491_v30 = vrot.slane %v4583_v1, 2  ;;  %v1493_v32 = vrot.slane %v4590_v25, 2 }
 0x12e   : > { %v1495_v62 = vrot.slane %v4597_v42, 2  ;;  %v1496_v38 = vrot.slane %v4604_v2, 2  ;;  %v1498_v0 = vrot.slane %v4611_v47, 2  ;;  %v1500_v7 = vrot.slane %v4621_v20, 2 }
 0x12f   : > { %v1501_v51 = vrot.slane %v4633_v15, 2  ;;  %v1503_v44 = vrot.slane %v4640_v41, 2  ;;  %v1505_v40 = vrot.slane %v4647_v54, 2  ;;  %v1508_v1 = vrot.slane %v4661_v63, 2 }
 0x130   : > { %v1477_v25 = vsel %vm887_vm1, %v1475_v6, %v1476_v18  ;;  %v1479_v42 = vsel %vm887_vm1, %v1476_v18, %v1478_v36  ;;  %v1482_v2 = vsel %vm887_vm1, %v1480_v59, %v1481_v58  ;;  %v1510_v47 = vrot.slane %v4665_v48, 2  ;;  %v6511_v18 = vld [vmem:[#allocation5_spill] sm:$0xff]  ;;  %v6512_v59 = vld [vmem:[#allocation7_spill] sm:$0xff] }
 0x131   : > { %v1484_v20 = vsel %vm887_vm1, %v1481_v58, %v1483_v26  ;;  %v1487_v15 = vsel %vm887_vm1, %v1485_v23, %v1486_v53  ;;  %v1489_v41 = vsel %vm887_vm1, %v1486_v53, %v1488_v27  ;;  %v1492_v54 = vsel %vm887_vm1, %v1490_v9, %v1491_v30 }
 0x132   : > { %v1494_v5 = vsel %vm887_vm1, %v1491_v30, %v1493_v32  ;;  %v1497_v63 = vsel %vm887_vm1, %v1495_v62, %v1496_v38  ;;  %v1499_v17 = vsel %vm887_vm1, %v1496_v38, %v1498_v0  ;;  %v1502_v50 = vsel %vm887_vm1, %v1500_v7, %v1501_v51 }
 0x133   : > { %v1504_v43 = vsel %vm887_vm1, %v1501_v51, %v1503_v44  ;;  %v1507_v48 = vsel %vm887_vm1, %v1505_v40, %v1506_v46  ;;  %v1509_v4 = vsel %vm887_vm1, %v1506_v46, %v1508_v1  ;;  %v4750_v55 = vadd.f32 %v4675_v45, %v4234_v31  ;;  %v6513_v31 = vld [vmem:[#allocation10_spill] sm:$0xff]  ;;  %v6530_v46 = vld [vmem:[#allocation28_spill] sm:$0xff] }
 0x134   : > { %v6509_v29 = vrot.slane %v4457_v3, 2  ;;  %v4756_v10 = vadd.f32 %v1439_v57, %v4238_v24  ;;  %v4759_v22 = vadd.f32 %v1442_v61, %v4244_v13  ;;  %v4762_v6 = vadd.f32 %v1444_v19, %v6510_v37  ;;  %v6514_v3 = vld [vmem:[#allocation8_spill] sm:$0xff]  ;;  %v6515_v24 = vld [vmem:[#allocation9_spill] sm:$0xff]  ;;  %v6517_v19 = vld [vmem:[#allocation11_spill] sm:$0xff] }
 0x135   : > { %v4765_v36 = vadd.f32 %v1447_v34, %v6511_v18  ;;  %v4768_v58 = vadd.f32 %v1449_v49, %v6512_v59  ;;  %v4771_v45 = vadd.f32 %v1452_v52, %v6513_v31  ;;  %v4774_v26 = vadd.f32 %v1454_v60, %v6514_v3  ;;  %v6516_v13 = vld [vmem:[#allocation13_spill] sm:$0xff]  ;;  %v6518_v34 = vld [vmem:[#allocation12_spill] sm:$0xff]  ;;  %v6520_v52 = vld [vmem:[#allocation14_spill] sm:$0xff] }
 0x136   : > { %v1512_v56 = vsel %vm887_vm1, %v1510_v47, %v6509_v29  ;;  %v4777_v57 = vadd.f32 %v1457_v11, %v6515_v24  ;;  %v4780_v61 = vadd.f32 %v1459_v28, %v6516_v13  ;;  %v4783_v23 = vadd.f32 %v1462_v16, %v6517_v19  ;;  %v6519_v49 = vld [vmem:[#allocation21_spill] sm:$0xff]  ;;  %v6521_v60 = vld [vmem:[#allocation15_spill] sm:$0xff]  ;;  %v6522_v11 = vld [vmem:[#allocation26_spill] sm:$0xff] }
 0x137   : > { %v4786_v53 = vadd.f32 %v1464_v35, %v6518_v34  ;;  %v4789_v27 = vadd.f32 %v1467_v39, %v6519_v49  ;;  %v4792_v9 = vadd.f32 %v1469_v21, %v6520_v52  ;;  %v4795_v30 = vadd.f32 %v1472_v12, %v6521_v60  ;;  %v6523_v28 = vld [vmem:[#allocation17_spill] sm:$0xff]  ;;  %v6524_v16 = vld [vmem:[#allocation18_spill] sm:$0xff]  ;;  %v6525_v35 = vld [vmem:[#allocation31_spill] sm:$0xff] }
 0x138   : > { %v4798_v32 = vadd.f32 %v1474_v14, %v6522_v11  ;;  %v4801_v62 = vadd.f32 %v1477_v25, %v6523_v28  ;;  %v4804_v38 = vadd.f32 %v1479_v42, %v6524_v16  ;;  %v4807_v0 = vadd.f32 %v1482_v2, %v6525_v35  ;;  %v6526_v39 = vld [vmem:[#allocation22_spill] sm:$0xff]  ;;  %v6527_v21 = vld [vmem:[#allocation23_spill] sm:$0xff]  ;;  %v6528_v12 = vld [vmem:[#allocation36_spill] sm:$0xff] }
 0x139   : > { %v4810_v7 = vadd.f32 %v1484_v20, %v6526_v39  ;;  %v4813_v51 = vadd.f32 %v1487_v15, %v6527_v21  ;;  %v4816_v44 = vadd.f32 %v1489_v41, %v6528_v12  ;;  %v6529_v14 = vld [vmem:[#allocation27_spill] sm:$0xff]  ;;  %v4822_v1 = vadd.f32 %v1494_v5, %v6530_v46  ;;  %v6532_v25 = vld [vmem:[#allocation41_spill] sm:$0xff]  ;;  %v6534_v2 = vld [vmem:[#allocation32_spill] sm:$0xff] }
 0x13a   : > { %v4819_v40 = vadd.f32 %v1492_v54, %v6529_v14  ;;  %v4825_v42 = vadd.f32 %v1497_v63, %v6532_v25  ;;  %v4828_v47 = vadd.f32 %v1499_v17, %v6534_v2  ;;  %v6536_v20 = vld [vmem:[#allocation33_spill] sm:$0xff]  ;;  %v6538_v15 = vld [vmem:[#allocation46_spill] sm:$0xff]  ;;  %v6544_v5 = vld [vmem:[#allocation51_spill] sm:$0xff] }
 0x13b   : > { %6531 = vst [vmem:[#allocation25_spill] sm:$0xff] %v4822_v1  ;;  %v4831_v29 = vadd.f32 %v1502_v50, %v6536_v20  ;;  %v4834_v37 = vadd.f32 %v1504_v43, %v6538_v15  ;;  %v6540_v41 = vld [vmem:[#allocation37_spill] sm:$0xff]  ;;  %v6542_v54 = vld [vmem:[#allocation38_spill] sm:$0xff]  ;;  %v4843_v31 = vadd.f32 %v1512_v56, %v6544_v5  ;;  %v6548_v50 = vld [vmem:[#allocation43_spill] sm:$0xff] }
 0x13c   : > { %6533 = vst [vmem:[#allocation5_spill] sm:$0xff] %v4825_v42  ;;  %v4837_v18 = vadd.f32 %v1507_v48, %v6540_v41  ;;  %v4840_v59 = vadd.f32 %v1509_v4, %v6542_v54  ;;  %v6546_v63 = vld [vmem:[#allocation54_spill] sm:$0xff]  ;;  %v1581_v13 = vmul.f32 %v6548_v50, %v4626_v8  ;;  %v6549_v43 = vld [vmem:[#allocation47_spill] sm:$0xff]  ;;  %v6550_v48 = vld [vmem:[#allocation48_spill] sm:$0xff] }
 0x13d   : > { %6535 = vst [vmem:[#allocation7_spill] sm:$0xff] %v4828_v47  ;;  %v4846_v3 = vperm.slane %v6546_v63, 1  ;;  %v6547_v17 = vld [vmem:[#allocation42_spill] sm:$0xff]  ;;  %v1582_v19 = vmul.f32 %v6549_v43, %v4626_v8  ;;  %v1583_v34 = vmul.f32 %v6550_v48, %v4626_v8  ;;  %v6551_v4 = vld [vmem:[#allocation52_spill] sm:$0xff]  ;;  %v6552_v56 = vld [vmem:[#allocation53_spill] sm:$0xff] }
 0x13e   : > { %6537 = vst [vmem:[#allocation10_spill] sm:$0xff] %v4831_v29  ;;  %v1580_v24 = vmul.f32 %v6547_v17, %v4626_v8  ;;  %v1584_v49 = vmul.f32 %v6551_v4, %v4626_v8  ;;  %v1585_v52 = vmul.f32 %v6552_v56, %v4626_v8  ;;  %v6553_v60 = vld [vmem:[#allocation56_spill] sm:$0xff]  ;;  %v6554_v28 = vld [vmem:[#allocation57_spill] sm:$0xff]  ;;  %v6555_v35 = vld [vmem:[#allocation58_spill] sm:$0xff] }
 0x13f   : > { %6539 = vst [vmem:[#allocation8_spill] sm:$0xff] %v4834_v37  ;;  %v1586_v11 = vmul.f32 %v6553_v60, %v4626_v8  ;;  %v1587_v16 = vmul.f32 %v6554_v28, %v4626_v8  ;;  %v1588_v39 = vmul.f32 %v6555_v35, %v4626_v8  ;;  %v6556_v21 = vld [vmem:[#allocation61_spill] sm:$0xff]  ;;  %v6557_v14 = vld [vmem:[#allocation62_spill] sm:$0xff]  ;;  %v6558_v25 = vld [vmem:[#allocation63_spill] sm:$0xff] }
 0x140   : > { %6541 = vst [vmem:[#allocation9_spill] sm:$0xff] %v4837_v18  ;;  %v1589_v12 = vmul.f32 %v6556_v21, %v4626_v8  ;;  %v1590_v46 = vmul.f32 %v6557_v14, %v4626_v8  ;;  %v1591_v2 = vmul.f32 %v6558_v25, %v4626_v8  ;;  %v6559_v20 = vld [vmem:[#allocation34_spill] sm:$0xff]  ;;  %v6560_v41 = vld [vmem:[#allocation35_spill] sm:$0xff]  ;;  %v6561_v5 = vld [vmem:[#allocation40_spill] sm:$0xff] }
 0x141   : > { %6543 = vst [vmem:[#allocation13_spill] sm:$0xff] %v4840_v59  ;;  %v1592_v15 = vmul.f32 %v6559_v20, %v4626_v8  ;;  %v1593_v54 = vmul.f32 %v6560_v41, %v4626_v8  ;;  %v6562_v59 = vld [vmem:[#allocation44_spill] sm:$0xff]  ;;  %v6563_v21 = vld [vmem:[#allocation49_spill] sm:$0xff]  ;;  %v6564_v14 = vld [vmem:[#allocation50_spill] sm:$0xff] }
 0x142   : > { %6545 = vst [vmem:[#allocation11_spill] sm:$0xff] %v4843_v31  ;;  %v1594_v31 = vmul.f32 %v6561_v5, %v4626_v8  ;;  %v1595_v63 = vmul.f32 %v6562_v59, %v4626_v8  ;;  %v1596_v35 = vmul.f32 %v6563_v21, %v4626_v8  ;;  %v1597_v28 = vmul.f32 %v6564_v14, %v4626_v8  ;;  %v6565_v25 = vld [vmem:[#allocation59_spill] sm:$0xff]  ;;  %v6566_v20 = vld [vmem:[#allocation60_spill] sm:$0xff]  ;;  %v6567_v41 = vld [vmem:[#allocation65_spill] sm:$0xff] }
 0x143   : > { %v1598_v60 = vmul.f32 %v6565_v25, %v4626_v8  ;;  %v1599_v56 = vmul.f32 %v6566_v20, %v4626_v8  ;;  %v1600_v4 = vmul.f32 %v6567_v41, %v4626_v8  ;;  %v6568_v5 = vld [vmem:[#allocation66_spill] sm:$0xff]  ;;  %v1692_v21 = vmul.f32 %v4846_v3, %v6570_v33  ;;  %v6571_v14 = vld [vmem:[#allocation71_spill] sm:$0xff]  ;;  %v6573_v20 = vld [vmem:[#allocation4_spill] sm:$0xff] }
 0x144   : > { %v1601_v48 = vmul.f32 %v6568_v5, %v4626_v8  ;;  %v6569_v59 = vld [vmem:[#allocation70_spill] sm:$0xff]  ;;  %v1603_v50 = vmul.f32 %v6571_v14, %v4626_v8  ;;  %v1605_v18 = vmul.f32 %v6573_v20, %v4626_v8  ;;  %v6574_v41 = vld [vmem:[#allocation79_spill] sm:$0xff]  ;;  %v6575_v5 = vld [vmem:[#allocation16_spill] sm:$0xff] }
 0x145   : > { %v1602_v43 = vmul.f32 %v6569_v59, %v4626_v8  ;;  %v6572_v25 = vld [vmem:[#allocation2_spill] sm:$0xff]  ;;  %v1606_v37 = vmul.f32 %v6574_v41, %v4626_v8  ;;  %v1607_v29 = vmul.f32 %v6575_v5, %v4626_v8  ;;  %v6576_v47 = vld [vmem:[#allocation29_spill] sm:$0xff]  ;;  %v4921_v41 = vadd.f32 %v1580_v24, %v4750_v55 }
 0x146   : > { %v1604_v17 = vmul.f32 %v6572_v25, %v4626_v8  ;;  %v1608_v59 = vmul.f32 %v4626_v8, %v6576_v47  ;;  %v6577_v42 = vld [vmem:[#allocation30_spill] sm:$0xff]  ;;  %v6581_v25 = vld [vmem:[#allocation73_spill] sm:$0xff]  ;;  %v4924_v5 = vadd.f32 %v1581_v13, %v4756_v10  ;;  %v4927_v47 = vadd.f32 %v1582_v19, %v4759_v22 }
 0x147   : > { %v4910_v33 = vmul.f32 %v4626_v8, %v6577_v42  ;;  %v6579_v14 = vld [vmem:[#allocation74_spill] sm:$0xff]  ;;  %v4918_v20 = vmul.f32 %v4626_v8, %v6581_v25  ;;  %6583 = vst [vmem:[#allocation15_spill] sm:$0xff] %v4921_v41  ;;  %v4930_v42 = vadd.f32 %v1583_v34, %v4762_v6  ;;  %v1819_v8 = vrot.slane %v1692_v21, 1 }
 0x148   : > { %v4914_v1 = vmul.f32 %v4846_v3, %v6579_v14  ;;  %6584 = vst [vmem:[#allocation26_spill] sm:$0xff] %v4924_v5  ;;  %v4936_v14 = vadd.f32 %v1585_v52, %v4768_v58  ;;  %v4942_v55 = vadd.f32 %v1587_v16, %v4774_v26  ;;  %v4945_v10 = vadd.f32 %v1588_v39, %v4777_v57  ;;  %v6612_v19 = vld [vmem:[#allocation10_spill] sm:$0xff]  ;;  %v6626_v16 = vld [vmem:[#allocation52_spill] sm:$0xff]  ;;  %v6627_v39 = vld [vmem:[#allocation53_spill] sm:$0xff] }
 0x149   : > { %6578 = vst [vmem:[#allocation12_spill] sm:$0xff] %v4910_v33  ;;  %v4933_v33 = vadd.f32 %v1584_v49, %v4765_v36  ;;  %v4948_v22 = vadd.f32 %v1589_v12, %v4780_v61  ;;  %v4951_v6 = vadd.f32 %v1590_v46, %v4783_v23  ;;  %v4954_v36 = vadd.f32 %v1591_v2, %v4786_v53  ;;  %v6620_v49 = vld [vmem:[#allocation20_spill] sm:$0xff] }
 0x14a   : > { %6580 = vst [vmem:[#allocation21_spill] sm:$0xff] %v4914_v1  ;;  %v4957_v58 = vadd.f32 %v1592_v15, %v4789_v27  ;;  %v4961_v26 = vadd.f32 %v1593_v54, %v4792_v9  ;;  %v4964_v57 = vadd.f32 %v1594_v31, %v4795_v30  ;;  %v4967_v61 = vadd.f32 %v1595_v63, %v4798_v32  ;;  %v6628_v12 = vld [vmem:[#allocation72_spill] sm:$0xff]  ;;  %v6630_v54 = vld [vmem:[#allocation57_spill] sm:$0xff] }
 0x14b   : > { %6582 = vst [vmem:[#allocation14_spill] sm:$0xff] %v4918_v20  ;;  %v4939_v20 = vadd.f32 %v1586_v11, %v4771_v45  ;;  %v6075_v45 = vrot.slane %v4914_v1, 1  ;;  %v4970_v23 = vadd.f32 %v1596_v35, %v4801_v62  ;;  %v4973_v53 = vadd.f32 %v1597_v28, %v4804_v38  ;;  %v6606_v38 = vld [vmem:[#allocation25_spill] sm:$0xff]  ;;  %v6629_v2 = vld [vmem:[#allocation56_spill] sm:$0xff] }
 0x14c   : > { %6585 = vst [vmem:[#allocation17_spill] sm:$0xff] %v4927_v47  ;;  %v4976_v27 = vadd.f32 %v1598_v60, %v4807_v0  ;;  %v4979_v24 = vadd.f32 %v1599_v56, %v4810_v7  ;;  %v4985_v30 = vadd.f32 %v1600_v4, %v4813_v51  ;;  %v4988_v32 = vadd.f32 %v1601_v48, %v4816_v44  ;;  %v6608_v0 = vld [vmem:[#allocation5_spill] sm:$0xff]  ;;  %v6610_v7 = vld [vmem:[#allocation7_spill] sm:$0xff]  ;;  %v6614_v51 = vld [vmem:[#allocation8_spill] sm:$0xff] }
 0x14d   : > { %6586 = vst [vmem:[#allocation18_spill] sm:$0xff] %v4930_v42  ;;  %v1820_v9 = vsel %vm645_vm0, %v6075_v45, %v1819_v8  ;;  %v4991_v62 = vadd.f32 %v1602_v43, %v4819_v40  ;;  %v4994_v31 = vadd.f32 %v1603_v50, %v6606_v38  ;;  %v4997_v63 = vadd.f32 %v1604_v17, %v6608_v0  ;;  %v6616_v44 = vld [vmem:[#allocation9_spill] sm:$0xff]  ;;  %v6618_v40 = vld [vmem:[#allocation42_spill] sm:$0xff]  ;;  %v6619_v50 = vld [vmem:[#allocation43_spill] sm:$0xff] }
 0x14e   : > { %6587 = vst [vmem:[#allocation31_spill] sm:$0xff] %v4933_v33  ;;  %v5000_v13 = vadd.f32 %v1605_v18, %v6610_v7  ;;  %v5003_v34 = vadd.f32 %v1606_v37, %v6612_v19  ;;  %v5006_v4 = vadd.f32 %v1607_v29, %v6614_v51  ;;  %v5009_v48 = vadd.f32 %v1608_v59, %v6616_v44  ;;  %v6622_v37 = vld [vmem:[#allocation68_spill] sm:$0xff]  ;;  %v6623_v29 = vld [vmem:[#allocation47_spill] sm:$0xff]  ;;  %v6625_v11 = vld [vmem:[#allocation69_spill] sm:$0xff] }
 0x14f   : > { %6588 = vst [vmem:[#allocation22_spill] sm:$0xff] %v4936_v14  ;;  %v5013_v43 = vmul.f32 %v6618_v40, %v4846_v3  ;;  %v5017_v17 = vmul.f32 %v6619_v50, %v4846_v3  ;;  %v5020_v18 = vadd.f32 %v1820_v9, %v6620_v49  ;;  %v5024_v56 = vmul.f32 %v6622_v37, %v4846_v3  ;;  %v6624_v59 = vld [vmem:[#allocation48_spill] sm:$0xff]  ;;  %v6632_v0 = vld [vmem:[#allocation58_spill] sm:$0xff]  ;;  %v6633_v19 = vld [vmem:[#allocation61_spill] sm:$0xff] }
 0x150   : > { %6589 = vst [vmem:[#allocation23_spill] sm:$0xff] %v4939_v20  ;;  %v5028_v52 = vmul.f32 %v6623_v29, %v4846_v3  ;;  %v5032_v60 = vmul.f32 %v6624_v59, %v4846_v3  ;;  %v5036_v28 = vmul.f32 %v6625_v11, %v4846_v3  ;;  %v5040_v35 = vmul.f32 %v6626_v16, %v4846_v3  ;;  %v6631_v9 = vld [vmem:[#allocation76_spill] sm:$0xff]  ;;  %v6634_v44 = vld [vmem:[#allocation77_spill] sm:$0xff]  ;;  %v6635_v45 = vld [vmem:[#allocation62_spill] sm:$0xff] }
 0x151   : > { %6590 = vst [vmem:[#allocation36_spill] sm:$0xff] %v4942_v55  ;;  %v5044_v21 = vmul.f32 %v6627_v39, %v4846_v3  ;;  %v5048_v46 = vmul.f32 %v6628_v12, %v4846_v3  ;;  %v5052_v15 = vmul.f32 %v6629_v2, %v4846_v3  ;;  %v5056_v8 = vmul.f32 %v6630_v54, %v4846_v3  ;;  %v6651_v55 = vld [vmem:[#allocation66_spill] sm:$0xff]  ;;  %v6659_v20 = vld [vmem:[#allocation79_spill] sm:$0xff]  ;;  %v6660_v14 = vld [vmem:[#allocation16_spill] sm:$0xff] }
 0x152   : > { %6591 = vst [vmem:[#allocation27_spill] sm:$0xff] %v4945_v10  ;;  %v1656_v38 = vmul.f32 %v6631_v9, %v4846_v3  ;;  %v1657_v7 = vmul.f32 %v6632_v0, %v4846_v3  ;;  %v5064_v51 = vmul.f32 %v6633_v19, %v4846_v3  ;;  %v1659_v49 = vmul.f32 %v6634_v44, %v4846_v3  ;;  %v6650_v10 = vld [vmem:[#allocation65_spill] sm:$0xff]  ;;  %v6655_v44 = vld [vmem:[#allocation3_spill] sm:$0xff]  ;;  %v6656_v19 = vld [vmem:[#allocation2_spill] sm:$0xff] }
 0x153   : > { %6592 = vst [vmem:[#allocation28_spill] sm:$0xff] %v4948_v22  ;;  %v1660_v1 = vmul.f32 %v6635_v45, %v4846_v3  ;;  %v6646_v22 = vld [vmem:[#allocation55_spill] sm:$0xff]  ;;  %v6657_v0 = vld [vmem:[#allocation4_spill] sm:$0xff]  ;;  %v6658_v9 = vld [vmem:[#allocation6_spill] sm:$0xff]  ;;  %v1741_v2 = vrot.slane %v5013_v43, 1  ;;  %v1744_v12 = vrot.slane %v5024_v56, 1 }
 0x154   : > { %6593 = vst [vmem:[#allocation41_spill] sm:$0xff] %v4951_v6  ;;  %v6645_v6 = vld [vmem:[#allocation50_spill] sm:$0xff]  ;;  %v6654_v45 = vld [vmem:[#allocation71_spill] sm:$0xff]  ;;  %v6662_v42 = vld [vmem:[#allocation29_spill] sm:$0xff]  ;;  %v1747_v47 = vrot.slane %v5032_v60, 1  ;;  %v1751_v5 = vrot.slane %v5040_v35, 1 }
 0x155   : > { %6594 = vst [vmem:[#allocation32_spill] sm:$0xff] %v4954_v36  ;;  %v6661_v33 = vld [vmem:[#allocation19_spill] sm:$0xff]  ;;  %v6663_v54 = vld [vmem:[#allocation30_spill] sm:$0xff]  ;;  %v1754_v41 = vrot.slane %v5048_v46, 1  ;;  %v1757_v43 = vrot.slane %v5056_v8, 1  ;;  %v1759_v39 = vrot.slane %v1656_v38, 1 }
 0x156   : > { %6595 = vst [vmem:[#allocation33_spill] sm:$0xff] %v4957_v58  ;;  %v6644_v58 = vld [vmem:[#allocation49_spill] sm:$0xff]  ;;  %v1762_v56 = vrot.slane %v5064_v51, 1  ;;  %v6664_v16 = vld [vmem:[#allocation24_spill] sm:$0xff]  ;;  %v1764_v60 = vrot.slane %v1659_v49, 1 }
 0x157   : > { %6596 = vst [vmem:[#allocation46_spill] sm:$0xff] %v4961_v26  ;;  %v5104_v36 = vmul.f32 %v6644_v58, %v4846_v3 }
 0x158   : > { %6597 = vst [vmem:[#allocation37_spill] sm:$0xff] %v4964_v57  ;;  %v6643_v57 = vld [vmem:[#allocation45_spill] sm:$0xff] }
 0x159   : > { %6598 = vst [vmem:[#allocation38_spill] sm:$0xff] %v4967_v61  ;;  %v5100_v26 = vmul.f32 %v6643_v57, %v4846_v3 }
 0x15a   : > { %6599 = vst [vmem:[#allocation51_spill] sm:$0xff] %v4970_v23  ;;  %v6642_v23 = vld [vmem:[#allocation44_spill] sm:$0xff] }
 0x15b   : > { %6600 = vst [vmem:[#allocation73_spill] sm:$0xff] %v4973_v53  ;;  %v5096_v61 = vmul.f32 %v6642_v23, %v4846_v3 }
 0x15c   : > { %6601 = vst [vmem:[#allocation80_spill] sm:$0xff] %v4976_v27  ;;  %v6641_v27 = vld [vmem:[#allocation40_spill] sm:$0xff] }
 0x15d   : > { %6602 = vst [vmem:[#allocation81_spill] sm:$0xff] %v4979_v24  ;;  %v5092_v53 = vmul.f32 %v6641_v27, %v4846_v3  ;;  %v5112_v27 = vmul.f32 %v6646_v22, %v4846_v3  ;;  %v5132_v22 = vmul.f32 %v6651_v55, %v4846_v3  ;;  %v5152_v55 = vmul.f32 %v6656_v19, %v4846_v3 }
 0x15e   : > { %6603 = vst [vmem:[#allocation82_spill] sm:$0xff] %v4985_v30  ;;  %v6640_v30 = vld [vmem:[#allocation39_spill] sm:$0xff]  ;;  %v5172_v19 = vmul.f32 %v6661_v33, %v4846_v3  ;;  %v1749_v33 = vrot.slane %v5036_v28, 1  ;;  %v1766_v28 = vrot.slane %v1660_v1, 1 }
 0x15f   : > { %6604 = vst [vmem:[#allocation83_spill] sm:$0xff] %v4988_v32  ;;  %v5088_v24 = vmul.f32 %v6640_v30, %v4846_v3  ;;  %v5108_v30 = vmul.f32 %v6645_v6, %v4846_v3  ;;  %v5128_v6 = vmul.f32 %v6650_v10, %v4846_v3  ;;  %v5148_v10 = vmul.f32 %v6655_v44, %v4846_v3 }
 0x160   : > { %6605 = vst [vmem:[#allocation84_spill] sm:$0xff] %v4991_v62  ;;  %v6639_v62 = vld [vmem:[#allocation35_spill] sm:$0xff]  ;;  %v5168_v44 = vmul.f32 %v6660_v14, %v4846_v3  ;;  %v1746_v14 = vrot.slane %v5028_v52, 1  ;;  %v5196_v52 = vmul.f32 %v4846_v3, %v6664_v16  ;;  %v5214_v16 = vsel %vm645_vm0, %v1747_v47, %v1749_v33 }
 0x161   : > { %6607 = vst [vmem:[#allocation25_spill] sm:$0xff] %v4994_v31  ;;  %v5084_v32 = vmul.f32 %v6639_v62, %v4846_v3  ;;  %v6647_v62 = vld [vmem:[#allocation59_spill] sm:$0xff]  ;;  %v5233_v33 = vsel %vm645_vm0, %v1762_v56, %v1764_v60  ;;  %v1782_v51 = vrot.slane %v5108_v30, 1  ;;  %v1784_v49 = vrot.slane %v5112_v27, 1 }
 0x162   : > { %6609 = vst [vmem:[#allocation5_spill] sm:$0xff] %v4997_v63  ;;  %v6638_v63 = vld [vmem:[#allocation34_spill] sm:$0xff]  ;;  %v5116_v23 = vmul.f32 %v6647_v62, %v4846_v3  ;;  %v5211_v38 = vsel %vm645_vm0, %v1746_v14, %v1747_v47  ;;  %v1799_v30 = vrot.slane %v5148_v10, 1 }
 0x163   : > { %6611 = vst [vmem:[#allocation7_spill] sm:$0xff] %v5000_v13  ;;  %v5080_v31 = vmul.f32 %v6638_v63, %v4846_v3  ;;  %v6648_v63 = vld [vmem:[#allocation60_spill] sm:$0xff] }
 0x164   : > { %6613 = vst [vmem:[#allocation10_spill] sm:$0xff] %v5003_v34  ;;  %v6637_v34 = vld [vmem:[#allocation78_spill] sm:$0xff]  ;;  %v5120_v57 = vmul.f32 %v6648_v63, %v4846_v3 }
 0x165   : > { %6615 = vst [vmem:[#allocation8_spill] sm:$0xff] %v5006_v4  ;;  %v5076_v13 = vmul.f32 %v6637_v34, %v4846_v3  ;;  %v6649_v34 = vld [vmem:[#allocation64_spill] sm:$0xff]  ;;  %v1771_v14 = vrot.slane %v5080_v31, 1  ;;  %v1781_v31 = vrot.slane %v5104_v36, 1 }
 0x166   : > { %6617 = vst [vmem:[#allocation9_spill] sm:$0xff] %v5009_v48  ;;  %v6636_v48 = vld [vmem:[#allocation63_spill] sm:$0xff]  ;;  %v5124_v58 = vmul.f32 %v6649_v34, %v4846_v3  ;;  %v5144_v34 = vmul.f32 %v6654_v45, %v4846_v3  ;;  %v5164_v45 = vmul.f32 %v6659_v20, %v4846_v3  ;;  %v1742_v20 = vrot.slane %v5017_v17, 1 }
 0x167   : > { %6621 = vst [vmem:[#allocation42_spill] sm:$0xff] %v5020_v18  ;;  %v5072_v4 = vmul.f32 %v6636_v48, %v4846_v3  ;;  %v6652_v48 = vld [vmem:[#allocation67_spill] sm:$0xff]  ;;  %v6653_v18 = vld [vmem:[#allocation70_spill] sm:$0xff]  ;;  %v1761_v17 = vrot.slane %v1657_v7, 1  ;;  %v1769_v8 = vrot.slane %v5076_v13, 1  ;;  %v1779_v7 = vrot.slane %v5100_v26, 1 }
 0x168   : > { %v5136_v62 = vmul.f32 %v6652_v48, %v4846_v3  ;;  %v5140_v63 = vmul.f32 %v6653_v18, %v4846_v3  ;;  %v5156_v48 = vmul.f32 %v6657_v0, %v4846_v3  ;;  %v5160_v18 = vmul.f32 %v6658_v9, %v4846_v3 }
 0x169   : > { %v5176_v0 = vmul.f32 %v4846_v3, %v6662_v42  ;;  %v5180_v9 = vmul.f32 %v4846_v3, %v6663_v54  ;;  %v1752_v42 = vrot.slane %v5044_v21, 1  ;;  %v1756_v54 = vrot.slane %v5052_v15, 1 }
 0x16a   : > { %v1767_v35 = vrot.slane %v5072_v4, 1  ;;  %v5201_v21 = vmul.f32 %v4846_v3, %v6581_v25  ;;  %v5204_v46 = vsel %vm645_vm0, %v1741_v2, %v1742_v20  ;;  %v5207_v15 = vsel %vm645_vm0, %v1742_v20, %v1744_v12 }
 0x16b   : > { %v5217_v1 = vsel %vm645_vm0, %v1751_v5, %v1752_v42  ;;  %v5220_v3 = vsel %vm645_vm0, %v1752_v42, %v1754_v41  ;;  %v5223_v4 = vsel %vm645_vm0, %v1756_v54, %v1757_v43  ;;  %v5226_v20 = vsel %vm645_vm0, %v1757_v43, %v1759_v39 }
 0x16c   : > { %v5229_v13 = vsel %vm645_vm0, %v1761_v17, %v1762_v56  ;;  %v5236_v47 = vsel %vm645_vm0, %v1766_v28, %v1767_v35  ;;  %v1772_v41 = vrot.slane %v5084_v32, 1  ;;  %v1774_v5 = vrot.slane %v5088_v24, 1 }
 0x16d   : > { %v5241_v12 = vsel %vm645_vm0, %v1767_v35, %v1769_v8  ;;  %v1776_v39 = vrot.slane %v5092_v53, 1  ;;  %v1777_v2 = vrot.slane %v5096_v61, 1  ;;  %v1786_v42 = vrot.slane %v5116_v23, 1 }
 0x16e   : > { %v1787_v32 = vrot.slane %v5120_v57, 1  ;;  %v1789_v24 = vrot.slane %v5124_v58, 1  ;;  %v1791_v54 = vrot.slane %v5128_v6, 1  ;;  %v1792_v53 = vrot.slane %v5132_v22, 1  ;;  %v6665_v58 = vld [vmem:[#allocation54_spill] sm:$0xff] }
 0x16f   : > { %v1794_v61 = vrot.slane %v5136_v62, 1  ;;  %v1796_v26 = vrot.slane %v5140_v63, 1  ;;  %v1797_v36 = vrot.slane %v5144_v34, 1  ;;  %v5259_v27 = vsel %vm645_vm0, %v1771_v14, %v1772_v41 }
 0x170   : > { %v1801_v23 = vrot.slane %v5152_v55, 1  ;;  %v1802_v57 = vrot.slane %v5156_v48, 1  ;;  %v5264_v43 = vperm.slane %v6665_v58, 2  ;;  %v5267_v22 = vsel %vm645_vm0, %v1772_v41, %v1774_v5  ;;  %v6671_v58 = vld [vmem:[#allocation26_spill] sm:$0xff] }
 0x171   : > { %v5270_v6 = vsel %vm645_vm0, %v1776_v39, %v1777_v2  ;;  %v5273_v62 = vsel %vm645_vm0, %v1777_v2, %v1779_v7  ;;  %v5276_v10 = vsel %vm645_vm0, %v1781_v31, %v1782_v51  ;;  %v5279_v63 = vsel %vm645_vm0, %v1782_v51, %v1784_v49 }
 0x172   : > { %v5282_v55 = vsel %vm645_vm0, %v1786_v42, %v1787_v32  ;;  %v5285_v34 = vsel %vm645_vm0, %v1787_v32, %v1789_v24  ;;  %v1804_v48 = vrot.slane %v5160_v18, 1  ;;  %v5289_v17 = vsel %vm645_vm0, %v1791_v54, %v1792_v53  ;;  %v6668_v42 = vld [vmem:[#allocation53_spill] sm:$0xff]  ;;  %v6669_v32 = vld [vmem:[#allocation74_spill] sm:$0xff] }
 0x173   : > { %v5292_v56 = vsel %vm645_vm0, %v1792_v53, %v1794_v61  ;;  %v5295_v60 = vsel %vm645_vm0, %v1796_v26, %v1797_v36  ;;  %v5298_v28 = vsel %vm645_vm0, %v1797_v36, %v1799_v30  ;;  %v5301_v35 = vsel %vm645_vm0, %v1801_v23, %v1802_v57  ;;  %v6670_v23 = vld [vmem:[#allocation15_spill] sm:$0xff] }
 0x174   : > { %v1806_v8 = vrot.slane %v5164_v45, 1  ;;  %v1807_v14 = vrot.slane %v5168_v44, 1  ;;  %v1886_v18 = vmul.f32 %v6618_v40, %v5264_v43  ;;  %v1887_v41 = vmul.f32 %v6619_v50, %v5264_v43  ;;  %v6692_v50 = vld [vmem:[#allocation28_spill] sm:$0xff] }
 0x175   : > { %v1888_v5 = vmul.f32 %v6622_v37, %v5264_v43  ;;  %v1889_v39 = vmul.f32 %v6623_v29, %v5264_v43  ;;  %v1890_v2 = vmul.f32 %v6624_v59, %v5264_v43  ;;  %v5316_v7 = vsel %vm645_vm0, %v1802_v57, %v1804_v48  ;;  %v6666_v29 = vld [vmem:[#allocation75_spill] sm:$0xff]  ;;  %v6667_v59 = vld [vmem:[#allocation52_spill] sm:$0xff] }
 0x176   : > { %v1809_v45 = vrot.slane %v5172_v19, 1  ;;  %v1811_v44 = vrot.slane %v5176_v0, 1  ;;  %v1812_v40 = vrot.slane %v5180_v9, 1  ;;  %v1891_v37 = vmul.f32 %v6625_v11, %v5264_v43 }
 0x177   : > { %v1933_v51 = vmul.f32 %v5264_v43, %v6666_v29  ;;  %v1892_v49 = vmul.f32 %v6667_v59, %v5264_v43  ;;  %v1893_v19 = vmul.f32 %v6668_v42, %v5264_v43  ;;  %v5333_v24 = vmul.f32 %v5264_v43, %v6669_v32  ;;  %v6672_v29 = vld [vmem:[#allocation17_spill] sm:$0xff] }
 0x178   : > { %v1982_v54 = vrot.slane %v1886_v18, 2  ;;  %v1983_v53 = vrot.slane %v1887_v41, 2  ;;  %v1985_v61 = vrot.slane %v1888_v5, 2  ;;  %v1987_v26 = vrot.slane %v1889_v39, 2  ;;  %v6673_v18 = vld [vmem:[#allocation72_spill] sm:$0xff] }
 0x179   : > { %v1988_v36 = vrot.slane %v1890_v2, 2  ;;  %v5336_v11 = vsel %vm645_vm0, %v1806_v8, %v1807_v14  ;;  %v5339_v30 = vsel %vm645_vm0, %v1807_v14, %v1809_v45  ;;  %v1853_v57 = vadd.f32 %v5204_v46, %v6670_v23  ;;  %v6674_v8 = vld [vmem:[#allocation56_spill] sm:$0xff]  ;;  %v6675_v14 = vld [vmem:[#allocation57_spill] sm:$0xff] }
 0x17a   : > { %v1854_v48 = vadd.f32 %v5207_v15, %v6671_v58  ;;  %v1855_v59 = vadd.f32 %v5211_v38, %v6672_v29  ;;  %v1894_v41 = vmul.f32 %v6673_v18, %v5264_v43  ;;  %v1990_v5 = vrot.slane %v1891_v37, 2  ;;  %v6676_v58 = vld [vmem:[#allocation18_spill] sm:$0xff] }
 0x17b   : > { %v2060_v39 = vrot.slane %v1933_v51, 2  ;;  %v1895_v2 = vmul.f32 %v6674_v8, %v5264_v43  ;;  %v1896_v45 = vmul.f32 %v6675_v14, %v5264_v43  ;;  %v1992_v42 = vrot.slane %v1892_v49, 2  ;;  %v6677_v51 = vld [vmem:[#allocation31_spill] sm:$0xff]  ;;  %v6678_v18 = vld [vmem:[#allocation22_spill] sm:$0xff] }
 0x17c   : > { %v1993_v32 = vrot.slane %v1893_v19, 2  ;;  %v1984_v46 = vsel %vm887_vm1, %v1982_v54, %v1983_v53  ;;  %v1986_v15 = vsel %vm887_vm1, %v1983_v53, %v1985_v61  ;;  %v1989_v23 = vsel %vm887_vm1, %v1987_v26, %v1988_v36  ;;  %v6679_v14 = vld [vmem:[#allocation23_spill] sm:$0xff]  ;;  %v6680_v19 = vld [vmem:[#allocation76_spill] sm:$0xff] }
 0x17d   : > { %v6077_v38 = vrot.slane %v5333_v24, 2  ;;  %v1856_v37 = vadd.f32 %v5214_v16, %v6676_v58  ;;  %v1857_v29 = vadd.f32 %v5217_v1, %v6677_v51  ;;  %v1858_v8 = vadd.f32 %v5220_v3, %v6678_v18  ;;  %v6681_v16 = vld [vmem:[#allocation58_spill] sm:$0xff] }
 0x17e   : > { %v1859_v49 = vadd.f32 %v5223_v4, %v6679_v14  ;;  %v1897_v54 = vmul.f32 %v6680_v19, %v5264_v43  ;;  %v1991_v53 = vsel %vm887_vm1, %v1988_v36, %v1990_v5  ;;  %v1995_v61 = vrot.slane %v1894_v41, 2  ;;  %v6682_v4 = vld [vmem:[#allocation61_spill] sm:$0xff] }
 0x17f   : > { %v2061_v26 = vsel %vm887_vm1, %v6077_v38, %v2060_v39  ;;  %v1898_v58 = vmul.f32 %v6681_v16, %v5264_v43  ;;  %v5373_v1 = vadd.f32 %v1984_v46, %v1853_v57  ;;  %v5375_v51 = vadd.f32 %v1986_v15, %v1854_v48  ;;  %v6683_v5 = vld [vmem:[#allocation77_spill] sm:$0xff]  ;;  %v6684_v39 = vld [vmem:[#allocation62_spill] sm:$0xff] }
 0x180   : > { %v5377_v3 = vadd.f32 %v1989_v23, %v1855_v59  ;;  %v1899_v18 = vmul.f32 %v6682_v4, %v5264_v43  ;;  %v1994_v14 = vsel %vm887_vm1, %v1992_v42, %v1993_v32  ;;  %v1997_v36 = vrot.slane %v1895_v2, 2  ;;  %v6685_v57 = vld [vmem:[#allocation42_spill] sm:$0xff]  ;;  %v6686_v59 = vld [vmem:[#allocation63_spill] sm:$0xff] }
 0x181   : > { %v1998_v41 = vrot.slane %v1896_v45, 2  ;;  %v1900_v19 = vmul.f32 %v6683_v5, %v5264_v43  ;;  %v1901_v38 = vmul.f32 %v6684_v39, %v5264_v43  ;;  %v5386_v16 = vadd.f32 %v1991_v53, %v1856_v37  ;;  %v6687_v39 = vld [vmem:[#allocation36_spill] sm:$0xff]  ;;  %2127 = vst.msk [vmem:[%s5653_s17] sm:$0xff] %vm2126_vm2, %v5373_v1 }
 0x182   : > { %v5389_v48 = vadd.f32 %v2061_v26, %v6685_v57  ;;  %v1902_v46 = vmul.f32 %v6686_v59, %v5264_v43  ;;  %v1996_v15 = vsel %vm887_vm1, %v1993_v32, %v1995_v61  ;;  %v2000_v23 = vrot.slane %v1897_v54, 2  ;;  %v6688_v54 = vld [vmem:[#allocation27_spill] sm:$0xff]  ;;  %v6689_v57 = vld [vmem:[#allocation78_spill] sm:$0xff]  ;;  %2128 = vst.msk [vmem:[%s5653_s17 + $0x8] sm:$0xff] %vm2126_vm2, %v5375_v51 }
 0x183   : > { %v5394_v2 = vadd.f32 %v1994_v14, %v1857_v29  ;;  %v2159_v45 = vsel %vm2126_vm2, %v5373_v1, 0.0  ;;  %v2160_v42 = vsel %vm2126_vm2, %v5375_v51, 0.0  ;;  %v2162_v37 = vsel %vm2126_vm2, %v5377_v3, 0.0  ;;  %2129 = vst.msk [vmem:[%s5653_s17 + $0x10] sm:$0xff] %vm2126_vm2, %v5377_v3 }
 0x184   : > { %v1999_v53 = vsel %vm887_vm1, %v1997_v36, %v1998_v41  ;;  %v2002_v26 = vrot.slane %v1898_v58, 2  ;;  %v2003_v4 = vrot.slane %v1899_v18, 2  ;;  %v2161_v5 = vadd.f32 %v2160_v42, %v2159_v45  ;;  %v6690_v18 = vld [vmem:[#allocation34_spill] sm:$0xff]  ;;  %2130 = vst.msk [vmem:[%s5653_s17 + $0x18] sm:$0xff] %vm2126_vm2, %v5386_v16 }
 0x185   : > { %v1860_v32 = vadd.f32 %v5226_v20, %v6687_v39  ;;  %v1861_v29 = vadd.f32 %v5229_v13, %v6688_v54  ;;  %v5407_v61 = vadd.f32 %v1996_v15, %v1858_v8  ;;  %v2164_v14 = vsel %vm2126_vm2, %v5386_v16, 0.0  ;;  %v6691_v20 = vld [vmem:[#allocation35_spill] sm:$0xff]  ;;  %2131 = vst.msk [vmem:[%s5653_s17 + $0x20] sm:$0xff] %vm2126_vm2, %v5394_v2 }
 0x186   : > { %v1903_v59 = vmul.f32 %v6689_v57, %v5264_v43  ;;  %v2001_v31 = vsel %vm887_vm1, %v1998_v41, %v2000_v23  ;;  %v2005_v36 = vrot.slane %v1900_v19, 2  ;;  %v2163_v58 = vadd.f32 %v2162_v37, %v2161_v5  ;;  %v6693_v19 = vld [vmem:[#allocation41_spill] sm:$0xff]  ;;  %2158 = vst.msk [vmem:[%s5653_s17 + $0xf8] sm:$0xff] %vm2126_vm2, %v5389_v48 }
 0x187   : > { %v1904_v45 = vmul.f32 %v6690_v18, %v5264_v43  ;;  %v1905_v42 = vmul.f32 %v6691_v20, %v5264_v43  ;;  %v5418_v39 = vadd.f32 %v1999_v53, %v1859_v49  ;;  %v2166_v13 = vsel %vm2126_vm2, %v5394_v2, 0.0  ;;  %v6694_v53 = vld [vmem:[#allocation39_spill] sm:$0xff]  ;;  %2132 = vst.msk [vmem:[%s5653_s17 + $0x28] sm:$0xff] %vm2126_vm2, %v5407_v61 }
 0x188   : > { %v2004_v8 = vsel %vm887_vm1, %v2002_v26, %v2003_v4  ;;  %v2007_v15 = vrot.slane %v1901_v38, 2  ;;  %v2008_v54 = vrot.slane %v1902_v46, 2  ;;  %v2165_v57 = vadd.f32 %v2164_v14, %v2163_v58  ;;  %v6695_v46 = vld [vmem:[#allocation40_spill] sm:$0xff] }
 0x189   : > { %v1862_v41 = vadd.f32 %v5233_v33, %v6692_v50  ;;  %v1863_v23 = vadd.f32 %v5236_v47, %v6693_v19  ;;  %v5427_v37 = vadd.f32 %v2001_v31, %v1860_v32  ;;  %v2168_v49 = vsel %vm2126_vm2, %v5407_v61, 0.0  ;;  %v6696_v33 = vld [vmem:[#allocation44_spill] sm:$0xff]  ;;  %2133 = vst.msk [vmem:[%s5653_s17 + $0x30] sm:$0xff] %vm2126_vm2, %v5418_v39 }
 0x18a   : > { %v1906_v5 = vmul.f32 %v6694_v53, %v5264_v43  ;;  %v2006_v18 = vsel %vm887_vm1, %v2003_v4, %v2005_v36  ;;  %v2010_v26 = vrot.slane %v1903_v59, 2  ;;  %v2167_v38 = vadd.f32 %v2166_v13, %v2165_v57  ;;  %v6697_v53 = vld [vmem:[#allocation32_spill] sm:$0xff]  ;;  %v6698_v59 = vld [vmem:[#allocation33_spill] sm:$0xff] }
 0x18b   : > { %v1907_v14 = vmul.f32 %v6695_v46, %v5264_v43  ;;  %v1908_v50 = vmul.f32 %v6696_v33, %v5264_v43  ;;  %v5438_v58 = vadd.f32 %v2004_v8, %v1861_v29  ;;  %v2170_v47 = vsel %vm2126_vm2, %v5418_v39, 0.0  ;;  %v6699_v8 = vld [vmem:[#allocation45_spill] sm:$0xff]  ;;  %2134 = vst.msk [vmem:[%s5653_s17 + $0x38] sm:$0xff] %vm2126_vm2, %v5427_v37 }
 0x18c   : > { %v2009_v31 = vsel %vm887_vm1, %v2007_v15, %v2008_v54  ;;  %v2012_v32 = vrot.slane %v1904_v45, 2  ;;  %v2013_v20 = vrot.slane %v1905_v42, 2  ;;  %v2169_v19 = vadd.f32 %v2168_v49, %v2167_v38  ;;  %v6700_v42 = vld [vmem:[#allocation49_spill] sm:$0xff] }
 0x18d   : > { %v1864_v4 = vadd.f32 %v5241_v12, %v6697_v53  ;;  %v1865_v36 = vadd.f32 %v5259_v27, %v6698_v59  ;;  %v5447_v13 = vadd.f32 %v2006_v18, %v1862_v41  ;;  %v2172_v29 = vsel %vm2126_vm2, %v5427_v37, 0.0  ;;  %v6701_v12 = vld [vmem:[#allocation50_spill] sm:$0xff]  ;;  %2135 = vst.msk [vmem:[%s5653_s17 + $0x40] sm:$0xff] %vm2126_vm2, %v5438_v58 }
 0x18e   : > { %v1909_v57 = vmul.f32 %v6699_v8, %v5264_v43  ;;  %v2011_v46 = vsel %vm887_vm1, %v2008_v54, %v2010_v26  ;;  %v2015_v15 = vrot.slane %v1906_v5, 2  ;;  %v2171_v45 = vadd.f32 %v2170_v47, %v2169_v19  ;;  %v6702_v8 = vld [vmem:[#allocation46_spill] sm:$0xff]  ;;  %v6703_v5 = vld [vmem:[#allocation37_spill] sm:$0xff] }
 0x18f   : > { %v1910_v49 = vmul.f32 %v6700_v42, %v5264_v43  ;;  %v1911_v38 = vmul.f32 %v6701_v12, %v5264_v43  ;;  %v5458_v33 = vadd.f32 %v2009_v31, %v1863_v23  ;;  %v2174_v27 = vsel %vm2126_vm2, %v5438_v58, 0.0  ;;  %v6704_v31 = vld [vmem:[#allocation55_spill] sm:$0xff]  ;;  %2136 = vst.msk [vmem:[%s5653_s17 + $0x48] sm:$0xff] %vm2126_vm2, %v5447_v13 }
 0x190   : > { %v2014_v41 = vsel %vm887_vm1, %v2012_v32, %v2013_v20  ;;  %v2017_v18 = vrot.slane %v1907_v14, 2  ;;  %v2018_v53 = vrot.slane %v1908_v50, 2  ;;  %v2173_v59 = vadd.f32 %v2172_v29, %v2171_v45  ;;  %v6705_v50 = vld [vmem:[#allocation59_spill] sm:$0xff] }
 0x191   : > { %v1866_v54 = vadd.f32 %v5267_v22, %v6702_v8  ;;  %v1867_v26 = vadd.f32 %v5270_v6, %v6703_v5  ;;  %v5467_v47 = vadd.f32 %v2011_v46, %v1864_v4  ;;  %v2176_v23 = vsel %vm2126_vm2, %v5447_v13, 0.0  ;;  %v6706_v22 = vld [vmem:[#allocation60_spill] sm:$0xff]  ;;  %2137 = vst.msk [vmem:[%s5653_s17 + $0x50] sm:$0xff] %vm2126_vm2, %v5458_v33 }
 0x192   : > { %v1912_v19 = vmul.f32 %v6704_v31, %v5264_v43  ;;  %v2016_v42 = vsel %vm887_vm1, %v2013_v20, %v2015_v15  ;;  %v2020_v32 = vrot.slane %v1909_v57, 2  ;;  %v2175_v14 = vadd.f32 %v2174_v27, %v2173_v59  ;;  %v6707_v31 = vld [vmem:[#allocation38_spill] sm:$0xff]  ;;  %v6708_v57 = vld [vmem:[#allocation51_spill] sm:$0xff] }
 0x193   : > { %v1913_v29 = vmul.f32 %v6705_v50, %v5264_v43  ;;  %v1914_v45 = vmul.f32 %v6706_v22, %v5264_v43  ;;  %v5478_v12 = vadd.f32 %v2014_v41, %v1865_v36  ;;  %v2178_v6 = vsel %vm2126_vm2, %v5458_v33, 0.0  ;;  %v6709_v41 = vld [vmem:[#allocation64_spill] sm:$0xff]  ;;  %2138 = vst.msk [vmem:[%s5653_s17 + $0x58] sm:$0xff] %vm2126_vm2, %v5467_v47 }
 0x194   : > { %v2019_v4 = vsel %vm887_vm1, %v2017_v18, %v2018_v53  ;;  %v2022_v46 = vrot.slane %v1910_v49, 2  ;;  %v2023_v8 = vrot.slane %v1911_v38, 2  ;;  %v2177_v5 = vadd.f32 %v2176_v23, %v2175_v14  ;;  %v6710_v38 = vld [vmem:[#allocation65_spill] sm:$0xff] }
 0x195   : > { %v1868_v20 = vadd.f32 %v5273_v62, %v6707_v31  ;;  %v1869_v15 = vadd.f32 %v5276_v10, %v6708_v57  ;;  %v5487_v27 = vadd.f32 %v2016_v42, %v1866_v54  ;;  %v2180_v36 = vsel %vm2126_vm2, %v5467_v47, 0.0  ;;  %v6711_v62 = vld [vmem:[#allocation66_spill] sm:$0xff]  ;;  %2139 = vst.msk [vmem:[%s5653_s17 + $0x60] sm:$0xff] %vm2126_vm2, %v5478_v12 }
 0x196   : > { %v1915_v59 = vmul.f32 %v6709_v41, %v5264_v43  ;;  %v2021_v50 = vsel %vm887_vm1, %v2018_v53, %v2020_v32  ;;  %v2025_v18 = vrot.slane %v1912_v19, 2  ;;  %v2179_v49 = vadd.f32 %v2178_v6, %v2177_v5  ;;  %v6712_v41 = vld [vmem:[#allocation73_spill] sm:$0xff]  ;;  %v6713_v19 = vld [vmem:[#allocation80_spill] sm:$0xff] }
 0x197   : > { %v1916_v23 = vmul.f32 %v6710_v38, %v5264_v43  ;;  %v1917_v14 = vmul.f32 %v6711_v62, %v5264_v43  ;;  %v5498_v22 = vadd.f32 %v2019_v4, %v1867_v26  ;;  %v2182_v10 = vsel %vm2126_vm2, %v5478_v12, 0.0  ;;  %v6714_v4 = vld [vmem:[#allocation67_spill] sm:$0xff]  ;;  %2140 = vst.msk [vmem:[%s5653_s17 + $0x68] sm:$0xff] %vm2126_vm2, %v5487_v27 }
 0x198   : > { %v2024_v54 = vsel %vm887_vm1, %v2022_v46, %v2023_v8  ;;  %v2027_v42 = vrot.slane %v1913_v29, 2  ;;  %v2028_v31 = vrot.slane %v1914_v45, 2  ;;  %v2181_v57 = vadd.f32 %v2180_v36, %v2179_v49  ;;  %v6715_v45 = vld [vmem:[#allocation70_spill] sm:$0xff] }
 0x199   : > { %v1870_v53 = vadd.f32 %v5279_v63, %v6712_v41  ;;  %v1871_v32 = vadd.f32 %v5282_v55, %v6713_v19  ;;  %v5507_v6 = vadd.f32 %v2021_v50, %v1868_v20  ;;  %v2184_v26 = vsel %vm2126_vm2, %v5487_v27, 0.0  ;;  %v6716_v63 = vld [vmem:[#allocation71_spill] sm:$0xff]  ;;  %2141 = vst.msk [vmem:[%s5653_s17 + $0x70] sm:$0xff] %vm2126_vm2, %v5498_v22 }
 0x19a   : > { %v1918_v5 = vmul.f32 %v6714_v4, %v5264_v43  ;;  %v2026_v38 = vsel %vm887_vm1, %v2023_v8, %v2025_v18  ;;  %v2030_v46 = vrot.slane %v1915_v59, 2  ;;  %v2183_v29 = vadd.f32 %v2182_v10, %v2181_v57  ;;  %v6717_v4 = vld [vmem:[#allocation81_spill] sm:$0xff]  ;;  %v6718_v59 = vld [vmem:[#allocation82_spill] sm:$0xff] }
 0x19b   : > { %v1919_v36 = vmul.f32 %v6715_v45, %v5264_v43  ;;  %v1920_v49 = vmul.f32 %v6716_v63, %v5264_v43  ;;  %v5518_v62 = vadd.f32 %v2024_v54, %v1869_v15  ;;  %v2186_v55 = vsel %vm2126_vm2, %v5498_v22, 0.0  ;;  %v6719_v54 = vld [vmem:[#allocation3_spill] sm:$0xff]  ;;  %2142 = vst.msk [vmem:[%s5653_s17 + $0x78] sm:$0xff] %vm2126_vm2, %v5507_v6 }
 0x19c   : > { %v2029_v20 = vsel %vm887_vm1, %v2027_v42, %v2028_v31  ;;  %v2032_v50 = vrot.slane %v1916_v23, 2  ;;  %v2033_v41 = vrot.slane %v1917_v14, 2  ;;  %v2185_v19 = vadd.f32 %v2184_v26, %v2183_v29  ;;  %v6720_v14 = vld [vmem:[#allocation2_spill] sm:$0xff] }
 0x19d   : > { %v1872_v8 = vadd.f32 %v5285_v34, %v6717_v4  ;;  %v1873_v18 = vadd.f32 %v5289_v17, %v6718_v59  ;;  %v5527_v10 = vadd.f32 %v2026_v38, %v1870_v53  ;;  %v2188_v15 = vsel %vm2126_vm2, %v5507_v6, 0.0  ;;  %v6721_v34 = vld [vmem:[#allocation4_spill] sm:$0xff]  ;;  %2143 = vst.msk [vmem:[%s5653_s17 + $0x80] sm:$0xff] %vm2126_vm2, %v5518_v62 }
 0x19e   : > { %v1921_v57 = vmul.f32 %v6719_v54, %v5264_v43  ;;  %v2031_v45 = vsel %vm887_vm1, %v2028_v31, %v2030_v46  ;;  %v2035_v42 = vrot.slane %v1918_v5, 2  ;;  %v2187_v23 = vadd.f32 %v2186_v55, %v2185_v19  ;;  %v6722_v54 = vld [vmem:[#allocation83_spill] sm:$0xff]  ;;  %v6723_v5 = vld [vmem:[#allocation84_spill] sm:$0xff] }
 0x19f   : > { %v1922_v26 = vmul.f32 %v6720_v14, %v5264_v43  ;;  %v1923_v29 = vmul.f32 %v6721_v34, %v5264_v43  ;;  %v5538_v63 = vadd.f32 %v2029_v20, %v1871_v32  ;;  %v2190_v17 = vsel %vm2126_vm2, %v5518_v62, 0.0  ;;  %v6724_v20 = vld [vmem:[#allocation6_spill] sm:$0xff]  ;;  %2144 = vst.msk [vmem:[%s5653_s17 + $0x88] sm:$0xff] %vm2126_vm2, %v5527_v10 }
 0x1a0   : > { %v2034_v53 = vsel %vm887_vm1, %v2032_v50, %v2033_v41  ;;  %v2037_v38 = vrot.slane %v1919_v36, 2  ;;  %v2038_v4 = vrot.slane %v1920_v49, 2  ;;  %v2189_v59 = vadd.f32 %v2188_v15, %v2187_v23  ;;  %v6725_v49 = vld [vmem:[#allocation79_spill] sm:$0xff] }
 0x1a1   : > { %v1874_v31 = vadd.f32 %v5292_v56, %v6722_v54  ;;  %v1875_v46 = vadd.f32 %v5295_v60, %v6723_v5  ;;  %v5547_v55 = vadd.f32 %v2031_v45, %v1872_v8  ;;  %v2192_v32 = vsel %vm2126_vm2, %v5527_v10, 0.0  ;;  %v6726_v56 = vld [vmem:[#allocation16_spill] sm:$0xff]  ;;  %2145 = vst.msk [vmem:[%s5653_s17 + $0x90] sm:$0xff] %vm2126_vm2, %v5538_v63 }
 0x1a2   : > { %v1924_v19 = vmul.f32 %v6724_v20, %v5264_v43  ;;  %v2036_v14 = vsel %vm887_vm1, %v2033_v41, %v2035_v42  ;;  %v2040_v50 = vrot.slane %v1921_v57, 2  ;;  %v2191_v36 = vadd.f32 %v2190_v17, %v2189_v59  ;;  %v6727_v57 = vld [vmem:[#allocation25_spill] sm:$0xff] }
 0x1a3   : > { %v1925_v15 = vmul.f32 %v6725_v49, %v5264_v43  ;;  %v1926_v23 = vmul.f32 %v6726_v56, %v5264_v43  ;;  %v5558_v60 = vadd.f32 %v2034_v53, %v1873_v18  ;;  %v2194_v8 = vsel %vm2126_vm2, %v5538_v63, 0.0  ;;  %v6728_v17 = vld [vmem:[#allocation5_spill] sm:$0xff]  ;;  %v6729_v53 = vld [vmem:[#allocation19_spill] sm:$0xff]  ;;  %2146 = vst.msk [vmem:[%s5653_s17 + $0x98] sm:$0xff] %vm2126_vm2, %v5547_v55 }
 0x1a4   : > { %v2039_v45 = vsel %vm887_vm1, %v2037_v38, %v2038_v4  ;;  %v2042_v34 = vrot.slane %v1922_v26, 2  ;;  %v2043_v54 = vrot.slane %v1923_v29, 2  ;;  %v2193_v41 = vadd.f32 %v2192_v32, %v2191_v36  ;;  %v2660_v29 = vld [vmem:[%s2749_s28 + $0x168] sm:$0xff] }
 0x1a5   : > { %v1876_v42 = vadd.f32 %v5298_v28, %v6727_v57  ;;  %v1877_v59 = vadd.f32 %v5301_v35, %v6728_v17  ;;  %v5567_v5 = vadd.f32 %v2036_v14, %v1874_v31  ;;  %v2196_v18 = vsel %vm2126_vm2, %v5547_v55, 0.0  ;;  %v2661_v28 = vld [vmem:[%s2749_s28 + $0x170] sm:$0xff]  ;;  %2147 = vst.msk [vmem:[%s5653_s17 + $0xa0] sm:$0xff] %vm2126_vm2, %v5558_v60 }
 0x1a6   : > { %v1927_v20 = vmul.f32 %v6729_v53, %v5264_v43  ;;  %v2041_v49 = vsel %vm887_vm1, %v2038_v4, %v2040_v50  ;;  %v2045_v38 = vrot.slane %v1924_v19, 2  ;;  %v2195_v26 = vadd.f32 %v2194_v8, %v2193_v41  ;;  %v6730_v19 = vld [vmem:[#allocation7_spill] sm:$0xff] }
 0x1a7   : > { %v1928_v32 = vmul.f32 %v2660_v29, %v5264_v43  ;;  %v1929_v36 = vmul.f32 %v2661_v28, %v5264_v43  ;;  %v5578_v35 = vadd.f32 %v2039_v45, %v1875_v46  ;;  %v2198_v31 = vsel %vm2126_vm2, %v5558_v60, 0.0  ;;  %v2662_v45 = vld [vmem:[%s2749_s28 + $0x178] sm:$0x3]  ;;  %2148 = vst.msk [vmem:[%s5653_s17 + $0xa8] sm:$0xff] %vm2126_vm2, %v5567_v5  ;;  %s411_s28 = scalar_lea.vmem %s5881_s5, %s2573_s25 }
 0x1a8   : > { %v2044_v14 = vsel %vm887_vm1, %v2042_v34, %v2043_v54  ;;  %v2047_v56 = vrot.slane %v1925_v15, 2  ;;  %v2048_v57 = vrot.slane %v1926_v23, 2  ;;  %v2197_v17 = vadd.f32 %v2196_v18, %v2195_v26  ;;  %v6731_v18 = vld [vmem:[#allocation10_spill] sm:$0xff]  ;;  %v6732_v28 = vld [vmem:[#allocation13_spill] sm:$0xff] }
 0x1a9   : > { %v1813_v4 = vsel %vm645_vm0, %v1811_v44, %v1812_v40  ;;  %v1878_v50 = vadd.f32 %v5316_v7, %v6730_v19  ;;  %v5590_v8 = vadd.f32 %v2041_v49, %v1876_v42  ;;  %v2200_v46 = vsel %vm2126_vm2, %v5567_v5, 0.0  ;;  %2149 = vst.msk [vmem:[%s5653_s17 + $0xb0] sm:$0xff] %vm2126_vm2, %v5578_v35 }
 0x1aa   : > { %v1930_v34 = vmul.f32 %v2662_v45, %v5264_v43  ;;  %v2046_v15 = vsel %vm887_vm1, %v2043_v54, %v2045_v38  ;;  %v2050_v23 = vrot.slane %v1927_v20, 2  ;;  %v2199_v41 = vadd.f32 %v2198_v31, %v2197_v17  ;;  %v6733_v54 = vld [vmem:[#allocation12_spill] sm:$0xff]  ;;  %v6737_v17 = vld [vmem:[#allocation14_spill] sm:$0xff] }
 0x1ab   : > { %v1879_v0 = vadd.f32 %v5336_v11, %v6731_v18  ;;  %v1931_v44 = vmul.f32 %v5264_v43, %v6581_v25  ;;  %v5601_v53 = vadd.f32 %v2044_v14, %v1877_v59  ;;  %v2202_v7 = vsel %vm2126_vm2, %v5578_v35, 0.0  ;;  %v6734_v38 = vld [vmem:[#allocation8_spill] sm:$0xff]  ;;  %2150 = vst.msk [vmem:[%s5653_s17 + $0xb8] sm:$0xff] %vm2126_vm2, %v5590_v8 }
 0x1ac   : > { %v2049_v42 = vsel %vm887_vm1, %v2047_v56, %v2048_v57  ;;  %v2052_v49 = vrot.slane %v1928_v32, 2  ;;  %v2053_v26 = vrot.slane %v1929_v36, 2  ;;  %v2201_v29 = vadd.f32 %v2200_v46, %v2199_v41  ;;  %v6736_v56 = vld [vmem:[#allocation11_spill] sm:$0xff]  ;;  %v6738_v46 = vld [vmem:[#allocation9_spill] sm:$0xff] }
 0x1ad   : > { %v1641_v20 = vadd.f32 %v6733_v54, %v6732_v28  ;;  %v1880_v31 = vadd.f32 %v5339_v30, %v6734_v38  ;;  %v5610_v11 = vadd.f32 %v2046_v15, %v1878_v50  ;;  %v2204_v25 = vsel %vm2126_vm2, %v5590_v8, 0.0  ;;  %v6739_v15 = vld [vmem:[#allocation21_spill] sm:$0xff]  ;;  %2151 = vst.msk [vmem:[%s5653_s17 + $0xc0] sm:$0xff] %vm2126_vm2, %v5601_v53 }
 0x1ae   : > { %v6735_v43 = vrot.slane %v5196_v52, 1  ;;  %v2051_v32 = vsel %vm887_vm1, %v2048_v57, %v2050_v23  ;;  %v2055_v36 = vrot.slane %v1930_v34, 2  ;;  %v2203_v14 = vadd.f32 %v2202_v7, %v2201_v29 }
 0x1af   : > { %v1642_v19 = vadd.f32 %v6737_v17, %v6736_v56  ;;  %v1881_v30 = vadd.f32 %v1813_v4, %v6738_v46  ;;  %v5623_v50 = vadd.f32 %v2049_v42, %v1879_v0  ;;  %v2206_v45 = vsel %vm2126_vm2, %v5601_v53, 0.0  ;;  %2152 = vst.msk [vmem:[%s5653_s17 + $0xc8] sm:$0xff] %vm2126_vm2, %v5610_v11 }
 0x1b0   : > { %v1815_v59 = vsel %vm645_vm0, %v1812_v40, %v6735_v43  ;;  %v6740_v52 = vrot.slane %v6739_v15, 1  ;;  %v6741_v9 = vrot.slane %v5201_v21, 1  ;;  %v2054_v57 = vsel %vm887_vm1, %v2052_v49, %v2053_v26 }
 0x1b1   : > { %v2057_v34 = vrot.slane %v1931_v44, 2  ;;  %v2205_v23 = vadd.f32 %v2204_v25, %v2203_v14  ;;  %v1882_v41 = vadd.f32 %v1815_v59, %v1641_v20  ;;  %v5633_v18 = vadd.f32 %v2051_v32, %v1880_v31  ;;  %2153 = vst.msk [vmem:[%s5653_s17 + $0xd0] sm:$0xff] %vm2126_vm2, %v5623_v50 }
 0x1b2   : > { %v1818_v40 = vsel %vm645_vm0, %v6741_v9, %v6740_v52  ;;  %v2208_v4 = vsel %vm2126_vm2, %v5610_v11, 0.0  ;;  %v2056_v0 = vsel %vm887_vm1, %v2053_v26, %v2055_v36  ;;  %v5638_v29 = vadd.f32 %v2054_v57, %v1881_v30 }
 0x1b3   : > { %v2207_v7 = vadd.f32 %v2206_v45, %v2205_v23  ;;  %v1883_v42 = vadd.f32 %v1818_v40, %v1642_v19  ;;  %v2210_v21 = vsel %vm2126_vm2, %v5623_v50, 0.0  ;;  %v6742_v28 = vrot.slane %v5333_v24, 2  ;;  %2154 = vst.msk [vmem:[%s5653_s17 + $0xd8] sm:$0xff] %vm2126_vm2, %v5633_v18 }
 0x1b4   : > { %v5645_v54 = vadd.f32 %v2056_v0, %v1882_v41  ;;  %v2212_v20 = vsel %vm2126_vm2, %v5633_v18, 0.0  ;;  %v2214_v26 = vsel %vm2126_vm2, %v5638_v29, 0.0  ;;  %v2220_v36 = vsel %vm2126_vm2, %v5389_v48, 0.0  ;;  %2155 = vst.msk [vmem:[%s5653_s17 + $0xe0] sm:$0xff] %vm2126_vm2, %v5638_v29 }
 0x1b5   : > { %v2059_v44 = vsel %vm887_vm1, %v2057_v34, %v6742_v28  ;;  %v2209_v49 = vadd.f32 %v2208_v4, %v2207_v7  ;;  %v2687_v17 = vmov 1024.0  }
 0x1b6   : > { %v5655_v24 = vadd.f32 %v2059_v44, %v1883_v42  ;;  %v2216_v25 = vsel %vm2126_vm2, %v5645_v54, 0.0  ;;  %2156 = vst.msk [vmem:[%s5653_s17 + $0xe8] sm:$0xff] %vm2126_vm2, %v5645_v54  ;;  %2613 = vrcp.f32 %v2687_v17 }
 0x1b7   : > { %v2211_v38 = vadd.f32 %v2210_v21, %v2209_v49 }
 0x1b8   : > { %v2218_v59 = vsel %vm2126_vm2, %v5655_v24, 0.0  ;;  %2157 = vst.msk [vmem:[%s5653_s17 + $0xf0] sm:$0xff] %vm2126_vm2, %v5655_v24 }
 0x1b9   : > { %v2213_v31 = vadd.f32 %v2212_v20, %v2211_v38 }
 0x1bb   : > { %v2215_v43 = vadd.f32 %v2214_v26, %v2213_v31 }
 0x1bc   : > { %v2614_v19 = vpop.eup %2613 }
 0x1bd   : > { %v2217_v32 = vadd.f32 %v2216_v25, %v2215_v43  ;;  %v2232_v46 = vmul.f32 1024.0, %v2614_v19  ;;  %vm2236_vm3 = vweird.f32 %v2614_v19 }
 0x1bf   : > { %v2219_v14 = vadd.f32 %v2218_v59, %v2217_v32  ;;  %v2233_v30 = vsub.f32 1.0, %v2232_v46 }
 0x1c1   : > { %v2221_v56 = vadd.f32 %v2220_v36, %v2219_v14  ;;  %v2234_v9 = vmul.f32 %v2614_v19, %v2233_v30 }
 0x1c3   : > { %2222 = vadd.xlane.f32.xlu0 %v2221_v56  ;;  %v2235_v34 = vadd.f32 %v2614_v19, %v2234_v9 }
 0x1c5   : > { %v2237_v4 = vsel %vm2236_vm3, %v2614_v19, %v2235_v34 }
 0x236   : > { %v2223_v45 = vpop.xlane.xlu0 %2222 }
 0x237   : > { %v2224_v15 = vrot.slane %v2223_v45, 4 }
 0x239   : > { %v2225_v52 = vadd.f32 %v2224_v15, %v2223_v45 }
 0x23b   : > { %v2226_v40 = vrot.slane %v2225_v52, 2 }
 0x23d   : > { %v2227_v57 = vadd.f32 %v2226_v40, %v2225_v52 }
 0x23f   : > { %v2228_v23 = vrot.slane %v2227_v57, 1 }
 0x241   : > { %v2229_v41 = vadd.f32 %v2228_v23, %v2227_v57 }
 0x243   : > { %2581 = vpush %v2229_v41 }
 0x244   : > { %2583 = vpush %v2237_v4 }
 0x274   : > { %s5761_s22 = spop %2581 }
 0x275   : > { %s2584_s23 = spop %2583 }
 0x276   : > { %s2239_s24 = smul.f32 %s2584_s23, %s5761_s22 }
 0x278   : > { %v5764_v0 = vstv %s2239_s24 }
 0x279   : > { %v2241_v7 = vsub.f32 %v5373_v1, %v5764_v0  ;;  %v2242_v42 = vsub.f32 %v5375_v51, %v5764_v0  ;;  %v2243_v21 = vsub.f32 %v5377_v3, %v5764_v0  ;;  %v2244_v28 = vsub.f32 %v5386_v16, %v5764_v0 }
 0x27a   : > { %v2245_v20 = vsub.f32 %v5394_v2, %v5764_v0  ;;  %v2246_v26 = vsub.f32 %v5407_v61, %v5764_v0  ;;  %v2247_v3 = vsub.f32 %v5418_v39, %v5764_v0  ;;  %v2248_v2 = vsub.f32 %v5427_v37, %v5764_v0 }
 0x27b   : > { %v2273_v44 = vmul.f32 %v2241_v7, %v2241_v7  ;;  %v2274_v49 = vmul.f32 %v2242_v42, %v2242_v42  ;;  %v2275_v38 = vmul.f32 %v2243_v21, %v2243_v21  ;;  %v2276_v31 = vmul.f32 %v2244_v28, %v2244_v28 }
 0x27c   : > { %v2277_v43 = vmul.f32 %v2245_v20, %v2245_v20  ;;  %v2278_v32 = vmul.f32 %v2246_v26, %v2246_v26  ;;  %v2249_v14 = vsub.f32 %v5438_v58, %v5764_v0  ;;  %v2279_v56 = vmul.f32 %v2247_v3, %v2247_v3 }
 0x27d   : > { %v2305_v1 = vsel %vm2126_vm2, %v2273_v44, 0.0  ;;  %v2306_v51 = vsel %vm2126_vm2, %v2274_v49, 0.0  ;;  %v2308_v16 = vsel %vm2126_vm2, %v2275_v38, 0.0  ;;  %v2310_v36 = vsel %vm2126_vm2, %v2276_v31, 0.0 }
 0x27e   : > { %v2307_v25 = vadd.f32 %v2306_v51, %v2305_v1  ;;  %v2312_v17 = vsel %vm2126_vm2, %v2277_v43, 0.0  ;;  %v2250_v39 = vsub.f32 %v5447_v13, %v5764_v0  ;;  %v2280_v46 = vmul.f32 %v2248_v2, %v2248_v2 }
 0x27f   : > { %v2314_v30 = vsel %vm2126_vm2, %v2278_v32, 0.0  ;;  %v2251_v37 = vsub.f32 %v5458_v33, %v5764_v0  ;;  %v2281_v15 = vmul.f32 %v2249_v14, %v2249_v14  ;;  %v2316_v52 = vsel %vm2126_vm2, %v2279_v56, 0.0 }
 0x280   : > { %v2309_v59 = vadd.f32 %v2308_v16, %v2307_v25  ;;  %v2252_v58 = vsub.f32 %v5467_v47, %v5764_v0  ;;  %v2282_v40 = vmul.f32 %v2250_v39, %v2250_v39  ;;  %v2318_v57 = vsel %vm2126_vm2, %v2280_v46, 0.0 }
 0x281   : > { %v2253_v13 = vsub.f32 %v5478_v12, %v5764_v0  ;;  %v2283_v23 = vmul.f32 %v2251_v37, %v2251_v37  ;;  %v2320_v41 = vsel %vm2126_vm2, %v2281_v15, 0.0  ;;  %v2254_v33 = vsub.f32 %v5487_v27, %v5764_v0 }
 0x282   : > { %v2311_v61 = vadd.f32 %v2310_v36, %v2309_v59  ;;  %v2284_v7 = vmul.f32 %v2252_v58, %v2252_v58  ;;  %v2322_v42 = vsel %vm2126_vm2, %v2282_v40, 0.0  ;;  %v2255_v47 = vsub.f32 %v5498_v22, %v5764_v0 }
 0x283   : > { %v2285_v28 = vmul.f32 %v2253_v13, %v2253_v13  ;;  %v2324_v44 = vsel %vm2126_vm2, %v2283_v23, 0.0  ;;  %v2256_v12 = vsub.f32 %v5507_v6, %v5764_v0  ;;  %v2286_v20 = vmul.f32 %v2254_v33, %v2254_v33 }
 0x284   : > { %v2313_v19 = vadd.f32 %v2312_v17, %v2311_v61  ;;  %v2326_v38 = vsel %vm2126_vm2, %v2284_v7, 0.0  ;;  %v2257_v27 = vsub.f32 %v5518_v62, %v5764_v0  ;;  %v2287_v31 = vmul.f32 %v2255_v47, %v2255_v47 }
 0x285   : > { %v2328_v1 = vsel %vm2126_vm2, %v2285_v28, 0.0  ;;  %v2258_v22 = vsub.f32 %v5527_v10, %v5764_v0  ;;  %v2288_v25 = vmul.f32 %v2256_v12, %v2256_v12  ;;  %v2330_v3 = vsel %vm2126_vm2, %v2286_v20, 0.0 }
 0x286   : > { %v2315_v45 = vadd.f32 %v2314_v30, %v2313_v19  ;;  %v2259_v6 = vsub.f32 %v5538_v63, %v5764_v0  ;;  %v2289_v16 = vmul.f32 %v2257_v27, %v2257_v27  ;;  %v2332_v59 = vsel %vm2126_vm2, %v2287_v31, 0.0 }
 0x287   : > { %v2260_v62 = vsub.f32 %v5547_v55, %v5764_v0  ;;  %v2290_v32 = vmul.f32 %v2258_v22, %v2258_v22  ;;  %v2334_v36 = vsel %vm2126_vm2, %v2288_v25, 0.0  ;;  %v2261_v10 = vsub.f32 %v5558_v60, %v5764_v0 }
 0x288   : > { %v2317_v9 = vadd.f32 %v2316_v52, %v2315_v45  ;;  %v2291_v14 = vmul.f32 %v2259_v6, %v2259_v6  ;;  %v2336_v56 = vsel %vm2126_vm2, %v2289_v16, 0.0  ;;  %v2262_v63 = vsub.f32 %v5567_v5, %v5764_v0 }
 0x289   : > { %v2292_v19 = vmul.f32 %v2260_v62, %v2260_v62  ;;  %v2338_v39 = vsel %vm2126_vm2, %v2290_v32, 0.0  ;;  %v2263_v55 = vsub.f32 %v5578_v35, %v5764_v0  ;;  %v2293_v30 = vmul.f32 %v2261_v10, %v2261_v10 }
 0x28a   : > { %v2319_v34 = vadd.f32 %v2318_v57, %v2317_v9  ;;  %v2340_v45 = vsel %vm2126_vm2, %v2291_v14, 0.0  ;;  %v2264_v60 = vsub.f32 %v5590_v8, %v5764_v0  ;;  %v2294_v15 = vmul.f32 %v2262_v63, %v2262_v63 }
 0x28b   : > { %v2342_v52 = vsel %vm2126_vm2, %v2292_v19, 0.0  ;;  %v2265_v5 = vsub.f32 %v5601_v53, %v5764_v0  ;;  %v2295_v58 = vmul.f32 %v2263_v55, %v2263_v55  ;;  %v2344_v40 = vsel %vm2126_vm2, %v2293_v30, 0.0 }
 0x28c   : > { %v2321_v4 = vadd.f32 %v2320_v41, %v2319_v34  ;;  %v2266_v35 = vsub.f32 %v5610_v11, %v5764_v0  ;;  %v2296_v34 = vmul.f32 %v2264_v60, %v2264_v60  ;;  %v2346_v13 = vsel %vm2126_vm2, %v2294_v15, 0.0 }
 0x28d   : > { %v2267_v8 = vsub.f32 %v5623_v50, %v5764_v0  ;;  %v2297_v41 = vmul.f32 %v2265_v5, %v2265_v5  ;;  %v2268_v53 = vsub.f32 %v5633_v18, %v5764_v0  ;;  %v2269_v11 = vsub.f32 %v5638_v29, %v5764_v0 }
 0x28e   : > { %v2323_v21 = vadd.f32 %v2322_v42, %v2321_v4  ;;  %v2348_v4 = vsel %vm2126_vm2, %v2295_v58, 0.0  ;;  %v2298_v7 = vmul.f32 %v2266_v35, %v2266_v35  ;;  %v2350_v42 = vsel %vm2126_vm2, %v2296_v34, 0.0 }
 0x28f   : > { %v2299_v47 = vmul.f32 %v2267_v8, %v2267_v8  ;;  %v2352_v28 = vsel %vm2126_vm2, %v2297_v41, 0.0  ;;  %v2270_v50 = vsub.f32 %v5645_v54, %v5764_v0  ;;  %v2271_v18 = vsub.f32 %v5655_v24, %v5764_v0 }
 0x290   : > { %v2325_v49 = vadd.f32 %v2324_v44, %v2323_v21  ;;  %v2354_v12 = vsel %vm2126_vm2, %v2298_v7, 0.0  ;;  %v2272_v29 = vsub.f32 %v5389_v48, %v5764_v0  ;;  %v2377_v14 = vlaneseq }
 0x291   : > { %v2302_v31 = vmul.f32 %v2270_v50, %v2270_v50  ;;  %v2303_v22 = vmul.f32 %v2271_v18, %v2271_v18 }
 0x292   : > { %v2327_v26 = vadd.f32 %v2326_v38, %v2325_v49  ;;  %v2300_v49 = vmul.f32 %v2268_v53, %v2268_v53  ;;  %v2301_v38 = vmul.f32 %v2269_v11, %v2269_v11 }
 0x293   : > { %v2364_v24 = vsel %vm2126_vm2, %v2303_v22, 0.0 }
 0x294   : > { %v2329_v51 = vadd.f32 %v2328_v1, %v2327_v26  ;;  %v2356_v26 = vsel %vm2126_vm2, %v2299_v47, 0.0  ;;  %v2358_v1 = vsel %vm2126_vm2, %v2300_v49, 0.0  ;;  %v2360_v54 = vsel %vm2126_vm2, %v2301_v38, 0.0 }
 0x296   : > { %v2331_v43 = vadd.f32 %v2330_v3, %v2329_v51  ;;  %v2304_v3 = vmul.f32 %v2272_v29, %v2272_v29 }
 0x298   : > { %v2333_v2 = vadd.f32 %v2332_v59, %v2331_v43  ;;  %v2362_v43 = vsel %vm2126_vm2, %v2302_v31, 0.0  ;;  %v2366_v59 = vsel %vm2126_vm2, %v2304_v3, 0.0 }
 0x29a   : > { %v2335_v61 = vadd.f32 %v2334_v36, %v2333_v2 }
 0x29c   : > { %v2337_v17 = vadd.f32 %v2336_v56, %v2335_v61  ;;  %v2378_v56 = vand.u32 127, %v2377_v14 }
 0x29e   : > { %v2339_v46 = vadd.f32 %v2338_v39, %v2337_v17  ;;  %vm2379_vm4 = vcmp.lt.s32.totalorder %v2378_v56, 64  ;;  %v2380_v17 = vstv %s5761_s22 }
 0x2a0   : > { %v2341_v37 = vadd.f32 %v2340_v45, %v2339_v46 }
 0x2a2   : > { %v2343_v9 = vadd.f32 %v2342_v52, %v2341_v37 }
 0x2a4   : > { %v2345_v57 = vadd.f32 %v2344_v40, %v2343_v9 }
 0x2a6   : > { %v2347_v23 = vadd.f32 %v2346_v13, %v2345_v57 }
 0x2a8   : > { %v2349_v33 = vadd.f32 %v2348_v4, %v2347_v23 }
 0x2aa   : > { %v2351_v21 = vadd.f32 %v2350_v42, %v2349_v33 }
 0x2ac   : > { %v2353_v44 = vadd.f32 %v2352_v28, %v2351_v21 }
 0x2ae   : > { %v2355_v20 = vadd.f32 %v2354_v12, %v2353_v44 }
 0x2b0   : > { %v2357_v27 = vadd.f32 %v2356_v26, %v2355_v20 }
 0x2b2   : > { %v2359_v51 = vadd.f32 %v2358_v1, %v2357_v27 }
 0x2b4   : > { %v2361_v25 = vadd.f32 %v2360_v54, %v2359_v51 }
 0x2b6   : > { %v2363_v6 = vadd.f32 %v2362_v43, %v2361_v25 }
 0x2b8   : > { %v2365_v16 = vadd.f32 %v2364_v24, %v2363_v6 }
 0x2ba   : > { %v2367_v2 = vadd.f32 %v2366_v59, %v2365_v16 }
 0x2bc   : > { %2368 = vadd.xlane.f32.xlu0 %v2367_v2 }
 0x32f   : > { %v2369_v48 = vpop.xlane.xlu0 %2368 }
 0x330   : > { %v2370_v0 = vrot.slane %v2369_v48, 4 }
 0x332   : > { %v2371_v62 = vadd.f32 %v2370_v0, %v2369_v48 }
 0x334   : > { %v2372_v32 = vrot.slane %v2371_v62, 2 }
 0x336   : > { %v2373_v36 = vadd.f32 %v2372_v32, %v2371_v62 }
 0x338   : > { %v2374_v61 = vrot.slane %v2373_v36, 1 }
 0x33a   : > { %v2375_v10 = vadd.f32 %v2374_v61, %v2373_v36 }
 0x33c   : > { %2585 = vpush %v2375_v10 }
 0x36d   : > { %s2586_s29 = spop %2585 }
 0x36e   : > { %v2381_v63 = vstv %s2586_s29 }
 0x36f   : > { %v2382_v19 = vsel %vm2379_vm4, %v2380_v17, %v2381_v63 }
 0x370   : > { %2383 = vst [vmem:[%s411_s28] sm:$0xff] %v2382_v19 }
 0x371 PF: > { %s16_s20 = sadd.s32 1, %s2685_s20   ;;  %s6743_s18 = smov %s2681_s19 }
 0x372   : > { %p13_p5 = scmp.ge.s32.totalorder %s16_s20, 4   ;;  %s6744_s19 = smov %s6746_s21 }
 0x374   :  { %15 = sbr.rel (!%p13_p5) target bundleno = 2 (0x2), region = 84 }

// kernel: additional_conv_pallas.6
= control target key start
LH: loop header
LB: loop body
LE: loop exit
PB: predicated region body
PF: predicated region fallthrough
CT: control target
= control target key end

     0   :  { %s2718_s18 = smov 0   ;;  %s2720_s19 = smov 0   ;;  %s5876_s0 = inlined_call_operand.vmem [shape: f32[2,16,18,8], index: 0, kind: input, shape index: {}, may-alias: {0,1,2}]   ;;  %s5877_s1 = inlined_call_operand.vmem [shape: f32[2,16,18,8], index: 1, kind: input, shape index: {}, may-alias: {0,1,2}]   ;;  %s5878_s2 = inlined_call_operand.vmem [shape: f32[2,16,18,8], index: 2, kind: input, shape index: {}, may-alias: {0,1,2}]   ;;  %s5879_s3 = inlined_call_operand.vmem [shape: f32[3,3,8], index: 3, kind: input, shape index: {}]   ;;  %s5880_s4 = inlined_call_operand.vmem [shape: f32[2,16,16,8], index: 4, kind: output, shape index: {0}]   ;;  %s5881_s5 = inlined_call_operand.vmem [shape: f32[2,1,8,128], index: 5, kind: output, shape index: {1}]  }
   0x1   :  { %s2722_s20 = smov 0  }
   0x2 LB: > { %s28_s21 = sadd.s32 1, %s2681_s19  ;;  %p2567_p0 = scmp.ge.s32.totalorder %s2685_s20, 1  ;;  %s2685_s20 = sphi %s2722_s20, %s16_s20   ;;  %s2681_s19 = sphi %s2720_s19, %s6744_s19   ;;  %s2677_s18 = sphi %s2718_s18, %s6743_s18  }
   0x3   : > { %p30_p1 = scmp.ge.s32.totalorder %s28_s21, 2  ;;  %p278_p2 = scmp.lt.s32.totalorder %s2685_s20, 3 }
   0x5   : > { %s6746_s21 = smov (%p30_p1, %s28_s21), 0  ;;  %p279_p3 = pnand %p2567_p0, %p278_p2 }
   0x7   : > { %282 = sbr.rel (%p279_p3) target bundleno = 881 (0x371), region = 36 }
   0xc   : > { %p350_p4 = scmp.lt.s32.totalorder %s2677_s18, 1  ;;  %v2754_v2 = vld [vmem:[%s5879_s3] sm:$0x7]  ;;  %vm645_vm0 = vcmask 1046528   ;;  %vm887_vm1 = vcmask 1045504   ;;  %vm2126_vm2 = vcmask 64512  }
   0xd   : > { %6078 = vst [vmem:[#allocation2_spill] sm:$0xff] %v2754_v2  ;;  %v2757_v4 = vperm.slane %v2754_v2, 0  ;;  %v2767_v8 = vperm.slane %v2754_v2, 1 }
   0xe   : > { %s6748_s18 = smov (!%p350_p4, %s2677_s18), 1 }
   0xf   : > { %s2739_s22 = smul.u32 384, %s6748_s18  ;;  %s2578_s14 = sshll.u32 %s6748_s18, 8 }
  0x10   : > { %s5653_s17 = scalar_lea.vmem %s5880_s4, %s2578_s14 }
  0x11   : > { %s372_s25 = scalar_lea.vmem %s5877_s1, %s2739_s22  ;;  %s2749_s28 = scalar_lea.vmem %s5876_s0, %s2739_s22 }
  0x12   : > { %v418_v0 = vld [vmem:[%s372_s25] sm:$0xff]  ;;  %v419_v1 = vld [vmem:[%s372_s25 + $0x8] sm:$0xff]  ;;  %v420_v3 = vld [vmem:[%s372_s25 + $0x10] sm:$0x3]  ;;  %s2577_s6 = sadd.s32 360, %s2739_s22  ;;  %s2573_s25 = sshll.u32 %s6748_s18, 3 }
  0x13   : > { %v2759_v5 = vmul.f32 0.0, %v418_v0  ;;  %v2761_v6 = vmul.f32 0.0, %v419_v1  ;;  %v2764_v7 = vld [vmem:[%s2749_s28] sm:$0xff]  ;;  %v2769_v9 = vmul.f32 0.0, %v420_v3  ;;  %v2772_v10 = vld [vmem:[%s2749_s28 + $0x8] sm:$0xff]  ;;  %v2775_v11 = vld [vmem:[%s2749_s28 + $0x18] sm:$0xff]  ;;  %s389_s9 = scalar_lea.vmem %s5878_s2, %s2577_s6 }
  0x14   : > { %6081 = vst [vmem:[#allocation5_spill] sm:$0xff] %v2764_v7  ;;  %v2778_v12 = vld [vmem:[%s2749_s28 + $0x20] sm:$0xff]  ;;  %v2782_v13 = vmul.f32 %v2757_v4, %v2764_v7  ;;  %v2786_v14 = vmul.f32 %v2757_v4, %v2772_v10  ;;  %v2790_v15 = vmul.f32 %v2757_v4, %v2775_v11  ;;  %v2793_v16 = vld [vmem:[%s2749_s28 + $0x10] sm:$0x3]  ;;  %v2799_v18 = vld [vmem:[%s2749_s28 + $0x38] sm:$0xff]  ;;  %v2815_v22 = vmul.f32 %v2767_v8, %v2764_v7 }
  0x15   : > { %6079 = vst [vmem:[#allocation3_spill] sm:$0xff] %v2759_v5  ;;  %v2796_v17 = vld [vmem:[%s2749_s28 + $0x30] sm:$0xff]  ;;  %v2803_v19 = vmul.f32 %v2757_v4, %v2759_v5  ;;  %v2807_v20 = vmul.f32 %v2757_v4, %v2761_v6  ;;  %v2811_v21 = vmul.f32 %v2757_v4, %v2778_v12  ;;  %v2818_v23 = vld [vmem:[%s2749_s28 + $0x28] sm:$0x3]  ;;  %v2832_v27 = vmul.f32 %v2757_v4, %v2799_v18  ;;  %v2843_v30 = vld [vmem:[%s2749_s28 + $0x60] sm:$0xff] }
  0x16   : > { %6080 = vst [vmem:[#allocation4_spill] sm:$0xff] %v2761_v6  ;;  %v2821_v24 = vld [vmem:[%s2749_s28 + $0x48] sm:$0xff]  ;;  %v2824_v25 = vld [vmem:[%s2749_s28 + $0x50] sm:$0xff]  ;;  %v2828_v26 = vmul.f32 %v2757_v4, %v2796_v17  ;;  %v2836_v28 = vmul.f32 %v2767_v8, %v2759_v5  ;;  %v2840_v29 = vmul.f32 %v2767_v8, %v2761_v6  ;;  %v2858_v34 = vmul.f32 %v2767_v8, %v2769_v9  ;;  %v2865_v36 = vld [vmem:[%s2749_s28 + $0x40] sm:$0x3] }
  0x17   : > { %6082 = vst [vmem:[#allocation6_spill] sm:$0xff] %v2769_v9  ;;  %v2846_v31 = vld [vmem:[%s2749_s28 + $0x68] sm:$0xff]  ;;  %v2850_v32 = vmul.f32 %v2757_v4, %v2821_v24  ;;  %v2854_v33 = vmul.f32 %v2757_v4, %v2824_v25  ;;  %v2862_v35 = vmul.f32 %v2767_v8, %v2772_v10  ;;  %v2868_v37 = vld [vmem:[%s2749_s28 + $0x78] sm:$0xff]  ;;  %v2871_v38 = vld [vmem:[%s2749_s28 + $0x80] sm:$0xff]  ;;  %v2875_v39 = vmul.f32 %v2757_v4, %v2843_v30 }
  0x18   : > { %6083 = vst [vmem:[#allocation7_spill] sm:$0xff] %v2772_v10  ;;  %v2879_v40 = vmul.f32 %v2757_v4, %v2846_v31  ;;  %v2883_v41 = vmul.f32 %v2767_v8, %v2793_v16  ;;  %v2887_v42 = vmul.f32 %v2767_v8, %v2775_v11  ;;  %v2890_v43 = vld [vmem:[%s2749_s28 + $0x58] sm:$0x3]  ;;  %v2893_v44 = vld [vmem:[%s2749_s28 + $0x90] sm:$0xff]  ;;  %v2900_v46 = vmul.f32 %v2757_v4, %v2868_v37  ;;  %v2918_v51 = vld [vmem:[%s2749_s28 + $0xa8] sm:$0xff] }
  0x19   : > { %6084 = vst [vmem:[#allocation8_spill] sm:$0xff] %v2775_v11  ;;  %v2896_v45 = vld [vmem:[%s2749_s28 + $0x98] sm:$0xff]  ;;  %v2904_v47 = vmul.f32 %v2757_v4, %v2871_v38  ;;  %v2908_v48 = vmul.f32 %v2767_v8, %v2778_v12  ;;  %v2912_v49 = vmul.f32 %v2767_v8, %v2818_v23  ;;  %v2915_v50 = vld [vmem:[%s2749_s28 + $0x70] sm:$0x3]  ;;  %v2925_v53 = vmul.f32 %v2757_v4, %v2893_v44  ;;  %v2941_v57 = vld [vmem:[%s2749_s28 + $0x88] sm:$0x3] }
  0x1a   : > { %6085 = vst [vmem:[#allocation9_spill] sm:$0xff] %v2778_v12  ;;  %v2921_v52 = vld [vmem:[%s2749_s28 + $0xb0] sm:$0xff]  ;;  %v2929_v54 = vmul.f32 %v2757_v4, %v2896_v45  ;;  %v2933_v55 = vmul.f32 %v2767_v8, %v2796_v17  ;;  %v2937_v56 = vmul.f32 %v2767_v8, %v2799_v18  ;;  %v2944_v58 = vld [vmem:[%s2749_s28 + $0xc0] sm:$0xff]  ;;  %v2947_v59 = vld [vmem:[%s2749_s28 + $0xc8] sm:$0xff]  ;;  %v2951_v60 = vmul.f32 %v2757_v4, %v2918_v51 }
  0x1b   : > { %6086 = vst [vmem:[#allocation10_spill] sm:$0xff] %v2793_v16  ;;  %v2955_v61 = vmul.f32 %v2757_v4, %v2921_v52  ;;  %v2959_v62 = vmul.f32 %v2767_v8, %v2865_v36  ;;  %v2963_v63 = vmul.f32 %v2767_v8, %v2821_v24  ;;  %v2966_v0 = vld [vmem:[%s2749_s28 + $0xa0] sm:$0x3]  ;;  %v2969_v1 = vld [vmem:[%s2749_s28 + $0xd8] sm:$0xff]  ;;  %v2994_v12 = vld [vmem:[%s2749_s28 + $0xf0] sm:$0xff]  ;;  %v3013_v10 = vmul.f32 %v2767_v8, %v2846_v31 }
  0x1c   : > { %6087 = vst [vmem:[#allocation11_spill] sm:$0xff] %v2796_v17  ;;  %v2972_v3 = vld [vmem:[%s2749_s28 + $0xe0] sm:$0xff]  ;;  %v2988_v17 = vmul.f32 %v2767_v8, %v2890_v43  ;;  %v2997_v11 = vld [vmem:[%s2749_s28 + $0xf8] sm:$0xff]  ;;  %v3001_v16 = vmul.f32 %v2757_v4, %v2969_v1  ;;  %v3019_v7 = vld [vmem:[%s2749_s28 + $0xd0] sm:$0x3]  ;;  %v3037_v5 = vmul.f32 %v2767_v8, %v2915_v50 }
  0x1d   : > { %6088 = vst [vmem:[#allocation12_spill] sm:$0xff] %v2799_v18  ;;  %v2976_v18 = vmul.f32 %v2757_v4, %v2944_v58  ;;  %v3022_v9 = vld [vmem:[%s2749_s28 + $0x108] sm:$0xff]  ;;  %v3025_v6 = vld [vmem:[%s2749_s28 + $0x110] sm:$0xff]  ;;  %v3050_v2 = vld [vmem:[%s2749_s28 + $0x138] sm:$0xff] }
  0x1e   : > { %6089 = vst [vmem:[#allocation13_spill] sm:$0xff] %v2818_v23  ;;  %v2991_v23 = vld [vmem:[%s2749_s28 + $0xb8] sm:$0x3] }
  0x1f   : > { %6090 = vst [vmem:[#allocation14_spill] sm:$0xff] %v2821_v24  ;;  %v2984_v24 = vmul.f32 %v2767_v8, %v2824_v25 }
  0x20   : > { %6091 = vst [vmem:[#allocation15_spill] sm:$0xff] %v2824_v25  ;;  %v3005_v25 = vmul.f32 %v2757_v4, %v2972_v3 }
  0x21   : > { %6092 = vst [vmem:[#allocation16_spill] sm:$0xff] %v2832_v27 }
  0x22   : > { %6093 = vst [vmem:[#allocation17_spill] sm:$0xff] %v2843_v30 }
  0x23   : > { %6094 = vst [vmem:[#allocation18_spill] sm:$0xff] %v2846_v31  ;;  %v3033_v31 = vmul.f32 %v2757_v4, %v2997_v11 }
  0x24   : > { %6095 = vst [vmem:[#allocation19_spill] sm:$0xff] %v2850_v32 }
  0x25   : > { %6096 = vst [vmem:[#allocation20_spill] sm:$0xff] %v2854_v33  ;;  %v3136_v33 = vmul.f32 %v2767_v8, %v2944_v58 }
  0x26   : > { %6097 = vst [vmem:[#allocation21_spill] sm:$0xff] %v2865_v36  ;;  %v2980_v36 = vmul.f32 %v2757_v4, %v2947_v59 }
  0x27   : > { %6098 = vst [vmem:[#allocation22_spill] sm:$0xff] %v2868_v37 }
  0x28   : > { %6099 = vst [vmem:[#allocation23_spill] sm:$0xff] %v2871_v38 }
  0x29   : > { %6100 = vst [vmem:[#allocation24_spill] sm:$0xff] %v2875_v39  ;;  %v3132_v39 = vld [vmem:[%s2749_s28 + $0x118] sm:$0x3] }
  0x2a   : > { %6101 = vst [vmem:[#allocation25_spill] sm:$0xff] %v2879_v40  ;;  %v3113_v40 = vld [vmem:[%s2749_s28 + $0x100] sm:$0x3] }
  0x2b   : > { %6102 = vst [vmem:[#allocation26_spill] sm:$0xff] %v2890_v43  ;;  %v3009_v43 = vmul.f32 %v2767_v8, %v2843_v30  ;;  %v3029_v30 = vmul.f32 %v2757_v4, %v2994_v12 }
  0x2c   : > { %6103 = vst [vmem:[#allocation27_spill] sm:$0xff] %v2893_v44 }
  0x2d   : > { %6104 = vst [vmem:[#allocation28_spill] sm:$0xff] %v2896_v45 }
  0x2e   : > { %6105 = vst [vmem:[#allocation29_spill] sm:$0xff] %v2900_v46  ;;  %v3110_v46 = vld [vmem:[%s2749_s28 + $0xe8] sm:$0x3] }
  0x2f   : > { %6106 = vst [vmem:[#allocation30_spill] sm:$0xff] %v2904_v47  ;;  %v475_v47 = vld [vmem:[%s389_s9 + $0x10] sm:$0x3] }
  0x30   : > { %6107 = vst [vmem:[#allocation31_spill] sm:$0xff] %v2915_v50  ;;  %v3062_v50 = vmul.f32 %v2767_v8, %v2871_v38  ;;  %v3154_v32 = vmul.f32 0.0, %v475_v47  ;;  %v3177_v47 = vmul.f32 %v2767_v8, %v3113_v40 }
  0x31   : > { %6108 = vst [vmem:[#allocation32_spill] sm:$0xff] %v2918_v51 }
  0x32   : > { %6109 = vst [vmem:[#allocation33_spill] sm:$0xff] %v2921_v52 }
  0x33   : > { %6110 = vst [vmem:[#allocation34_spill] sm:$0xff] %v2925_v53  ;;  %v474_v53 = vld [vmem:[%s389_s9 + $0x8] sm:$0xff] }
  0x34   : > { %6111 = vst [vmem:[#allocation35_spill] sm:$0xff] %v2929_v54  ;;  %v473_v54 = vld [vmem:[%s389_s9] sm:$0xff] }
  0x35   : > { %6112 = vst [vmem:[#allocation36_spill] sm:$0xff] %v2941_v57 }
  0x36   : > { %6113 = vst [vmem:[#allocation37_spill] sm:$0xff] %v2944_v58  ;;  %v3158_v58 = vmul.f32 %v2767_v8, %v2972_v3 }
  0x37   : > { %6114 = vst [vmem:[#allocation38_spill] sm:$0xff] %v2947_v59 }
  0x38   : > { %6115 = vst [vmem:[#allocation39_spill] sm:$0xff] %v2951_v60  ;;  %v3075_v60 = vld [vmem:[%s2749_s28 + $0x158] sm:$0xff] }
  0x39   : > { %6116 = vst [vmem:[#allocation40_spill] sm:$0xff] %v2955_v61  ;;  %v3072_v61 = vld [vmem:[%s2749_s28 + $0x150] sm:$0xff] }
  0x3a   : > { %6117 = vst [vmem:[#allocation41_spill] sm:$0xff] %v2966_v0 }
  0x3b   : > { %6118 = vst [vmem:[#allocation42_spill] sm:$0xff] %v2969_v1 }
  0x3c   : > { %6119 = vst [vmem:[#allocation43_spill] sm:$0xff] %v2972_v3  ;;  %v651_v3 = vrot.slane %v2815_v22, 1 }
  0x3d   : > { %6120 = vst [vmem:[#allocation44_spill] sm:$0xff] %v2976_v18  ;;  %v3069_v18 = vld [vmem:[%s2749_s28 + $0x140] sm:$0xff] }
  0x3e   : > { %6121 = vst [vmem:[#allocation45_spill] sm:$0xff] %v2980_v36  ;;  %v3047_v36 = vld [vmem:[%s2749_s28 + $0x128] sm:$0xff]  ;;  %v3221_v22 = vmul.f32 %v2767_v8, %v3069_v18 }
  0x3f   : > { %6122 = vst [vmem:[#allocation46_spill] sm:$0xff] %v2991_v23  ;;  %v3083_v38 = vmul.f32 %v2757_v4, %v3047_v36 }
  0x40   : > { %6123 = vst [vmem:[#allocation47_spill] sm:$0xff] %v2994_v12 }
  0x41   : > { %6124 = vst [vmem:[#allocation48_spill] sm:$0xff] %v2997_v11 }
  0x42   : > { %6125 = vst [vmem:[#allocation49_spill] sm:$0xff] %v3001_v16  ;;  %v3044_v16 = vld [vmem:[%s2749_s28 + $0x120] sm:$0xff] }
  0x43   : > { %6126 = vst [vmem:[#allocation50_spill] sm:$0xff] %v3005_v25  ;;  %v3041_v25 = vmul.f32 %v2767_v8, %v2868_v37  ;;  %v3066_v37 = vmul.f32 %v2767_v8, %v2941_v57  ;;  %v3087_v57 = vmul.f32 %v2767_v8, %v2893_v44  ;;  %v3103_v44 = vmul.f32 %v2767_v8, %v2966_v0 }
  0x44   : > { %6127 = vst [vmem:[#allocation51_spill] sm:$0xff] %v3019_v7  ;;  %v3125_v0 = vmul.f32 %v2767_v8, %v2921_v52  ;;  %v3148_v52 = vmul.f32 %v2767_v8, %v2969_v1  ;;  %v3169_v1 = vmul.f32 %v2767_v8, %v2994_v12  ;;  %v3196_v12 = vld [vmem:[%s2749_s28 + $0x160] sm:$0x3] }
  0x45   : > { %6128 = vst [vmem:[#allocation52_spill] sm:$0xff] %v3022_v9 }
  0x46   : > { %6129 = vst [vmem:[#allocation53_spill] sm:$0xff] %v3025_v6 }
  0x47   : > { %6130 = vst [vmem:[#allocation54_spill] sm:$0xff] %v3029_v30  ;;  %v3054_v30 = vmul.f32 %v2757_v4, %v3022_v9 }
  0x48   : > { %6131 = vst [vmem:[#allocation55_spill] sm:$0xff] %v3033_v31  ;;  %v3058_v31 = vmul.f32 %v2757_v4, %v3025_v6 }
  0x49   : > { %6132 = vst [vmem:[#allocation56_spill] sm:$0xff] %v3044_v16 }
  0x4a   : > { %6133 = vst [vmem:[#allocation57_spill] sm:$0xff] %v3047_v36 }
  0x4b   : > { %6134 = vst [vmem:[#allocation58_spill] sm:$0xff] %v3050_v2 }
  0x4c   : > { %6135 = vst [vmem:[#allocation59_spill] sm:$0xff] %v3054_v30  ;;  %v3079_v30 = vmul.f32 %v2757_v4, %v3044_v16 }
  0x4d   : > { %6136 = vst [vmem:[#allocation60_spill] sm:$0xff] %v3058_v31  ;;  %v3091_v31 = vmul.f32 %v2767_v8, %v2896_v45  ;;  %v3107_v45 = vmul.f32 %v2767_v8, %v2918_v51  ;;  %v3129_v51 = vmul.f32 %v2767_v8, %v2991_v23  ;;  %v3150_v23 = vmul.f32 0.0, %v473_v54  ;;  %v3180_v54 = vld [vmem:[%s2749_s28 + $0x148] sm:$0x3] }
  0x4e   : > { %6137 = vst [vmem:[#allocation61_spill] sm:$0xff] %v3069_v18 }
  0x4f   : > { %6138 = vst [vmem:[#allocation62_spill] sm:$0xff] %v3072_v61 }
  0x50   : > { %6139 = vst [vmem:[#allocation63_spill] sm:$0xff] %v3075_v60 }
  0x51   : > { %6140 = vst [vmem:[#allocation64_spill] sm:$0xff] %v3079_v30  ;;  %v3095_v30 = vmul.f32 %v2757_v4, %v3050_v2 }
  0x52   : > { %6141 = vst [vmem:[#allocation65_spill] sm:$0xff] %v3083_v38  ;;  %v3099_v38 = vmul.f32 %v2757_v4, %v3069_v18  ;;  %v657_v18 = vrot.slane %v2908_v48, 1  ;;  %v664_v48 = vrot.slane %v2959_v62, 1  ;;  %v681_v62 = vrot.slane %v3087_v57, 1 }
  0x53   : > { %6142 = vst [vmem:[#allocation66_spill] sm:$0xff] %v3095_v30  ;;  %v3117_v30 = vmul.f32 %v2757_v4, %v3072_v61 }
  0x54   : > { %6143 = vst [vmem:[#allocation67_spill] sm:$0xff] %v3099_v38  ;;  %v3121_v38 = vmul.f32 %v2757_v4, %v3075_v60  ;;  %v3144_v4 = vmul.f32 %v2767_v8, %v3019_v7  ;;  %v3165_v7 = vmul.f32 %v2767_v8, %v3110_v46 }
  0x55   : > { %6144 = vst [vmem:[#allocation68_spill] sm:$0xff] %v3110_v46  ;;  %v649_v46 = vrot.slane %v2858_v34, 1  ;;  %v3217_v34 = vmul.f32 %v2767_v8, %v3050_v2  ;;  %v656_v2 = vrot.slane %v2887_v42, 1  ;;  %v662_v42 = vrot.slane %v2937_v56, 1 }
  0x56   : > { %6145 = vst [vmem:[#allocation69_spill] sm:$0xff] %v3113_v40  ;;  %v647_v40 = vrot.slane %v2840_v29, 1  ;;  %v654_v29 = vrot.slane %v2883_v41, 1  ;;  %v3237_v41 = vmul.f32 %v2767_v8, %v3196_v12  ;;  %v679_v56 = vrot.slane %v3066_v37, 1 }
  0x57   : > { %6146 = vst [vmem:[#allocation70_spill] sm:$0xff] %v3117_v30  ;;  %v3140_v30 = vmul.f32 %v2767_v8, %v2947_v59  ;;  %v3161_v59 = vld [vmem:[%s2749_s28 + $0x130] sm:$0x3]  ;;  %v665_v37 = vsel %vm645_vm0, %v662_v42, %v664_v48  ;;  %v696_v48 = vrot.slane %v3148_v52, 1 }
  0x58   : > { %6147 = vst [vmem:[#allocation71_spill] sm:$0xff] %v3121_v38  ;;  %v3152_v38 = vmul.f32 0.0, %v474_v53  ;;  %v3173_v53 = vmul.f32 %v2767_v8, %v2997_v11  ;;  %v646_v11 = vrot.slane %v2836_v28, 1  ;;  %v3212_v28 = vmul.f32 %v2767_v8, %v3161_v59 }
  0x59   : > { %6148 = vst [vmem:[#allocation72_spill] sm:$0xff] %v3132_v39 }
  0x5a   : > { %6149 = vst [vmem:[#allocation73_spill] sm:$0xff] %v3150_v23  ;;  %v3184_v23 = vmul.f32 %v2767_v8, %v3022_v9  ;;  %v652_v9 = vrot.slane %v2862_v35, 1  ;;  %v3225_v35 = vmul.f32 %v2767_v8, %v3180_v54 }
  0x5b   : > { %6150 = vst [vmem:[#allocation74_spill] sm:$0xff] %v3152_v38  ;;  %v3192_v38 = vmul.f32 %v2767_v8, %v3132_v39  ;;  %v3208_v39 = vmul.f32 %v2767_v8, %v3047_v36  ;;  %v3229_v36 = vmul.f32 %v2767_v8, %v3072_v61 }
  0x5c   : > { %6151 = vst [vmem:[#allocation75_spill] sm:$0xff] %v3154_v32  ;;  %v3188_v32 = vmul.f32 %v2767_v8, %v3025_v6  ;;  %v3204_v6 = vmul.f32 %v2767_v8, %v3044_v16  ;;  %v3242_v16 = vsel %vm645_vm0, %v646_v11, %v647_v40  ;;  %v3248_v61 = vsel %vm645_vm0, %v651_v3, %v652_v9 }
  0x5d   : > { %6152 = vst [vmem:[#allocation76_spill] sm:$0xff] %v3161_v59  ;;  %v3233_v59 = vmul.f32 %v2767_v8, %v3075_v60  ;;  %v659_v60 = vrot.slane %v2912_v49, 1  ;;  %v3252_v27 = vsel %vm645_vm0, %v652_v9, %v654_v29  ;;  %v661_v8 = vrot.slane %v2933_v55, 1 }
  0x5e   : > { %6153 = vst [vmem:[#allocation77_spill] sm:$0xff] %v3180_v54  ;;  %v3245_v54 = vsel %vm645_vm0, %v647_v40, %v649_v46  ;;  %v666_v11 = vrot.slane %v2963_v63, 1  ;;  %v669_v40 = vrot.slane %v2988_v17, 1  ;;  %v671_v46 = vrot.slane %v3009_v43, 1 }
  0x5f   : > { %6154 = vst [vmem:[#allocation78_spill] sm:$0xff] %v3196_v12  ;;  %v667_v12 = vrot.slane %v2984_v24, 1  ;;  %v672_v3 = vrot.slane %v3013_v10, 1  ;;  %v674_v49 = vrot.slane %v3037_v5, 1  ;;  %v676_v9 = vrot.slane %v3041_v25, 1 }
  0x60   : > { %v677_v55 = vrot.slane %v3062_v50, 1  ;;  %v682_v63 = vrot.slane %v3091_v31, 1  ;;  %v684_v24 = vrot.slane %v3103_v44, 1  ;;  %v658_v17 = vsel %vm645_vm0, %v656_v2, %v657_v18 }
  0x61   : > { %v686_v43 = vrot.slane %v3107_v45, 1  ;;  %v687_v10 = vrot.slane %v3125_v0, 1  ;;  %v689_v5 = vrot.slane %v3129_v51, 1  ;;  %v660_v25 = vsel %vm645_vm0, %v657_v18, %v659_v60 }
  0x62   : > { %v663_v50 = vsel %vm645_vm0, %v661_v8, %v662_v42  ;;  %v668_v57 = vsel %vm645_vm0, %v666_v11, %v667_v12  ;;  %v670_v31 = vsel %vm645_vm0, %v667_v12, %v669_v40  ;;  %v673_v44 = vsel %vm645_vm0, %v671_v46, %v672_v3 }
  0x63   : > { %v675_v2 = vsel %vm645_vm0, %v672_v3, %v674_v49  ;;  %v678_v45 = vsel %vm645_vm0, %v676_v9, %v677_v55  ;;  %v680_v0 = vsel %vm645_vm0, %v677_v55, %v679_v56  ;;  %v683_v51 = vsel %vm645_vm0, %v681_v62, %v682_v63 }
  0x64   : > { %v685_v18 = vsel %vm645_vm0, %v682_v63, %v684_v24  ;;  %v691_v60 = vrot.slane %v3136_v33, 1  ;;  %v688_v29 = vsel %vm645_vm0, %v686_v43, %v687_v10  ;;  %v690_v8 = vsel %vm645_vm0, %v687_v10, %v689_v5 }
  0x65   : > { %v692_v12 = vrot.slane %v3140_v30, 1  ;;  %v694_v42 = vrot.slane %v3144_v4, 1  ;;  %v697_v11 = vrot.slane %v3158_v58, 1  ;;  %v699_v40 = vrot.slane %v3165_v7, 1 }
  0x66   : > { %v701_v46 = vrot.slane %v3169_v1, 1  ;;  %v702_v3 = vrot.slane %v3173_v53, 1  ;;  %v704_v33 = vrot.slane %v3177_v47, 1  ;;  %v706_v49 = vrot.slane %v3184_v23, 1 }
  0x67   : > { %v707_v9 = vrot.slane %v3188_v32, 1  ;;  %v709_v30 = vrot.slane %v3192_v38, 1  ;;  %v711_v4 = vrot.slane %v3204_v6, 1  ;;  %v712_v52 = vrot.slane %v3208_v39, 1 }
  0x68   : > { %v714_v58 = vrot.slane %v3212_v28, 1  ;;  %v693_v7 = vsel %vm645_vm0, %v691_v60, %v692_v12  ;;  %v716_v1 = vrot.slane %v3217_v34, 1  ;;  %v717_v53 = vrot.slane %v3221_v22, 1 }
  0x69   : > { %v719_v47 = vrot.slane %v3225_v35, 1  ;;  %v695_v23 = vsel %vm645_vm0, %v692_v12, %v694_v42  ;;  %v721_v32 = vrot.slane %v3229_v36, 1  ;;  %v722_v38 = vrot.slane %v3233_v59, 1  ;;  %v6158_v12 = vld [vmem:[#allocation19_spill] sm:$0xff] }
  0x6a   : > { %v724_v6 = vrot.slane %v3237_v41, 1  ;;  %v698_v39 = vsel %vm645_vm0, %v696_v48, %v697_v11  ;;  %v700_v28 = vsel %vm645_vm0, %v697_v11, %v699_v40  ;;  %v703_v55 = vsel %vm645_vm0, %v701_v46, %v702_v3 }
  0x6b   : > { %v705_v34 = vsel %vm645_vm0, %v702_v3, %v704_v33  ;;  %v708_v22 = vsel %vm645_vm0, %v706_v49, %v707_v9  ;;  %v710_v35 = vsel %vm645_vm0, %v707_v9, %v709_v30  ;;  %v713_v56 = vsel %vm645_vm0, %v711_v4, %v712_v52  ;;  %v6184_v49 = vld [vmem:[#allocation49_spill] sm:$0xff]  ;;  %v6186_v9 = vld [vmem:[#allocation50_spill] sm:$0xff] }
  0x6c   : > { %v715_v36 = vsel %vm645_vm0, %v712_v52, %v714_v58  ;;  %v718_v59 = vsel %vm645_vm0, %v716_v1, %v717_v53  ;;  %v720_v41 = vsel %vm645_vm0, %v717_v53, %v719_v47  ;;  %v3321_v62 = vadd.f32 %v3242_v16, %v2803_v19  ;;  %v6188_v30 = vld [vmem:[#allocation54_spill] sm:$0xff]  ;;  %v6190_v52 = vld [vmem:[#allocation55_spill] sm:$0xff]  ;;  %v6194_v53 = vld [vmem:[#allocation60_spill] sm:$0xff] }
  0x6d   : > { %v3325_v63 = vadd.f32 %v3245_v54, %v2807_v20  ;;  %v723_v24 = vsel %vm645_vm0, %v721_v32, %v722_v38  ;;  %v725_v43 = vsel %vm645_vm0, %v722_v38, %v724_v6  ;;  %v3331_v10 = vadd.f32 %v3248_v61, %v2782_v13  ;;  %v6156_v20 = vld [vmem:[#allocation16_spill] sm:$0xff]  ;;  %v6198_v38 = vld [vmem:[#allocation65_spill] sm:$0xff] }
  0x6e   : > { %v3335_v5 = vadd.f32 %v3252_v27, %v2786_v14  ;;  %v3338_v60 = vadd.f32 %v658_v17, %v2790_v15  ;;  %v3341_v16 = vadd.f32 %v660_v25, %v2811_v21  ;;  %v3344_v19 = vadd.f32 %v663_v50, %v2828_v26  ;;  %v6160_v13 = vld [vmem:[#allocation20_spill] sm:$0xff]  ;;  %v6164_v15 = vld [vmem:[#allocation25_spill] sm:$0xff]  ;;  %v6168_v26 = vld [vmem:[#allocation30_spill] sm:$0xff] }
  0x6f   : > { %v3347_v54 = vadd.f32 %v665_v37, %v6156_v20  ;;  %v3350_v42 = vadd.f32 %v668_v57, %v6158_v12  ;;  %v3353_v61 = vadd.f32 %v670_v31, %v6160_v13  ;;  %v6162_v14 = vld [vmem:[#allocation24_spill] sm:$0xff]  ;;  %v3359_v17 = vadd.f32 %v675_v2, %v6164_v15  ;;  %v6166_v21 = vld [vmem:[#allocation29_spill] sm:$0xff]  ;;  %v6170_v37 = vld [vmem:[#allocation34_spill] sm:$0xff] }
  0x70   : > { %6155 = vst [vmem:[#allocation79_spill] sm:$0xff] %v3344_v19  ;;  %v3356_v27 = vadd.f32 %v673_v44, %v6162_v14  ;;  %v3362_v25 = vadd.f32 %v678_v45, %v6166_v21  ;;  %v3365_v50 = vadd.f32 %v680_v0, %v6168_v26  ;;  %v3368_v48 = vadd.f32 %v683_v51, %v6170_v37  ;;  %v6172_v57 = vld [vmem:[#allocation35_spill] sm:$0xff]  ;;  %v6176_v44 = vld [vmem:[#allocation40_spill] sm:$0xff]  ;;  %v6180_v45 = vld [vmem:[#allocation2_spill] sm:$0xff] }
  0x71   : > { %6157 = vst [vmem:[#allocation16_spill] sm:$0xff] %v3347_v54  ;;  %v3371_v11 = vadd.f32 %v685_v18, %v6172_v57  ;;  %v6174_v31 = vld [vmem:[#allocation39_spill] sm:$0xff]  ;;  %v3377_v46 = vadd.f32 %v690_v8, %v6176_v44  ;;  %v6178_v2 = vld [vmem:[#allocation44_spill] sm:$0xff]  ;;  %v3383_v33 = vperm.slane %v6180_v45, 2  ;;  %v3388_v0 = vld [vmem:[%s5879_s3 + $0x4] sm:$0x7]  ;;  %v3397_v8 = vadd.f32 %v700_v28, %v6186_v9 }
  0x72   : > { %6159 = vst [vmem:[#allocation19_spill] sm:$0xff] %v3350_v42  ;;  %v3374_v40 = vadd.f32 %v688_v29, %v6174_v31  ;;  %v3380_v3 = vadd.f32 %v693_v7, %v6178_v2  ;;  %v6182_v51 = vld [vmem:[#allocation45_spill] sm:$0xff]  ;;  %v3394_v29 = vadd.f32 %v698_v39, %v6184_v49  ;;  %v3400_v4 = vadd.f32 %v703_v55, %v6188_v30  ;;  %v6192_v7 = vld [vmem:[#allocation59_spill] sm:$0xff]  ;;  %v6200_v39 = vld [vmem:[#allocation66_spill] sm:$0xff] }
  0x73   : > { %6161 = vst [vmem:[#allocation20_spill] sm:$0xff] %v3353_v61  ;;  %v3391_v18 = vadd.f32 %v695_v23, %v6182_v51  ;;  %v3403_v58 = vadd.f32 %v705_v34, %v6190_v52  ;;  %v3406_v1 = vadd.f32 %v708_v22, %v6192_v7  ;;  %v3409_v47 = vadd.f32 %v710_v35, %v6194_v53  ;;  %v6196_v23 = vld [vmem:[#allocation64_spill] sm:$0xff]  ;;  %v6202_v55 = vld [vmem:[#allocation67_spill] sm:$0xff]  ;;  %v6204_v34 = vld [vmem:[#allocation70_spill] sm:$0xff] }
  0x74   : > { %6163 = vst [vmem:[#allocation24_spill] sm:$0xff] %v3356_v27  ;;  %v3412_v32 = vadd.f32 %v713_v56, %v6196_v23  ;;  %v3415_v6 = vadd.f32 %v715_v36, %v6198_v38  ;;  %v3418_v28 = vadd.f32 %v718_v59, %v6200_v39  ;;  %v3421_v20 = vadd.f32 %v720_v41, %v6202_v55  ;;  %v6206_v22 = vld [vmem:[#allocation71_spill] sm:$0xff]  ;;  %v6209_v56 = vld [vmem:[#allocation4_spill] sm:$0xff]  ;;  %v6211_v59 = vld [vmem:[#allocation6_spill] sm:$0xff] }
  0x75   : > { %6165 = vst [vmem:[#allocation25_spill] sm:$0xff] %v3359_v17  ;;  %v3424_v12 = vadd.f32 %v723_v24, %v6204_v34  ;;  %v3427_v13 = vadd.f32 %v725_v43, %v6206_v22  ;;  %v6208_v35 = vld [vmem:[#allocation3_spill] sm:$0xff]  ;;  %v792_v15 = vmul.f32 %v3383_v33, %v6209_v56  ;;  %v3434_v36 = vperm.slane %v3388_v0, 0  ;;  %v6212_v41 = vld [vmem:[#allocation5_spill] sm:$0xff]  ;;  %v6214_v37 = vld [vmem:[#allocation10_spill] sm:$0xff] }
  0x76   : > { %6167 = vst [vmem:[#allocation29_spill] sm:$0xff] %v3362_v25  ;;  %v791_v14 = vmul.f32 %v3383_v33, %v6208_v35  ;;  %v793_v21 = vmul.f32 %v3383_v33, %v6211_v59  ;;  %v3440_v26 = vmul.f32 %v3383_v33, %v6212_v41  ;;  %v6213_v24 = vld [vmem:[#allocation7_spill] sm:$0xff]  ;;  %v3448_v57 = vmul.f32 %v3383_v33, %v6214_v37  ;;  %v6215_v31 = vld [vmem:[#allocation8_spill] sm:$0xff]  ;;  %v6216_v2 = vld [vmem:[#allocation9_spill] sm:$0xff] }
  0x77   : > { %6169 = vst [vmem:[#allocation30_spill] sm:$0xff] %v3365_v50  ;;  %v3444_v43 = vmul.f32 %v3383_v33, %v6213_v24  ;;  %v3452_v44 = vmul.f32 %v3383_v33, %v6215_v31  ;;  %v3456_v45 = vmul.f32 %v3383_v33, %v6216_v2  ;;  %v6217_v51 = vld [vmem:[#allocation13_spill] sm:$0xff]  ;;  %v6218_v9 = vld [vmem:[#allocation11_spill] sm:$0xff]  ;;  %v6219_v52 = vld [vmem:[#allocation12_spill] sm:$0xff] }
  0x78   : > { %6171 = vst [vmem:[#allocation34_spill] sm:$0xff] %v3368_v48  ;;  %v3460_v49 = vmul.f32 %v3383_v33, %v6217_v51  ;;  %v3464_v30 = vmul.f32 %v3383_v33, %v6218_v9  ;;  %v3468_v7 = vmul.f32 %v3383_v33, %v6219_v52  ;;  %v6220_v53 = vld [vmem:[#allocation21_spill] sm:$0xff]  ;;  %v6221_v38 = vld [vmem:[#allocation14_spill] sm:$0xff]  ;;  %v6222_v55 = vld [vmem:[#allocation15_spill] sm:$0xff]  ;;  %v893_v61 = vrot.slane %v3440_v26, 2 }
  0x79   : > { %6173 = vst [vmem:[#allocation35_spill] sm:$0xff] %v3371_v11  ;;  %v3472_v23 = vmul.f32 %v3383_v33, %v6220_v53  ;;  %v3476_v39 = vmul.f32 %v3383_v33, %v6221_v38  ;;  %v3480_v34 = vmul.f32 %v3383_v33, %v6222_v55  ;;  %v6223_v22 = vld [vmem:[#allocation26_spill] sm:$0xff]  ;;  %v6224_v56 = vld [vmem:[#allocation17_spill] sm:$0xff]  ;;  %v6226_v37 = vld [vmem:[#allocation31_spill] sm:$0xff]  ;;  %v896_v42 = vrot.slane %v3448_v57, 2 }
  0x7a   : > { %6175 = vst [vmem:[#allocation39_spill] sm:$0xff] %v3374_v40  ;;  %v3484_v35 = vmul.f32 %v3383_v33, %v6223_v22  ;;  %v3488_v59 = vmul.f32 %v3383_v33, %v6224_v56  ;;  %v6225_v51 = vld [vmem:[#allocation18_spill] sm:$0xff]  ;;  %v6228_v52 = vld [vmem:[#allocation23_spill] sm:$0xff]  ;;  %v6229_v9 = vld [vmem:[#allocation36_spill] sm:$0xff]  ;;  %v898_v54 = vrot.slane %v3452_v44, 2  ;;  %v901_v19 = vrot.slane %v3460_v49, 2 }
  0x7b   : > { %6177 = vst [vmem:[#allocation40_spill] sm:$0xff] %v3377_v46  ;;  %v3492_v53 = vmul.f32 %v3383_v33, %v6225_v51  ;;  %v6227_v38 = vld [vmem:[#allocation22_spill] sm:$0xff]  ;;  %v3504_v22 = vmul.f32 %v3383_v33, %v6228_v52  ;;  %v3508_v56 = vmul.f32 %v3383_v33, %v6229_v9  ;;  %v6230_v2 = vld [vmem:[#allocation27_spill] sm:$0xff]  ;;  %v6231_v31 = vld [vmem:[#allocation28_spill] sm:$0xff]  ;;  %v889_v46 = vrot.slane %v792_v15, 2 }
  0x7c   : > { %6179 = vst [vmem:[#allocation44_spill] sm:$0xff] %v3380_v3  ;;  %v3500_v55 = vmul.f32 %v3383_v33, %v6227_v38  ;;  %v3512_v51 = vmul.f32 %v3383_v33, %v6230_v2  ;;  %v6232_v24 = vld [vmem:[#allocation41_spill] sm:$0xff]  ;;  %v888_v3 = vrot.slane %v791_v14, 2  ;;  %v6248_v40 = vld [vmem:[#allocation56_spill] sm:$0xff]  ;;  %v6255_v17 = vld [vmem:[#allocation63_spill] sm:$0xff]  ;;  %v904_v26 = vrot.slane %v3468_v7, 2 }
  0x7d   : > { %6181 = vst [vmem:[#allocation2_spill] sm:$0xff] %v3388_v0  ;;  %v3496_v0 = vmul.f32 %v3383_v33, %v6226_v37  ;;  %v3516_v37 = vmul.f32 %v3383_v33, %v6231_v31  ;;  %v3520_v38 = vmul.f32 %v3383_v33, %v6232_v24  ;;  %v6234_v41 = vld [vmem:[#allocation33_spill] sm:$0xff]  ;;  %v3584_v11 = vmul.f32 %v3383_v33, %v6248_v40  ;;  %v6254_v40 = vld [vmem:[#allocation62_spill] sm:$0xff] }
  0x7e   : > { %6183 = vst [vmem:[#allocation45_spill] sm:$0xff] %v3391_v18  ;;  %v3528_v9 = vmul.f32 %v3383_v33, %v6234_v41  ;;  %v6247_v18 = vld [vmem:[#allocation72_spill] sm:$0xff]  ;;  %v6253_v15 = vld [vmem:[#allocation77_spill] sm:$0xff]  ;;  %v6256_v27 = vld [vmem:[#allocation78_spill] sm:$0xff]  ;;  %v908_v57 = vrot.slane %v3476_v39, 2  ;;  %v919_v49 = vrot.slane %v3504_v22, 2 }
  0x7f   : > { %6185 = vst [vmem:[#allocation49_spill] sm:$0xff] %v3394_v29  ;;  %v6246_v29 = vld [vmem:[#allocation53_spill] sm:$0xff]  ;;  %v916_v44 = vrot.slane %v3496_v0, 2  ;;  %v923_v7 = vrot.slane %v3512_v51, 2  ;;  %v926_v39 = vrot.slane %v3520_v38, 2 }
  0x80   : > { %6187 = vst [vmem:[#allocation50_spill] sm:$0xff] %v3397_v8  ;;  %v6245_v8 = vld [vmem:[#allocation52_spill] sm:$0xff]  ;;  %v929_v0 = vrot.slane %v3528_v9, 2 }
  0x81   : > { %6189 = vst [vmem:[#allocation54_spill] sm:$0xff] %v3400_v4  ;;  %v6244_v4 = vld [vmem:[#allocation69_spill] sm:$0xff] }
  0x82   : > { %6191 = vst [vmem:[#allocation55_spill] sm:$0xff] %v3403_v58  ;;  %v6243_v58 = vld [vmem:[#allocation48_spill] sm:$0xff] }
  0x83   : > { %6193 = vst [vmem:[#allocation59_spill] sm:$0xff] %v3406_v1  ;;  %v6242_v1 = vld [vmem:[#allocation47_spill] sm:$0xff] }
  0x84   : > { %6195 = vst [vmem:[#allocation60_spill] sm:$0xff] %v3409_v47  ;;  %v6241_v47 = vld [vmem:[#allocation68_spill] sm:$0xff] }
  0x85   : > { %6197 = vst [vmem:[#allocation64_spill] sm:$0xff] %v3412_v32  ;;  %v6240_v32 = vld [vmem:[#allocation43_spill] sm:$0xff] }
  0x86   : > { %6199 = vst [vmem:[#allocation65_spill] sm:$0xff] %v3415_v6  ;;  %v6239_v6 = vld [vmem:[#allocation42_spill] sm:$0xff] }
  0x87   : > { %6201 = vst [vmem:[#allocation66_spill] sm:$0xff] %v3418_v28  ;;  %v6238_v28 = vld [vmem:[#allocation51_spill] sm:$0xff]  ;;  %v3548_v41 = vmul.f32 %v3383_v33, %v6239_v6  ;;  %v3568_v6 = vmul.f32 %v3383_v33, %v6244_v4  ;;  %v6249_v4 = vld [vmem:[#allocation57_spill] sm:$0xff] }
  0x88   : > { %6203 = vst [vmem:[#allocation67_spill] sm:$0xff] %v3421_v20  ;;  %v6237_v20 = vld [vmem:[#allocation38_spill] sm:$0xff]  ;;  %v3588_v48 = vmul.f32 %v3383_v33, %v6249_v4  ;;  %v3608_v4 = vmul.f32 %v3383_v33, %v6254_v40 }
  0x89   : > { %6205 = vst [vmem:[#allocation70_spill] sm:$0xff] %v3424_v12  ;;  %v6236_v12 = vld [vmem:[#allocation37_spill] sm:$0xff]  ;;  %v3540_v24 = vmul.f32 %v3383_v33, %v6237_v20  ;;  %v3560_v20 = vmul.f32 %v3383_v33, %v6242_v1  ;;  %v3580_v1 = vmul.f32 %v3383_v33, %v6247_v18 }
  0x8a   : > { %6207 = vst [vmem:[#allocation71_spill] sm:$0xff] %v3427_v13  ;;  %v6235_v13 = vld [vmem:[#allocation46_spill] sm:$0xff]  ;;  %v3536_v31 = vmul.f32 %v3383_v33, %v6236_v12  ;;  %v3556_v12 = vmul.f32 %v3383_v33, %v6241_v47  ;;  %v3576_v47 = vmul.f32 %v3383_v33, %v6246_v29  ;;  %v6252_v18 = vld [vmem:[#allocation61_spill] sm:$0xff] }
  0x8b   : > { %6210 = vst [vmem:[#allocation3_spill] sm:$0xff] %v3434_v36  ;;  %v6233_v36 = vld [vmem:[#allocation32_spill] sm:$0xff]  ;;  %v3532_v2 = vmul.f32 %v3383_v33, %v6235_v13  ;;  %v3552_v13 = vmul.f32 %v3383_v33, %v6240_v32  ;;  %v3572_v32 = vmul.f32 %v3383_v33, %v6245_v8  ;;  %v6251_v29 = vld [vmem:[#allocation58_spill] sm:$0xff]  ;;  %v3600_v14 = vmul.f32 %v3383_v33, %v6252_v18 }
  0x8c   : > { %v3524_v52 = vmul.f32 %v3383_v33, %v6233_v36  ;;  %v3544_v36 = vmul.f32 %v3383_v33, %v6238_v28  ;;  %v3564_v28 = vmul.f32 %v3383_v33, %v6243_v58  ;;  %v891_v58 = vrot.slane %v793_v21, 2  ;;  %v6250_v8 = vld [vmem:[#allocation76_spill] sm:$0xff] }
  0x8d   : > { %v3592_v50 = vmul.f32 %v3383_v33, %v6250_v8  ;;  %v3596_v25 = vmul.f32 %v3383_v33, %v6251_v29  ;;  %v3604_v21 = vmul.f32 %v3383_v33, %v6253_v15  ;;  %v3612_v8 = vmul.f32 %v3383_v33, %v6255_v17 }
  0x8e   : > { %v3616_v29 = vmul.f32 %v3383_v33, %v6256_v27  ;;  %v894_v18 = vrot.slane %v3444_v43, 2  ;;  %v3622_v15 = vsel %vm887_vm1, %v888_v3, %v889_v46  ;;  %v3625_v40 = vsel %vm887_vm1, %v889_v46, %v891_v58 }
  0x8f   : > { %v899_v17 = vrot.slane %v3456_v45, 2  ;;  %v903_v33 = vrot.slane %v3464_v30, 2  ;;  %v906_v43 = vrot.slane %v3472_v23, 2  ;;  %v909_v3 = vrot.slane %v3480_v34, 2 }
  0x90   : > { %v911_v27 = vrot.slane %v3484_v35, 2  ;;  %v913_v46 = vrot.slane %v3488_v59, 2  ;;  %v914_v58 = vrot.slane %v3492_v53, 2  ;;  %v918_v45 = vrot.slane %v3500_v55, 2 }
  0x91   : > { %v921_v30 = vrot.slane %v3508_v56, 2  ;;  %v924_v23 = vrot.slane %v3516_v37, 2  ;;  %v895_v34 = vsel %vm887_vm1, %v893_v61, %v894_v18  ;;  %v897_v35 = vsel %vm887_vm1, %v894_v18, %v896_v42 }
  0x92   : > { %v928_v53 = vrot.slane %v3524_v52, 2  ;;  %v900_v55 = vsel %vm887_vm1, %v898_v54, %v899_v17  ;;  %v902_v22 = vsel %vm887_vm1, %v899_v17, %v901_v19  ;;  %v905_v56 = vsel %vm887_vm1, %v903_v33, %v904_v26 }
  0x93   : > { %v907_v51 = vsel %vm887_vm1, %v904_v26, %v906_v43  ;;  %v910_v37 = vsel %vm887_vm1, %v908_v57, %v909_v3  ;;  %v912_v38 = vsel %vm887_vm1, %v909_v3, %v911_v27  ;;  %v915_v61 = vsel %vm887_vm1, %v913_v46, %v914_v58 }
  0x94   : > { %v917_v42 = vsel %vm887_vm1, %v914_v58, %v916_v44  ;;  %v920_v18 = vsel %vm887_vm1, %v918_v45, %v919_v49  ;;  %v922_v9 = vsel %vm887_vm1, %v919_v49, %v921_v30  ;;  %v925_v54 = vsel %vm887_vm1, %v923_v7, %v924_v23 }
  0x95   : > { %v927_v19 = vsel %vm887_vm1, %v924_v23, %v926_v39  ;;  %v930_v17 = vsel %vm887_vm1, %v928_v53, %v929_v0  ;;  %v931_v52 = vrot.slane %v3532_v2, 2  ;;  %v933_v59 = vrot.slane %v3536_v31, 2 }
  0x96   : > { %v934_v27 = vrot.slane %v3540_v24, 2  ;;  %v936_v33 = vrot.slane %v3544_v36, 2  ;;  %v938_v26 = vrot.slane %v3548_v41, 2  ;;  %v939_v43 = vrot.slane %v3552_v13, 2 }
  0x97   : > { %v941_v57 = vrot.slane %v3556_v12, 2  ;;  %v943_v3 = vrot.slane %v3560_v20, 2  ;;  %v944_v46 = vrot.slane %v3564_v28, 2  ;;  %v946_v58 = vrot.slane %v3568_v6, 2 }
  0x98   : > { %v948_v2 = vrot.slane %v3572_v32, 2  ;;  %v949_v31 = vrot.slane %v3576_v47, 2  ;;  %v951_v24 = vrot.slane %v3580_v1, 2  ;;  %v953_v36 = vrot.slane %v3584_v11, 2 }
  0x99   : > { %v954_v41 = vrot.slane %v3588_v48, 2  ;;  %v956_v13 = vrot.slane %v3592_v50, 2  ;;  %v958_v12 = vrot.slane %v3596_v25, 2  ;;  %v959_v20 = vrot.slane %v3600_v14, 2 }
  0x9a   : > { %v961_v28 = vrot.slane %v3604_v21, 2  ;;  %v932_v6 = vsel %vm887_vm1, %v929_v0, %v931_v52  ;;  %v963_v32 = vrot.slane %v3608_v4, 2  ;;  %v964_v47 = vrot.slane %v3612_v8, 2 }
  0x9b   : > { %v966_v1 = vrot.slane %v3616_v29, 2  ;;  %v935_v11 = vsel %vm887_vm1, %v933_v59, %v934_v27  ;;  %v937_v48 = vsel %vm887_vm1, %v934_v27, %v936_v33  ;;  %v940_v50 = vsel %vm887_vm1, %v938_v26, %v939_v43  ;;  %v6257_v27 = vld [vmem:[#allocation79_spill] sm:$0xff] }
  0x9c   : > { %v942_v25 = vsel %vm887_vm1, %v939_v43, %v941_v57  ;;  %v945_v14 = vsel %vm887_vm1, %v943_v3, %v944_v46  ;;  %v947_v21 = vsel %vm887_vm1, %v944_v46, %v946_v58  ;;  %v950_v44 = vsel %vm887_vm1, %v948_v2, %v949_v31 }
  0x9d   : > { %v952_v4 = vsel %vm887_vm1, %v949_v31, %v951_v24  ;;  %v955_v8 = vsel %vm887_vm1, %v953_v36, %v954_v41  ;;  %v957_v29 = vsel %vm887_vm1, %v954_v41, %v956_v13  ;;  %v960_v45 = vsel %vm887_vm1, %v958_v12, %v959_v20  ;;  %v6275_v13 = vld [vmem:[#allocation59_spill] sm:$0xff] }
  0x9e   : > { %v962_v49 = vsel %vm887_vm1, %v959_v20, %v961_v28  ;;  %v965_v30 = vsel %vm887_vm1, %v963_v32, %v964_v47  ;;  %v967_v7 = vsel %vm887_vm1, %v964_v47, %v966_v1  ;;  %v3701_v23 = vadd.f32 %v3622_v15, %v3321_v62  ;;  %v6258_v62 = vld [vmem:[#allocation16_spill] sm:$0xff]  ;;  %v6281_v47 = vld [vmem:[#allocation65_spill] sm:$0xff] }
  0x9f   : > { %v3705_v39 = vadd.f32 %v3625_v40, %v3325_v63  ;;  %v3708_v53 = vadd.f32 %v895_v34, %v3331_v10  ;;  %v3711_v0 = vadd.f32 %v897_v35, %v3335_v5  ;;  %v3714_v52 = vadd.f32 %v900_v55, %v3338_v60  ;;  %v6259_v63 = vld [vmem:[#allocation19_spill] sm:$0xff]  ;;  %v6260_v10 = vld [vmem:[#allocation20_spill] sm:$0xff]  ;;  %v6262_v60 = vld [vmem:[#allocation25_spill] sm:$0xff] }
  0xa0   : > { %v3717_v59 = vadd.f32 %v902_v22, %v3341_v16  ;;  %v3720_v33 = vadd.f32 %v905_v56, %v6257_v27  ;;  %v3723_v15 = vadd.f32 %v907_v51, %v6258_v62  ;;  %v3726_v40 = vadd.f32 %v910_v37, %v6259_v63  ;;  %v6261_v5 = vld [vmem:[#allocation24_spill] sm:$0xff]  ;;  %v6263_v16 = vld [vmem:[#allocation29_spill] sm:$0xff]  ;;  %v6264_v56 = vld [vmem:[#allocation30_spill] sm:$0xff] }
  0xa1   : > { %v3729_v34 = vadd.f32 %v912_v38, %v6260_v10  ;;  %v3732_v35 = vadd.f32 %v915_v61, %v6261_v5  ;;  %v3735_v55 = vadd.f32 %v917_v42, %v6262_v60  ;;  %v3738_v22 = vadd.f32 %v920_v18, %v6263_v16  ;;  %v6265_v51 = vld [vmem:[#allocation34_spill] sm:$0xff]  ;;  %v6266_v37 = vld [vmem:[#allocation35_spill] sm:$0xff]  ;;  %v6268_v61 = vld [vmem:[#allocation40_spill] sm:$0xff] }
  0xa2   : > { %v3741_v26 = vadd.f32 %v922_v9, %v6264_v56  ;;  %v3744_v43 = vadd.f32 %v925_v54, %v6265_v51  ;;  %v3747_v57 = vadd.f32 %v927_v19, %v6266_v37  ;;  %v6267_v38 = vld [vmem:[#allocation39_spill] sm:$0xff]  ;;  %v3753_v46 = vadd.f32 %v932_v6, %v6268_v61  ;;  %v6269_v42 = vld [vmem:[#allocation44_spill] sm:$0xff]  ;;  %v6270_v18 = vld [vmem:[#allocation45_spill] sm:$0xff] }
  0xa3   : > { %v3750_v3 = vadd.f32 %v930_v17, %v6267_v38  ;;  %v3756_v58 = vadd.f32 %v935_v11, %v6269_v42  ;;  %v3759_v2 = vadd.f32 %v937_v48, %v6270_v18  ;;  %v6271_v9 = vld [vmem:[#allocation49_spill] sm:$0xff]  ;;  %v6272_v54 = vld [vmem:[#allocation50_spill] sm:$0xff]  ;;  %v6274_v17 = vld [vmem:[#allocation55_spill] sm:$0xff]  ;;  %v3774_v12 = vadd.f32 %v950_v44, %v6275_v13 }
  0xa4   : > { %v3762_v31 = vadd.f32 %v940_v50, %v6271_v9  ;;  %v3765_v24 = vadd.f32 %v942_v25, %v6272_v54  ;;  %v6273_v19 = vld [vmem:[#allocation54_spill] sm:$0xff]  ;;  %v3771_v41 = vadd.f32 %v947_v21, %v6274_v17  ;;  %v6277_v20 = vld [vmem:[#allocation60_spill] sm:$0xff]  ;;  %v3783_v1 = vadd.f32 %v957_v29, %v6281_v47  ;;  %v6285_v50 = vld [vmem:[#allocation67_spill] sm:$0xff] }
  0xa5   : > { %v3768_v36 = vadd.f32 %v945_v14, %v6273_v19  ;;  %6276 = vst [vmem:[#allocation4_spill] sm:$0xff] %v3774_v12  ;;  %v3777_v28 = vadd.f32 %v952_v4, %v6277_v20  ;;  %v6279_v6 = vld [vmem:[#allocation64_spill] sm:$0xff]  ;;  %v6283_v11 = vld [vmem:[#allocation66_spill] sm:$0xff]  ;;  %v3789_v25 = vadd.f32 %v962_v49, %v6285_v50  ;;  %v6289_v44 = vld [vmem:[#allocation71_spill] sm:$0xff] }
  0xa6   : > { %v3780_v32 = vadd.f32 %v955_v8, %v6279_v6  ;;  %6282 = vst [vmem:[#allocation16_spill] sm:$0xff] %v3783_v1  ;;  %v3786_v48 = vadd.f32 %v960_v45, %v6283_v11  ;;  %v6287_v14 = vld [vmem:[#allocation70_spill] sm:$0xff]  ;;  %v3795_v27 = vadd.f32 %v967_v7, %v6289_v44  ;;  %v6291_v4 = vld [vmem:[#allocation5_spill] sm:$0xff]  ;;  %v6292_v62 = vld [vmem:[#allocation3_spill] sm:$0xff] }
  0xa7   : > { %6278 = vst [vmem:[#allocation6_spill] sm:$0xff] %v3777_v28  ;;  %v3792_v21 = vadd.f32 %v965_v30, %v6287_v14  ;;  %v1033_v63 = vmul.f32 %v6292_v62, %v6291_v4  ;;  %v6293_v8 = vld [vmem:[#allocation7_spill] sm:$0xff]  ;;  %v6294_v29 = vld [vmem:[#allocation8_spill] sm:$0xff]  ;;  %v6295_v45 = vld [vmem:[#allocation9_spill] sm:$0xff] }
  0xa8   : > { %6280 = vst [vmem:[#allocation79_spill] sm:$0xff] %v3780_v32  ;;  %v1034_v10 = vmul.f32 %v6292_v62, %v6293_v8  ;;  %v1035_v5 = vmul.f32 %v6292_v62, %v6294_v29  ;;  %v1036_v49 = vmul.f32 %v6292_v62, %v6295_v45  ;;  %v6296_v60 = vld [vmem:[#allocation11_spill] sm:$0xff]  ;;  %v6297_v16 = vld [vmem:[#allocation12_spill] sm:$0xff]  ;;  %v6298_v56 = vld [vmem:[#allocation14_spill] sm:$0xff] }
  0xa9   : > { %6284 = vst [vmem:[#allocation19_spill] sm:$0xff] %v3786_v48  ;;  %v1037_v30 = vmul.f32 %v6292_v62, %v6296_v60  ;;  %v1038_v7 = vmul.f32 %v6292_v62, %v6297_v16  ;;  %v1039_v51 = vmul.f32 %v6292_v62, %v6298_v56  ;;  %v6299_v37 = vld [vmem:[#allocation15_spill] sm:$0xff]  ;;  %v6300_v61 = vld [vmem:[#allocation17_spill] sm:$0xff]  ;;  %v6301_v18 = vld [vmem:[#allocation18_spill] sm:$0xff]  ;;  %v3868_v12 = vadd.f32 %v1033_v63, %v3701_v23 }
  0xaa   : > { %6286 = vst [vmem:[#allocation20_spill] sm:$0xff] %v3789_v25  ;;  %v1040_v38 = vmul.f32 %v6292_v62, %v6299_v37  ;;  %v1041_v42 = vmul.f32 %v6292_v62, %v6300_v61  ;;  %v1042_v9 = vmul.f32 %v6292_v62, %v6301_v18  ;;  %v6302_v54 = vld [vmem:[#allocation22_spill] sm:$0xff]  ;;  %v6303_v17 = vld [vmem:[#allocation23_spill] sm:$0xff]  ;;  %v6305_v47 = vld [vmem:[#allocation28_spill] sm:$0xff] }
  0xab   : > { %6288 = vst [vmem:[#allocation24_spill] sm:$0xff] %v3792_v21  ;;  %v1043_v19 = vmul.f32 %v6292_v62, %v6302_v54  ;;  %v1044_v13 = vmul.f32 %v6292_v62, %v6303_v17  ;;  %v6304_v20 = vld [vmem:[#allocation27_spill] sm:$0xff]  ;;  %v1046_v11 = vmul.f32 %v6292_v62, %v6305_v47  ;;  %v6306_v50 = vld [vmem:[#allocation32_spill] sm:$0xff]  ;;  %v6307_v44 = vld [vmem:[#allocation33_spill] sm:$0xff] }
  0xac   : > { %6290 = vst [vmem:[#allocation25_spill] sm:$0xff] %v3795_v27  ;;  %v1045_v6 = vmul.f32 %v6292_v62, %v6304_v20  ;;  %v1047_v14 = vmul.f32 %v6292_v62, %v6306_v50  ;;  %v1048_v61 = vmul.f32 %v6292_v62, %v6307_v44  ;;  %v6308_v18 = vld [vmem:[#allocation37_spill] sm:$0xff]  ;;  %v6309_v54 = vld [vmem:[#allocation38_spill] sm:$0xff]  ;;  %v3834_v17 = vld [vmem:[%s2749_s28 + $0x168] sm:$0xff]  ;;  %v3889_v23 = vadd.f32 %v1040_v38, %v3723_v15 }
  0xad   : > { %v1049_v37 = vmul.f32 %v6292_v62, %v6308_v18  ;;  %v1050_v56 = vmul.f32 %v6292_v62, %v6309_v54  ;;  %6310 = vst [vmem:[#allocation29_spill] sm:$0xff] %v3834_v17  ;;  %v6311_v16 = vld [vmem:[#allocation42_spill] sm:$0xff]  ;;  %v6312_v60 = vld [vmem:[#allocation43_spill] sm:$0xff]  ;;  %v6314_v29 = vld [vmem:[#allocation48_spill] sm:$0xff] }
  0xae   : > { %v1051_v20 = vmul.f32 %v6292_v62, %v6311_v16  ;;  %v1052_v47 = vmul.f32 %v6292_v62, %v6312_v60  ;;  %v6313_v45 = vld [vmem:[#allocation47_spill] sm:$0xff]  ;;  %v1054_v44 = vmul.f32 %v6292_v62, %v6314_v29  ;;  %v6315_v8 = vld [vmem:[#allocation52_spill] sm:$0xff]  ;;  %v6316_v4 = vld [vmem:[#allocation53_spill] sm:$0xff]  ;;  %6324 = vst [vmem:[#allocation34_spill] sm:$0xff] %v3889_v23  ;;  %v3910_v15 = vadd.f32 %v1047_v14, %v3744_v43 }
  0xaf   : > { %v1053_v50 = vmul.f32 %v6292_v62, %v6313_v45  ;;  %v1055_v18 = vmul.f32 %v6292_v62, %v6315_v8  ;;  %v1056_v54 = vmul.f32 %v6292_v62, %v6316_v4  ;;  %v6317_v27 = vld [vmem:[#allocation56_spill] sm:$0xff]  ;;  %v6318_v25 = vld [vmem:[#allocation57_spill] sm:$0xff]  ;;  %v6320_v60 = vld [vmem:[#allocation58_spill] sm:$0xff] }
  0xb0   : > { %v1057_v21 = vmul.f32 %v6292_v62, %v6317_v27  ;;  %v1058_v16 = vmul.f32 %v6292_v62, %v6318_v25  ;;  %v3853_v48 = vld [vmem:[%s2749_s28 + $0x170] sm:$0xff]  ;;  %v1059_v45 = vmul.f32 %v6292_v62, %v6320_v60  ;;  %v6321_v1 = vld [vmem:[#allocation61_spill] sm:$0xff]  ;;  %v6322_v32 = vld [vmem:[#allocation62_spill] sm:$0xff]  ;;  %v1063_v27 = vmul.f32 %v6292_v62, %v3834_v17  ;;  %6331 = vst [vmem:[#allocation50_spill] sm:$0xff] %v3910_v15 }
  0xb1   : > { %6319 = vst [vmem:[#allocation30_spill] sm:$0xff] %v3853_v48  ;;  %v1060_v29 = vmul.f32 %v6292_v62, %v6321_v1  ;;  %v1061_v8 = vmul.f32 %v6292_v62, %v6322_v32  ;;  %v6323_v28 = vld [vmem:[#allocation63_spill] sm:$0xff]  ;;  %v1064_v25 = vmul.f32 %v6292_v62, %v3853_v48  ;;  %v3871_v60 = vadd.f32 %v1034_v10, %v3705_v39  ;;  %v6338_v43 = vld [vmem:[#allocation2_spill] sm:$0xff] }
  0xb2   : > { %v1062_v4 = vmul.f32 %v6292_v62, %v6323_v28  ;;  %v3874_v1 = vadd.f32 %v1035_v5, %v3708_v53  ;;  %v3877_v32 = vadd.f32 %v1036_v49, %v3711_v0  ;;  %v3880_v28 = vadd.f32 %v1037_v30, %v3714_v52  ;;  %v6348_v30 = vld [vmem:[#allocation16_spill] sm:$0xff]  ;;  %v6368_v14 = vld [vmem:[#allocation14_spill] sm:$0xff] }
  0xb3   : > { %v3883_v17 = vadd.f32 %v1038_v7, %v3717_v59  ;;  %v3886_v62 = vadd.f32 %v1039_v51, %v3720_v33  ;;  %v3892_v39 = vadd.f32 %v1041_v42, %v3726_v40  ;;  %v3895_v53 = vadd.f32 %v1042_v9, %v3729_v34 }
  0xb4   : > { %v3898_v0 = vadd.f32 %v1043_v19, %v3732_v35  ;;  %v3901_v52 = vadd.f32 %v1044_v13, %v3735_v55  ;;  %v3904_v59 = vadd.f32 %v1045_v6, %v3738_v22  ;;  %v3907_v33 = vadd.f32 %v1046_v11, %v3741_v26  ;;  %v6365_v13 = vld [vmem:[#allocation11_spill] sm:$0xff]  ;;  %v6366_v6 = vld [vmem:[#allocation12_spill] sm:$0xff]  ;;  %v6367_v11 = vld [vmem:[#allocation21_spill] sm:$0xff] }
  0xb5   : > { %6325 = vst [vmem:[#allocation35_spill] sm:$0xff] %v3892_v39  ;;  %v3913_v40 = vadd.f32 %v1048_v61, %v3747_v57  ;;  %v3916_v34 = vadd.f32 %v1049_v37, %v3750_v3  ;;  %v3919_v35 = vadd.f32 %v1050_v56, %v3753_v46  ;;  %v3922_v55 = vadd.f32 %v1051_v20, %v3756_v58  ;;  %v6342_v58 = vld [vmem:[#allocation4_spill] sm:$0xff]  ;;  %v6403_v39 = vld [vmem:[#allocation63_spill] sm:$0xff] }
  0xb6   : > { %6326 = vst [vmem:[#allocation39_spill] sm:$0xff] %v3895_v53  ;;  %v3925_v22 = vadd.f32 %v1052_v47, %v3759_v2  ;;  %v3928_v26 = vadd.f32 %v1053_v50, %v3762_v31  ;;  %v3931_v63 = vperm.slane %v6338_v43, 1  ;;  %v3934_v57 = vadd.f32 %v1054_v44, %v3765_v24  ;;  %v6344_v2 = vld [vmem:[#allocation6_spill] sm:$0xff]  ;;  %v6346_v31 = vld [vmem:[#allocation79_spill] sm:$0xff] }
  0xb7   : > { %6327 = vst [vmem:[#allocation40_spill] sm:$0xff] %v3898_v0  ;;  %v3937_v3 = vadd.f32 %v1055_v18, %v3768_v36  ;;  %v3940_v46 = vadd.f32 %v1056_v54, %v3771_v41  ;;  %v3943_v10 = vadd.f32 %v1057_v21, %v6342_v58  ;;  %v3946_v5 = vadd.f32 %v1058_v16, %v6344_v2  ;;  %v6350_v24 = vld [vmem:[#allocation19_spill] sm:$0xff]  ;;  %v6352_v36 = vld [vmem:[#allocation20_spill] sm:$0xff]  ;;  %v6356_v21 = vld [vmem:[#allocation25_spill] sm:$0xff] }
  0xb8   : > { %6328 = vst [vmem:[#allocation44_spill] sm:$0xff] %v3901_v52  ;;  %v3949_v49 = vadd.f32 %v1059_v45, %v6346_v31  ;;  %v3952_v7 = vadd.f32 %v1060_v29, %v6348_v30  ;;  %v3955_v56 = vadd.f32 %v1061_v8, %v6350_v24  ;;  %v3958_v51 = vadd.f32 %v1062_v4, %v6352_v36  ;;  %v6354_v41 = vld [vmem:[#allocation24_spill] sm:$0xff]  ;;  %v6359_v45 = vld [vmem:[#allocation5_spill] sm:$0xff]  ;;  %v6360_v29 = vld [vmem:[#allocation7_spill] sm:$0xff] }
  0xb9   : > { %6329 = vst [vmem:[#allocation45_spill] sm:$0xff] %v3904_v59  ;;  %v3961_v37 = vadd.f32 %v1063_v27, %v6354_v41  ;;  %v3964_v38 = vadd.f32 %v1064_v25, %v6356_v21  ;;  %v3967_v16 = vperm.slane %v6338_v43, 2  ;;  %v1098_v61 = vmul.f32 %v3931_v63, %v6359_v45  ;;  %v6361_v8 = vld [vmem:[#allocation10_spill] sm:$0xff]  ;;  %v6362_v4 = vld [vmem:[#allocation8_spill] sm:$0xff]  ;;  %v6363_v27 = vld [vmem:[#allocation9_spill] sm:$0xff] }
  0xba   : > { %6330 = vst [vmem:[#allocation49_spill] sm:$0xff] %v3907_v33  ;;  %v1099_v42 = vmul.f32 %v3931_v63, %v6360_v29  ;;  %v1100_v18 = vmul.f32 %v3931_v63, %v6361_v8  ;;  %v1101_v9 = vmul.f32 %v3931_v63, %v6362_v4  ;;  %v1102_v54 = vmul.f32 %v3931_v63, %v6363_v27  ;;  %v6364_v25 = vld [vmem:[#allocation13_spill] sm:$0xff]  ;;  %v6369_v43 = vld [vmem:[#allocation15_spill] sm:$0xff]  ;;  %v6370_v2 = vld [vmem:[#allocation26_spill] sm:$0xff] }
  0xbb   : > { %6332 = vst [vmem:[#allocation54_spill] sm:$0xff] %v3913_v40  ;;  %v1103_v19 = vmul.f32 %v3931_v63, %v6364_v25  ;;  %v3983_v20 = vmul.f32 %v3931_v63, %v6365_v13  ;;  %v3987_v47 = vmul.f32 %v3931_v63, %v6366_v6  ;;  %v3991_v50 = vmul.f32 %v3931_v63, %v6367_v11  ;;  %v6371_v30 = vld [vmem:[#allocation17_spill] sm:$0xff]  ;;  %v6372_v36 = vld [vmem:[#allocation18_spill] sm:$0xff]  ;;  %v6373_v21 = vld [vmem:[#allocation31_spill] sm:$0xff] }
  0xbc   : > { %6333 = vst [vmem:[#allocation55_spill] sm:$0xff] %v3916_v34  ;;  %v3995_v44 = vmul.f32 %v3931_v63, %v6368_v14  ;;  %v3999_v58 = vmul.f32 %v3931_v63, %v6369_v43  ;;  %v4003_v31 = vmul.f32 %v3931_v63, %v6370_v2  ;;  %v4007_v24 = vmul.f32 %v3931_v63, %v6371_v30  ;;  %v6374_v29 = vld [vmem:[#allocation22_spill] sm:$0xff]  ;;  %v6375_v4 = vld [vmem:[#allocation23_spill] sm:$0xff]  ;;  %v6376_v25 = vld [vmem:[#allocation36_spill] sm:$0xff] }
  0xbd   : > { %6334 = vst [vmem:[#allocation59_spill] sm:$0xff] %v3919_v35  ;;  %v4011_v41 = vmul.f32 %v3931_v63, %v6372_v36  ;;  %v4015_v45 = vmul.f32 %v3931_v63, %v6373_v21  ;;  %v4019_v8 = vmul.f32 %v3931_v63, %v6374_v29  ;;  %v4023_v27 = vmul.f32 %v3931_v63, %v6375_v4  ;;  %v6377_v6 = vld [vmem:[#allocation27_spill] sm:$0xff]  ;;  %v6378_v14 = vld [vmem:[#allocation28_spill] sm:$0xff]  ;;  %v6379_v2 = vld [vmem:[#allocation41_spill] sm:$0xff] }
  0xbe   : > { %6335 = vst [vmem:[#allocation60_spill] sm:$0xff] %v3922_v55  ;;  %v4027_v13 = vmul.f32 %v3931_v63, %v6376_v25  ;;  %v4031_v11 = vmul.f32 %v3931_v63, %v6377_v6  ;;  %v4035_v43 = vmul.f32 %v3931_v63, %v6378_v14  ;;  %v4039_v30 = vmul.f32 %v3931_v63, %v6379_v2  ;;  %v6380_v36 = vld [vmem:[#allocation32_spill] sm:$0xff]  ;;  %v6381_v29 = vld [vmem:[#allocation33_spill] sm:$0xff]  ;;  %v6382_v25 = vld [vmem:[#allocation46_spill] sm:$0xff] }
  0xbf   : > { %6336 = vst [vmem:[#allocation64_spill] sm:$0xff] %v3925_v22  ;;  %v4043_v21 = vmul.f32 %v3931_v63, %v6380_v36  ;;  %v4047_v4 = vmul.f32 %v3931_v63, %v6381_v29  ;;  %v4051_v6 = vmul.f32 %v3931_v63, %v6382_v25  ;;  %v6396_v22 = vld [vmem:[#allocation57_spill] sm:$0xff]  ;;  %v6397_v55 = vld [vmem:[#allocation76_spill] sm:$0xff]  ;;  %v6398_v35 = vld [vmem:[#allocation58_spill] sm:$0xff]  ;;  %v1195_v15 = vrot.slane %v1099_v42, 1 }
  0xc0   : > { %6337 = vst [vmem:[#allocation65_spill] sm:$0xff] %v3928_v26  ;;  %v6395_v26 = vld [vmem:[#allocation56_spill] sm:$0xff]  ;;  %v4118_v34 = vld [vmem:[%s2749_s28 + $0x178] sm:$0x3]  ;;  %v1197_v33 = vrot.slane %v1100_v18, 1  ;;  %v1199_v52 = vrot.slane %v1101_v9, 1  ;;  %v4134_v23 = vmul.f32 %v3931_v63, %v6403_v39 }
  0xc1   : > { %6339 = vst [vmem:[#allocation66_spill] sm:$0xff] %v3934_v57  ;;  %v6394_v57 = vld [vmem:[#allocation72_spill] sm:$0xff]  ;;  %v6401_v59 = vld [vmem:[#allocation77_spill] sm:$0xff]  ;;  %v1202_v0 = vrot.slane %v1103_v19, 1  ;;  %v6402_v53 = vld [vmem:[#allocation62_spill] sm:$0xff]  ;;  %v1204_v9 = vrot.slane %v3983_v20, 1 }
  0xc2   : > { %6340 = vst [vmem:[#allocation67_spill] sm:$0xff] %v3937_v3  ;;  %v6393_v3 = vld [vmem:[#allocation53_spill] sm:$0xff]  ;;  %v1205_v39 = vrot.slane %v3987_v47, 1  ;;  %v4158_v19 = vsel %vm645_vm0, %v1195_v15, %v1197_v33  ;;  %v1210_v20 = vrot.slane %v3999_v58, 1  ;;  %v1212_v47 = vrot.slane %v4003_v31, 1 }
  0xc3   : > { %6341 = vst [vmem:[#allocation70_spill] sm:$0xff] %v3940_v46  ;;  %v6392_v46 = vld [vmem:[#allocation52_spill] sm:$0xff]  ;;  %v6405_v42 = vld [vmem:[#allocation29_spill] sm:$0xff]  ;;  %v1217_v33 = vrot.slane %v4015_v45, 1  ;;  %v1227_v58 = vrot.slane %v4039_v30, 1  ;;  %v1229_v31 = vrot.slane %v4043_v21, 1 }
  0xc4   : > { %6343 = vst [vmem:[#allocation71_spill] sm:$0xff] %v3943_v10  ;;  %v6391_v10 = vld [vmem:[#allocation69_spill] sm:$0xff]  ;;  %v4142_v18 = vmul.f32 %v3931_v63, %v6405_v42  ;;  %v1209_v42 = vrot.slane %v3995_v44, 1  ;;  %v1224_v44 = vrot.slane %v4031_v11, 1  ;;  %v1206_v45 = vsel %vm645_vm0, %v1204_v9, %v1205_v39 }
  0xc5   : > { %6345 = vst [vmem:[#allocation3_spill] sm:$0xff] %v3946_v5  ;;  %v6390_v5 = vld [vmem:[#allocation48_spill] sm:$0xff] }
  0xc6   : > { %6347 = vst [vmem:[#allocation2_spill] sm:$0xff] %v3949_v49  ;;  %v6389_v49 = vld [vmem:[#allocation47_spill] sm:$0xff]  ;;  %v1211_v11 = vsel %vm645_vm0, %v1209_v42, %v1210_v20 }
  0xc7   : > { %6349 = vst [vmem:[#allocation4_spill] sm:$0xff] %v3952_v7  ;;  %v6388_v7 = vld [vmem:[#allocation68_spill] sm:$0xff] }
  0xc8   : > { %6351 = vst [vmem:[#allocation6_spill] sm:$0xff] %v3955_v56  ;;  %v6387_v56 = vld [vmem:[#allocation43_spill] sm:$0xff] }
  0xc9   : > { %6353 = vst [vmem:[#allocation79_spill] sm:$0xff] %v3958_v51  ;;  %v6386_v51 = vld [vmem:[#allocation42_spill] sm:$0xff]  ;;  %v4071_v25 = vmul.f32 %v3931_v63, %v6387_v56  ;;  %v4091_v56 = vmul.f32 %v3931_v63, %v6392_v46  ;;  %v4111_v46 = vmul.f32 %v3931_v63, %v6397_v55  ;;  %v1200_v55 = vrot.slane %v1102_v54, 1 }
  0xca   : > { %6355 = vst [vmem:[#allocation16_spill] sm:$0xff] %v3961_v37  ;;  %v6385_v37 = vld [vmem:[#allocation51_spill] sm:$0xff]  ;;  %v4067_v29 = vmul.f32 %v3931_v63, %v6386_v51  ;;  %v4087_v51 = vmul.f32 %v3931_v63, %v6391_v10  ;;  %v4107_v10 = vmul.f32 %v3931_v63, %v6396_v22  ;;  %v4126_v22 = vmul.f32 %v3931_v63, %v6401_v59 }
  0xcb   : > { %6357 = vst [vmem:[#allocation19_spill] sm:$0xff] %v3964_v38  ;;  %v6384_v38 = vld [vmem:[#allocation38_spill] sm:$0xff]  ;;  %v4063_v36 = vmul.f32 %v3931_v63, %v6385_v37  ;;  %v4083_v37 = vmul.f32 %v3931_v63, %v6390_v5  ;;  %v4103_v5 = vmul.f32 %v3931_v63, %v6395_v26  ;;  %v1194_v26 = vrot.slane %v1098_v61, 1 }
  0xcc   : > { %6358 = vst [vmem:[#allocation20_spill] sm:$0xff] %v3967_v16  ;;  %v6383_v16 = vld [vmem:[#allocation37_spill] sm:$0xff]  ;;  %v4059_v2 = vmul.f32 %v3931_v63, %v6384_v38  ;;  %v4079_v38 = vmul.f32 %v3931_v63, %v6389_v49  ;;  %v4099_v49 = vmul.f32 %v3931_v63, %v6394_v57  ;;  %v4146_v59 = vmul.f32 %v3931_v63, %v3853_v48 }
  0xcd   : > { %v4055_v14 = vmul.f32 %v3931_v63, %v6383_v16  ;;  %v4075_v16 = vmul.f32 %v3931_v63, %v6388_v7  ;;  %v4095_v7 = vmul.f32 %v3931_v63, %v6393_v3  ;;  %v4115_v3 = vmul.f32 %v3931_v63, %v6398_v35  ;;  %6399 = vst [vmem:[#allocation24_spill] sm:$0xff] %v4118_v34  ;;  %v6400_v57 = vld [vmem:[#allocation61_spill] sm:$0xff] }
  0xce   : > { %v4122_v40 = vmul.f32 %v3931_v63, %v6400_v57  ;;  %v4130_v35 = vmul.f32 %v3931_v63, %v6402_v53  ;;  %v6404_v57 = vld [vmem:[#allocation78_spill] sm:$0xff]  ;;  %v4150_v53 = vmul.f32 %v3931_v63, %v4118_v34  ;;  %v4155_v54 = vsel %vm645_vm0, %v1194_v26, %v1195_v15 }
  0xcf   : > { %v4138_v61 = vmul.f32 %v3931_v63, %v6404_v57  ;;  %v1207_v57 = vrot.slane %v3991_v50, 1  ;;  %v4163_v48 = vsel %vm645_vm0, %v1199_v52, %v1200_v55  ;;  %v4166_v63 = vsel %vm645_vm0, %v1200_v55, %v1202_v0 }
  0xd0   : > { %v1214_v26 = vrot.slane %v4007_v24, 1  ;;  %v1215_v34 = vrot.slane %v4011_v41, 1  ;;  %v1219_v15 = vrot.slane %v4019_v8, 1  ;;  %v1220_v50 = vrot.slane %v4023_v27, 1 }
  0xd1   : > { %v1222_v52 = vrot.slane %v4027_v13, 1  ;;  %v1225_v0 = vrot.slane %v4035_v43, 1  ;;  %v1230_v24 = vrot.slane %v4047_v4, 1  ;;  %v1232_v41 = vrot.slane %v4051_v6, 1 }
  0xd2   : > { %v1208_v8 = vsel %vm645_vm0, %v1205_v39, %v1207_v57  ;;  %v1234_v27 = vrot.slane %v4055_v14, 1  ;;  %v1235_v13 = vrot.slane %v4059_v2, 1  ;;  %v1213_v43 = vsel %vm645_vm0, %v1210_v20, %v1212_v47 }
  0xd3   : > { %v1216_v30 = vsel %vm645_vm0, %v1214_v26, %v1215_v34  ;;  %v1237_v21 = vrot.slane %v4063_v36, 1  ;;  %v1218_v4 = vsel %vm645_vm0, %v1215_v34, %v1217_v33  ;;  %v1221_v6 = vsel %vm645_vm0, %v1219_v15, %v1220_v50 }
  0xd4   : > { %v1223_v55 = vsel %vm645_vm0, %v1220_v50, %v1222_v52  ;;  %v1226_v9 = vsel %vm645_vm0, %v1224_v44, %v1225_v0  ;;  %v1228_v14 = vsel %vm645_vm0, %v1225_v0, %v1227_v58  ;;  %v1231_v2 = vsel %vm645_vm0, %v1229_v31, %v1230_v24 }
  0xd5   : > { %v1233_v42 = vsel %vm645_vm0, %v1230_v24, %v1232_v41  ;;  %v1239_v39 = vrot.slane %v4067_v29, 1  ;;  %v1236_v57 = vsel %vm645_vm0, %v1234_v27, %v1235_v13  ;;  %v1240_v36 = vrot.slane %v4071_v25, 1 }
  0xd6   : > { %v1242_v34 = vrot.slane %v4075_v16, 1  ;;  %v1244_v20 = vrot.slane %v4079_v38, 1  ;;  %v1238_v47 = vsel %vm645_vm0, %v1235_v13, %v1237_v21  ;;  %v1245_v26 = vrot.slane %v4083_v37, 1 }
  0xd7   : > { %v1247_v33 = vrot.slane %v4087_v51, 1  ;;  %v1249_v15 = vrot.slane %v4091_v56, 1  ;;  %v1250_v50 = vrot.slane %v4095_v7, 1  ;;  %v1252_v29 = vrot.slane %v4099_v49, 1 }
  0xd8   : > { %v1254_v52 = vrot.slane %v4103_v5, 1  ;;  %v1255_v25 = vrot.slane %v4107_v10, 1  ;;  %v1257_v16 = vrot.slane %v4111_v46, 1  ;;  %v1259_v38 = vrot.slane %v4115_v3, 1 }
  0xd9   : > { %v1260_v44 = vrot.slane %v4122_v40, 1  ;;  %v1262_v37 = vrot.slane %v4126_v22, 1  ;;  %v1241_v51 = vsel %vm645_vm0, %v1239_v39, %v1240_v36  ;;  %v1264_v56 = vrot.slane %v4130_v35, 1 }
  0xda   : > { %v1265_v7 = vrot.slane %v4134_v23, 1  ;;  %v1267_v49 = vrot.slane %v4138_v61, 1  ;;  %v1243_v5 = vsel %vm645_vm0, %v1240_v36, %v1242_v34  ;;  %v1269_v10 = vrot.slane %v4142_v18, 1  ;;  %v6412_v36 = vld [vmem:[#allocation35_spill] sm:$0xff] }
  0xdb   : > { %v1270_v46 = vrot.slane %v4146_v59, 1  ;;  %v1272_v3 = vrot.slane %v4150_v53, 1  ;;  %v1246_v40 = vsel %vm645_vm0, %v1244_v20, %v1245_v26  ;;  %v1248_v22 = vsel %vm645_vm0, %v1245_v26, %v1247_v33 }
  0xdc   : > { %v1251_v0 = vsel %vm645_vm0, %v1249_v15, %v1250_v50  ;;  %v1253_v35 = vsel %vm645_vm0, %v1250_v50, %v1252_v29  ;;  %v1256_v23 = vsel %vm645_vm0, %v1254_v52, %v1255_v25  ;;  %v1258_v61 = vsel %vm645_vm0, %v1255_v25, %v1257_v16  ;;  %v6436_v29 = vld [vmem:[#allocation65_spill] sm:$0xff]  ;;  %v6438_v52 = vld [vmem:[#allocation66_spill] sm:$0xff] }
  0xdd   : > { %v1261_v58 = vsel %vm645_vm0, %v1259_v38, %v1260_v44  ;;  %v1263_v18 = vsel %vm645_vm0, %v1260_v44, %v1262_v37  ;;  %v1266_v59 = vsel %vm645_vm0, %v1264_v56, %v1265_v7  ;;  %v1268_v53 = vsel %vm645_vm0, %v1265_v7, %v1267_v49  ;;  %v6442_v16 = vld [vmem:[#allocation70_spill] sm:$0xff]  ;;  %v6444_v38 = vld [vmem:[#allocation71_spill] sm:$0xff]  ;;  %v6450_v49 = vld [vmem:[#allocation4_spill] sm:$0xff] }
  0xde   : > { %v4234_v31 = vadd.f32 %v4155_v54, %v3868_v12  ;;  %v4238_v24 = vadd.f32 %v4158_v19, %v3871_v60  ;;  %v1271_v41 = vsel %vm645_vm0, %v1269_v10, %v1270_v46  ;;  %v1273_v27 = vsel %vm645_vm0, %v1270_v46, %v1272_v3  ;;  %v6410_v54 = vld [vmem:[#allocation34_spill] sm:$0xff]  ;;  %v6446_v37 = vld [vmem:[#allocation3_spill] sm:$0xff] }
  0xdf   : > { %v4244_v13 = vadd.f32 %v4163_v48, %v3874_v1  ;;  %v4248_v21 = vadd.f32 %v4166_v63, %v3877_v32  ;;  %v4251_v39 = vadd.f32 %v1206_v45, %v3880_v28  ;;  %v4254_v12 = vadd.f32 %v1208_v8, %v3883_v17  ;;  %v6414_v1 = vld [vmem:[#allocation39_spill] sm:$0xff]  ;;  %v6416_v32 = vld [vmem:[#allocation40_spill] sm:$0xff]  ;;  %v6420_v17 = vld [vmem:[#allocation45_spill] sm:$0xff] }
  0xe0   : > { %v4257_v60 = vadd.f32 %v1211_v11, %v3886_v62  ;;  %v4260_v19 = vadd.f32 %v1213_v43, %v6410_v54  ;;  %v4263_v34 = vadd.f32 %v1216_v30, %v6412_v36  ;;  %v4266_v48 = vadd.f32 %v1218_v4, %v6414_v1  ;;  %v6418_v28 = vld [vmem:[#allocation44_spill] sm:$0xff]  ;;  %v6422_v62 = vld [vmem:[#allocation49_spill] sm:$0xff]  ;;  %v6424_v43 = vld [vmem:[#allocation50_spill] sm:$0xff] }
  0xe1   : > { %6406 = vst [vmem:[#allocation25_spill] sm:$0xff] %v4248_v21  ;;  %v4269_v63 = vadd.f32 %v1221_v6, %v6416_v32  ;;  %v4272_v45 = vadd.f32 %v1223_v55, %v6418_v28  ;;  %v4275_v8 = vadd.f32 %v1226_v9, %v6420_v17  ;;  %v4278_v11 = vadd.f32 %v1228_v14, %v6422_v62  ;;  %v6426_v30 = vld [vmem:[#allocation54_spill] sm:$0xff]  ;;  %v6428_v4 = vld [vmem:[#allocation55_spill] sm:$0xff]  ;;  %v6432_v55 = vld [vmem:[#allocation60_spill] sm:$0xff] }
  0xe2   : > { %6407 = vst [vmem:[#allocation5_spill] sm:$0xff] %v4251_v39  ;;  %v4281_v20 = vadd.f32 %v1231_v2, %v6424_v43  ;;  %v4284_v26 = vadd.f32 %v1233_v42, %v6426_v30  ;;  %v4287_v33 = vadd.f32 %v1236_v57, %v6428_v4  ;;  %v6430_v6 = vld [vmem:[#allocation59_spill] sm:$0xff]  ;;  %v4293_v50 = vadd.f32 %v1241_v51, %v6432_v55  ;;  %v6434_v9 = vld [vmem:[#allocation64_spill] sm:$0xff]  ;;  %v6448_v56 = vld [vmem:[#allocation2_spill] sm:$0xff] }
  0xe3   : > { %6408 = vst [vmem:[#allocation7_spill] sm:$0xff] %v4254_v12  ;;  %v4290_v15 = vadd.f32 %v1238_v47, %v6430_v6  ;;  %v4296_v14 = vadd.f32 %v1243_v5, %v6434_v9  ;;  %v4299_v2 = vadd.f32 %v1246_v40, %v6436_v29  ;;  %v4302_v42 = vadd.f32 %v1248_v22, %v6438_v52  ;;  %v6440_v57 = vld [vmem:[#allocation67_spill] sm:$0xff]  ;;  %v6452_v10 = vld [vmem:[#allocation6_spill] sm:$0xff]  ;;  %v6456_v22 = vld [vmem:[#allocation16_spill] sm:$0xff] }
  0xe4   : > { %6409 = vst [vmem:[#allocation10_spill] sm:$0xff] %v4257_v60  ;;  %v4305_v25 = vadd.f32 %v1251_v0, %v6440_v57  ;;  %v4308_v47 = vadd.f32 %v1253_v35, %v6442_v16  ;;  %v4311_v44 = vadd.f32 %v1256_v23, %v6444_v38  ;;  %v4314_v51 = vadd.f32 %v1258_v61, %v6446_v37  ;;  %v6454_v3 = vld [vmem:[#allocation79_spill] sm:$0xff]  ;;  %v2615_v61 = vld [vmem:[%s2749_s28] sm:$0xff]  ;;  %v2617_v36 = vld [vmem:[%s2749_s28 + $0x10] sm:$0x3] }
  0xe5   : > { %6411 = vst [vmem:[#allocation8_spill] sm:$0xff] %v4260_v19  ;;  %v4317_v7 = vadd.f32 %v1261_v58, %v6448_v56  ;;  %v4320_v5 = vadd.f32 %v1263_v18, %v6450_v49  ;;  %v4323_v46 = vadd.f32 %v1266_v59, %v6452_v10  ;;  %v4326_v40 = vadd.f32 %v1268_v53, %v6454_v3  ;;  %v6458_v35 = vld [vmem:[#allocation19_spill] sm:$0xff]  ;;  %v6459_v58 = vld [vmem:[#allocation20_spill] sm:$0xff]  ;;  %v4354_v1 = vld [vmem:[%s2749_s28 + $0x20] sm:$0xff] }
  0xe6   : > { %6413 = vst [vmem:[#allocation9_spill] sm:$0xff] %v4263_v34  ;;  %v4329_v0 = vadd.f32 %v1271_v41, %v6456_v22  ;;  %v4332_v23 = vadd.f32 %v1273_v27, %v6458_v35  ;;  %v4336_v54 = vmul.f32 %v2615_v61, %v6459_v58  ;;  %v2616_v18 = vld [vmem:[%s2749_s28 + $0x8] sm:$0xff]  ;;  %v4344_v53 = vmul.f32 %v2617_v36, %v6459_v58  ;;  %v4347_v41 = vld [vmem:[%s2749_s28 + $0x18] sm:$0xff]  ;;  %v4368_v62 = vld [vmem:[%s2749_s28 + $0x30] sm:$0xff] }
  0xe7   : > { %6415 = vst [vmem:[#allocation13_spill] sm:$0xff] %v4266_v48  ;;  %v4340_v59 = vmul.f32 %v2616_v18, %v6459_v58  ;;  %v4351_v27 = vmul.f32 %v4347_v41, %v6459_v58  ;;  %v4358_v32 = vmul.f32 %v4354_v1, %v6459_v58  ;;  %v4361_v28 = vld [vmem:[%s2749_s28 + $0x28] sm:$0x3]  ;;  %v4372_v43 = vmul.f32 %v4368_v62, %v6459_v58  ;;  %v4375_v30 = vld [vmem:[%s2749_s28 + $0x38] sm:$0xff]  ;;  %v4382_v6 = vld [vmem:[%s2749_s28 + $0x40] sm:$0x3] }
  0xe8   : > { %6417 = vst [vmem:[#allocation11_spill] sm:$0xff] %v4269_v63  ;;  %v4365_v17 = vmul.f32 %v4361_v28, %v6459_v58  ;;  %v4379_v4 = vmul.f32 %v4375_v30, %v6459_v58  ;;  %v4386_v55 = vmul.f32 %v4382_v6, %v6459_v58  ;;  %v4389_v9 = vld [vmem:[%s2749_s28 + $0x48] sm:$0xff]  ;;  %v4396_v52 = vld [vmem:[%s2749_s28 + $0x50] sm:$0xff]  ;;  %v4407_v37 = vld [vmem:[%s2749_s28 + $0x58] sm:$0x3]  ;;  %v1438_v60 = vrot.slane %v4344_v53, 2 }
  0xe9   : > { %6419 = vst [vmem:[#allocation12_spill] sm:$0xff] %v4272_v45  ;;  %v4393_v29 = vmul.f32 %v4389_v9, %v6459_v58  ;;  %v4400_v57 = vmul.f32 %v4396_v52, %v6459_v58  ;;  %v6468_v16 = vld [vmem:[#allocation24_spill] sm:$0xff]  ;;  %v4411_v56 = vmul.f32 %v4407_v37, %v6459_v58  ;;  %v4414_v49 = vld [vmem:[%s2749_s28 + $0x60] sm:$0xff]  ;;  %v4421_v3 = vld [vmem:[%s2749_s28 + $0x68] sm:$0xff]  ;;  %v1441_v12 = vrot.slane %v4358_v32, 2 }
  0xea   : > { %6421 = vst [vmem:[#allocation21_spill] sm:$0xff] %v4275_v8  ;;  %v4404_v38 = vmul.f32 %v6459_v58, %v6468_v16  ;;  %v4418_v10 = vmul.f32 %v4414_v49, %v6459_v58  ;;  %v4425_v22 = vmul.f32 %v4421_v3, %v6459_v58  ;;  %v4428_v35 = vld [vmem:[%s2749_s28 + $0x70] sm:$0x3]  ;;  %v4435_v18 = vld [vmem:[%s2749_s28 + $0x78] sm:$0xff]  ;;  %v4442_v16 = vld [vmem:[%s2749_s28 + $0x80] sm:$0xff]  ;;  %v1443_v39 = vrot.slane %v4365_v17, 2 }
  0xeb   : > { %6423 = vst [vmem:[#allocation14_spill] sm:$0xff] %v4278_v11  ;;  %v4432_v61 = vmul.f32 %v4428_v35, %v6459_v58  ;;  %v4439_v36 = vmul.f32 %v4435_v18, %v6459_v58  ;;  %v1436_v11 = vrot.slane %v4340_v59, 2  ;;  %v4629_v45 = vld [vmem:[%s2749_s28 + $0x140] sm:$0xff]  ;;  %v4650_v59 = vld [vmem:[%s2749_s28 + $0x158] sm:$0xff]  ;;  %v1445_v21 = vrot.slane %v4372_v43, 2 }
  0xec   : > { %6425 = vst [vmem:[#allocation15_spill] sm:$0xff] %v4281_v20  ;;  %v1453_v53 = vrot.slane %v4411_v56, 2  ;;  %v1456_v32 = vrot.slane %v4425_v22, 2 }
  0xed   : > { %6427 = vst [vmem:[#allocation26_spill] sm:$0xff] %v4284_v26  ;;  %v1458_v17 = vrot.slane %v4432_v61, 2 }
  0xee   : > { %6429 = vst [vmem:[#allocation17_spill] sm:$0xff] %v4287_v33 }
  0xef   : > { %6431 = vst [vmem:[#allocation18_spill] sm:$0xff] %v4290_v15  ;;  %v4607_v15 = vld [vmem:[%s2749_s28 + $0x130] sm:$0x3] }
  0xf0   : > { %6433 = vst [vmem:[#allocation31_spill] sm:$0xff] %v4293_v50  ;;  %v4600_v50 = vld [vmem:[%s2749_s28 + $0x128] sm:$0xff] }
  0xf1   : > { %6435 = vst [vmem:[#allocation22_spill] sm:$0xff] %v4296_v14  ;;  %v4593_v14 = vld [vmem:[%s2749_s28 + $0x120] sm:$0xff] }
  0xf2   : > { %6437 = vst [vmem:[#allocation23_spill] sm:$0xff] %v4299_v2  ;;  %v4579_v2 = vld [vmem:[%s2749_s28 + $0x110] sm:$0xff] }
  0xf3   : > { %6439 = vst [vmem:[#allocation36_spill] sm:$0xff] %v4302_v42  ;;  %v4572_v42 = vld [vmem:[%s2749_s28 + $0x108] sm:$0xff] }
  0xf4   : > { %6441 = vst [vmem:[#allocation27_spill] sm:$0xff] %v4305_v25  ;;  %v4565_v25 = vld [vmem:[%s2749_s28 + $0x100] sm:$0x3] }
  0xf5   : > { %6443 = vst [vmem:[#allocation28_spill] sm:$0xff] %v4308_v47  ;;  %v4586_v47 = vld [vmem:[%s2749_s28 + $0x118] sm:$0x3] }
  0xf6   : > { %6445 = vst [vmem:[#allocation41_spill] sm:$0xff] %v4311_v44 }
  0xf7   : > { %6447 = vst [vmem:[#allocation32_spill] sm:$0xff] %v4314_v51 }
  0xf8   : > { %6449 = vst [vmem:[#allocation33_spill] sm:$0xff] %v4317_v7 }
  0xf9   : > { %6451 = vst [vmem:[#allocation46_spill] sm:$0xff] %v4320_v5  ;;  %v4540_v5 = vld [vmem:[%s5879_s3 + $0x8] sm:$0x7] }
  0xfa   : > { %6453 = vst [vmem:[#allocation37_spill] sm:$0xff] %v4323_v46  ;;  %v4524_v46 = vld [vmem:[%s2749_s28 + $0xd8] sm:$0xff]  ;;  %v4626_v8 = vperm.slane %v4540_v5, 0 }
  0xfb   : > { %6455 = vst [vmem:[#allocation38_spill] sm:$0xff] %v4326_v40  ;;  %v4517_v40 = vld [vmem:[%s2749_s28 + $0xd0] sm:$0x3] }
  0xfc   : > { %6457 = vst [vmem:[#allocation51_spill] sm:$0xff] %v4329_v0  ;;  %v4510_v0 = vld [vmem:[%s2749_s28 + $0xc8] sm:$0xff] }
  0xfd   : > { %6460 = vst [vmem:[#allocation42_spill] sm:$0xff] %v4347_v41  ;;  %v1513_v41 = vrot.slane %v4404_v38, 2  ;;  %v4528_v38 = vmul.f32 %v4524_v46, %v6459_v58 }
  0xfe   : > { %6461 = vst [vmem:[#allocation43_spill] sm:$0xff] %v4354_v1  ;;  %v4502_v1 = vld [vmem:[%s2749_s28 + $0xc0] sm:$0xff] }
  0xff   : > { %6462 = vst [vmem:[#allocation68_spill] sm:$0xff] %v4361_v28  ;;  %v6476_v28 = vld [vmem:[#allocation30_spill] sm:$0xff] }
 0x100   : > { %6463 = vst [vmem:[#allocation47_spill] sm:$0xff] %v4368_v62  ;;  %v4495_v62 = vld [vmem:[%s2749_s28 + $0xb8] sm:$0x3] }
 0x101   : > { %6464 = vst [vmem:[#allocation48_spill] sm:$0xff] %v4375_v30  ;;  %v4488_v30 = vld [vmem:[%s2749_s28 + $0xb0] sm:$0xff] }
 0x102   : > { %6465 = vst [vmem:[#allocation69_spill] sm:$0xff] %v4382_v6  ;;  %v4449_v6 = vld [vmem:[%s2749_s28 + $0x88] sm:$0x3] }
 0x103   : > { %6466 = vst [vmem:[#allocation52_spill] sm:$0xff] %v4389_v9  ;;  %v4481_v9 = vld [vmem:[%s2749_s28 + $0xa8] sm:$0xff] }
 0x104   : > { %6467 = vst [vmem:[#allocation53_spill] sm:$0xff] %v4396_v52 }
 0x105   : > { %6469 = vst [vmem:[#allocation72_spill] sm:$0xff] %v4407_v37  ;;  %v4446_v37 = vmul.f32 %v4442_v16, %v6459_v58 }
 0x106   : > { %6470 = vst [vmem:[#allocation56_spill] sm:$0xff] %v4414_v49 }
 0x107   : > { %6471 = vst [vmem:[#allocation57_spill] sm:$0xff] %v4421_v3  ;;  %v4457_v3 = vmul.f32 %v6459_v58, %v6476_v28  ;;  %v1461_v43 = vrot.slane %v4446_v37, 2 }
 0x108   : > { %6472 = vst [vmem:[#allocation76_spill] sm:$0xff] %v4428_v35  ;;  %v4453_v35 = vmul.f32 %v4449_v6, %v6459_v58 }
 0x109   : > { %6473 = vst [vmem:[#allocation58_spill] sm:$0xff] %v4435_v18  ;;  %v4460_v18 = vld [vmem:[%s2749_s28 + $0x90] sm:$0xff]  ;;  %v6499_v33 = vrot.slane %v4457_v3, 2 }
 0x10a   : > { %6474 = vst [vmem:[#allocation61_spill] sm:$0xff] %v4442_v16  ;;  %v4464_v49 = vmul.f32 %v4460_v18, %v6459_v58  ;;  %v4467_v16 = vld [vmem:[%s2749_s28 + $0x98] sm:$0xff] }
 0x10b   : > { %6475 = vst [vmem:[#allocation77_spill] sm:$0xff] %v4449_v6  ;;  %v4471_v52 = vmul.f32 %v4467_v16, %v6459_v58  ;;  %v4474_v6 = vld [vmem:[%s2749_s28 + $0xa0] sm:$0x3]  ;;  %v1514_v26 = vsel %vm887_vm1, %v6499_v33, %v1513_v41  ;;  %v4636_v33 = vld [vmem:[%s2749_s28 + $0x148] sm:$0x3] }
 0x10c   : > { %6477 = vst [vmem:[#allocation62_spill] sm:$0xff] %v4460_v18  ;;  %v4478_v28 = vmul.f32 %v4474_v6, %v6459_v58  ;;  %v4485_v18 = vmul.f32 %v4481_v9, %v6459_v58  ;;  %v4640_v41 = vmul.f32 %v4636_v33, %v6459_v58  ;;  %v1578_v34 = vadd.f32 %v1514_v26, %v4332_v23 }
 0x10d   : > { %6478 = vst [vmem:[#allocation63_spill] sm:$0xff] %v4467_v16  ;;  %v4492_v16 = vmul.f32 %v4488_v30, %v6459_v58  ;;  %v1448_v26 = vrot.slane %v4386_v55, 2  ;;  %v1450_v23 = vrot.slane %v4393_v29, 2  ;;  %v1465_v55 = vrot.slane %v4464_v49, 2 }
 0x10e   : > { %6479 = vst [vmem:[#allocation78_spill] sm:$0xff] %v4474_v6  ;;  %v4499_v6 = vmul.f32 %v4495_v62, %v6459_v58  ;;  %v1466_v29 = vrot.slane %v4471_v52, 2  ;;  %v1468_v56 = vrot.slane %v4478_v28, 2  ;;  %v1459_v28 = vsel %vm887_vm1, %v1456_v32, %v1458_v17 }
 0x10f   : > { %6480 = vst [vmem:[#allocation34_spill] sm:$0xff] %v4481_v9  ;;  %v4506_v9 = vmul.f32 %v4502_v1, %v6459_v58  ;;  %v1471_v22 = vrot.slane %v4492_v16, 2 }
 0x110   : > { %6481 = vst [vmem:[#allocation35_spill] sm:$0xff] %v4488_v30  ;;  %v4514_v30 = vmul.f32 %v4510_v0, %v6459_v58  ;;  %v1473_v37 = vrot.slane %v4499_v6, 2 }
 0x111   : > { %6482 = vst [vmem:[#allocation39_spill] sm:$0xff] %v4495_v62  ;;  %v4521_v62 = vmul.f32 %v4517_v40, %v6459_v58  ;;  %v1475_v6 = vrot.slane %v4506_v9, 2 }
 0x112   : > { %6483 = vst [vmem:[#allocation40_spill] sm:$0xff] %v4502_v1  ;;  %v4531_v1 = vld [vmem:[%s2749_s28 + $0xe0] sm:$0xff] }
 0x113   : > { %6484 = vst [vmem:[#allocation44_spill] sm:$0xff] %v4510_v0  ;;  %v4535_v0 = vmul.f32 %v4531_v1, %v6459_v58 }
 0x114   : > { %6485 = vst [vmem:[#allocation45_spill] sm:$0xff] %v4517_v40  ;;  %v4543_v40 = vld [vmem:[%s2749_s28 + $0xe8] sm:$0x3] }
 0x115   : > { %6486 = vst [vmem:[#allocation49_spill] sm:$0xff] %v4524_v46  ;;  %v4547_v7 = vmul.f32 %v4543_v40, %v6459_v58  ;;  %v4550_v46 = vld [vmem:[%s2749_s28 + $0xf0] sm:$0xff] }
 0x116   : > { %6487 = vst [vmem:[#allocation50_spill] sm:$0xff] %v4531_v1  ;;  %v4554_v51 = vmul.f32 %v4550_v46, %v6459_v58  ;;  %v4557_v1 = vld [vmem:[%s2749_s28 + $0xf8] sm:$0xff] }
 0x117   : > { %6488 = vst [vmem:[#allocation54_spill] sm:$0xff] %v4540_v5  ;;  %v4561_v44 = vmul.f32 %v4557_v1, %v6459_v58  ;;  %v4654_v5 = vmul.f32 %v4650_v59, %v6459_v58 }
 0x118   : > { %6489 = vst [vmem:[#allocation55_spill] sm:$0xff] %v4543_v40  ;;  %v4569_v40 = vmul.f32 %v4565_v25, %v6459_v58 }
 0x119   : > { %6490 = vst [vmem:[#allocation59_spill] sm:$0xff] %v4550_v46  ;;  %v4576_v46 = vmul.f32 %v4572_v42, %v6459_v58 }
 0x11a   : > { %6491 = vst [vmem:[#allocation60_spill] sm:$0xff] %v4557_v1  ;;  %v4583_v1 = vmul.f32 %v4579_v2, %v6459_v58 }
 0x11b   : > { %6492 = vst [vmem:[#allocation64_spill] sm:$0xff] %v4565_v25  ;;  %v4590_v25 = vmul.f32 %v4586_v47, %v6459_v58  ;;  %v1490_v9 = vrot.slane %v4576_v46, 2  ;;  %v1506_v46 = vrot.slane %v4654_v5, 2 }
 0x11c   : > { %6493 = vst [vmem:[#allocation65_spill] sm:$0xff] %v4572_v42  ;;  %v4597_v42 = vmul.f32 %v4593_v14, %v6459_v58 }
 0x11d   : > { %6494 = vst [vmem:[#allocation66_spill] sm:$0xff] %v4579_v2  ;;  %v4604_v2 = vmul.f32 %v4600_v50, %v6459_v58 }
 0x11e   : > { %6495 = vst [vmem:[#allocation67_spill] sm:$0xff] %v4586_v47  ;;  %v4611_v47 = vmul.f32 %v4607_v15, %v6459_v58 }
 0x11f   : > { %6496 = vst [vmem:[#allocation70_spill] sm:$0xff] %v4593_v14  ;;  %v4617_v14 = vld [vmem:[%s2749_s28 + $0x138] sm:$0xff] }
 0x120   : > { %6497 = vst [vmem:[#allocation71_spill] sm:$0xff] %v4600_v50  ;;  %v4621_v20 = vmul.f32 %v4617_v14, %v6459_v58  ;;  %v1435_v50 = vrot.slane %v4336_v54, 2 }
 0x121   : > { %6498 = vst [vmem:[#allocation3_spill] sm:$0xff] %v4607_v15  ;;  %v4633_v15 = vmul.f32 %v4629_v45, %v6459_v58 }
 0x122   : > { %6500 = vst [vmem:[#allocation2_spill] sm:$0xff] %v4617_v14  ;;  %v4643_v14 = vld [vmem:[%s2749_s28 + $0x150] sm:$0xff] }
 0x123   : > { %6501 = vst [vmem:[#allocation4_spill] sm:$0xff] %v4629_v45  ;;  %v4647_v54 = vmul.f32 %v4643_v14, %v6459_v58  ;;  %v4657_v45 = vld [vmem:[%s2749_s28 + $0x160] sm:$0x3] }
 0x124   : > { %6502 = vst [vmem:[#allocation6_spill] sm:$0xff] %v4636_v33  ;;  %v4661_v63 = vmul.f32 %v4657_v45, %v6459_v58  ;;  %v6506_v33 = vld [vmem:[#allocation29_spill] sm:$0xff] }
 0x125   : > { %6503 = vst [vmem:[#allocation79_spill] sm:$0xff] %v4643_v14  ;;  %v4665_v48 = vmul.f32 %v6459_v58, %v6506_v33  ;;  %v6507_v14 = vld [vmem:[#allocation74_spill] sm:$0xff]  ;;  %v1446_v58 = vrot.slane %v4379_v4, 2  ;;  %v1463_v4 = vrot.slane %v4453_v35, 2 }
 0x126   : > { %6504 = vst [vmem:[#allocation16_spill] sm:$0xff] %v4650_v59  ;;  %v1611_v19 = vmul.f32 %v4626_v8, %v6507_v14  ;;  %v1440_v59 = vrot.slane %v4351_v27, 2  ;;  %v1451_v14 = vrot.slane %v4400_v57, 2  ;;  %v1455_v27 = vrot.slane %v4418_v10, 2 }
 0x127   : > { %6505 = vst [vmem:[#allocation19_spill] sm:$0xff] %v4657_v45  ;;  %v4675_v45 = vsel %vm887_vm1, %v1435_v50, %v1436_v11  ;;  %v1460_v50 = vrot.slane %v4439_v36, 2  ;;  %v1439_v57 = vsel %vm887_vm1, %v1436_v11, %v1438_v60  ;;  %v1470_v10 = vrot.slane %v4485_v18, 2 }
 0x128   : > { %v4687_v33 = vadd.f32 %v1611_v19, %v1578_v34  ;;  %v1442_v61 = vsel %vm887_vm1, %v1440_v59, %v1441_v12  ;;  %v1444_v19 = vsel %vm887_vm1, %v1441_v12, %v1443_v39  ;;  %v1447_v34 = vsel %vm887_vm1, %v1445_v21, %v1446_v58 }
 0x129   : > { %v1449_v49 = vsel %vm887_vm1, %v1446_v58, %v1448_v26  ;;  %v1452_v52 = vsel %vm887_vm1, %v1450_v23, %v1451_v14  ;;  %v1454_v60 = vsel %vm887_vm1, %v1451_v14, %v1453_v53  ;;  %v1457_v11 = vsel %vm887_vm1, %v1455_v27, %v1456_v32 }
 0x12a   : > { %6508 = vst [vmem:[#allocation20_spill] sm:$0xff] %v4687_v33  ;;  %v1462_v16 = vsel %vm887_vm1, %v1460_v50, %v1461_v43  ;;  %v1464_v35 = vsel %vm887_vm1, %v1461_v43, %v1463_v4  ;;  %v1467_v39 = vsel %vm887_vm1, %v1465_v55, %v1466_v29  ;;  %v1469_v21 = vsel %vm887_vm1, %v1466_v29, %v1468_v56  ;;  %v6570_v33 = vld [vmem:[#allocation75_spill] sm:$0xff] }
 0x12b   : > { %v1472_v12 = vsel %vm887_vm1, %v1470_v10, %v1471_v22  ;;  %v1476_v18 = vrot.slane %v4514_v30, 2  ;;  %v1474_v14 = vsel %vm887_vm1, %v1471_v22, %v1473_v37  ;;  %v1478_v36 = vrot.slane %v4521_v62, 2  ;;  %v6510_v37 = vld [vmem:[#allocation25_spill] sm:$0xff] }
 0x12c   : > { %v1480_v59 = vrot.slane %v4528_v38, 2  ;;  %v1481_v58 = vrot.slane %v4535_v0, 2  ;;  %v1483_v26 = vrot.slane %v4547_v7, 2  ;;  %v1485_v23 = vrot.slane %v4554_v51, 2 }
 0x12d   : > { %v1486_v53 = vrot.slane %v4561_v44, 2  ;;  %v1488_v27 = vrot.slane %v4569_v40, 2  ;;  %v1491_v30 = vrot.slane %v4583_v1, 2  ;;  %v1493_v32 = vrot.slane %v4590_v25, 2 }
 0x12e   : > { %v1495_v62 = vrot.slane %v4597_v42, 2  ;;  %v1496_v38 = vrot.slane %v4604_v2, 2  ;;  %v1498_v0 = vrot.slane %v4611_v47, 2  ;;  %v1500_v7 = vrot.slane %v4621_v20, 2 }
 0x12f   : > { %v1501_v51 = vrot.slane %v4633_v15, 2  ;;  %v1503_v44 = vrot.slane %v4640_v41, 2  ;;  %v1505_v40 = vrot.slane %v4647_v54, 2  ;;  %v1508_v1 = vrot.slane %v4661_v63, 2 }
 0x130   : > { %v1477_v25 = vsel %vm887_vm1, %v1475_v6, %v1476_v18  ;;  %v1479_v42 = vsel %vm887_vm1, %v1476_v18, %v1478_v36  ;;  %v1482_v2 = vsel %vm887_vm1, %v1480_v59, %v1481_v58  ;;  %v1510_v47 = vrot.slane %v4665_v48, 2  ;;  %v6511_v18 = vld [vmem:[#allocation5_spill] sm:$0xff]  ;;  %v6512_v59 = vld [vmem:[#allocation7_spill] sm:$0xff] }
 0x131   : > { %v1484_v20 = vsel %vm887_vm1, %v1481_v58, %v1483_v26  ;;  %v1487_v15 = vsel %vm887_vm1, %v1485_v23, %v1486_v53  ;;  %v1489_v41 = vsel %vm887_vm1, %v1486_v53, %v1488_v27  ;;  %v1492_v54 = vsel %vm887_vm1, %v1490_v9, %v1491_v30 }
 0x132   : > { %v1494_v5 = vsel %vm887_vm1, %v1491_v30, %v1493_v32  ;;  %v1497_v63 = vsel %vm887_vm1, %v1495_v62, %v1496_v38  ;;  %v1499_v17 = vsel %vm887_vm1, %v1496_v38, %v1498_v0  ;;  %v1502_v50 = vsel %vm887_vm1, %v1500_v7, %v1501_v51 }
 0x133   : > { %v1504_v43 = vsel %vm887_vm1, %v1501_v51, %v1503_v44  ;;  %v1507_v48 = vsel %vm887_vm1, %v1505_v40, %v1506_v46  ;;  %v1509_v4 = vsel %vm887_vm1, %v1506_v46, %v1508_v1  ;;  %v4750_v55 = vadd.f32 %v4675_v45, %v4234_v31  ;;  %v6513_v31 = vld [vmem:[#allocation10_spill] sm:$0xff]  ;;  %v6530_v46 = vld [vmem:[#allocation28_spill] sm:$0xff] }
 0x134   : > { %v6509_v29 = vrot.slane %v4457_v3, 2  ;;  %v4756_v10 = vadd.f32 %v1439_v57, %v4238_v24  ;;  %v4759_v22 = vadd.f32 %v1442_v61, %v4244_v13  ;;  %v4762_v6 = vadd.f32 %v1444_v19, %v6510_v37  ;;  %v6514_v3 = vld [vmem:[#allocation8_spill] sm:$0xff]  ;;  %v6515_v24 = vld [vmem:[#allocation9_spill] sm:$0xff]  ;;  %v6517_v19 = vld [vmem:[#allocation11_spill] sm:$0xff] }
 0x135   : > { %v4765_v36 = vadd.f32 %v1447_v34, %v6511_v18  ;;  %v4768_v58 = vadd.f32 %v1449_v49, %v6512_v59  ;;  %v4771_v45 = vadd.f32 %v1452_v52, %v6513_v31  ;;  %v4774_v26 = vadd.f32 %v1454_v60, %v6514_v3  ;;  %v6516_v13 = vld [vmem:[#allocation13_spill] sm:$0xff]  ;;  %v6518_v34 = vld [vmem:[#allocation12_spill] sm:$0xff]  ;;  %v6520_v52 = vld [vmem:[#allocation14_spill] sm:$0xff] }
 0x136   : > { %v1512_v56 = vsel %vm887_vm1, %v1510_v47, %v6509_v29  ;;  %v4777_v57 = vadd.f32 %v1457_v11, %v6515_v24  ;;  %v4780_v61 = vadd.f32 %v1459_v28, %v6516_v13  ;;  %v4783_v23 = vadd.f32 %v1462_v16, %v6517_v19  ;;  %v6519_v49 = vld [vmem:[#allocation21_spill] sm:$0xff]  ;;  %v6521_v60 = vld [vmem:[#allocation15_spill] sm:$0xff]  ;;  %v6522_v11 = vld [vmem:[#allocation26_spill] sm:$0xff] }
 0x137   : > { %v4786_v53 = vadd.f32 %v1464_v35, %v6518_v34  ;;  %v4789_v27 = vadd.f32 %v1467_v39, %v6519_v49  ;;  %v4792_v9 = vadd.f32 %v1469_v21, %v6520_v52  ;;  %v4795_v30 = vadd.f32 %v1472_v12, %v6521_v60  ;;  %v6523_v28 = vld [vmem:[#allocation17_spill] sm:$0xff]  ;;  %v6524_v16 = vld [vmem:[#allocation18_spill] sm:$0xff]  ;;  %v6525_v35 = vld [vmem:[#allocation31_spill] sm:$0xff] }
 0x138   : > { %v4798_v32 = vadd.f32 %v1474_v14, %v6522_v11  ;;  %v4801_v62 = vadd.f32 %v1477_v25, %v6523_v28  ;;  %v4804_v38 = vadd.f32 %v1479_v42, %v6524_v16  ;;  %v4807_v0 = vadd.f32 %v1482_v2, %v6525_v35  ;;  %v6526_v39 = vld [vmem:[#allocation22_spill] sm:$0xff]  ;;  %v6527_v21 = vld [vmem:[#allocation23_spill] sm:$0xff]  ;;  %v6528_v12 = vld [vmem:[#allocation36_spill] sm:$0xff] }
 0x139   : > { %v4810_v7 = vadd.f32 %v1484_v20, %v6526_v39  ;;  %v4813_v51 = vadd.f32 %v1487_v15, %v6527_v21  ;;  %v4816_v44 = vadd.f32 %v1489_v41, %v6528_v12  ;;  %v6529_v14 = vld [vmem:[#allocation27_spill] sm:$0xff]  ;;  %v4822_v1 = vadd.f32 %v1494_v5, %v6530_v46  ;;  %v6532_v25 = vld [vmem:[#allocation41_spill] sm:$0xff]  ;;  %v6534_v2 = vld [vmem:[#allocation32_spill] sm:$0xff] }
 0x13a   : > { %v4819_v40 = vadd.f32 %v1492_v54, %v6529_v14  ;;  %v4825_v42 = vadd.f32 %v1497_v63, %v6532_v25  ;;  %v4828_v47 = vadd.f32 %v1499_v17, %v6534_v2  ;;  %v6536_v20 = vld [vmem:[#allocation33_spill] sm:$0xff]  ;;  %v6538_v15 = vld [vmem:[#allocation46_spill] sm:$0xff]  ;;  %v6544_v5 = vld [vmem:[#allocation51_spill] sm:$0xff] }
 0x13b   : > { %6531 = vst [vmem:[#allocation25_spill] sm:$0xff] %v4822_v1  ;;  %v4831_v29 = vadd.f32 %v1502_v50, %v6536_v20  ;;  %v4834_v37 = vadd.f32 %v1504_v43, %v6538_v15  ;;  %v6540_v41 = vld [vmem:[#allocation37_spill] sm:$0xff]  ;;  %v6542_v54 = vld [vmem:[#allocation38_spill] sm:$0xff]  ;;  %v4843_v31 = vadd.f32 %v1512_v56, %v6544_v5  ;;  %v6548_v50 = vld [vmem:[#allocation43_spill] sm:$0xff] }
 0x13c   : > { %6533 = vst [vmem:[#allocation5_spill] sm:$0xff] %v4825_v42  ;;  %v4837_v18 = vadd.f32 %v1507_v48, %v6540_v41  ;;  %v4840_v59 = vadd.f32 %v1509_v4, %v6542_v54  ;;  %v6546_v63 = vld [vmem:[#allocation54_spill] sm:$0xff]  ;;  %v1581_v13 = vmul.f32 %v6548_v50, %v4626_v8  ;;  %v6549_v43 = vld [vmem:[#allocation47_spill] sm:$0xff]  ;;  %v6550_v48 = vld [vmem:[#allocation48_spill] sm:$0xff] }
 0x13d   : > { %6535 = vst [vmem:[#allocation7_spill] sm:$0xff] %v4828_v47  ;;  %v4846_v3 = vperm.slane %v6546_v63, 1  ;;  %v6547_v17 = vld [vmem:[#allocation42_spill] sm:$0xff]  ;;  %v1582_v19 = vmul.f32 %v6549_v43, %v4626_v8  ;;  %v1583_v34 = vmul.f32 %v6550_v48, %v4626_v8  ;;  %v6551_v4 = vld [vmem:[#allocation52_spill] sm:$0xff]  ;;  %v6552_v56 = vld [vmem:[#allocation53_spill] sm:$0xff] }
 0x13e   : > { %6537 = vst [vmem:[#allocation10_spill] sm:$0xff] %v4831_v29  ;;  %v1580_v24 = vmul.f32 %v6547_v17, %v4626_v8  ;;  %v1584_v49 = vmul.f32 %v6551_v4, %v4626_v8  ;;  %v1585_v52 = vmul.f32 %v6552_v56, %v4626_v8  ;;  %v6553_v60 = vld [vmem:[#allocation56_spill] sm:$0xff]  ;;  %v6554_v28 = vld [vmem:[#allocation57_spill] sm:$0xff]  ;;  %v6555_v35 = vld [vmem:[#allocation58_spill] sm:$0xff] }
 0x13f   : > { %6539 = vst [vmem:[#allocation8_spill] sm:$0xff] %v4834_v37  ;;  %v1586_v11 = vmul.f32 %v6553_v60, %v4626_v8  ;;  %v1587_v16 = vmul.f32 %v6554_v28, %v4626_v8  ;;  %v1588_v39 = vmul.f32 %v6555_v35, %v4626_v8  ;;  %v6556_v21 = vld [vmem:[#allocation61_spill] sm:$0xff]  ;;  %v6557_v14 = vld [vmem:[#allocation62_spill] sm:$0xff]  ;;  %v6558_v25 = vld [vmem:[#allocation63_spill] sm:$0xff] }
 0x140   : > { %6541 = vst [vmem:[#allocation9_spill] sm:$0xff] %v4837_v18  ;;  %v1589_v12 = vmul.f32 %v6556_v21, %v4626_v8  ;;  %v1590_v46 = vmul.f32 %v6557_v14, %v4626_v8  ;;  %v1591_v2 = vmul.f32 %v6558_v25, %v4626_v8  ;;  %v6559_v20 = vld [vmem:[#allocation34_spill] sm:$0xff]  ;;  %v6560_v41 = vld [vmem:[#allocation35_spill] sm:$0xff]  ;;  %v6561_v5 = vld [vmem:[#allocation40_spill] sm:$0xff] }
 0x141   : > { %6543 = vst [vmem:[#allocation13_spill] sm:$0xff] %v4840_v59  ;;  %v1592_v15 = vmul.f32 %v6559_v20, %v4626_v8  ;;  %v1593_v54 = vmul.f32 %v6560_v41, %v4626_v8  ;;  %v6562_v59 = vld [vmem:[#allocation44_spill] sm:$0xff]  ;;  %v6563_v21 = vld [vmem:[#allocation49_spill] sm:$0xff]  ;;  %v6564_v14 = vld [vmem:[#allocation50_spill] sm:$0xff] }
 0x142   : > { %6545 = vst [vmem:[#allocation11_spill] sm:$0xff] %v4843_v31  ;;  %v1594_v31 = vmul.f32 %v6561_v5, %v4626_v8  ;;  %v1595_v63 = vmul.f32 %v6562_v59, %v4626_v8  ;;  %v1596_v35 = vmul.f32 %v6563_v21, %v4626_v8  ;;  %v1597_v28 = vmul.f32 %v6564_v14, %v4626_v8  ;;  %v6565_v25 = vld [vmem:[#allocation59_spill] sm:$0xff]  ;;  %v6566_v20 = vld [vmem:[#allocation60_spill] sm:$0xff]  ;;  %v6567_v41 = vld [vmem:[#allocation65_spill] sm:$0xff] }
 0x143   : > { %v1598_v60 = vmul.f32 %v6565_v25, %v4626_v8  ;;  %v1599_v56 = vmul.f32 %v6566_v20, %v4626_v8  ;;  %v1600_v4 = vmul.f32 %v6567_v41, %v4626_v8  ;;  %v6568_v5 = vld [vmem:[#allocation66_spill] sm:$0xff]  ;;  %v1692_v21 = vmul.f32 %v4846_v3, %v6570_v33  ;;  %v6571_v14 = vld [vmem:[#allocation71_spill] sm:$0xff]  ;;  %v6573_v20 = vld [vmem:[#allocation4_spill] sm:$0xff] }
 0x144   : > { %v1601_v48 = vmul.f32 %v6568_v5, %v4626_v8  ;;  %v6569_v59 = vld [vmem:[#allocation70_spill] sm:$0xff]  ;;  %v1603_v50 = vmul.f32 %v6571_v14, %v4626_v8  ;;  %v1605_v18 = vmul.f32 %v6573_v20, %v4626_v8  ;;  %v6574_v41 = vld [vmem:[#allocation79_spill] sm:$0xff]  ;;  %v6575_v5 = vld [vmem:[#allocation16_spill] sm:$0xff] }
 0x145   : > { %v1602_v43 = vmul.f32 %v6569_v59, %v4626_v8  ;;  %v6572_v25 = vld [vmem:[#allocation2_spill] sm:$0xff]  ;;  %v1606_v37 = vmul.f32 %v6574_v41, %v4626_v8  ;;  %v1607_v29 = vmul.f32 %v6575_v5, %v4626_v8  ;;  %v6576_v47 = vld [vmem:[#allocation29_spill] sm:$0xff]  ;;  %v4921_v41 = vadd.f32 %v1580_v24, %v4750_v55 }
 0x146   : > { %v1604_v17 = vmul.f32 %v6572_v25, %v4626_v8  ;;  %v1608_v59 = vmul.f32 %v4626_v8, %v6576_v47  ;;  %v6577_v42 = vld [vmem:[#allocation30_spill] sm:$0xff]  ;;  %v6581_v25 = vld [vmem:[#allocation73_spill] sm:$0xff]  ;;  %v4924_v5 = vadd.f32 %v1581_v13, %v4756_v10  ;;  %v4927_v47 = vadd.f32 %v1582_v19, %v4759_v22 }
 0x147   : > { %v4910_v33 = vmul.f32 %v4626_v8, %v6577_v42  ;;  %v6579_v14 = vld [vmem:[#allocation74_spill] sm:$0xff]  ;;  %v4918_v20 = vmul.f32 %v4626_v8, %v6581_v25  ;;  %6583 = vst [vmem:[#allocation15_spill] sm:$0xff] %v4921_v41  ;;  %v4930_v42 = vadd.f32 %v1583_v34, %v4762_v6  ;;  %v1819_v8 = vrot.slane %v1692_v21, 1 }
 0x148   : > { %v4914_v1 = vmul.f32 %v4846_v3, %v6579_v14  ;;  %6584 = vst [vmem:[#allocation26_spill] sm:$0xff] %v4924_v5  ;;  %v4936_v14 = vadd.f32 %v1585_v52, %v4768_v58  ;;  %v4942_v55 = vadd.f32 %v1587_v16, %v4774_v26  ;;  %v4945_v10 = vadd.f32 %v1588_v39, %v4777_v57  ;;  %v6612_v19 = vld [vmem:[#allocation10_spill] sm:$0xff]  ;;  %v6626_v16 = vld [vmem:[#allocation52_spill] sm:$0xff]  ;;  %v6627_v39 = vld [vmem:[#allocation53_spill] sm:$0xff] }
 0x149   : > { %6578 = vst [vmem:[#allocation12_spill] sm:$0xff] %v4910_v33  ;;  %v4933_v33 = vadd.f32 %v1584_v49, %v4765_v36  ;;  %v4948_v22 = vadd.f32 %v1589_v12, %v4780_v61  ;;  %v4951_v6 = vadd.f32 %v1590_v46, %v4783_v23  ;;  %v4954_v36 = vadd.f32 %v1591_v2, %v4786_v53  ;;  %v6620_v49 = vld [vmem:[#allocation20_spill] sm:$0xff] }
 0x14a   : > { %6580 = vst [vmem:[#allocation21_spill] sm:$0xff] %v4914_v1  ;;  %v4957_v58 = vadd.f32 %v1592_v15, %v4789_v27  ;;  %v4961_v26 = vadd.f32 %v1593_v54, %v4792_v9  ;;  %v4964_v57 = vadd.f32 %v1594_v31, %v4795_v30  ;;  %v4967_v61 = vadd.f32 %v1595_v63, %v4798_v32  ;;  %v6628_v12 = vld [vmem:[#allocation72_spill] sm:$0xff]  ;;  %v6630_v54 = vld [vmem:[#allocation57_spill] sm:$0xff] }
 0x14b   : > { %6582 = vst [vmem:[#allocation14_spill] sm:$0xff] %v4918_v20  ;;  %v4939_v20 = vadd.f32 %v1586_v11, %v4771_v45  ;;  %v6075_v45 = vrot.slane %v4914_v1, 1  ;;  %v4970_v23 = vadd.f32 %v1596_v35, %v4801_v62  ;;  %v4973_v53 = vadd.f32 %v1597_v28, %v4804_v38  ;;  %v6606_v38 = vld [vmem:[#allocation25_spill] sm:$0xff]  ;;  %v6629_v2 = vld [vmem:[#allocation56_spill] sm:$0xff] }
 0x14c   : > { %6585 = vst [vmem:[#allocation17_spill] sm:$0xff] %v4927_v47  ;;  %v4976_v27 = vadd.f32 %v1598_v60, %v4807_v0  ;;  %v4979_v24 = vadd.f32 %v1599_v56, %v4810_v7  ;;  %v4985_v30 = vadd.f32 %v1600_v4, %v4813_v51  ;;  %v4988_v32 = vadd.f32 %v1601_v48, %v4816_v44  ;;  %v6608_v0 = vld [vmem:[#allocation5_spill] sm:$0xff]  ;;  %v6610_v7 = vld [vmem:[#allocation7_spill] sm:$0xff]  ;;  %v6614_v51 = vld [vmem:[#allocation8_spill] sm:$0xff] }
 0x14d   : > { %6586 = vst [vmem:[#allocation18_spill] sm:$0xff] %v4930_v42  ;;  %v1820_v9 = vsel %vm645_vm0, %v6075_v45, %v1819_v8  ;;  %v4991_v62 = vadd.f32 %v1602_v43, %v4819_v40  ;;  %v4994_v31 = vadd.f32 %v1603_v50, %v6606_v38  ;;  %v4997_v63 = vadd.f32 %v1604_v17, %v6608_v0  ;;  %v6616_v44 = vld [vmem:[#allocation9_spill] sm:$0xff]  ;;  %v6618_v40 = vld [vmem:[#allocation42_spill] sm:$0xff]  ;;  %v6619_v50 = vld [vmem:[#allocation43_spill] sm:$0xff] }
 0x14e   : > { %6587 = vst [vmem:[#allocation31_spill] sm:$0xff] %v4933_v33  ;;  %v5000_v13 = vadd.f32 %v1605_v18, %v6610_v7  ;;  %v5003_v34 = vadd.f32 %v1606_v37, %v6612_v19  ;;  %v5006_v4 = vadd.f32 %v1607_v29, %v6614_v51  ;;  %v5009_v48 = vadd.f32 %v1608_v59, %v6616_v44  ;;  %v6622_v37 = vld [vmem:[#allocation68_spill] sm:$0xff]  ;;  %v6623_v29 = vld [vmem:[#allocation47_spill] sm:$0xff]  ;;  %v6625_v11 = vld [vmem:[#allocation69_spill] sm:$0xff] }
 0x14f   : > { %6588 = vst [vmem:[#allocation22_spill] sm:$0xff] %v4936_v14  ;;  %v5013_v43 = vmul.f32 %v6618_v40, %v4846_v3  ;;  %v5017_v17 = vmul.f32 %v6619_v50, %v4846_v3  ;;  %v5020_v18 = vadd.f32 %v1820_v9, %v6620_v49  ;;  %v5024_v56 = vmul.f32 %v6622_v37, %v4846_v3  ;;  %v6624_v59 = vld [vmem:[#allocation48_spill] sm:$0xff]  ;;  %v6632_v0 = vld [vmem:[#allocation58_spill] sm:$0xff]  ;;  %v6633_v19 = vld [vmem:[#allocation61_spill] sm:$0xff] }
 0x150   : > { %6589 = vst [vmem:[#allocation23_spill] sm:$0xff] %v4939_v20  ;;  %v5028_v52 = vmul.f32 %v6623_v29, %v4846_v3  ;;  %v5032_v60 = vmul.f32 %v6624_v59, %v4846_v3  ;;  %v5036_v28 = vmul.f32 %v6625_v11, %v4846_v3  ;;  %v5040_v35 = vmul.f32 %v6626_v16, %v4846_v3  ;;  %v6631_v9 = vld [vmem:[#allocation76_spill] sm:$0xff]  ;;  %v6634_v44 = vld [vmem:[#allocation77_spill] sm:$0xff]  ;;  %v6635_v45 = vld [vmem:[#allocation62_spill] sm:$0xff] }
 0x151   : > { %6590 = vst [vmem:[#allocation36_spill] sm:$0xff] %v4942_v55  ;;  %v5044_v21 = vmul.f32 %v6627_v39, %v4846_v3  ;;  %v5048_v46 = vmul.f32 %v6628_v12, %v4846_v3  ;;  %v5052_v15 = vmul.f32 %v6629_v2, %v4846_v3  ;;  %v5056_v8 = vmul.f32 %v6630_v54, %v4846_v3  ;;  %v6651_v55 = vld [vmem:[#allocation66_spill] sm:$0xff]  ;;  %v6659_v20 = vld [vmem:[#allocation79_spill] sm:$0xff]  ;;  %v6660_v14 = vld [vmem:[#allocation16_spill] sm:$0xff] }
 0x152   : > { %6591 = vst [vmem:[#allocation27_spill] sm:$0xff] %v4945_v10  ;;  %v1656_v38 = vmul.f32 %v6631_v9, %v4846_v3  ;;  %v1657_v7 = vmul.f32 %v6632_v0, %v4846_v3  ;;  %v5064_v51 = vmul.f32 %v6633_v19, %v4846_v3  ;;  %v1659_v49 = vmul.f32 %v6634_v44, %v4846_v3  ;;  %v6650_v10 = vld [vmem:[#allocation65_spill] sm:$0xff]  ;;  %v6655_v44 = vld [vmem:[#allocation3_spill] sm:$0xff]  ;;  %v6656_v19 = vld [vmem:[#allocation2_spill] sm:$0xff] }
 0x153   : > { %6592 = vst [vmem:[#allocation28_spill] sm:$0xff] %v4948_v22  ;;  %v1660_v1 = vmul.f32 %v6635_v45, %v4846_v3  ;;  %v6646_v22 = vld [vmem:[#allocation55_spill] sm:$0xff]  ;;  %v6657_v0 = vld [vmem:[#allocation4_spill] sm:$0xff]  ;;  %v6658_v9 = vld [vmem:[#allocation6_spill] sm:$0xff]  ;;  %v1741_v2 = vrot.slane %v5013_v43, 1  ;;  %v1744_v12 = vrot.slane %v5024_v56, 1 }
 0x154   : > { %6593 = vst [vmem:[#allocation41_spill] sm:$0xff] %v4951_v6  ;;  %v6645_v6 = vld [vmem:[#allocation50_spill] sm:$0xff]  ;;  %v6654_v45 = vld [vmem:[#allocation71_spill] sm:$0xff]  ;;  %v6662_v42 = vld [vmem:[#allocation29_spill] sm:$0xff]  ;;  %v1747_v47 = vrot.slane %v5032_v60, 1  ;;  %v1751_v5 = vrot.slane %v5040_v35, 1 }
 0x155   : > { %6594 = vst [vmem:[#allocation32_spill] sm:$0xff] %v4954_v36  ;;  %v6661_v33 = vld [vmem:[#allocation19_spill] sm:$0xff]  ;;  %v6663_v54 = vld [vmem:[#allocation30_spill] sm:$0xff]  ;;  %v1754_v41 = vrot.slane %v5048_v46, 1  ;;  %v1757_v43 = vrot.slane %v5056_v8, 1  ;;  %v1759_v39 = vrot.slane %v1656_v38, 1 }
 0x156   : > { %6595 = vst [vmem:[#allocation33_spill] sm:$0xff] %v4957_v58  ;;  %v6644_v58 = vld [vmem:[#allocation49_spill] sm:$0xff]  ;;  %v1762_v56 = vrot.slane %v5064_v51, 1  ;;  %v6664_v16 = vld [vmem:[#allocation24_spill] sm:$0xff]  ;;  %v1764_v60 = vrot.slane %v1659_v49, 1 }
 0x157   : > { %6596 = vst [vmem:[#allocation46_spill] sm:$0xff] %v4961_v26  ;;  %v5104_v36 = vmul.f32 %v6644_v58, %v4846_v3 }
 0x158   : > { %6597 = vst [vmem:[#allocation37_spill] sm:$0xff] %v4964_v57  ;;  %v6643_v57 = vld [vmem:[#allocation45_spill] sm:$0xff] }
 0x159   : > { %6598 = vst [vmem:[#allocation38_spill] sm:$0xff] %v4967_v61  ;;  %v5100_v26 = vmul.f32 %v6643_v57, %v4846_v3 }
 0x15a   : > { %6599 = vst [vmem:[#allocation51_spill] sm:$0xff] %v4970_v23  ;;  %v6642_v23 = vld [vmem:[#allocation44_spill] sm:$0xff] }
 0x15b   : > { %6600 = vst [vmem:[#allocation73_spill] sm:$0xff] %v4973_v53  ;;  %v5096_v61 = vmul.f32 %v6642_v23, %v4846_v3 }
 0x15c   : > { %6601 = vst [vmem:[#allocation80_spill] sm:$0xff] %v4976_v27  ;;  %v6641_v27 = vld [vmem:[#allocation40_spill] sm:$0xff] }
 0x15d   : > { %6602 = vst [vmem:[#allocation81_spill] sm:$0xff] %v4979_v24  ;;  %v5092_v53 = vmul.f32 %v6641_v27, %v4846_v3  ;;  %v5112_v27 = vmul.f32 %v6646_v22, %v4846_v3  ;;  %v5132_v22 = vmul.f32 %v6651_v55, %v4846_v3  ;;  %v5152_v55 = vmul.f32 %v6656_v19, %v4846_v3 }
 0x15e   : > { %6603 = vst [vmem:[#allocation82_spill] sm:$0xff] %v4985_v30  ;;  %v6640_v30 = vld [vmem:[#allocation39_spill] sm:$0xff]  ;;  %v5172_v19 = vmul.f32 %v6661_v33, %v4846_v3  ;;  %v1749_v33 = vrot.slane %v5036_v28, 1  ;;  %v1766_v28 = vrot.slane %v1660_v1, 1 }
 0x15f   : > { %6604 = vst [vmem:[#allocation83_spill] sm:$0xff] %v4988_v32  ;;  %v5088_v24 = vmul.f32 %v6640_v30, %v4846_v3  ;;  %v5108_v30 = vmul.f32 %v6645_v6, %v4846_v3  ;;  %v5128_v6 = vmul.f32 %v6650_v10, %v4846_v3  ;;  %v5148_v10 = vmul.f32 %v6655_v44, %v4846_v3 }
 0x160   : > { %6605 = vst [vmem:[#allocation84_spill] sm:$0xff] %v4991_v62  ;;  %v6639_v62 = vld [vmem:[#allocation35_spill] sm:$0xff]  ;;  %v5168_v44 = vmul.f32 %v6660_v14, %v4846_v3  ;;  %v1746_v14 = vrot.slane %v5028_v52, 1  ;;  %v5196_v52 = vmul.f32 %v4846_v3, %v6664_v16  ;;  %v5214_v16 = vsel %vm645_vm0, %v1747_v47, %v1749_v33 }
 0x161   : > { %6607 = vst [vmem:[#allocation25_spill] sm:$0xff] %v4994_v31  ;;  %v5084_v32 = vmul.f32 %v6639_v62, %v4846_v3  ;;  %v6647_v62 = vld [vmem:[#allocation59_spill] sm:$0xff]  ;;  %v5233_v33 = vsel %vm645_vm0, %v1762_v56, %v1764_v60  ;;  %v1782_v51 = vrot.slane %v5108_v30, 1  ;;  %v1784_v49 = vrot.slane %v5112_v27, 1 }
 0x162   : > { %6609 = vst [vmem:[#allocation5_spill] sm:$0xff] %v4997_v63  ;;  %v6638_v63 = vld [vmem:[#allocation34_spill] sm:$0xff]  ;;  %v5116_v23 = vmul.f32 %v6647_v62, %v4846_v3  ;;  %v5211_v38 = vsel %vm645_vm0, %v1746_v14, %v1747_v47  ;;  %v1799_v30 = vrot.slane %v5148_v10, 1 }
 0x163   : > { %6611 = vst [vmem:[#allocation7_spill] sm:$0xff] %v5000_v13  ;;  %v5080_v31 = vmul.f32 %v6638_v63, %v4846_v3  ;;  %v6648_v63 = vld [vmem:[#allocation60_spill] sm:$0xff] }
 0x164   : > { %6613 = vst [vmem:[#allocation10_spill] sm:$0xff] %v5003_v34  ;;  %v6637_v34 = vld [vmem:[#allocation78_spill] sm:$0xff]  ;;  %v5120_v57 = vmul.f32 %v6648_v63, %v4846_v3 }
 0x165   : > { %6615 = vst [vmem:[#allocation8_spill] sm:$0xff] %v5006_v4  ;;  %v5076_v13 = vmul.f32 %v6637_v34, %v4846_v3  ;;  %v6649_v34 = vld [vmem:[#allocation64_spill] sm:$0xff]  ;;  %v1771_v14 = vrot.slane %v5080_v31, 1  ;;  %v1781_v31 = vrot.slane %v5104_v36, 1 }
 0x166   : > { %6617 = vst [vmem:[#allocation9_spill] sm:$0xff] %v5009_v48  ;;  %v6636_v48 = vld [vmem:[#allocation63_spill] sm:$0xff]  ;;  %v5124_v58 = vmul.f32 %v6649_v34, %v4846_v3  ;;  %v5144_v34 = vmul.f32 %v6654_v45, %v4846_v3  ;;  %v5164_v45 = vmul.f32 %v6659_v20, %v4846_v3  ;;  %v1742_v20 = vrot.slane %v5017_v17, 1 }
 0x167   : > { %6621 = vst [vmem:[#allocation42_spill] sm:$0xff] %v5020_v18  ;;  %v5072_v4 = vmul.f32 %v6636_v48, %v4846_v3  ;;  %v6652_v48 = vld [vmem:[#allocation67_spill] sm:$0xff]  ;;  %v6653_v18 = vld [vmem:[#allocation70_spill] sm:$0xff]  ;;  %v1761_v17 = vrot.slane %v1657_v7, 1  ;;  %v1769_v8 = vrot.slane %v5076_v13, 1  ;;  %v1779_v7 = vrot.slane %v5100_v26, 1 }
 0x168   : > { %v5136_v62 = vmul.f32 %v6652_v48, %v4846_v3  ;;  %v5140_v63 = vmul.f32 %v6653_v18, %v4846_v3  ;;  %v5156_v48 = vmul.f32 %v6657_v0, %v4846_v3  ;;  %v5160_v18 = vmul.f32 %v6658_v9, %v4846_v3 }
 0x169   : > { %v5176_v0 = vmul.f32 %v4846_v3, %v6662_v42  ;;  %v5180_v9 = vmul.f32 %v4846_v3, %v6663_v54  ;;  %v1752_v42 = vrot.slane %v5044_v21, 1  ;;  %v1756_v54 = vrot.slane %v5052_v15, 1 }
 0x16a   : > { %v1767_v35 = vrot.slane %v5072_v4, 1  ;;  %v5201_v21 = vmul.f32 %v4846_v3, %v6581_v25  ;;  %v5204_v46 = vsel %vm645_vm0, %v1741_v2, %v1742_v20  ;;  %v5207_v15 = vsel %vm645_vm0, %v1742_v20, %v1744_v12 }
 0x16b   : > { %v5217_v1 = vsel %vm645_vm0, %v1751_v5, %v1752_v42  ;;  %v5220_v3 = vsel %vm645_vm0, %v1752_v42, %v1754_v41  ;;  %v5223_v4 = vsel %vm645_vm0, %v1756_v54, %v1757_v43  ;;  %v5226_v20 = vsel %vm645_vm0, %v1757_v43, %v1759_v39 }
 0x16c   : > { %v5229_v13 = vsel %vm645_vm0, %v1761_v17, %v1762_v56  ;;  %v5236_v47 = vsel %vm645_vm0, %v1766_v28, %v1767_v35  ;;  %v1772_v41 = vrot.slane %v5084_v32, 1  ;;  %v1774_v5 = vrot.slane %v5088_v24, 1 }
 0x16d   : > { %v5241_v12 = vsel %vm645_vm0, %v1767_v35, %v1769_v8  ;;  %v1776_v39 = vrot.slane %v5092_v53, 1  ;;  %v1777_v2 = vrot.slane %v5096_v61, 1  ;;  %v1786_v42 = vrot.slane %v5116_v23, 1 }
 0x16e   : > { %v1787_v32 = vrot.slane %v5120_v57, 1  ;;  %v1789_v24 = vrot.slane %v5124_v58, 1  ;;  %v1791_v54 = vrot.slane %v5128_v6, 1  ;;  %v1792_v53 = vrot.slane %v5132_v22, 1  ;;  %v6665_v58 = vld [vmem:[#allocation54_spill] sm:$0xff] }
 0x16f   : > { %v1794_v61 = vrot.slane %v5136_v62, 1  ;;  %v1796_v26 = vrot.slane %v5140_v63, 1  ;;  %v1797_v36 = vrot.slane %v5144_v34, 1  ;;  %v5259_v27 = vsel %vm645_vm0, %v1771_v14, %v1772_v41 }
 0x170   : > { %v1801_v23 = vrot.slane %v5152_v55, 1  ;;  %v1802_v57 = vrot.slane %v5156_v48, 1  ;;  %v5264_v43 = vperm.slane %v6665_v58, 2  ;;  %v5267_v22 = vsel %vm645_vm0, %v1772_v41, %v1774_v5  ;;  %v6671_v58 = vld [vmem:[#allocation26_spill] sm:$0xff] }
 0x171   : > { %v5270_v6 = vsel %vm645_vm0, %v1776_v39, %v1777_v2  ;;  %v5273_v62 = vsel %vm645_vm0, %v1777_v2, %v1779_v7  ;;  %v5276_v10 = vsel %vm645_vm0, %v1781_v31, %v1782_v51  ;;  %v5279_v63 = vsel %vm645_vm0, %v1782_v51, %v1784_v49 }
 0x172   : > { %v5282_v55 = vsel %vm645_vm0, %v1786_v42, %v1787_v32  ;;  %v5285_v34 = vsel %vm645_vm0, %v1787_v32, %v1789_v24  ;;  %v1804_v48 = vrot.slane %v5160_v18, 1  ;;  %v5289_v17 = vsel %vm645_vm0, %v1791_v54, %v1792_v53  ;;  %v6668_v42 = vld [vmem:[#allocation53_spill] sm:$0xff]  ;;  %v6669_v32 = vld [vmem:[#allocation74_spill] sm:$0xff] }
 0x173   : > { %v5292_v56 = vsel %vm645_vm0, %v1792_v53, %v1794_v61  ;;  %v5295_v60 = vsel %vm645_vm0, %v1796_v26, %v1797_v36  ;;  %v5298_v28 = vsel %vm645_vm0, %v1797_v36, %v1799_v30  ;;  %v5301_v35 = vsel %vm645_vm0, %v1801_v23, %v1802_v57  ;;  %v6670_v23 = vld [vmem:[#allocation15_spill] sm:$0xff] }
 0x174   : > { %v1806_v8 = vrot.slane %v5164_v45, 1  ;;  %v1807_v14 = vrot.slane %v5168_v44, 1  ;;  %v1886_v18 = vmul.f32 %v6618_v40, %v5264_v43  ;;  %v1887_v41 = vmul.f32 %v6619_v50, %v5264_v43  ;;  %v6692_v50 = vld [vmem:[#allocation28_spill] sm:$0xff] }
 0x175   : > { %v1888_v5 = vmul.f32 %v6622_v37, %v5264_v43  ;;  %v1889_v39 = vmul.f32 %v6623_v29, %v5264_v43  ;;  %v1890_v2 = vmul.f32 %v6624_v59, %v5264_v43  ;;  %v5316_v7 = vsel %vm645_vm0, %v1802_v57, %v1804_v48  ;;  %v6666_v29 = vld [vmem:[#allocation75_spill] sm:$0xff]  ;;  %v6667_v59 = vld [vmem:[#allocation52_spill] sm:$0xff] }
 0x176   : > { %v1809_v45 = vrot.slane %v5172_v19, 1  ;;  %v1811_v44 = vrot.slane %v5176_v0, 1  ;;  %v1812_v40 = vrot.slane %v5180_v9, 1  ;;  %v1891_v37 = vmul.f32 %v6625_v11, %v5264_v43 }
 0x177   : > { %v1933_v51 = vmul.f32 %v5264_v43, %v6666_v29  ;;  %v1892_v49 = vmul.f32 %v6667_v59, %v5264_v43  ;;  %v1893_v19 = vmul.f32 %v6668_v42, %v5264_v43  ;;  %v5333_v24 = vmul.f32 %v5264_v43, %v6669_v32  ;;  %v6672_v29 = vld [vmem:[#allocation17_spill] sm:$0xff] }
 0x178   : > { %v1982_v54 = vrot.slane %v1886_v18, 2  ;;  %v1983_v53 = vrot.slane %v1887_v41, 2  ;;  %v1985_v61 = vrot.slane %v1888_v5, 2  ;;  %v1987_v26 = vrot.slane %v1889_v39, 2  ;;  %v6673_v18 = vld [vmem:[#allocation72_spill] sm:$0xff] }
 0x179   : > { %v1988_v36 = vrot.slane %v1890_v2, 2  ;;  %v5336_v11 = vsel %vm645_vm0, %v1806_v8, %v1807_v14  ;;  %v5339_v30 = vsel %vm645_vm0, %v1807_v14, %v1809_v45  ;;  %v1853_v57 = vadd.f32 %v5204_v46, %v6670_v23  ;;  %v6674_v8 = vld [vmem:[#allocation56_spill] sm:$0xff]  ;;  %v6675_v14 = vld [vmem:[#allocation57_spill] sm:$0xff] }
 0x17a   : > { %v1854_v48 = vadd.f32 %v5207_v15, %v6671_v58  ;;  %v1855_v59 = vadd.f32 %v5211_v38, %v6672_v29  ;;  %v1894_v41 = vmul.f32 %v6673_v18, %v5264_v43  ;;  %v1990_v5 = vrot.slane %v1891_v37, 2  ;;  %v6676_v58 = vld [vmem:[#allocation18_spill] sm:$0xff] }
 0x17b   : > { %v2060_v39 = vrot.slane %v1933_v51, 2  ;;  %v1895_v2 = vmul.f32 %v6674_v8, %v5264_v43  ;;  %v1896_v45 = vmul.f32 %v6675_v14, %v5264_v43  ;;  %v1992_v42 = vrot.slane %v1892_v49, 2  ;;  %v6677_v51 = vld [vmem:[#allocation31_spill] sm:$0xff]  ;;  %v6678_v18 = vld [vmem:[#allocation22_spill] sm:$0xff] }
 0x17c   : > { %v1993_v32 = vrot.slane %v1893_v19, 2  ;;  %v1984_v46 = vsel %vm887_vm1, %v1982_v54, %v1983_v53  ;;  %v1986_v15 = vsel %vm887_vm1, %v1983_v53, %v1985_v61  ;;  %v1989_v23 = vsel %vm887_vm1, %v1987_v26, %v1988_v36  ;;  %v6679_v14 = vld [vmem:[#allocation23_spill] sm:$0xff]  ;;  %v6680_v19 = vld [vmem:[#allocation76_spill] sm:$0xff] }
 0x17d   : > { %v6077_v38 = vrot.slane %v5333_v24, 2  ;;  %v1856_v37 = vadd.f32 %v5214_v16, %v6676_v58  ;;  %v1857_v29 = vadd.f32 %v5217_v1, %v6677_v51  ;;  %v1858_v8 = vadd.f32 %v5220_v3, %v6678_v18  ;;  %v6681_v16 = vld [vmem:[#allocation58_spill] sm:$0xff] }
 0x17e   : > { %v1859_v49 = vadd.f32 %v5223_v4, %v6679_v14  ;;  %v1897_v54 = vmul.f32 %v6680_v19, %v5264_v43  ;;  %v1991_v53 = vsel %vm887_vm1, %v1988_v36, %v1990_v5  ;;  %v1995_v61 = vrot.slane %v1894_v41, 2  ;;  %v6682_v4 = vld [vmem:[#allocation61_spill] sm:$0xff] }
 0x17f   : > { %v2061_v26 = vsel %vm887_vm1, %v6077_v38, %v2060_v39  ;;  %v1898_v58 = vmul.f32 %v6681_v16, %v5264_v43  ;;  %v5373_v1 = vadd.f32 %v1984_v46, %v1853_v57  ;;  %v5375_v51 = vadd.f32 %v1986_v15, %v1854_v48  ;;  %v6683_v5 = vld [vmem:[#allocation77_spill] sm:$0xff]  ;;  %v6684_v39 = vld [vmem:[#allocation62_spill] sm:$0xff] }
 0x180   : > { %v5377_v3 = vadd.f32 %v1989_v23, %v1855_v59  ;;  %v1899_v18 = vmul.f32 %v6682_v4, %v5264_v43  ;;  %v1994_v14 = vsel %vm887_vm1, %v1992_v42, %v1993_v32  ;;  %v1997_v36 = vrot.slane %v1895_v2, 2  ;;  %v6685_v57 = vld [vmem:[#allocation42_spill] sm:$0xff]  ;;  %v6686_v59 = vld [vmem:[#allocation63_spill] sm:$0xff] }
 0x181   : > { %v1998_v41 = vrot.slane %v1896_v45, 2  ;;  %v1900_v19 = vmul.f32 %v6683_v5, %v5264_v43  ;;  %v1901_v38 = vmul.f32 %v6684_v39, %v5264_v43  ;;  %v5386_v16 = vadd.f32 %v1991_v53, %v1856_v37  ;;  %v6687_v39 = vld [vmem:[#allocation36_spill] sm:$0xff]  ;;  %2127 = vst.msk [vmem:[%s5653_s17] sm:$0xff] %vm2126_vm2, %v5373_v1 }
 0x182   : > { %v5389_v48 = vadd.f32 %v2061_v26, %v6685_v57  ;;  %v1902_v46 = vmul.f32 %v6686_v59, %v5264_v43  ;;  %v1996_v15 = vsel %vm887_vm1, %v1993_v32, %v1995_v61  ;;  %v2000_v23 = vrot.slane %v1897_v54, 2  ;;  %v6688_v54 = vld [vmem:[#allocation27_spill] sm:$0xff]  ;;  %v6689_v57 = vld [vmem:[#allocation78_spill] sm:$0xff]  ;;  %2128 = vst.msk [vmem:[%s5653_s17 + $0x8] sm:$0xff] %vm2126_vm2, %v5375_v51 }
 0x183   : > { %v5394_v2 = vadd.f32 %v1994_v14, %v1857_v29  ;;  %v2159_v45 = vsel %vm2126_vm2, %v5373_v1, 0.0  ;;  %v2160_v42 = vsel %vm2126_vm2, %v5375_v51, 0.0  ;;  %v2162_v37 = vsel %vm2126_vm2, %v5377_v3, 0.0  ;;  %2129 = vst.msk [vmem:[%s5653_s17 + $0x10] sm:$0xff] %vm2126_vm2, %v5377_v3 }
 0x184   : > { %v1999_v53 = vsel %vm887_vm1, %v1997_v36, %v1998_v41  ;;  %v2002_v26 = vrot.slane %v1898_v58, 2  ;;  %v2003_v4 = vrot.slane %v1899_v18, 2  ;;  %v2161_v5 = vadd.f32 %v2160_v42, %v2159_v45  ;;  %v6690_v18 = vld [vmem:[#allocation34_spill] sm:$0xff]  ;;  %2130 = vst.msk [vmem:[%s5653_s17 + $0x18] sm:$0xff] %vm2126_vm2, %v5386_v16 }
 0x185   : > { %v1860_v32 = vadd.f32 %v5226_v20, %v6687_v39  ;;  %v1861_v29 = vadd.f32 %v5229_v13, %v6688_v54  ;;  %v5407_v61 = vadd.f32 %v1996_v15, %v1858_v8  ;;  %v2164_v14 = vsel %vm2126_vm2, %v5386_v16, 0.0  ;;  %v6691_v20 = vld [vmem:[#allocation35_spill] sm:$0xff]  ;;  %2131 = vst.msk [vmem:[%s5653_s17 + $0x20] sm:$0xff] %vm2126_vm2, %v5394_v2 }
 0x186   : > { %v1903_v59 = vmul.f32 %v6689_v57, %v5264_v43  ;;  %v2001_v31 = vsel %vm887_vm1, %v1998_v41, %v2000_v23  ;;  %v2005_v36 = vrot.slane %v1900_v19, 2  ;;  %v2163_v58 = vadd.f32 %v2162_v37, %v2161_v5  ;;  %v6693_v19 = vld [vmem:[#allocation41_spill] sm:$0xff]  ;;  %2158 = vst.msk [vmem:[%s5653_s17 + $0xf8] sm:$0xff] %vm2126_vm2, %v5389_v48 }
 0x187   : > { %v1904_v45 = vmul.f32 %v6690_v18, %v5264_v43  ;;  %v1905_v42 = vmul.f32 %v6691_v20, %v5264_v43  ;;  %v5418_v39 = vadd.f32 %v1999_v53, %v1859_v49  ;;  %v2166_v13 = vsel %vm2126_vm2, %v5394_v2, 0.0  ;;  %v6694_v53 = vld [vmem:[#allocation39_spill] sm:$0xff]  ;;  %2132 = vst.msk [vmem:[%s5653_s17 + $0x28] sm:$0xff] %vm2126_vm2, %v5407_v61 }
 0x188   : > { %v2004_v8 = vsel %vm887_vm1, %v2002_v26, %v2003_v4  ;;  %v2007_v15 = vrot.slane %v1901_v38, 2  ;;  %v2008_v54 = vrot.slane %v1902_v46, 2  ;;  %v2165_v57 = vadd.f32 %v2164_v14, %v2163_v58  ;;  %v6695_v46 = vld [vmem:[#allocation40_spill] sm:$0xff] }
 0x189   : > { %v1862_v41 = vadd.f32 %v5233_v33, %v6692_v50  ;;  %v1863_v23 = vadd.f32 %v5236_v47, %v6693_v19  ;;  %v5427_v37 = vadd.f32 %v2001_v31, %v1860_v32  ;;  %v2168_v49 = vsel %vm2126_vm2, %v5407_v61, 0.0  ;;  %v6696_v33 = vld [vmem:[#allocation44_spill] sm:$0xff]  ;;  %2133 = vst.msk [vmem:[%s5653_s17 + $0x30] sm:$0xff] %vm2126_vm2, %v5418_v39 }
 0x18a   : > { %v1906_v5 = vmul.f32 %v6694_v53, %v5264_v43  ;;  %v2006_v18 = vsel %vm887_vm1, %v2003_v4, %v2005_v36  ;;  %v2010_v26 = vrot.slane %v1903_v59, 2  ;;  %v2167_v38 = vadd.f32 %v2166_v13, %v2165_v57  ;;  %v6697_v53 = vld [vmem:[#allocation32_spill] sm:$0xff]  ;;  %v6698_v59 = vld [vmem:[#allocation33_spill] sm:$0xff] }
 0x18b   : > { %v1907_v14 = vmul.f32 %v6695_v46, %v5264_v43  ;;  %v1908_v50 = vmul.f32 %v6696_v33, %v5264_v43  ;;  %v5438_v58 = vadd.f32 %v2004_v8, %v1861_v29  ;;  %v2170_v47 = vsel %vm2126_vm2, %v5418_v39, 0.0  ;;  %v6699_v8 = vld [vmem:[#allocation45_spill] sm:$0xff]  ;;  %2134 = vst.msk [vmem:[%s5653_s17 + $0x38] sm:$0xff] %vm2126_vm2, %v5427_v37 }
 0x18c   : > { %v2009_v31 = vsel %vm887_vm1, %v2007_v15, %v2008_v54  ;;  %v2012_v32 = vrot.slane %v1904_v45, 2  ;;  %v2013_v20 = vrot.slane %v1905_v42, 2  ;;  %v2169_v19 = vadd.f32 %v2168_v49, %v2167_v38  ;;  %v6700_v42 = vld [vmem:[#allocation49_spill] sm:$0xff] }
 0x18d   : > { %v1864_v4 = vadd.f32 %v5241_v12, %v6697_v53  ;;  %v1865_v36 = vadd.f32 %v5259_v27, %v6698_v59  ;;  %v5447_v13 = vadd.f32 %v2006_v18, %v1862_v41  ;;  %v2172_v29 = vsel %vm2126_vm2, %v5427_v37, 0.0  ;;  %v6701_v12 = vld [vmem:[#allocation50_spill] sm:$0xff]  ;;  %2135 = vst.msk [vmem:[%s5653_s17 + $0x40] sm:$0xff] %vm2126_vm2, %v5438_v58 }
 0x18e   : > { %v1909_v57 = vmul.f32 %v6699_v8, %v5264_v43  ;;  %v2011_v46 = vsel %vm887_vm1, %v2008_v54, %v2010_v26  ;;  %v2015_v15 = vrot.slane %v1906_v5, 2  ;;  %v2171_v45 = vadd.f32 %v2170_v47, %v2169_v19  ;;  %v6702_v8 = vld [vmem:[#allocation46_spill] sm:$0xff]  ;;  %v6703_v5 = vld [vmem:[#allocation37_spill] sm:$0xff] }
 0x18f   : > { %v1910_v49 = vmul.f32 %v6700_v42, %v5264_v43  ;;  %v1911_v38 = vmul.f32 %v6701_v12, %v5264_v43  ;;  %v5458_v33 = vadd.f32 %v2009_v31, %v1863_v23  ;;  %v2174_v27 = vsel %vm2126_vm2, %v5438_v58, 0.0  ;;  %v6704_v31 = vld [vmem:[#allocation55_spill] sm:$0xff]  ;;  %2136 = vst.msk [vmem:[%s5653_s17 + $0x48] sm:$0xff] %vm2126_vm2, %v5447_v13 }
 0x190   : > { %v2014_v41 = vsel %vm887_vm1, %v2012_v32, %v2013_v20  ;;  %v2017_v18 = vrot.slane %v1907_v14, 2  ;;  %v2018_v53 = vrot.slane %v1908_v50, 2  ;;  %v2173_v59 = vadd.f32 %v2172_v29, %v2171_v45  ;;  %v6705_v50 = vld [vmem:[#allocation59_spill] sm:$0xff] }
 0x191   : > { %v1866_v54 = vadd.f32 %v5267_v22, %v6702_v8  ;;  %v1867_v26 = vadd.f32 %v5270_v6, %v6703_v5  ;;  %v5467_v47 = vadd.f32 %v2011_v46, %v1864_v4  ;;  %v2176_v23 = vsel %vm2126_vm2, %v5447_v13, 0.0  ;;  %v6706_v22 = vld [vmem:[#allocation60_spill] sm:$0xff]  ;;  %2137 = vst.msk [vmem:[%s5653_s17 + $0x50] sm:$0xff] %vm2126_vm2, %v5458_v33 }
 0x192   : > { %v1912_v19 = vmul.f32 %v6704_v31, %v5264_v43  ;;  %v2016_v42 = vsel %vm887_vm1, %v2013_v20, %v2015_v15  ;;  %v2020_v32 = vrot.slane %v1909_v57, 2  ;;  %v2175_v14 = vadd.f32 %v2174_v27, %v2173_v59  ;;  %v6707_v31 = vld [vmem:[#allocation38_spill] sm:$0xff]  ;;  %v6708_v57 = vld [vmem:[#allocation51_spill] sm:$0xff] }
 0x193   : > { %v1913_v29 = vmul.f32 %v6705_v50, %v5264_v43  ;;  %v1914_v45 = vmul.f32 %v6706_v22, %v5264_v43  ;;  %v5478_v12 = vadd.f32 %v2014_v41, %v1865_v36  ;;  %v2178_v6 = vsel %vm2126_vm2, %v5458_v33, 0.0  ;;  %v6709_v41 = vld [vmem:[#allocation64_spill] sm:$0xff]  ;;  %2138 = vst.msk [vmem:[%s5653_s17 + $0x58] sm:$0xff] %vm2126_vm2, %v5467_v47 }
 0x194   : > { %v2019_v4 = vsel %vm887_vm1, %v2017_v18, %v2018_v53  ;;  %v2022_v46 = vrot.slane %v1910_v49, 2  ;;  %v2023_v8 = vrot.slane %v1911_v38, 2  ;;  %v2177_v5 = vadd.f32 %v2176_v23, %v2175_v14  ;;  %v6710_v38 = vld [vmem:[#allocation65_spill] sm:$0xff] }
 0x195   : > { %v1868_v20 = vadd.f32 %v5273_v62, %v6707_v31  ;;  %v1869_v15 = vadd.f32 %v5276_v10, %v6708_v57  ;;  %v5487_v27 = vadd.f32 %v2016_v42, %v1866_v54  ;;  %v2180_v36 = vsel %vm2126_vm2, %v5467_v47, 0.0  ;;  %v6711_v62 = vld [vmem:[#allocation66_spill] sm:$0xff]  ;;  %2139 = vst.msk [vmem:[%s5653_s17 + $0x60] sm:$0xff] %vm2126_vm2, %v5478_v12 }
 0x196   : > { %v1915_v59 = vmul.f32 %v6709_v41, %v5264_v43  ;;  %v2021_v50 = vsel %vm887_vm1, %v2018_v53, %v2020_v32  ;;  %v2025_v18 = vrot.slane %v1912_v19, 2  ;;  %v2179_v49 = vadd.f32 %v2178_v6, %v2177_v5  ;;  %v6712_v41 = vld [vmem:[#allocation73_spill] sm:$0xff]  ;;  %v6713_v19 = vld [vmem:[#allocation80_spill] sm:$0xff] }
 0x197   : > { %v1916_v23 = vmul.f32 %v6710_v38, %v5264_v43  ;;  %v1917_v14 = vmul.f32 %v6711_v62, %v5264_v43  ;;  %v5498_v22 = vadd.f32 %v2019_v4, %v1867_v26  ;;  %v2182_v10 = vsel %vm2126_vm2, %v5478_v12, 0.0  ;;  %v6714_v4 = vld [vmem:[#allocation67_spill] sm:$0xff]  ;;  %2140 = vst.msk [vmem:[%s5653_s17 + $0x68] sm:$0xff] %vm2126_vm2, %v5487_v27 }
 0x198   : > { %v2024_v54 = vsel %vm887_vm1, %v2022_v46, %v2023_v8  ;;  %v2027_v42 = vrot.slane %v1913_v29, 2  ;;  %v2028_v31 = vrot.slane %v1914_v45, 2  ;;  %v2181_v57 = vadd.f32 %v2180_v36, %v2179_v49  ;;  %v6715_v45 = vld [vmem:[#allocation70_spill] sm:$0xff] }
 0x199   : > { %v1870_v53 = vadd.f32 %v5279_v63, %v6712_v41  ;;  %v1871_v32 = vadd.f32 %v5282_v55, %v6713_v19  ;;  %v5507_v6 = vadd.f32 %v2021_v50, %v1868_v20  ;;  %v2184_v26 = vsel %vm2126_vm2, %v5487_v27, 0.0  ;;  %v6716_v63 = vld [vmem:[#allocation71_spill] sm:$0xff]  ;;  %2141 = vst.msk [vmem:[%s5653_s17 + $0x70] sm:$0xff] %vm2126_vm2, %v5498_v22 }
 0x19a   : > { %v1918_v5 = vmul.f32 %v6714_v4, %v5264_v43  ;;  %v2026_v38 = vsel %vm887_vm1, %v2023_v8, %v2025_v18  ;;  %v2030_v46 = vrot.slane %v1915_v59, 2  ;;  %v2183_v29 = vadd.f32 %v2182_v10, %v2181_v57  ;;  %v6717_v4 = vld [vmem:[#allocation81_spill] sm:$0xff]  ;;  %v6718_v59 = vld [vmem:[#allocation82_spill] sm:$0xff] }
 0x19b   : > { %v1919_v36 = vmul.f32 %v6715_v45, %v5264_v43  ;;  %v1920_v49 = vmul.f32 %v6716_v63, %v5264_v43  ;;  %v5518_v62 = vadd.f32 %v2024_v54, %v1869_v15  ;;  %v2186_v55 = vsel %vm2126_vm2, %v5498_v22, 0.0  ;;  %v6719_v54 = vld [vmem:[#allocation3_spill] sm:$0xff]  ;;  %2142 = vst.msk [vmem:[%s5653_s17 + $0x78] sm:$0xff] %vm2126_vm2, %v5507_v6 }
 0x19c   : > { %v2029_v20 = vsel %vm887_vm1, %v2027_v42, %v2028_v31  ;;  %v2032_v50 = vrot.slane %v1916_v23, 2  ;;  %v2033_v41 = vrot.slane %v1917_v14, 2  ;;  %v2185_v19 = vadd.f32 %v2184_v26, %v2183_v29  ;;  %v6720_v14 = vld [vmem:[#allocation2_spill] sm:$0xff] }
 0x19d   : > { %v1872_v8 = vadd.f32 %v5285_v34, %v6717_v4  ;;  %v1873_v18 = vadd.f32 %v5289_v17, %v6718_v59  ;;  %v5527_v10 = vadd.f32 %v2026_v38, %v1870_v53  ;;  %v2188_v15 = vsel %vm2126_vm2, %v5507_v6, 0.0  ;;  %v6721_v34 = vld [vmem:[#allocation4_spill] sm:$0xff]  ;;  %2143 = vst.msk [vmem:[%s5653_s17 + $0x80] sm:$0xff] %vm2126_vm2, %v5518_v62 }
 0x19e   : > { %v1921_v57 = vmul.f32 %v6719_v54, %v5264_v43  ;;  %v2031_v45 = vsel %vm887_vm1, %v2028_v31, %v2030_v46  ;;  %v2035_v42 = vrot.slane %v1918_v5, 2  ;;  %v2187_v23 = vadd.f32 %v2186_v55, %v2185_v19  ;;  %v6722_v54 = vld [vmem:[#allocation83_spill] sm:$0xff]  ;;  %v6723_v5 = vld [vmem:[#allocation84_spill] sm:$0xff] }
 0x19f   : > { %v1922_v26 = vmul.f32 %v6720_v14, %v5264_v43  ;;  %v1923_v29 = vmul.f32 %v6721_v34, %v5264_v43  ;;  %v5538_v63 = vadd.f32 %v2029_v20, %v1871_v32  ;;  %v2190_v17 = vsel %vm2126_vm2, %v5518_v62, 0.0  ;;  %v6724_v20 = vld [vmem:[#allocation6_spill] sm:$0xff]  ;;  %2144 = vst.msk [vmem:[%s5653_s17 + $0x88] sm:$0xff] %vm2126_vm2, %v5527_v10 }
 0x1a0   : > { %v2034_v53 = vsel %vm887_vm1, %v2032_v50, %v2033_v41  ;;  %v2037_v38 = vrot.slane %v1919_v36, 2  ;;  %v2038_v4 = vrot.slane %v1920_v49, 2  ;;  %v2189_v59 = vadd.f32 %v2188_v15, %v2187_v23  ;;  %v6725_v49 = vld [vmem:[#allocation79_spill] sm:$0xff] }
 0x1a1   : > { %v1874_v31 = vadd.f32 %v5292_v56, %v6722_v54  ;;  %v1875_v46 = vadd.f32 %v5295_v60, %v6723_v5  ;;  %v5547_v55 = vadd.f32 %v2031_v45, %v1872_v8  ;;  %v2192_v32 = vsel %vm2126_vm2, %v5527_v10, 0.0  ;;  %v6726_v56 = vld [vmem:[#allocation16_spill] sm:$0xff]  ;;  %2145 = vst.msk [vmem:[%s5653_s17 + $0x90] sm:$0xff] %vm2126_vm2, %v5538_v63 }
 0x1a2   : > { %v1924_v19 = vmul.f32 %v6724_v20, %v5264_v43  ;;  %v2036_v14 = vsel %vm887_vm1, %v2033_v41, %v2035_v42  ;;  %v2040_v50 = vrot.slane %v1921_v57, 2  ;;  %v2191_v36 = vadd.f32 %v2190_v17, %v2189_v59  ;;  %v6727_v57 = vld [vmem:[#allocation25_spill] sm:$0xff] }
 0x1a3   : > { %v1925_v15 = vmul.f32 %v6725_v49, %v5264_v43  ;;  %v1926_v23 = vmul.f32 %v6726_v56, %v5264_v43  ;;  %v5558_v60 = vadd.f32 %v2034_v53, %v1873_v18  ;;  %v2194_v8 = vsel %vm2126_vm2, %v5538_v63, 0.0  ;;  %v6728_v17 = vld [vmem:[#allocation5_spill] sm:$0xff]  ;;  %v6729_v53 = vld [vmem:[#allocation19_spill] sm:$0xff]  ;;  %2146 = vst.msk [vmem:[%s5653_s17 + $0x98] sm:$0xff] %vm2126_vm2, %v5547_v55 }
 0x1a4   : > { %v2039_v45 = vsel %vm887_vm1, %v2037_v38, %v2038_v4  ;;  %v2042_v34 = vrot.slane %v1922_v26, 2  ;;  %v2043_v54 = vrot.slane %v1923_v29, 2  ;;  %v2193_v41 = vadd.f32 %v2192_v32, %v2191_v36  ;;  %v2660_v29 = vld [vmem:[%s2749_s28 + $0x168] sm:$0xff] }
 0x1a5   : > { %v1876_v42 = vadd.f32 %v5298_v28, %v6727_v57  ;;  %v1877_v59 = vadd.f32 %v5301_v35, %v6728_v17  ;;  %v5567_v5 = vadd.f32 %v2036_v14, %v1874_v31  ;;  %v2196_v18 = vsel %vm2126_vm2, %v5547_v55, 0.0  ;;  %v2661_v28 = vld [vmem:[%s2749_s28 + $0x170] sm:$0xff]  ;;  %2147 = vst.msk [vmem:[%s5653_s17 + $0xa0] sm:$0xff] %vm2126_vm2, %v5558_v60 }
 0x1a6   : > { %v1927_v20 = vmul.f32 %v6729_v53, %v5264_v43  ;;  %v2041_v49 = vsel %vm887_vm1, %v2038_v4, %v2040_v50  ;;  %v2045_v38 = vrot.slane %v1924_v19, 2  ;;  %v2195_v26 = vadd.f32 %v2194_v8, %v2193_v41  ;;  %v6730_v19 = vld [vmem:[#allocation7_spill] sm:$0xff] }
 0x1a7   : > { %v1928_v32 = vmul.f32 %v2660_v29, %v5264_v43  ;;  %v1929_v36 = vmul.f32 %v2661_v28, %v5264_v43  ;;  %v5578_v35 = vadd.f32 %v2039_v45, %v1875_v46  ;;  %v2198_v31 = vsel %vm2126_vm2, %v5558_v60, 0.0  ;;  %v2662_v45 = vld [vmem:[%s2749_s28 + $0x178] sm:$0x3]  ;;  %2148 = vst.msk [vmem:[%s5653_s17 + $0xa8] sm:$0xff] %vm2126_vm2, %v5567_v5  ;;  %s411_s28 = scalar_lea.vmem %s5881_s5, %s2573_s25 }
 0x1a8   : > { %v2044_v14 = vsel %vm887_vm1, %v2042_v34, %v2043_v54  ;;  %v2047_v56 = vrot.slane %v1925_v15, 2  ;;  %v2048_v57 = vrot.slane %v1926_v23, 2  ;;  %v2197_v17 = vadd.f32 %v2196_v18, %v2195_v26  ;;  %v6731_v18 = vld [vmem:[#allocation10_spill] sm:$0xff]  ;;  %v6732_v28 = vld [vmem:[#allocation13_spill] sm:$0xff] }
 0x1a9   : > { %v1813_v4 = vsel %vm645_vm0, %v1811_v44, %v1812_v40  ;;  %v1878_v50 = vadd.f32 %v5316_v7, %v6730_v19  ;;  %v5590_v8 = vadd.f32 %v2041_v49, %v1876_v42  ;;  %v2200_v46 = vsel %vm2126_vm2, %v5567_v5, 0.0  ;;  %2149 = vst.msk [vmem:[%s5653_s17 + $0xb0] sm:$0xff] %vm2126_vm2, %v5578_v35 }
 0x1aa   : > { %v1930_v34 = vmul.f32 %v2662_v45, %v5264_v43  ;;  %v2046_v15 = vsel %vm887_vm1, %v2043_v54, %v2045_v38  ;;  %v2050_v23 = vrot.slane %v1927_v20, 2  ;;  %v2199_v41 = vadd.f32 %v2198_v31, %v2197_v17  ;;  %v6733_v54 = vld [vmem:[#allocation12_spill] sm:$0xff]  ;;  %v6737_v17 = vld [vmem:[#allocation14_spill] sm:$0xff] }
 0x1ab   : > { %v1879_v0 = vadd.f32 %v5336_v11, %v6731_v18  ;;  %v1931_v44 = vmul.f32 %v5264_v43, %v6581_v25  ;;  %v5601_v53 = vadd.f32 %v2044_v14, %v1877_v59  ;;  %v2202_v7 = vsel %vm2126_vm2, %v5578_v35, 0.0  ;;  %v6734_v38 = vld [vmem:[#allocation8_spill] sm:$0xff]  ;;  %2150 = vst.msk [vmem:[%s5653_s17 + $0xb8] sm:$0xff] %vm2126_vm2, %v5590_v8 }
 0x1ac   : > { %v2049_v42 = vsel %vm887_vm1, %v2047_v56, %v2048_v57  ;;  %v2052_v49 = vrot.slane %v1928_v32, 2  ;;  %v2053_v26 = vrot.slane %v1929_v36, 2  ;;  %v2201_v29 = vadd.f32 %v2200_v46, %v2199_v41  ;;  %v6736_v56 = vld [vmem:[#allocation11_spill] sm:$0xff]  ;;  %v6738_v46 = vld [vmem:[#allocation9_spill] sm:$0xff] }
 0x1ad   : > { %v1641_v20 = vadd.f32 %v6733_v54, %v6732_v28  ;;  %v1880_v31 = vadd.f32 %v5339_v30, %v6734_v38  ;;  %v5610_v11 = vadd.f32 %v2046_v15, %v1878_v50  ;;  %v2204_v25 = vsel %vm2126_vm2, %v5590_v8, 0.0  ;;  %v6739_v15 = vld [vmem:[#allocation21_spill] sm:$0xff]  ;;  %2151 = vst.msk [vmem:[%s5653_s17 + $0xc0] sm:$0xff] %vm2126_vm2, %v5601_v53 }
 0x1ae   : > { %v6735_v43 = vrot.slane %v5196_v52, 1  ;;  %v2051_v32 = vsel %vm887_vm1, %v2048_v57, %v2050_v23  ;;  %v2055_v36 = vrot.slane %v1930_v34, 2  ;;  %v2203_v14 = vadd.f32 %v2202_v7, %v2201_v29 }
 0x1af   : > { %v1642_v19 = vadd.f32 %v6737_v17, %v6736_v56  ;;  %v1881_v30 = vadd.f32 %v1813_v4, %v6738_v46  ;;  %v5623_v50 = vadd.f32 %v2049_v42, %v1879_v0  ;;  %v2206_v45 = vsel %vm2126_vm2, %v5601_v53, 0.0  ;;  %2152 = vst.msk [vmem:[%s5653_s17 + $0xc8] sm:$0xff] %vm2126_vm2, %v5610_v11 }
 0x1b0   : > { %v1815_v59 = vsel %vm645_vm0, %v1812_v40, %v6735_v43  ;;  %v6740_v52 = vrot.slane %v6739_v15, 1  ;;  %v6741_v9 = vrot.slane %v5201_v21, 1  ;;  %v2054_v57 = vsel %vm887_vm1, %v2052_v49, %v2053_v26 }
 0x1b1   : > { %v2057_v34 = vrot.slane %v1931_v44, 2  ;;  %v2205_v23 = vadd.f32 %v2204_v25, %v2203_v14  ;;  %v1882_v41 = vadd.f32 %v1815_v59, %v1641_v20  ;;  %v5633_v18 = vadd.f32 %v2051_v32, %v1880_v31  ;;  %2153 = vst.msk [vmem:[%s5653_s17 + $0xd0] sm:$0xff] %vm2126_vm2, %v5623_v50 }
 0x1b2   : > { %v1818_v40 = vsel %vm645_vm0, %v6741_v9, %v6740_v52  ;;  %v2208_v4 = vsel %vm2126_vm2, %v5610_v11, 0.0  ;;  %v2056_v0 = vsel %vm887_vm1, %v2053_v26, %v2055_v36  ;;  %v5638_v29 = vadd.f32 %v2054_v57, %v1881_v30 }
 0x1b3   : > { %v2207_v7 = vadd.f32 %v2206_v45, %v2205_v23  ;;  %v1883_v42 = vadd.f32 %v1818_v40, %v1642_v19  ;;  %v2210_v21 = vsel %vm2126_vm2, %v5623_v50, 0.0  ;;  %v6742_v28 = vrot.slane %v5333_v24, 2  ;;  %2154 = vst.msk [vmem:[%s5653_s17 + $0xd8] sm:$0xff] %vm2126_vm2, %v5633_v18 }
 0x1b4   : > { %v5645_v54 = vadd.f32 %v2056_v0, %v1882_v41  ;;  %v2212_v20 = vsel %vm2126_vm2, %v5633_v18, 0.0  ;;  %v2214_v26 = vsel %vm2126_vm2, %v5638_v29, 0.0  ;;  %v2220_v36 = vsel %vm2126_vm2, %v5389_v48, 0.0  ;;  %2155 = vst.msk [vmem:[%s5653_s17 + $0xe0] sm:$0xff] %vm2126_vm2, %v5638_v29 }
 0x1b5   : > { %v2059_v44 = vsel %vm887_vm1, %v2057_v34, %v6742_v28  ;;  %v2209_v49 = vadd.f32 %v2208_v4, %v2207_v7  ;;  %v2687_v17 = vmov 2048.0  }
 0x1b6   : > { %v5655_v24 = vadd.f32 %v2059_v44, %v1883_v42  ;;  %v2216_v25 = vsel %vm2126_vm2, %v5645_v54, 0.0  ;;  %2156 = vst.msk [vmem:[%s5653_s17 + $0xe8] sm:$0xff] %vm2126_vm2, %v5645_v54  ;;  %2613 = vrcp.f32 %v2687_v17 }
 0x1b7   : > { %v2211_v38 = vadd.f32 %v2210_v21, %v2209_v49 }
 0x1b8   : > { %v2218_v59 = vsel %vm2126_vm2, %v5655_v24, 0.0  ;;  %2157 = vst.msk [vmem:[%s5653_s17 + $0xf0] sm:$0xff] %vm2126_vm2, %v5655_v24 }
 0x1b9   : > { %v2213_v31 = vadd.f32 %v2212_v20, %v2211_v38 }
 0x1bb   : > { %v2215_v43 = vadd.f32 %v2214_v26, %v2213_v31 }
 0x1bc   : > { %v2614_v19 = vpop.eup %2613 }
 0x1bd   : > { %v2217_v32 = vadd.f32 %v2216_v25, %v2215_v43  ;;  %v2232_v46 = vmul.f32 2048.0, %v2614_v19  ;;  %vm2236_vm3 = vweird.f32 %v2614_v19 }
 0x1bf   : > { %v2219_v14 = vadd.f32 %v2218_v59, %v2217_v32  ;;  %v2233_v30 = vsub.f32 1.0, %v2232_v46 }
 0x1c1   : > { %v2221_v56 = vadd.f32 %v2220_v36, %v2219_v14  ;;  %v2234_v9 = vmul.f32 %v2614_v19, %v2233_v30 }
 0x1c3   : > { %2222 = vadd.xlane.f32.xlu0 %v2221_v56  ;;  %v2235_v34 = vadd.f32 %v2614_v19, %v2234_v9 }
 0x1c5   : > { %v2237_v4 = vsel %vm2236_vm3, %v2614_v19, %v2235_v34 }
 0x236   : > { %v2223_v45 = vpop.xlane.xlu0 %2222 }
 0x237   : > { %v2224_v15 = vrot.slane %v2223_v45, 4 }
 0x239   : > { %v2225_v52 = vadd.f32 %v2224_v15, %v2223_v45 }
 0x23b   : > { %v2226_v40 = vrot.slane %v2225_v52, 2 }
 0x23d   : > { %v2227_v57 = vadd.f32 %v2226_v40, %v2225_v52 }
 0x23f   : > { %v2228_v23 = vrot.slane %v2227_v57, 1 }
 0x241   : > { %v2229_v41 = vadd.f32 %v2228_v23, %v2227_v57 }
 0x243   : > { %2581 = vpush %v2229_v41 }
 0x244   : > { %2583 = vpush %v2237_v4 }
 0x274   : > { %s5761_s22 = spop %2581 }
 0x275   : > { %s2584_s23 = spop %2583 }
 0x276   : > { %s2239_s24 = smul.f32 %s2584_s23, %s5761_s22 }
 0x278   : > { %v5764_v0 = vstv %s2239_s24 }
 0x279   : > { %v2241_v7 = vsub.f32 %v5373_v1, %v5764_v0  ;;  %v2242_v42 = vsub.f32 %v5375_v51, %v5764_v0  ;;  %v2243_v21 = vsub.f32 %v5377_v3, %v5764_v0  ;;  %v2244_v28 = vsub.f32 %v5386_v16, %v5764_v0 }
 0x27a   : > { %v2245_v20 = vsub.f32 %v5394_v2, %v5764_v0  ;;  %v2246_v26 = vsub.f32 %v5407_v61, %v5764_v0  ;;  %v2247_v3 = vsub.f32 %v5418_v39, %v5764_v0  ;;  %v2248_v2 = vsub.f32 %v5427_v37, %v5764_v0 }
 0x27b   : > { %v2273_v44 = vmul.f32 %v2241_v7, %v2241_v7  ;;  %v2274_v49 = vmul.f32 %v2242_v42, %v2242_v42  ;;  %v2275_v38 = vmul.f32 %v2243_v21, %v2243_v21  ;;  %v2276_v31 = vmul.f32 %v2244_v28, %v2244_v28 }
 0x27c   : > { %v2277_v43 = vmul.f32 %v2245_v20, %v2245_v20  ;;  %v2278_v32 = vmul.f32 %v2246_v26, %v2246_v26  ;;  %v2249_v14 = vsub.f32 %v5438_v58, %v5764_v0  ;;  %v2279_v56 = vmul.f32 %v2247_v3, %v2247_v3 }
 0x27d   : > { %v2305_v1 = vsel %vm2126_vm2, %v2273_v44, 0.0  ;;  %v2306_v51 = vsel %vm2126_vm2, %v2274_v49, 0.0  ;;  %v2308_v16 = vsel %vm2126_vm2, %v2275_v38, 0.0  ;;  %v2310_v36 = vsel %vm2126_vm2, %v2276_v31, 0.0 }
 0x27e   : > { %v2307_v25 = vadd.f32 %v2306_v51, %v2305_v1  ;;  %v2312_v17 = vsel %vm2126_vm2, %v2277_v43, 0.0  ;;  %v2250_v39 = vsub.f32 %v5447_v13, %v5764_v0  ;;  %v2280_v46 = vmul.f32 %v2248_v2, %v2248_v2 }
 0x27f   : > { %v2314_v30 = vsel %vm2126_vm2, %v2278_v32, 0.0  ;;  %v2251_v37 = vsub.f32 %v5458_v33, %v5764_v0  ;;  %v2281_v15 = vmul.f32 %v2249_v14, %v2249_v14  ;;  %v2316_v52 = vsel %vm2126_vm2, %v2279_v56, 0.0 }
 0x280   : > { %v2309_v59 = vadd.f32 %v2308_v16, %v2307_v25  ;;  %v2252_v58 = vsub.f32 %v5467_v47, %v5764_v0  ;;  %v2282_v40 = vmul.f32 %v2250_v39, %v2250_v39  ;;  %v2318_v57 = vsel %vm2126_vm2, %v2280_v46, 0.0 }
 0x281   : > { %v2253_v13 = vsub.f32 %v5478_v12, %v5764_v0  ;;  %v2283_v23 = vmul.f32 %v2251_v37, %v2251_v37  ;;  %v2320_v41 = vsel %vm2126_vm2, %v2281_v15, 0.0  ;;  %v2254_v33 = vsub.f32 %v5487_v27, %v5764_v0 }
 0x282   : > { %v2311_v61 = vadd.f32 %v2310_v36, %v2309_v59  ;;  %v2284_v7 = vmul.f32 %v2252_v58, %v2252_v58  ;;  %v2322_v42 = vsel %vm2126_vm2, %v2282_v40, 0.0  ;;  %v2255_v47 = vsub.f32 %v5498_v22, %v5764_v0 }
 0x283   : > { %v2285_v28 = vmul.f32 %v2253_v13, %v2253_v13  ;;  %v2324_v44 = vsel %vm2126_vm2, %v2283_v23, 0.0  ;;  %v2256_v12 = vsub.f32 %v5507_v6, %v5764_v0  ;;  %v2286_v20 = vmul.f32 %v2254_v33, %v2254_v33 }
 0x284   : > { %v2313_v19 = vadd.f32 %v2312_v17, %v2311_v61  ;;  %v2326_v38 = vsel %vm2126_vm2, %v2284_v7, 0.0  ;;  %v2257_v27 = vsub.f32 %v5518_v62, %v5764_v0  ;;  %v2287_v31 = vmul.f32 %v2255_v47, %v2255_v47 }
 0x285   : > { %v2328_v1 = vsel %vm2126_vm2, %v2285_v28, 0.0  ;;  %v2258_v22 = vsub.f32 %v5527_v10, %v5764_v0  ;;  %v2288_v25 = vmul.f32 %v2256_v12, %v2256_v12  ;;  %v2330_v3 = vsel %vm2126_vm2, %v2286_v20, 0.0 }
 0x286   : > { %v2315_v45 = vadd.f32 %v2314_v30, %v2313_v19  ;;  %v2259_v6 = vsub.f32 %v5538_v63, %v5764_v0  ;;  %v2289_v16 = vmul.f32 %v2257_v27, %v2257_v27  ;;  %v2332_v59 = vsel %vm2126_vm2, %v2287_v31, 0.0 }
 0x287   : > { %v2260_v62 = vsub.f32 %v5547_v55, %v5764_v0  ;;  %v2290_v32 = vmul.f32 %v2258_v22, %v2258_v22  ;;  %v2334_v36 = vsel %vm2126_vm2, %v2288_v25, 0.0  ;;  %v2261_v10 = vsub.f32 %v5558_v60, %v5764_v0 }
 0x288   : > { %v2317_v9 = vadd.f32 %v2316_v52, %v2315_v45  ;;  %v2291_v14 = vmul.f32 %v2259_v6, %v2259_v6  ;;  %v2336_v56 = vsel %vm2126_vm2, %v2289_v16, 0.0  ;;  %v2262_v63 = vsub.f32 %v5567_v5, %v5764_v0 }
 0x289   : > { %v2292_v19 = vmul.f32 %v2260_v62, %v2260_v62  ;;  %v2338_v39 = vsel %vm2126_vm2, %v2290_v32, 0.0  ;;  %v2263_v55 = vsub.f32 %v5578_v35, %v5764_v0  ;;  %v2293_v30 = vmul.f32 %v2261_v10, %v2261_v10 }
 0x28a   : > { %v2319_v34 = vadd.f32 %v2318_v57, %v2317_v9  ;;  %v2340_v45 = vsel %vm2126_vm2, %v2291_v14, 0.0  ;;  %v2264_v60 = vsub.f32 %v5590_v8, %v5764_v0  ;;  %v2294_v15 = vmul.f32 %v2262_v63, %v2262_v63 }
 0x28b   : > { %v2342_v52 = vsel %vm2126_vm2, %v2292_v19, 0.0  ;;  %v2265_v5 = vsub.f32 %v5601_v53, %v5764_v0  ;;  %v2295_v58 = vmul.f32 %v2263_v55, %v2263_v55  ;;  %v2344_v40 = vsel %vm2126_vm2, %v2293_v30, 0.0 }
 0x28c   : > { %v2321_v4 = vadd.f32 %v2320_v41, %v2319_v34  ;;  %v2266_v35 = vsub.f32 %v5610_v11, %v5764_v0  ;;  %v2296_v34 = vmul.f32 %v2264_v60, %v2264_v60  ;;  %v2346_v13 = vsel %vm2126_vm2, %v2294_v15, 0.0 }
 0x28d   : > { %v2267_v8 = vsub.f32 %v5623_v50, %v5764_v0  ;;  %v2297_v41 = vmul.f32 %v2265_v5, %v2265_v5  ;;  %v2268_v53 = vsub.f32 %v5633_v18, %v5764_v0  ;;  %v2269_v11 = vsub.f32 %v5638_v29, %v5764_v0 }
 0x28e   : > { %v2323_v21 = vadd.f32 %v2322_v42, %v2321_v4  ;;  %v2348_v4 = vsel %vm2126_vm2, %v2295_v58, 0.0  ;;  %v2298_v7 = vmul.f32 %v2266_v35, %v2266_v35  ;;  %v2350_v42 = vsel %vm2126_vm2, %v2296_v34, 0.0 }
 0x28f   : > { %v2299_v47 = vmul.f32 %v2267_v8, %v2267_v8  ;;  %v2352_v28 = vsel %vm2126_vm2, %v2297_v41, 0.0  ;;  %v2270_v50 = vsub.f32 %v5645_v54, %v5764_v0  ;;  %v2271_v18 = vsub.f32 %v5655_v24, %v5764_v0 }
 0x290   : > { %v2325_v49 = vadd.f32 %v2324_v44, %v2323_v21  ;;  %v2354_v12 = vsel %vm2126_vm2, %v2298_v7, 0.0  ;;  %v2272_v29 = vsub.f32 %v5389_v48, %v5764_v0  ;;  %v2377_v14 = vlaneseq }
 0x291   : > { %v2302_v31 = vmul.f32 %v2270_v50, %v2270_v50  ;;  %v2303_v22 = vmul.f32 %v2271_v18, %v2271_v18 }
 0x292   : > { %v2327_v26 = vadd.f32 %v2326_v38, %v2325_v49  ;;  %v2300_v49 = vmul.f32 %v2268_v53, %v2268_v53  ;;  %v2301_v38 = vmul.f32 %v2269_v11, %v2269_v11 }
 0x293   : > { %v2364_v24 = vsel %vm2126_vm2, %v2303_v22, 0.0 }
 0x294   : > { %v2329_v51 = vadd.f32 %v2328_v1, %v2327_v26  ;;  %v2356_v26 = vsel %vm2126_vm2, %v2299_v47, 0.0  ;;  %v2358_v1 = vsel %vm2126_vm2, %v2300_v49, 0.0  ;;  %v2360_v54 = vsel %vm2126_vm2, %v2301_v38, 0.0 }
 0x296   : > { %v2331_v43 = vadd.f32 %v2330_v3, %v2329_v51  ;;  %v2304_v3 = vmul.f32 %v2272_v29, %v2272_v29 }
 0x298   : > { %v2333_v2 = vadd.f32 %v2332_v59, %v2331_v43  ;;  %v2362_v43 = vsel %vm2126_vm2, %v2302_v31, 0.0  ;;  %v2366_v59 = vsel %vm2126_vm2, %v2304_v3, 0.0 }
 0x29a   : > { %v2335_v61 = vadd.f32 %v2334_v36, %v2333_v2 }
 0x29c   : > { %v2337_v17 = vadd.f32 %v2336_v56, %v2335_v61  ;;  %v2378_v56 = vand.u32 127, %v2377_v14 }
 0x29e   : > { %v2339_v46 = vadd.f32 %v2338_v39, %v2337_v17  ;;  %vm2379_vm4 = vcmp.lt.s32.totalorder %v2378_v56, 64  ;;  %v2380_v17 = vstv %s5761_s22 }
 0x2a0   : > { %v2341_v37 = vadd.f32 %v2340_v45, %v2339_v46 }
 0x2a2   : > { %v2343_v9 = vadd.f32 %v2342_v52, %v2341_v37 }
 0x2a4   : > { %v2345_v57 = vadd.f32 %v2344_v40, %v2343_v9 }
 0x2a6   : > { %v2347_v23 = vadd.f32 %v2346_v13, %v2345_v57 }
 0x2a8   : > { %v2349_v33 = vadd.f32 %v2348_v4, %v2347_v23 }
 0x2aa   : > { %v2351_v21 = vadd.f32 %v2350_v42, %v2349_v33 }
 0x2ac   : > { %v2353_v44 = vadd.f32 %v2352_v28, %v2351_v21 }
 0x2ae   : > { %v2355_v20 = vadd.f32 %v2354_v12, %v2353_v44 }
 0x2b0   : > { %v2357_v27 = vadd.f32 %v2356_v26, %v2355_v20 }
 0x2b2   : > { %v2359_v51 = vadd.f32 %v2358_v1, %v2357_v27 }
 0x2b4   : > { %v2361_v25 = vadd.f32 %v2360_v54, %v2359_v51 }
 0x2b6   : > { %v2363_v6 = vadd.f32 %v2362_v43, %v2361_v25 }
 0x2b8   : > { %v2365_v16 = vadd.f32 %v2364_v24, %v2363_v6 }
 0x2ba   : > { %v2367_v2 = vadd.f32 %v2366_v59, %v2365_v16 }
 0x2bc   : > { %2368 = vadd.xlane.f32.xlu0 %v2367_v2 }
 0x32f   : > { %v2369_v48 = vpop.xlane.xlu0 %2368 }
 0x330   : > { %v2370_v0 = vrot.slane %v2369_v48, 4 }
 0x332   : > { %v2371_v62 = vadd.f32 %v2370_v0, %v2369_v48 }
 0x334   : > { %v2372_v32 = vrot.slane %v2371_v62, 2 }
 0x336   : > { %v2373_v36 = vadd.f32 %v2372_v32, %v2371_v62 }
 0x338   : > { %v2374_v61 = vrot.slane %v2373_v36, 1 }
 0x33a   : > { %v2375_v10 = vadd.f32 %v2374_v61, %v2373_v36 }
 0x33c   : > { %2585 = vpush %v2375_v10 }
 0x36d   : > { %s2586_s29 = spop %2585 }
 0x36e   : > { %v2381_v63 = vstv %s2586_s29 }
 0x36f   : > { %v2382_v19 = vsel %vm2379_vm4, %v2380_v17, %v2381_v63 }
 0x370   : > { %2383 = vst [vmem:[%s411_s28] sm:$0xff] %v2382_v19 }
 0x371 PF: > { %s16_s20 = sadd.s32 1, %s2685_s20   ;;  %s6743_s18 = smov %s2681_s19 }
 0x372   : > { %p13_p5 = scmp.ge.s32.totalorder %s16_s20, 4   ;;  %s6744_s19 = smov %s6746_s21 }
 0x374   :  { %15 = sbr.rel (!%p13_p5) target bundleno = 2 (0x2), region = 84 }

</bundles_post_ra>
